<compile_context>
chip_gen: v7x
topology: tpu7x:2x2x1
jax: 0.10.0
libtpu: 0.0.40
codegen_flags: <defaults>
</compile_context>

<pallas_src>
import functools

import jax
import jax.numpy as jnp
from jax.experimental import pallas as pl
from jax.experimental.pallas import tpu as pltpu

_LANE = 128
_SENTINEL = -1.0  # ce value written to padded pixels; negative => never selected


def _cdiv(a, b):
    return -(-a // b)


def _vmem_limit_bytes():
    """Scoped VMEM limit per generation (v5e/v6e: 64 MiB, v7x: 32 MiB)."""
    cap = 128 * 1024 * 1024
    try:
        info = pltpu.get_tpu_info()
        cap = int(getattr(info, "vmem_capacity_bytes", cap)) or cap
    except Exception:
        cap = 64 * 1024 * 1024
    return max(32 * 1024 * 1024, min(cap // 2, 64 * 1024 * 1024))


# ----------------------------------------------------------------------------
# Kernel 1: per-pixel cross entropy, classes on sublanes, pixels on lanes.
# Consumes NCHW logits viewed as (N, C, H*W) -- no transpose, no pre-cast.
# ----------------------------------------------------------------------------
def _ce_kernel(logits_ref, tgt_ref, ce_ref, *, hw, tl):
    j = pl.program_id(1)
    x = logits_ref[0].astype(jnp.float32)                     # (C, tl)
    t = tgt_ref[0]                                            # (1, tl) int32
    m = jnp.max(x, axis=0, keepdims=True)                     # (1, tl)
    lse = m + jnp.log(jnp.sum(jnp.exp(x - m), axis=0, keepdims=True))
    cls = jax.lax.broadcasted_iota(jnp.int32, x.shape, 0)     # class id / sublane
    picked = jnp.sum(jnp.where(cls == t, x, 0.0), axis=0, keepdims=True)
    ce = lse - picked                                         # (1, tl), always >= 0
    if hw % tl:  # tail tile exists: mark out-of-range pixels with the sentinel
        lane = j * tl + jax.lax.broadcasted_iota(jnp.int32, ce.shape, 1)
        ce = jnp.where(lane < hw, ce, _SENTINEL)
    ce_ref[0] = ce


# ----------------------------------------------------------------------------
# Radix-select pass: 16-bin histogram of a 4-bit digit of the ce bit pattern,
# restricted to keys matching the already-resolved high-bit prefix.
# Grid = (2 cores "parallel", row-blocks "arbitrary"); output accumulates in
# the resident (16, 128) block per core.
# ----------------------------------------------------------------------------
def _radix_hist_kernel(prefix_ref, ce_ref, hist_ref, *, shift, rows, s2, bpc):
    c = pl.program_id(0)
    i = pl.program_id(1)

    @pl.when(i == 0)
    def _():
        hist_ref[...] = jnp.zeros_like(hist_ref)

    key = pltpu.bitcast(ce_ref[...], jnp.int32)               # (s2, 128)
    blk = c * bpc + i                                         # logical block id
    row = blk * s2 + jax.lax.broadcasted_iota(jnp.int32, key.shape, 0)
    valid = (row < rows) & (key >= 0)                         # drops sentinel / tail
    if shift + 4 <= 31:
        hi = prefix_ref[0] >> (shift + 4)
        valid = valid & ((key >> (shift + 4)) == hi)
    digit = jnp.where(valid, (key >> shift) & 15, -1)
    for b in range(16):
        hist_ref[b:b + 1, :] += jnp.sum(
            (digit == b).astype(jnp.float32), axis=0, keepdims=True)


# ----------------------------------------------------------------------------
# Kernel 2: masked sum / count given the exact threshold (per-lane partials
# accumulated in the resident output block, one (1, 128) add per step).
# ----------------------------------------------------------------------------
def _masked_mean_kernel(th_ref, ce_ref, sum_ref, cnt_ref, *, rows, s2, bpc):
    c = pl.program_id(0)
    i = pl.program_id(1)

    @pl.when(i == 0)
    def _():
        sum_ref[...] = jnp.zeros_like(sum_ref)
        cnt_ref[...] = jnp.zeros_like(cnt_ref)

    th = th_ref[0]
    ce = ce_ref[...]                                          # (s2, 128) f32
    blk = c * bpc + i
    row = blk * s2 + jax.lax.broadcasted_iota(jnp.int32, ce.shape, 0)
    sel = (row < rows) & (ce >= th)                           # sentinel < 0 <= th
    sum_ref[0:1, :] += jnp.sum(jnp.where(sel, ce, 0.0), axis=0, keepdims=True)
    cnt_ref[0:1, :] += jnp.sum(jnp.where(sel, 1.0, 0.0), axis=0, keepdims=True)


def ohem_cross_entropy(inputs, targets, selected_ratio=0.5):
    """inputs: (N, C, H, W) float logits; targets: (N, H, W) int labels."""
    N, C, H, W = inputs.shape
    HW = H * W
    P = N * HW
    n_sel = min(max(int(selected_ratio * N * HW), 1), P)

    vmem_limit = _vmem_limit_bytes()
    itemsize = inputs.dtype.itemsize

    # ---- kernel-1 pixel tile derived from the VMEM budget --------------------
    per_pixel = 2 * (C * itemsize + 8)            # dbl-buffered logits + tgt + ce
    tl_cap = max(_LANE, min(8192, (vmem_limit * 3 // 5) // per_pixel))
    tl_cap = (tl_cap // _LANE) * _LANE
    if HW >= _LANE:
        tl = max(_LANE, min(tl_cap, (HW // _LANE) * _LANE))
    else:
        tl = HW                                   # single full-dim block
    n1 = _cdiv(HW, tl)
    hw_pad = n1 * tl

    logits3 = inputs.reshape(N, C, HW)            # free view, no NCHW->NHWC copy
    tgt3 = targets.reshape(N, 1, HW).astype(jnp.int32)

    ce = pl.pallas_call(
        functools.partial(_ce_kernel, hw=HW, tl=tl),
        out_shape=jax.ShapeDtypeStruct((N, 1, hw_pad), jnp.float32),
        grid_spec=pltpu.PrefetchScalarGridSpec(
            num_scalar_prefetch=0,
            grid=(N, n1),
            in_specs=[
                pl.BlockSpec((1, C, tl), lambda n, j: (n, 0, j)),
                pl.BlockSpec((1, 1, tl), lambda n, j: (n, 0, j)),
            ],
            out_specs=pl.BlockSpec((1, 1, tl), lambda n, j: (n, 0, j)),
        ),
        compiler_params=pltpu.CompilerParams(
            dimension_semantics=("parallel", "parallel"),
            vmem_limit_bytes=vmem_limit),
    )(logits3, tgt3)

    # ---- flat, lane-dense view of ce for the selection / reduction passes ----
    total = N * hw_pad
    if total % _LANE:
        pad = (-total) % _LANE
        ce2 = jnp.pad(ce.reshape(-1), (0, pad), constant_values=_SENTINEL)
        total += pad
        ce2 = ce2.reshape(total // _LANE, _LANE)
    else:
        ce2 = ce.reshape(total // _LANE, _LANE)
    rows = total // _LANE

    # ---- block geometry shared by the radix passes and the final reduction ---
    s2_cap = min(8192, (vmem_limit // 4) // (_LANE * 4))      # ~4 MiB blocks
    s2_cap = max(8, (s2_cap // 8) * 8)
    s2 = rows if rows <= s2_cap else s2_cap
    nblocks = _cdiv(rows, s2)
    bpc = _cdiv(nblocks, 2)                                   # blocks per core
    last_blk = nblocks - 1

    def _blk_map(c, i):  # clamp the 2-core overhang onto a real block (masked)
        return (jnp.minimum(c * bpc + i, last_blk), 0)

    reduce_params = pltpu.CompilerParams(
        dimension_semantics=("parallel", "arbitrary"),
        vmem_limit_bytes=vmem_limit)

    # ---- exact k-th largest ce via 8x 4-bit radix-select (streaming O(P)) ----
    prefix = jnp.zeros((1,), jnp.int32)
    k_rem = jnp.asarray(n_sel, jnp.int32)
    for p in range(8):
        shift = 28 - 4 * p
        hist2d = pl.pallas_call(
            functools.partial(_radix_hist_kernel, shift=shift, rows=rows,
                              s2=s2, bpc=bpc),
            out_shape=jax.ShapeDtypeStruct((2 * 16, _LANE), jnp.float32),
            grid_spec=pltpu.PrefetchScalarGridSpec(
                num_scalar_prefetch=0,
                grid=(2, bpc),
                in_specs=[
                    pl.BlockSpec(memory_space=pltpu.MemorySpace.SMEM),
                    pl.BlockSpec((s2, _LANE), _blk_map),
                ],
                out_specs=pl.BlockSpec((16, _LANE), lambda c, i: (c, 0)),
            ),
            compiler_params=reduce_params,
        )(prefix, ce2)
        # tiny glue on 16 bins: pick the bin holding the k_rem-th largest
        hist = jnp.sum(hist2d.reshape(2, 16, _LANE).astype(jnp.int32),
                       axis=(0, 2))                            # (16,)
        cnt_ge = jnp.cumsum(hist[::-1])[::-1]                  # count(digit >= b)
        d = jnp.sum((cnt_ge >= k_rem).astype(jnp.int32)) - 1
        cnt_ge_pad = jnp.concatenate([cnt_ge, jnp.zeros((1,), jnp.int32)])
        k_rem = k_rem - cnt_ge_pad[d + 1]
        prefix = prefix | (d << shift)
    th = jax.lax.bitcast_convert_type(prefix, jnp.float32)    # == k-th largest ce

    # ---- kernel 2: masked sum / count at the exact threshold -----------------
    s_out, c_out = pl.pallas_call(
        functools.partial(_masked_mean_kernel, rows=rows, s2=s2, bpc=bpc),
        out_shape=(
            jax.ShapeDtypeStruct((2 * 8, _LANE), jnp.float32),
            jax.ShapeDtypeStruct((2 * 8, _LANE), jnp.float32),
        ),
        grid_spec=pltpu.PrefetchScalarGridSpec(
            num_scalar_prefetch=0,
            grid=(2, bpc),
            in_specs=[
                pl.BlockSpec(memory_space=pltpu.MemorySpace.SMEM),
                pl.BlockSpec((s2, _LANE), _blk_map),
            ],
            out_specs=[
                pl.BlockSpec((8, _LANE), lambda c, i: (c, 0)),
                pl.BlockSpec((8, _LANE), lambda c, i: (c, 0)),
            ],
        ),
        compiler_params=reduce_params,
    )(th, ce2)

    return jnp.sum(s_out) / jnp.sum(c_out)


def _reference(inputs, targets, selected_ratio=0.5):
    """Pure-JAX reference mirroring the PyTorch forward."""
    N, C, H, W = inputs.shape
    P = N * H * W
    n_selected = int(selected_ratio * N * H * W)
    logits = jnp.transpose(inputs, (0, 2, 3, 1)).reshape(P, C)
    t = targets.reshape(P).astype(jnp.int32)
    logp = jax.nn.log_softmax(logits, axis=-1)
    ce = -jnp.take_along_axis(logp, t[:, None], axis=-1)[:, 0]
    vals = jax.lax.top_k(ce, n_selected)[0]
    th = vals[n_selected - 1]
    mask = (ce >= th).astype(jnp.float32)
    return jnp.sum(ce * mask) / jnp.sum(mask)


if __name__ == "__main__":
    key = jax.random.PRNGKey(0)
    k1, k2 = jax.random.split(key)
    N, C, H, W = 2, 4, 16, 16
    inputs = jax.random.normal(k1, (N, C, H, W), dtype=jnp.float32)
    targets = jax.random.randint(k2, (N, H, W), 0, C, dtype=jnp.int32)

    fn = jax.jit(lambda x, t: ohem_cross_entropy(x, t, selected_ratio=0.5))
    loss = jax.block_until_ready(fn(inputs, targets))

    ref = jax.block_until_ready(_reference(inputs, targets, selected_ratio=0.5))
    assert jnp.allclose(loss, ref, rtol=1e-5, atol=1e-5), (loss, ref)
    print("KERNEL_OK")
</pallas_src>

<mosaic_0001>
module attributes {stable_mosaic.version = 11 : i64} {
  func.func @_ce_kernel(%arg0: i32, %arg1: i32, %arg2: memref<1x4x256xf32, #tpu.memory_space<vmem>>, %arg3: memref<1x1x256xi32, #tpu.memory_space<vmem>>, %arg4: memref<1x1x256xf32, #tpu.memory_space<vmem>>) attributes {dimension_semantics = [#tpu.dimension_semantics<parallel>, #tpu.dimension_semantics<parallel>], iteration_bounds = array<i64: 2, 1>, scalar_prefetch = 0 : i64, scratch_operands = 0 : i64, tpu.core_type = #tpu.core_type<tc>, window_params = [{transform_indices = @transform_0, window_bounds = array<i64: 1, 4, 256>}, {transform_indices = @transform_1, window_bounds = array<i64: 1, 1, 256>}, {transform_indices = @transform_2, window_bounds = array<i64: 1, 1, 256>}]} {
    %c0 = arith.constant 0 : index
    %c0_0 = arith.constant 0 : index
    %c0_1 = arith.constant 0 : index
    %0 = vector.load %arg2[%c0, %c0_0, %c0_1] : memref<1x4x256xf32, #tpu.memory_space<vmem>>, vector<1x4x256xf32>
    %1 = vector.shape_cast %0 : vector<1x4x256xf32> to vector<4x256xf32>
    %c0_2 = arith.constant 0 : index
    %c0_3 = arith.constant 0 : index
    %c0_4 = arith.constant 0 : index
    %2 = vector.load %arg3[%c0_2, %c0_3, %c0_4] : memref<1x1x256xi32, #tpu.memory_space<vmem>>, vector<1x1x256xi32>
    %3 = vector.shape_cast %2 : vector<1x1x256xi32> to vector<1x256xi32>
    %cst = arith.constant dense<0xFF800000> : vector<256xf32>
    %4 = vector.multi_reduction <maximumf>, %1, %cst [0] : vector<4x256xf32> to vector<256xf32>
    %5 = vector.shape_cast %4 : vector<256xf32> to vector<1x256xf32>
    %6 = vector.broadcast %5 : vector<1x256xf32> to vector<4x256xf32>
    %7 = arith.subf %1, %6 : vector<4x256xf32>
    %8 = math.exp %7 : vector<4x256xf32>
    %cst_5 = arith.constant dense<0.000000e+00> : vector<256xf32>
    %9 = vector.multi_reduction <add>, %8, %cst_5 [0] : vector<4x256xf32> to vector<256xf32>
    %10 = vector.shape_cast %9 : vector<256xf32> to vector<1x256xf32>
    %11 = math.log %10 : vector<1x256xf32>
    %12 = arith.addf %5, %11 : vector<1x256xf32>
    %13 = tpu.iota {dimensions = array<i32: 0>} : vector<4x256xi32>
    %14 = vector.broadcast %3 : vector<1x256xi32> to vector<4x256xi32>
    %15 = arith.cmpi eq, %13, %14 : vector<4x256xi32>
    %cst_6 = arith.constant 0.000000e+00 : f32
    %16 = vector.broadcast %cst_6 : f32 to vector<4x256xf32>
    %17 = arith.select %15, %1, %16 : vector<4x256xi1>, vector<4x256xf32>
    %cst_7 = arith.constant dense<0.000000e+00> : vector<256xf32>
    %18 = vector.multi_reduction <add>, %17, %cst_7 [0] : vector<4x256xf32> to vector<256xf32>
    %19 = vector.shape_cast %18 : vector<256xf32> to vector<1x256xf32>
    %20 = arith.subf %12, %19 : vector<1x256xf32>
    %c0_8 = arith.constant 0 : index
    %c0_9 = arith.constant 0 : index
    %c0_10 = arith.constant 0 : index
    %21 = vector.load %arg4[%c0_8, %c0_9, %c0_10] : memref<1x1x256xf32, #tpu.memory_space<vmem>>, vector<1x1x256xf32>
    %22 = vector.shape_cast %21 : vector<1x1x256xf32> to vector<1x256xf32>
    %23 = vector.shape_cast %20 : vector<1x256xf32> to vector<1x1x256xf32>
    tpu.vector_store %arg4[%c0_8, %c0_9, %c0_10], %23 {strides = array<i32>} : memref<1x1x256xf32, #tpu.memory_space<vmem>>, vector<1x1x256xf32>,
    return
  }
  func.func @transform_0(%arg0: i32, %arg1: i32) -> (i32, i32, i32) {
    %c0_i32 = arith.constant 0 : i32
    %c0_i32_0 = arith.constant 0 : i32
    return %arg0, %c0_i32, %arg1 : i32, i32, i32
  }
  func.func @transform_1(%arg0: i32, %arg1: i32) -> (i32, i32, i32) {
    %c0_i32 = arith.constant 0 : i32
    %c0_i32_0 = arith.constant 0 : i32
    return %arg0, %c0_i32, %arg1 : i32, i32, i32
  }
  func.func @transform_2(%arg0: i32, %arg1: i32) -> (i32, i32, i32) {
    %c0_i32 = arith.constant 0 : i32
    %c0_i32_0 = arith.constant 0 : i32
    return %arg0, %c0_i32, %arg1 : i32, i32, i32
  }
}

module attributes {stable_mosaic.version = 11 : i64} {
  func.func @_radix_hist_kernel(%arg0: i32, %arg1: i32, %arg2: memref<1xi32, #tpu.memory_space<smem>>, %arg3: memref<4x128xf32, #tpu.memory_space<vmem>>, %arg4: memref<16x128xf32, #tpu.memory_space<vmem>>) attributes {dimension_semantics = [#tpu.dimension_semantics<parallel>, #tpu.dimension_semantics<arbitrary>], iteration_bounds = array<i64: 2, 1>, scalar_prefetch = 0 : i64, scratch_operands = 0 : i64, tpu.core_type = #tpu.core_type<tc>, window_params = [{transform_indices = @transform_0, window_bounds = array<i64: 1>}, {transform_indices = @transform_1, window_bounds = array<i64: 4, 128>}, {transform_indices = @transform_2, window_bounds = array<i64: 16, 128>}]} {
    %c0_i32 = arith.constant 0 : i32
    %0 = arith.cmpi eq, %arg1, %c0_i32 : i32
    %1 = arith.extui %0 : i1 to i32
    %c0_i32_0 = arith.constant 0 : i32
    %2 = arith.cmpi ne, %1, %c0_i32_0 : i32
    scf.if %2 {
      %cst_72 = arith.constant 0.000000e+00 : f32
      %166 = vector.broadcast %cst_72 : f32 to vector<16x128xf32>
      %c0_73 = arith.constant 0 : index
      %c0_74 = arith.constant 0 : index
      %167 = vector.load %arg4[%c0_73, %c0_74] : memref<16x128xf32, #tpu.memory_space<vmem>>, vector<16x128xf32>
      tpu.vector_store %arg4[%c0_73, %c0_74], %166 {strides = array<i32>} : memref<16x128xf32, #tpu.memory_space<vmem>>, vector<16x128xf32>,
    } else {
    }
    %c0 = arith.constant 0 : index
    %c0_1 = arith.constant 0 : index
    %3 = vector.load %arg3[%c0, %c0_1] : memref<4x128xf32, #tpu.memory_space<vmem>>, vector<4x128xf32>
    %4 = tpu.bitcast %3 : vector<4x128xf32> -> vector<4x128xi32>
    %c1_i32 = arith.constant 1 : i32
    %5 = arith.muli %arg0, %c1_i32 : i32
    %6 = arith.addi %5, %arg1 : i32
    %c4_i32 = arith.constant 4 : i32
    %7 = arith.muli %6, %c4_i32 : i32
    %8 = tpu.iota {dimensions = array<i32: 0>} : vector<4x128xi32>
    %9 = vector.broadcast %7 : i32 to vector<4x128xi32>
    %10 = arith.addi %9, %8 : vector<4x128xi32>
    %c4_i32_2 = arith.constant 4 : i32
    %11 = vector.broadcast %c4_i32_2 : i32 to vector<4x128xi32>
    %12 = arith.cmpi slt, %10, %11 : vector<4x128xi32>
    %c0_i32_3 = arith.constant 0 : i32
    %13 = vector.broadcast %c0_i32_3 : i32 to vector<4x128xi32>
    %14 = arith.cmpi sge, %4, %13 : vector<4x128xi32>
    %15 = arith.andi %12, %14 : vector<4x128xi1>
    %c28_i32 = arith.constant 28 : i32
    %16 = vector.broadcast %c28_i32 : i32 to vector<4x128xi32>
    %17 = arith.shrsi %4, %16 : vector<4x128xi32>
    %c15_i32 = arith.constant 15 : i32
    %18 = vector.broadcast %c15_i32 : i32 to vector<4x128xi32>
    %19 = arith.andi %17, %18 : vector<4x128xi32>
    %c-1_i32 = arith.constant -1 : i32
    %20 = vector.broadcast %c-1_i32 : i32 to vector<4x128xi32>
    %21 = arith.select %15, %19, %20 : vector<4x128xi1>, vector<4x128xi32>
    %c0_4 = arith.constant 0 : index
    %c0_5 = arith.constant 0 : index
    %22 = vector.load %arg4[%c0_4, %c0_5] : memref<16x128xf32, #tpu.memory_space<vmem>>, vector<1x128xf32>
    %c0_i32_6 = arith.constant 0 : i32
    %23 = vector.broadcast %c0_i32_6 : i32 to vector<4x128xi32>
    %24 = arith.cmpi eq, %21, %23 : vector<4x128xi32>
    %25 = arith.extui %24 : vector<4x128xi1> to vector<4x128xi32>
    %26 = arith.sitofp %25 : vector<4x128xi32> to vector<4x128xf32>
    %cst = arith.constant dense<0.000000e+00> : vector<128xf32>
    %27 = vector.multi_reduction <add>, %26, %cst [0] : vector<4x128xf32> to vector<128xf32>
    %28 = vector.shape_cast %27 : vector<128xf32> to vector<1x128xf32>
    %29 = arith.addf %22, %28 : vector<1x128xf32>
    %c0_7 = arith.constant 0 : index
    %c0_8 = arith.constant 0 : index
    %30 = vector.load %arg4[%c0_7, %c0_8] : memref<16x128xf32, #tpu.memory_space<vmem>>, vector<1x128xf32>
    tpu.vector_store %arg4[%c0_7, %c0_8], %29 {strides = array<i32>} : memref<16x128xf32, #tpu.memory_space<vmem>>, vector<1x128xf32>,
    %c1 = arith.constant 1 : index
    %c0_9 = arith.constant 0 : index
    %31 = vector.load %arg4[%c1, %c0_9] : memref<16x128xf32, #tpu.memory_space<vmem>>, vector<1x128xf32>
    %c1_i32_10 = arith.constant 1 : i32
    %32 = vector.broadcast %c1_i32_10 : i32 to vector<4x128xi32>
    %33 = arith.cmpi eq, %21, %32 : vector<4x128xi32>
    %34 = arith.extui %33 : vector<4x128xi1> to vector<4x128xi32>
    %35 = arith.sitofp %34 : vector<4x128xi32> to vector<4x128xf32>
    %cst_11 = arith.constant dense<0.000000e+00> : vector<128xf32>
    %36 = vector.multi_reduction <add>, %35, %cst_11 [0] : vector<4x128xf32> to vector<128xf32>
    %37 = vector.shape_cast %36 : vector<128xf32> to vector<1x128xf32>
    %38 = arith.addf %31, %37 : vector<1x128xf32>
    %c1_12 = arith.constant 1 : index
    %c0_13 = arith.constant 0 : index
    %39 = vector.load %arg4[%c1_12, %c0_13] : memref<16x128xf32, #tpu.memory_space<vmem>>, vector<1x128xf32>
    tpu.vector_store %arg4[%c1_12, %c0_13], %38 {strides = array<i32>} : memref<16x128xf32, #tpu.memory_space<vmem>>, vector<1x128xf32>,
    %c2 = arith.constant 2 : index
    %c0_14 = arith.constant 0 : index
    %40 = vector.load %arg4[%c2, %c0_14] : memref<16x128xf32, #tpu.memory_space<vmem>>, vector<1x128xf32>
    %c2_i32 = arith.constant 2 : i32
    %41 = vector.broadcast %c2_i32 : i32 to vector<4x128xi32>
    %42 = arith.cmpi eq, %21, %41 : vector<4x128xi32>
    %43 = arith.extui %42 : vector<4x128xi1> to vector<4x128xi32>
    %44 = arith.sitofp %43 : vector<4x128xi32> to vector<4x128xf32>
    %cst_15 = arith.constant dense<0.000000e+00> : vector<128xf32>
    %45 = vector.multi_reduction <add>, %44, %cst_15 [0] : vector<4x128xf32> to vector<128xf32>
    %46 = vector.shape_cast %45 : vector<128xf32> to vector<1x128xf32>
    %47 = arith.addf %40, %46 : vector<1x128xf32>
    %c2_16 = arith.constant 2 : index
    %c0_17 = arith.constant 0 : index
    %48 = vector.load %arg4[%c2_16, %c0_17] : memref<16x128xf32, #tpu.memory_space<vmem>>, vector<1x128xf32>
    tpu.vector_store %arg4[%c2_16, %c0_17], %47 {strides = array<i32>} : memref<16x128xf32, #tpu.memory_space<vmem>>, vector<1x128xf32>,
    %c3 = arith.constant 3 : index
    %c0_18 = arith.constant 0 : index
    %49 = vector.load %arg4[%c3, %c0_18] : memref<16x128xf32, #tpu.memory_space<vmem>>, vector<1x128xf32>
    %c3_i32 = arith.constant 3 : i32
    %50 = vector.broadcast %c3_i32 : i32 to vector<4x128xi32>
    %51 = arith.cmpi eq, %21, %50 : vector<4x128xi32>
    %52 = arith.extui %51 : vector<4x128xi1> to vector<4x128xi32>
    %53 = arith.sitofp %52 : vector<4x128xi32> to vector<4x128xf32>
    %cst_19 = arith.constant dense<0.000000e+00> : vector<128xf32>
    %54 = vector.multi_reduction <add>, %53, %cst_19 [0] : vector<4x128xf32> to vector<128xf32>
    %55 = vector.shape_cast %54 : vector<128xf32> to vector<1x128xf32>
    %56 = arith.addf %49, %55 : vector<1x128xf32>
    %c3_20 = arith.constant 3 : index
    %c0_21 = arith.constant 0 : index
    %57 = vector.load %arg4[%c3_20, %c0_21] : memref<16x128xf32, #tpu.memory_space<vmem>>, vector<1x128xf32>
    tpu.vector_store %arg4[%c3_20, %c0_21], %56 {strides = array<i32>} : memref<16x128xf32, #tpu.memory_space<vmem>>, vector<1x128xf32>,
    %c4 = arith.constant 4 : index
    %c0_22 = arith.constant 0 : index
    %58 = vector.load %arg4[%c4, %c0_22] : memref<16x128xf32, #tpu.memory_space<vmem>>, vector<1x128xf32>
    %c4_i32_23 = arith.constant 4 : i32
    %59 = vector.broadcast %c4_i32_23 : i32 to vector<4x128xi32>
    %60 = arith.cmpi eq, %21, %59 : vector<4x128xi32>
    %61 = arith.extui %60 : vector<4x128xi1> to vector<4x128xi32>
    %62 = arith.sitofp %61 : vector<4x128xi32> to vector<4x128xf32>
    %cst_24 = arith.constant dense<0.000000e+00> : vector<128xf32>
    %63 = vector.multi_reduction <add>, %62, %cst_24 [0] : vector<4x128xf32> to vector<128xf32>
    %64 = vector.shape_cast %63 : vector<128xf32> to vector<1x128xf32>
    %65 = arith.addf %58, %64 : vector<1x128xf32>
    %c4_25 = arith.constant 4 : index
    %c0_26 = arith.constant 0 : index
    %66 = vector.load %arg4[%c4_25, %c0_26] : memref<16x128xf32, #tpu.memory_space<vmem>>, vector<1x128xf32>
    tpu.vector_store %arg4[%c4_25, %c0_26], %65 {strides = array<i32>} : memref<16x128xf32, #tpu.memory_space<vmem>>, vector<1x128xf32>,
    %c5 = arith.constant 5 : index
    %c0_27 = arith.constant 0 : index
    %67 = vector.load %arg4[%c5, %c0_27] : memref<16x128xf32, #tpu.memory_space<vmem>>, vector<1x128xf32>
    %c5_i32 = arith.constant 5 : i32
    %68 = vector.broadcast %c5_i32 : i32 to vector<4x128xi32>
    %69 = arith.cmpi eq, %21, %68 : vector<4x128xi32>
    %70 = arith.extui %69 : vector<4x128xi1> to vector<4x128xi32>
    %71 = arith.sitofp %70 : vector<4x128xi32> to vector<4x128xf32>
    %cst_28 = arith.constant dense<0.000000e+00> : vector<128xf32>
    %72 = vector.multi_reduction <add>, %71, %cst_28 [0] : vector<4x128xf32> to vector<128xf32>
    %73 = vector.shape_cast %72 : vector<128xf32> to vector<1x128xf32>
    %74 = arith.addf %67, %73 : vector<1x128xf32>
    %c5_29 = arith.constant 5 : index
    %c0_30 = arith.constant 0 : index
    %75 = vector.load %arg4[%c5_29, %c0_30] : memref<16x128xf32, #tpu.memory_space<vmem>>, vector<1x128xf32>
    tpu.vector_store %arg4[%c5_29, %c0_30], %74 {strides = array<i32>} : memref<16x128xf32, #tpu.memory_space<vmem>>, vector<1x128xf32>,
    %c6 = arith.constant 6 : index
    %c0_31 = arith.constant 0 : index
    %76 = vector.load %arg4[%c6, %c0_31] : memref<16x128xf32, #tpu.memory_space<vmem>>, vector<1x128xf32>
    %c6_i32 = arith.constant 6 : i32
    %77 = vector.broadcast %c6_i32 : i32 to vector<4x128xi32>
    %78 = arith.cmpi eq, %21, %77 : vector<4x128xi32>
    %79 = arith.extui %78 : vector<4x128xi1> to vector<4x128xi32>
    %80 = arith.sitofp %79 : vector<4x128xi32> to vector<4x128xf32>
    %cst_32 = arith.constant dense<0.000000e+00> : vector<128xf32>
    %81 = vector.multi_reduction <add>, %80, %cst_32 [0] : vector<4x128xf32> to vector<128xf32>
    %82 = vector.shape_cast %81 : vector<128xf32> to vector<1x128xf32>
    %83 = arith.addf %76, %82 : vector<1x128xf32>
    %c6_33 = arith.constant 6 : index
    %c0_34 = arith.constant 0 : index
    %84 = vector.load %arg4[%c6_33, %c0_34] : memref<16x128xf32, #tpu.memory_space<vmem>>, vector<1x128xf32>
    tpu.vector_store %arg4[%c6_33, %c0_34], %83 {strides = array<i32>} : memref<16x128xf32, #tpu.memory_space<vmem>>, vector<1x128xf32>,
    %c7 = arith.constant 7 : index
    %c0_35 = arith.constant 0 : index
    %85 = vector.load %arg4[%c7, %c0_35] : memref<16x128xf32, #tpu.memory_space<vmem>>, vector<1x128xf32>
    %c7_i32 = arith.constant 7 : i32
    %86 = vector.broadcast %c7_i32 : i32 to vector<4x128xi32>
    %87 = arith.cmpi eq, %21, %86 : vector<4x128xi32>
    %88 = arith.extui %87 : vector<4x128xi1> to vector<4x128xi32>
    %89 = arith.sitofp %88 : vector<4x128xi32> to vector<4x128xf32>
    %cst_36 = arith.constant dense<0.000000e+00> : vector<128xf32>
    %90 = vector.multi_reduction <add>, %89, %cst_36 [0] : vector<4x128xf32> to vector<128xf32>
    %91 = vector.shape_cast %90 : vector<128xf32> to vector<1x128xf32>
    %92 = arith.addf %85, %91 : vector<1x128xf32>
    %c7_37 = arith.constant 7 : index
    %c0_38 = arith.constant 0 : index
    %93 = vector.load %arg4[%c7_37, %c0_38] : memref<16x128xf32, #tpu.memory_space<vmem>>, vector<1x128xf32>
    tpu.vector_store %arg4[%c7_37, %c0_38], %92 {strides = array<i32>} : memref<16x128xf32, #tpu.memory_space<vmem>>, vector<1x128xf32>,
    %c8 = arith.constant 8 : index
    %c0_39 = arith.constant 0 : index
    %94 = vector.load %arg4[%c8, %c0_39] : memref<16x128xf32, #tpu.memory_space<vmem>>, vector<1x128xf32>
    %c8_i32 = arith.constant 8 : i32
    %95 = vector.broadcast %c8_i32 : i32 to vector<4x128xi32>
    %96 = arith.cmpi eq, %21, %95 : vector<4x128xi32>
    %97 = arith.extui %96 : vector<4x128xi1> to vector<4x128xi32>
    %98 = arith.sitofp %97 : vector<4x128xi32> to vector<4x128xf32>
    %cst_40 = arith.constant dense<0.000000e+00> : vector<128xf32>
    %99 = vector.multi_reduction <add>, %98, %cst_40 [0] : vector<4x128xf32> to vector<128xf32>
    %100 = vector.shape_cast %99 : vector<128xf32> to vector<1x128xf32>
    %101 = arith.addf %94, %100 : vector<1x128xf32>
    %c8_41 = arith.constant 8 : index
    %c0_42 = arith.constant 0 : index
    %102 = vector.load %arg4[%c8_41, %c0_42] : memref<16x128xf32, #tpu.memory_space<vmem>>, vector<1x128xf32>
    tpu.vector_store %arg4[%c8_41, %c0_42], %101 {strides = array<i32>} : memref<16x128xf32, #tpu.memory_space<vmem>>, vector<1x128xf32>,
    %c9 = arith.constant 9 : index
    %c0_43 = arith.constant 0 : index
    %103 = vector.load %arg4[%c9, %c0_43] : memref<16x128xf32, #tpu.memory_space<vmem>>, vector<1x128xf32>
    %c9_i32 = arith.constant 9 : i32
    %104 = vector.broadcast %c9_i32 : i32 to vector<4x128xi32>
    %105 = arith.cmpi eq, %21, %104 : vector<4x128xi32>
    %106 = arith.extui %105 : vector<4x128xi1> to vector<4x128xi32>
    %107 = arith.sitofp %106 : vector<4x128xi32> to vector<4x128xf32>
    %cst_44 = arith.constant dense<0.000000e+00> : vector<128xf32>
    %108 = vector.multi_reduction <add>, %107, %cst_44 [0] : vector<4x128xf32> to vector<128xf32>
    %109 = vector.shape_cast %108 : vector<128xf32> to vector<1x128xf32>
    %110 = arith.addf %103, %109 : vector<1x128xf32>
    %c9_45 = arith.constant 9 : index
    %c0_46 = arith.constant 0 : index
    %111 = vector.load %arg4[%c9_45, %c0_46] : memref<16x128xf32, #tpu.memory_space<vmem>>, vector<1x128xf32>
    tpu.vector_store %arg4[%c9_45, %c0_46], %110 {strides = array<i32>} : memref<16x128xf32, #tpu.memory_space<vmem>>, vector<1x128xf32>,
    %c10 = arith.constant 10 : index
    %c0_47 = arith.constant 0 : index
    %112 = vector.load %arg4[%c10, %c0_47] : memref<16x128xf32, #tpu.memory_space<vmem>>, vector<1x128xf32>
    %c10_i32 = arith.constant 10 : i32
    %113 = vector.broadcast %c10_i32 : i32 to vector<4x128xi32>
    %114 = arith.cmpi eq, %21, %113 : vector<4x128xi32>
    %115 = arith.extui %114 : vector<4x128xi1> to vector<4x128xi32>
    %116 = arith.sitofp %115 : vector<4x128xi32> to vector<4x128xf32>
    %cst_48 = arith.constant dense<0.000000e+00> : vector<128xf32>
    %117 = vector.multi_reduction <add>, %116, %cst_48 [0] : vector<4x128xf32> to vector<128xf32>
    %118 = vector.shape_cast %117 : vector<128xf32> to vector<1x128xf32>
    %119 = arith.addf %112, %118 : vector<1x128xf32>
    %c10_49 = arith.constant 10 : index
    %c0_50 = arith.constant 0 : index
    %120 = vector.load %arg4[%c10_49, %c0_50] : memref<16x128xf32, #tpu.memory_space<vmem>>, vector<1x128xf32>
    tpu.vector_store %arg4[%c10_49, %c0_50], %119 {strides = array<i32>} : memref<16x128xf32, #tpu.memory_space<vmem>>, vector<1x128xf32>,
    %c11 = arith.constant 11 : index
    %c0_51 = arith.constant 0 : index
    %121 = vector.load %arg4[%c11, %c0_51] : memref<16x128xf32, #tpu.memory_space<vmem>>, vector<1x128xf32>
    %c11_i32 = arith.constant 11 : i32
    %122 = vector.broadcast %c11_i32 : i32 to vector<4x128xi32>
    %123 = arith.cmpi eq, %21, %122 : vector<4x128xi32>
    %124 = arith.extui %123 : vector<4x128xi1> to vector<4x128xi32>
    %125 = arith.sitofp %124 : vector<4x128xi32> to vector<4x128xf32>
    %cst_52 = arith.constant dense<0.000000e+00> : vector<128xf32>
    %126 = vector.multi_reduction <add>, %125, %cst_52 [0] : vector<4x128xf32> to vector<128xf32>
    %127 = vector.shape_cast %126 : vector<128xf32> to vector<1x128xf32>
    %128 = arith.addf %121, %127 : vector<1x128xf32>
    %c11_53 = arith.constant 11 : index
    %c0_54 = arith.constant 0 : index
    %129 = vector.load %arg4[%c11_53, %c0_54] : memref<16x128xf32, #tpu.memory_space<vmem>>, vector<1x128xf32>
    tpu.vector_store %arg4[%c11_53, %c0_54], %128 {strides = array<i32>} : memref<16x128xf32, #tpu.memory_space<vmem>>, vector<1x128xf32>,
    %c12 = arith.constant 12 : index
    %c0_55 = arith.constant 0 : index
    %130 = vector.load %arg4[%c12, %c0_55] : memref<16x128xf32, #tpu.memory_space<vmem>>, vector<1x128xf32>
    %c12_i32 = arith.constant 12 : i32
    %131 = vector.broadcast %c12_i32 : i32 to vector<4x128xi32>
    %132 = arith.cmpi eq, %21, %131 : vector<4x128xi32>
    %133 = arith.extui %132 : vector<4x128xi1> to vector<4x128xi32>
    %134 = arith.sitofp %133 : vector<4x128xi32> to vector<4x128xf32>
    %cst_56 = arith.constant dense<0.000000e+00> : vector<128xf32>
    %135 = vector.multi_reduction <add>, %134, %cst_56 [0] : vector<4x128xf32> to vector<128xf32>
    %136 = vector.shape_cast %135 : vector<128xf32> to vector<1x128xf32>
    %137 = arith.addf %130, %136 : vector<1x128xf32>
    %c12_57 = arith.constant 12 : index
    %c0_58 = arith.constant 0 : index
    %138 = vector.load %arg4[%c12_57, %c0_58] : memref<16x128xf32, #tpu.memory_space<vmem>>, vector<1x128xf32>
    tpu.vector_store %arg4[%c12_57, %c0_58], %137 {strides = array<i32>} : memref<16x128xf32, #tpu.memory_space<vmem>>, vector<1x128xf32>,
    %c13 = arith.constant 13 : index
    %c0_59 = arith.constant 0 : index
    %139 = vector.load %arg4[%c13, %c0_59] : memref<16x128xf32, #tpu.memory_space<vmem>>, vector<1x128xf32>
    %c13_i32 = arith.constant 13 : i32
    %140 = vector.broadcast %c13_i32 : i32 to vector<4x128xi32>
    %141 = arith.cmpi eq, %21, %140 : vector<4x128xi32>
    %142 = arith.extui %141 : vector<4x128xi1> to vector<4x128xi32>
    %143 = arith.sitofp %142 : vector<4x128xi32> to vector<4x128xf32>
    %cst_60 = arith.constant dense<0.000000e+00> : vector<128xf32>
    %144 = vector.multi_reduction <add>, %143, %cst_60 [0] : vector<4x128xf32> to vector<128xf32>
    %145 = vector.shape_cast %144 : vector<128xf32> to vector<1x128xf32>
    %146 = arith.addf %139, %145 : vector<1x128xf32>
    %c13_61 = arith.constant 13 : index
    %c0_62 = arith.constant 0 : index
    %147 = vector.load %arg4[%c13_61, %c0_62] : memref<16x128xf32, #tpu.memory_space<vmem>>, vector<1x128xf32>
    tpu.vector_store %arg4[%c13_61, %c0_62], %146 {strides = array<i32>} : memref<16x128xf32, #tpu.memory_space<vmem>>, vector<1x128xf32>,
    %c14 = arith.constant 14 : index
    %c0_63 = arith.constant 0 : index
    %148 = vector.load %arg4[%c14, %c0_63] : memref<16x128xf32, #tpu.memory_space<vmem>>, vector<1x128xf32>
    %c14_i32 = arith.constant 14 : i32
    %149 = vector.broadcast %c14_i32 : i32 to vector<4x128xi32>
    %150 = arith.cmpi eq, %21, %149 : vector<4x128xi32>
    %151 = arith.extui %150 : vector<4x128xi1> to vector<4x128xi32>
    %152 = arith.sitofp %151 : vector<4x128xi32> to vector<4x128xf32>
    %cst_64 = arith.constant dense<0.000000e+00> : vector<128xf32>
    %153 = vector.multi_reduction <add>, %152, %cst_64 [0] : vector<4x128xf32> to vector<128xf32>
    %154 = vector.shape_cast %153 : vector<128xf32> to vector<1x128xf32>
    %155 = arith.addf %148, %154 : vector<1x128xf32>
    %c14_65 = arith.constant 14 : index
    %c0_66 = arith.constant 0 : index
    %156 = vector.load %arg4[%c14_65, %c0_66] : memref<16x128xf32, #tpu.memory_space<vmem>>, vector<1x128xf32>
    tpu.vector_store %arg4[%c14_65, %c0_66], %155 {strides = array<i32>} : memref<16x128xf32, #tpu.memory_space<vmem>>, vector<1x128xf32>,
    %c15 = arith.constant 15 : index
    %c0_67 = arith.constant 0 : index
    %157 = vector.load %arg4[%c15, %c0_67] : memref<16x128xf32, #tpu.memory_space<vmem>>, vector<1x128xf32>
    %c15_i32_68 = arith.constant 15 : i32
    %158 = vector.broadcast %c15_i32_68 : i32 to vector<4x128xi32>
    %159 = arith.cmpi eq, %21, %158 : vector<4x128xi32>
    %160 = arith.extui %159 : vector<4x128xi1> to vector<4x128xi32>
    %161 = arith.sitofp %160 : vector<4x128xi32> to vector<4x128xf32>
    %cst_69 = arith.constant dense<0.000000e+00> : vector<128xf32>
    %162 = vector.multi_reduction <add>, %161, %cst_69 [0] : vector<4x128xf32> to vector<128xf32>
    %163 = vector.shape_cast %162 : vector<128xf32> to vector<1x128xf32>
    %164 = arith.addf %157, %163 : vector<1x128xf32>
    %c15_70 = arith.constant 15 : index
    %c0_71 = arith.constant 0 : index
    %165 = vector.load %arg4[%c15_70, %c0_71] : memref<16x128xf32, #tpu.memory_space<vmem>>, vector<1x128xf32>
    tpu.vector_store %arg4[%c15_70, %c0_71], %164 {strides = array<i32>} : memref<16x128xf32, #tpu.memory_space<vmem>>, vector<1x128xf32>,
    return
  }
  func.func @transform_0(%arg0: i32, %arg1: i32) -> i32 {
    %c0_i32 = arith.constant 0 : i32
    %c0_i32_0 = arith.constant 0 : i32
    return %c0_i32 : i32
  }
  func.func @transform_1(%arg0: i32, %arg1: i32) -> (i32, i32) {
    %c1_i32 = arith.constant 1 : i32
    %0 = arith.muli %arg0, %c1_i32 : i32
    %1 = arith.addi %0, %arg1 : i32
    %c0_i32 = arith.constant 0 : i32
    %2 = arith.minsi %1, %c0_i32 : i32
    %c0_i32_0 = arith.constant 0 : i32
    %c0_i32_1 = arith.constant 0 : i32
    return %2, %c0_i32_0 : i32, i32
  }
  func.func @transform_2(%arg0: i32, %arg1: i32) -> (i32, i32) {
    %c0_i32 = arith.constant 0 : i32
    %c0_i32_0 = arith.constant 0 : i32
    return %arg0, %c0_i32 : i32, i32
  }
}

module attributes {stable_mosaic.version = 11 : i64} {
  func.func @_radix_hist_kernel(%arg0: i32, %arg1: i32, %arg2: memref<1xi32, #tpu.memory_space<smem>>, %arg3: memref<4x128xf32, #tpu.memory_space<vmem>>, %arg4: memref<16x128xf32, #tpu.memory_space<vmem>>) attributes {dimension_semantics = [#tpu.dimension_semantics<parallel>, #tpu.dimension_semantics<arbitrary>], iteration_bounds = array<i64: 2, 1>, scalar_prefetch = 0 : i64, scratch_operands = 0 : i64, tpu.core_type = #tpu.core_type<tc>, window_params = [{transform_indices = @transform_0, window_bounds = array<i64: 1>}, {transform_indices = @transform_1, window_bounds = array<i64: 4, 128>}, {transform_indices = @transform_2, window_bounds = array<i64: 16, 128>}]} {
    %c0_i32 = arith.constant 0 : i32
    %0 = arith.cmpi eq, %arg1, %c0_i32 : i32
    %1 = arith.extui %0 : i1 to i32
    %c0_i32_0 = arith.constant 0 : i32
    %2 = arith.cmpi ne, %1, %c0_i32_0 : i32
    scf.if %2 {
      %cst_74 = arith.constant 0.000000e+00 : f32
      %173 = vector.broadcast %cst_74 : f32 to vector<16x128xf32>
      %c0_75 = arith.constant 0 : index
      %c0_76 = arith.constant 0 : index
      %174 = vector.load %arg4[%c0_75, %c0_76] : memref<16x128xf32, #tpu.memory_space<vmem>>, vector<16x128xf32>
      tpu.vector_store %arg4[%c0_75, %c0_76], %173 {strides = array<i32>} : memref<16x128xf32, #tpu.memory_space<vmem>>, vector<16x128xf32>,
    } else {
    }
    %c0 = arith.constant 0 : index
    %c0_1 = arith.constant 0 : index
    %3 = vector.load %arg3[%c0, %c0_1] : memref<4x128xf32, #tpu.memory_space<vmem>>, vector<4x128xf32>
    %4 = tpu.bitcast %3 : vector<4x128xf32> -> vector<4x128xi32>
    %c1_i32 = arith.constant 1 : i32
    %5 = arith.muli %arg0, %c1_i32 : i32
    %6 = arith.addi %5, %arg1 : i32
    %c4_i32 = arith.constant 4 : i32
    %7 = arith.muli %6, %c4_i32 : i32
    %8 = tpu.iota {dimensions = array<i32: 0>} : vector<4x128xi32>
    %9 = vector.broadcast %7 : i32 to vector<4x128xi32>
    %10 = arith.addi %9, %8 : vector<4x128xi32>
    %c4_i32_2 = arith.constant 4 : i32
    %11 = vector.broadcast %c4_i32_2 : i32 to vector<4x128xi32>
    %12 = arith.cmpi slt, %10, %11 : vector<4x128xi32>
    %c0_i32_3 = arith.constant 0 : i32
    %13 = vector.broadcast %c0_i32_3 : i32 to vector<4x128xi32>
    %14 = arith.cmpi sge, %4, %13 : vector<4x128xi32>
    %15 = arith.andi %12, %14 : vector<4x128xi1>
    %c0_4 = arith.constant 0 : index
    %16 = memref.load %arg2[%c0_4] : memref<1xi32, #tpu.memory_space<smem>>
    %c28_i32 = arith.constant 28 : i32
    %17 = arith.shrsi %16, %c28_i32 : i32
    %c28_i32_5 = arith.constant 28 : i32
    %18 = vector.broadcast %c28_i32_5 : i32 to vector<4x128xi32>
    %19 = arith.shrsi %4, %18 : vector<4x128xi32>
    %20 = vector.broadcast %17 : i32 to vector<4x128xi32>
    %21 = arith.cmpi eq, %19, %20 : vector<4x128xi32>
    %22 = arith.andi %15, %21 : vector<4x128xi1>
    %c24_i32 = arith.constant 24 : i32
    %23 = vector.broadcast %c24_i32 : i32 to vector<4x128xi32>
    %24 = arith.shrsi %4, %23 : vector<4x128xi32>
    %c15_i32 = arith.constant 15 : i32
    %25 = vector.broadcast %c15_i32 : i32 to vector<4x128xi32>
    %26 = arith.andi %24, %25 : vector<4x128xi32>
    %c-1_i32 = arith.constant -1 : i32
    %27 = vector.broadcast %c-1_i32 : i32 to vector<4x128xi32>
    %28 = arith.select %22, %26, %27 : vector<4x128xi1>, vector<4x128xi32>
    %c0_6 = arith.constant 0 : index
    %c0_7 = arith.constant 0 : index
    %29 = vector.load %arg4[%c0_6, %c0_7] : memref<16x128xf32, #tpu.memory_space<vmem>>, vector<1x128xf32>
    %c0_i32_8 = arith.constant 0 : i32
    %30 = vector.broadcast %c0_i32_8 : i32 to vector<4x128xi32>
    %31 = arith.cmpi eq, %28, %30 : vector<4x128xi32>
    %32 = arith.extui %31 : vector<4x128xi1> to vector<4x128xi32>
    %33 = arith.sitofp %32 : vector<4x128xi32> to vector<4x128xf32>
    %cst = arith.constant dense<0.000000e+00> : vector<128xf32>
    %34 = vector.multi_reduction <add>, %33, %cst [0] : vector<4x128xf32> to vector<128xf32>
    %35 = vector.shape_cast %34 : vector<128xf32> to vector<1x128xf32>
    %36 = arith.addf %29, %35 : vector<1x128xf32>
    %c0_9 = arith.constant 0 : index
    %c0_10 = arith.constant 0 : index
    %37 = vector.load %arg4[%c0_9, %c0_10] : memref<16x128xf32, #tpu.memory_space<vmem>>, vector<1x128xf32>
    tpu.vector_store %arg4[%c0_9, %c0_10], %36 {strides = array<i32>} : memref<16x128xf32, #tpu.memory_space<vmem>>, vector<1x128xf32>,
    %c1 = arith.constant 1 : index
    %c0_11 = arith.constant 0 : index
    %38 = vector.load %arg4[%c1, %c0_11] : memref<16x128xf32, #tpu.memory_space<vmem>>, vector<1x128xf32>
    %c1_i32_12 = arith.constant 1 : i32
    %39 = vector.broadcast %c1_i32_12 : i32 to vector<4x128xi32>
    %40 = arith.cmpi eq, %28, %39 : vector<4x128xi32>
    %41 = arith.extui %40 : vector<4x128xi1> to vector<4x128xi32>
    %42 = arith.sitofp %41 : vector<4x128xi32> to vector<4x128xf32>
    %cst_13 = arith.constant dense<0.000000e+00> : vector<128xf32>
    %43 = vector.multi_reduction <add>, %42, %cst_13 [0] : vector<4x128xf32> to vector<128xf32>
    %44 = vector.shape_cast %43 : vector<128xf32> to vector<1x128xf32>
    %45 = arith.addf %38, %44 : vector<1x128xf32>
    %c1_14 = arith.constant 1 : index
    %c0_15 = arith.constant 0 : index
    %46 = vector.load %arg4[%c1_14, %c0_15] : memref<16x128xf32, #tpu.memory_space<vmem>>, vector<1x128xf32>
    tpu.vector_store %arg4[%c1_14, %c0_15], %45 {strides = array<i32>} : memref<16x128xf32, #tpu.memory_space<vmem>>, vector<1x128xf32>,
    %c2 = arith.constant 2 : index
    %c0_16 = arith.constant 0 : index
    %47 = vector.load %arg4[%c2, %c0_16] : memref<16x128xf32, #tpu.memory_space<vmem>>, vector<1x128xf32>
    %c2_i32 = arith.constant 2 : i32
    %48 = vector.broadcast %c2_i32 : i32 to vector<4x128xi32>
    %49 = arith.cmpi eq, %28, %48 : vector<4x128xi32>
    %50 = arith.extui %49 : vector<4x128xi1> to vector<4x128xi32>
    %51 = arith.sitofp %50 : vector<4x128xi32> to vector<4x128xf32>
    %cst_17 = arith.constant dense<0.000000e+00> : vector<128xf32>
    %52 = vector.multi_reduction <add>, %51, %cst_17 [0] : vector<4x128xf32> to vector<128xf32>
    %53 = vector.shape_cast %52 : vector<128xf32> to vector<1x128xf32>
    %54 = arith.addf %47, %53 : vector<1x128xf32>
    %c2_18 = arith.constant 2 : index
    %c0_19 = arith.constant 0 : index
    %55 = vector.load %arg4[%c2_18, %c0_19] : memref<16x128xf32, #tpu.memory_space<vmem>>, vector<1x128xf32>
    tpu.vector_store %arg4[%c2_18, %c0_19], %54 {strides = array<i32>} : memref<16x128xf32, #tpu.memory_space<vmem>>, vector<1x128xf32>,
    %c3 = arith.constant 3 : index
    %c0_20 = arith.constant 0 : index
    %56 = vector.load %arg4[%c3, %c0_20] : memref<16x128xf32, #tpu.memory_space<vmem>>, vector<1x128xf32>
    %c3_i32 = arith.constant 3 : i32
    %57 = vector.broadcast %c3_i32 : i32 to vector<4x128xi32>
    %58 = arith.cmpi eq, %28, %57 : vector<4x128xi32>
    %59 = arith.extui %58 : vector<4x128xi1> to vector<4x128xi32>
    %60 = arith.sitofp %59 : vector<4x128xi32> to vector<4x128xf32>
    %cst_21 = arith.constant dense<0.000000e+00> : vector<128xf32>
    %61 = vector.multi_reduction <add>, %60, %cst_21 [0] : vector<4x128xf32> to vector<128xf32>
    %62 = vector.shape_cast %61 : vector<128xf32> to vector<1x128xf32>
    %63 = arith.addf %56, %62 : vector<1x128xf32>
    %c3_22 = arith.constant 3 : index
    %c0_23 = arith.constant 0 : index
    %64 = vector.load %arg4[%c3_22, %c0_23] : memref<16x128xf32, #tpu.memory_space<vmem>>, vector<1x128xf32>
    tpu.vector_store %arg4[%c3_22, %c0_23], %63 {strides = array<i32>} : memref<16x128xf32, #tpu.memory_space<vmem>>, vector<1x128xf32>,
    %c4 = arith.constant 4 : index
    %c0_24 = arith.constant 0 : index
    %65 = vector.load %arg4[%c4, %c0_24] : memref<16x128xf32, #tpu.memory_space<vmem>>, vector<1x128xf32>
    %c4_i32_25 = arith.constant 4 : i32
    %66 = vector.broadcast %c4_i32_25 : i32 to vector<4x128xi32>
    %67 = arith.cmpi eq, %28, %66 : vector<4x128xi32>
    %68 = arith.extui %67 : vector<4x128xi1> to vector<4x128xi32>
    %69 = arith.sitofp %68 : vector<4x128xi32> to vector<4x128xf32>
    %cst_26 = arith.constant dense<0.000000e+00> : vector<128xf32>
    %70 = vector.multi_reduction <add>, %69, %cst_26 [0] : vector<4x128xf32> to vector<128xf32>
    %71 = vector.shape_cast %70 : vector<128xf32> to vector<1x128xf32>
    %72 = arith.addf %65, %71 : vector<1x128xf32>
    %c4_27 = arith.constant 4 : index
    %c0_28 = arith.constant 0 : index
    %73 = vector.load %arg4[%c4_27, %c0_28] : memref<16x128xf32, #tpu.memory_space<vmem>>, vector<1x128xf32>
    tpu.vector_store %arg4[%c4_27, %c0_28], %72 {strides = array<i32>} : memref<16x128xf32, #tpu.memory_space<vmem>>, vector<1x128xf32>,
    %c5 = arith.constant 5 : index
    %c0_29 = arith.constant 0 : index
    %74 = vector.load %arg4[%c5, %c0_29] : memref<16x128xf32, #tpu.memory_space<vmem>>, vector<1x128xf32>
    %c5_i32 = arith.constant 5 : i32
    %75 = vector.broadcast %c5_i32 : i32 to vector<4x128xi32>
    %76 = arith.cmpi eq, %28, %75 : vector<4x128xi32>
    %77 = arith.extui %76 : vector<4x128xi1> to vector<4x128xi32>
    %78 = arith.sitofp %77 : vector<4x128xi32> to vector<4x128xf32>
    %cst_30 = arith.constant dense<0.000000e+00> : vector<128xf32>
    %79 = vector.multi_reduction <add>, %78, %cst_30 [0] : vector<4x128xf32> to vector<128xf32>
    %80 = vector.shape_cast %79 : vector<128xf32> to vector<1x128xf32>
    %81 = arith.addf %74, %80 : vector<1x128xf32>
    %c5_31 = arith.constant 5 : index
    %c0_32 = arith.constant 0 : index
    %82 = vector.load %arg4[%c5_31, %c0_32] : memref<16x128xf32, #tpu.memory_space<vmem>>, vector<1x128xf32>
    tpu.vector_store %arg4[%c5_31, %c0_32], %81 {strides = array<i32>} : memref<16x128xf32, #tpu.memory_space<vmem>>, vector<1x128xf32>,
    %c6 = arith.constant 6 : index
    %c0_33 = arith.constant 0 : index
    %83 = vector.load %arg4[%c6, %c0_33] : memref<16x128xf32, #tpu.memory_space<vmem>>, vector<1x128xf32>
    %c6_i32 = arith.constant 6 : i32
    %84 = vector.broadcast %c6_i32 : i32 to vector<4x128xi32>
    %85 = arith.cmpi eq, %28, %84 : vector<4x128xi32>
    %86 = arith.extui %85 : vector<4x128xi1> to vector<4x128xi32>
    %87 = arith.sitofp %86 : vector<4x128xi32> to vector<4x128xf32>
    %cst_34 = arith.constant dense<0.000000e+00> : vector<128xf32>
    %88 = vector.multi_reduction <add>, %87, %cst_34 [0] : vector<4x128xf32> to vector<128xf32>
    %89 = vector.shape_cast %88 : vector<128xf32> to vector<1x128xf32>
    %90 = arith.addf %83, %89 : vector<1x128xf32>
    %c6_35 = arith.constant 6 : index
    %c0_36 = arith.constant 0 : index
    %91 = vector.load %arg4[%c6_35, %c0_36] : memref<16x128xf32, #tpu.memory_space<vmem>>, vector<1x128xf32>
    tpu.vector_store %arg4[%c6_35, %c0_36], %90 {strides = array<i32>} : memref<16x128xf32, #tpu.memory_space<vmem>>, vector<1x128xf32>,
    %c7 = arith.constant 7 : index
    %c0_37 = arith.constant 0 : index
    %92 = vector.load %arg4[%c7, %c0_37] : memref<16x128xf32, #tpu.memory_space<vmem>>, vector<1x128xf32>
    %c7_i32 = arith.constant 7 : i32
    %93 = vector.broadcast %c7_i32 : i32 to vector<4x128xi32>
    %94 = arith.cmpi eq, %28, %93 : vector<4x128xi32>
    %95 = arith.extui %94 : vector<4x128xi1> to vector<4x128xi32>
    %96 = arith.sitofp %95 : vector<4x128xi32> to vector<4x128xf32>
    %cst_38 = arith.constant dense<0.000000e+00> : vector<128xf32>
    %97 = vector.multi_reduction <add>, %96, %cst_38 [0] : vector<4x128xf32> to vector<128xf32>
    %98 = vector.shape_cast %97 : vector<128xf32> to vector<1x128xf32>
    %99 = arith.addf %92, %98 : vector<1x128xf32>
    %c7_39 = arith.constant 7 : index
    %c0_40 = arith.constant 0 : index
    %100 = vector.load %arg4[%c7_39, %c0_40] : memref<16x128xf32, #tpu.memory_space<vmem>>, vector<1x128xf32>
    tpu.vector_store %arg4[%c7_39, %c0_40], %99 {strides = array<i32>} : memref<16x128xf32, #tpu.memory_space<vmem>>, vector<1x128xf32>,
    %c8 = arith.constant 8 : index
    %c0_41 = arith.constant 0 : index
    %101 = vector.load %arg4[%c8, %c0_41] : memref<16x128xf32, #tpu.memory_space<vmem>>, vector<1x128xf32>
    %c8_i32 = arith.constant 8 : i32
    %102 = vector.broadcast %c8_i32 : i32 to vector<4x128xi32>
    %103 = arith.cmpi eq, %28, %102 : vector<4x128xi32>
    %104 = arith.extui %103 : vector<4x128xi1> to vector<4x128xi32>
    %105 = arith.sitofp %104 : vector<4x128xi32> to vector<4x128xf32>
    %cst_42 = arith.constant dense<0.000000e+00> : vector<128xf32>
    %106 = vector.multi_reduction <add>, %105, %cst_42 [0] : vector<4x128xf32> to vector<128xf32>
    %107 = vector.shape_cast %106 : vector<128xf32> to vector<1x128xf32>
    %108 = arith.addf %101, %107 : vector<1x128xf32>
    %c8_43 = arith.constant 8 : index
    %c0_44 = arith.constant 0 : index
    %109 = vector.load %arg4[%c8_43, %c0_44] : memref<16x128xf32, #tpu.memory_space<vmem>>, vector<1x128xf32>
    tpu.vector_store %arg4[%c8_43, %c0_44], %108 {strides = array<i32>} : memref<16x128xf32, #tpu.memory_space<vmem>>, vector<1x128xf32>,
    %c9 = arith.constant 9 : index
    %c0_45 = arith.constant 0 : index
    %110 = vector.load %arg4[%c9, %c0_45] : memref<16x128xf32, #tpu.memory_space<vmem>>, vector<1x128xf32>
    %c9_i32 = arith.constant 9 : i32
    %111 = vector.broadcast %c9_i32 : i32 to vector<4x128xi32>
    %112 = arith.cmpi eq, %28, %111 : vector<4x128xi32>
    %113 = arith.extui %112 : vector<4x128xi1> to vector<4x128xi32>
    %114 = arith.sitofp %113 : vector<4x128xi32> to vector<4x128xf32>
    %cst_46 = arith.constant dense<0.000000e+00> : vector<128xf32>
    %115 = vector.multi_reduction <add>, %114, %cst_46 [0] : vector<4x128xf32> to vector<128xf32>
    %116 = vector.shape_cast %115 : vector<128xf32> to vector<1x128xf32>
    %117 = arith.addf %110, %116 : vector<1x128xf32>
    %c9_47 = arith.constant 9 : index
    %c0_48 = arith.constant 0 : index
    %118 = vector.load %arg4[%c9_47, %c0_48] : memref<16x128xf32, #tpu.memory_space<vmem>>, vector<1x128xf32>
    tpu.vector_store %arg4[%c9_47, %c0_48], %117 {strides = array<i32>} : memref<16x128xf32, #tpu.memory_space<vmem>>, vector<1x128xf32>,
    %c10 = arith.constant 10 : index
    %c0_49 = arith.constant 0 : index
    %119 = vector.load %arg4[%c10, %c0_49] : memref<16x128xf32, #tpu.memory_space<vmem>>, vector<1x128xf32>
    %c10_i32 = arith.constant 10 : i32
    %120 = vector.broadcast %c10_i32 : i32 to vector<4x128xi32>
    %121 = arith.cmpi eq, %28, %120 : vector<4x128xi32>
    %122 = arith.extui %121 : vector<4x128xi1> to vector<4x128xi32>
    %123 = arith.sitofp %122 : vector<4x128xi32> to vector<4x128xf32>
    %cst_50 = arith.constant dense<0.000000e+00> : vector<128xf32>
    %124 = vector.multi_reduction <add>, %123, %cst_50 [0] : vector<4x128xf32> to vector<128xf32>
    %125 = vector.shape_cast %124 : vector<128xf32> to vector<1x128xf32>
    %126 = arith.addf %119, %125 : vector<1x128xf32>
    %c10_51 = arith.constant 10 : index
    %c0_52 = arith.constant 0 : index
    %127 = vector.load %arg4[%c10_51, %c0_52] : memref<16x128xf32, #tpu.memory_space<vmem>>, vector<1x128xf32>
    tpu.vector_store %arg4[%c10_51, %c0_52], %126 {strides = array<i32>} : memref<16x128xf32, #tpu.memory_space<vmem>>, vector<1x128xf32>,
    %c11 = arith.constant 11 : index
    %c0_53 = arith.constant 0 : index
    %128 = vector.load %arg4[%c11, %c0_53] : memref<16x128xf32, #tpu.memory_space<vmem>>, vector<1x128xf32>
    %c11_i32 = arith.constant 11 : i32
    %129 = vector.broadcast %c11_i32 : i32 to vector<4x128xi32>
    %130 = arith.cmpi eq, %28, %129 : vector<4x128xi32>
    %131 = arith.extui %130 : vector<4x128xi1> to vector<4x128xi32>
    %132 = arith.sitofp %131 : vector<4x128xi32> to vector<4x128xf32>
    %cst_54 = arith.constant dense<0.000000e+00> : vector<128xf32>
    %133 = vector.multi_reduction <add>, %132, %cst_54 [0] : vector<4x128xf32> to vector<128xf32>
    %134 = vector.shape_cast %133 : vector<128xf32> to vector<1x128xf32>
    %135 = arith.addf %128, %134 : vector<1x128xf32>
    %c11_55 = arith.constant 11 : index
    %c0_56 = arith.constant 0 : index
    %136 = vector.load %arg4[%c11_55, %c0_56] : memref<16x128xf32, #tpu.memory_space<vmem>>, vector<1x128xf32>
    tpu.vector_store %arg4[%c11_55, %c0_56], %135 {strides = array<i32>} : memref<16x128xf32, #tpu.memory_space<vmem>>, vector<1x128xf32>,
    %c12 = arith.constant 12 : index
    %c0_57 = arith.constant 0 : index
    %137 = vector.load %arg4[%c12, %c0_57] : memref<16x128xf32, #tpu.memory_space<vmem>>, vector<1x128xf32>
    %c12_i32 = arith.constant 12 : i32
    %138 = vector.broadcast %c12_i32 : i32 to vector<4x128xi32>
    %139 = arith.cmpi eq, %28, %138 : vector<4x128xi32>
    %140 = arith.extui %139 : vector<4x128xi1> to vector<4x128xi32>
    %141 = arith.sitofp %140 : vector<4x128xi32> to vector<4x128xf32>
    %cst_58 = arith.constant dense<0.000000e+00> : vector<128xf32>
    %142 = vector.multi_reduction <add>, %141, %cst_58 [0] : vector<4x128xf32> to vector<128xf32>
    %143 = vector.shape_cast %142 : vector<128xf32> to vector<1x128xf32>
    %144 = arith.addf %137, %143 : vector<1x128xf32>
    %c12_59 = arith.constant 12 : index
    %c0_60 = arith.constant 0 : index
    %145 = vector.load %arg4[%c12_59, %c0_60] : memref<16x128xf32, #tpu.memory_space<vmem>>, vector<1x128xf32>
    tpu.vector_store %arg4[%c12_59, %c0_60], %144 {strides = array<i32>} : memref<16x128xf32, #tpu.memory_space<vmem>>, vector<1x128xf32>,
    %c13 = arith.constant 13 : index
    %c0_61 = arith.constant 0 : index
    %146 = vector.load %arg4[%c13, %c0_61] : memref<16x128xf32, #tpu.memory_space<vmem>>, vector<1x128xf32>
    %c13_i32 = arith.constant 13 : i32
    %147 = vector.broadcast %c13_i32 : i32 to vector<4x128xi32>
    %148 = arith.cmpi eq, %28, %147 : vector<4x128xi32>
    %149 = arith.extui %148 : vector<4x128xi1> to vector<4x128xi32>
    %150 = arith.sitofp %149 : vector<4x128xi32> to vector<4x128xf32>
    %cst_62 = arith.constant dense<0.000000e+00> : vector<128xf32>
    %151 = vector.multi_reduction <add>, %150, %cst_62 [0] : vector<4x128xf32> to vector<128xf32>
    %152 = vector.shape_cast %151 : vector<128xf32> to vector<1x128xf32>
    %153 = arith.addf %146, %152 : vector<1x128xf32>
    %c13_63 = arith.constant 13 : index
    %c0_64 = arith.constant 0 : index
    %154 = vector.load %arg4[%c13_63, %c0_64] : memref<16x128xf32, #tpu.memory_space<vmem>>, vector<1x128xf32>
    tpu.vector_store %arg4[%c13_63, %c0_64], %153 {strides = array<i32>} : memref<16x128xf32, #tpu.memory_space<vmem>>, vector<1x128xf32>,
    %c14 = arith.constant 14 : index
    %c0_65 = arith.constant 0 : index
    %155 = vector.load %arg4[%c14, %c0_65] : memref<16x128xf32, #tpu.memory_space<vmem>>, vector<1x128xf32>
    %c14_i32 = arith.constant 14 : i32
    %156 = vector.broadcast %c14_i32 : i32 to vector<4x128xi32>
    %157 = arith.cmpi eq, %28, %156 : vector<4x128xi32>
    %158 = arith.extui %157 : vector<4x128xi1> to vector<4x128xi32>
    %159 = arith.sitofp %158 : vector<4x128xi32> to vector<4x128xf32>
    %cst_66 = arith.constant dense<0.000000e+00> : vector<128xf32>
    %160 = vector.multi_reduction <add>, %159, %cst_66 [0] : vector<4x128xf32> to vector<128xf32>
    %161 = vector.shape_cast %160 : vector<128xf32> to vector<1x128xf32>
    %162 = arith.addf %155, %161 : vector<1x128xf32>
    %c14_67 = arith.constant 14 : index
    %c0_68 = arith.constant 0 : index
    %163 = vector.load %arg4[%c14_67, %c0_68] : memref<16x128xf32, #tpu.memory_space<vmem>>, vector<1x128xf32>
    tpu.vector_store %arg4[%c14_67, %c0_68], %162 {strides = array<i32>} : memref<16x128xf32, #tpu.memory_space<vmem>>, vector<1x128xf32>,
    %c15 = arith.constant 15 : index
    %c0_69 = arith.constant 0 : index
    %164 = vector.load %arg4[%c15, %c0_69] : memref<16x128xf32, #tpu.memory_space<vmem>>, vector<1x128xf32>
    %c15_i32_70 = arith.constant 15 : i32
    %165 = vector.broadcast %c15_i32_70 : i32 to vector<4x128xi32>
    %166 = arith.cmpi eq, %28, %165 : vector<4x128xi32>
    %167 = arith.extui %166 : vector<4x128xi1> to vector<4x128xi32>
    %168 = arith.sitofp %167 : vector<4x128xi32> to vector<4x128xf32>
    %cst_71 = arith.constant dense<0.000000e+00> : vector<128xf32>
    %169 = vector.multi_reduction <add>, %168, %cst_71 [0] : vector<4x128xf32> to vector<128xf32>
    %170 = vector.shape_cast %169 : vector<128xf32> to vector<1x128xf32>
    %171 = arith.addf %164, %170 : vector<1x128xf32>
    %c15_72 = arith.constant 15 : index
    %c0_73 = arith.constant 0 : index
    %172 = vector.load %arg4[%c15_72, %c0_73] : memref<16x128xf32, #tpu.memory_space<vmem>>, vector<1x128xf32>
    tpu.vector_store %arg4[%c15_72, %c0_73], %171 {strides = array<i32>} : memref<16x128xf32, #tpu.memory_space<vmem>>, vector<1x128xf32>,
    return
  }
  func.func @transform_0(%arg0: i32, %arg1: i32) -> i32 {
    %c0_i32 = arith.constant 0 : i32
    %c0_i32_0 = arith.constant 0 : i32
    return %c0_i32 : i32
  }
  func.func @transform_1(%arg0: i32, %arg1: i32) -> (i32, i32) {
    %c1_i32 = arith.constant 1 : i32
    %0 = arith.muli %arg0, %c1_i32 : i32
    %1 = arith.addi %0, %arg1 : i32
    %c0_i32 = arith.constant 0 : i32
    %2 = arith.minsi %1, %c0_i32 : i32
    %c0_i32_0 = arith.constant 0 : i32
    %c0_i32_1 = arith.constant 0 : i32
    return %2, %c0_i32_0 : i32, i32
  }
  func.func @transform_2(%arg0: i32, %arg1: i32) -> (i32, i32) {
    %c0_i32 = arith.constant 0 : i32
    %c0_i32_0 = arith.constant 0 : i32
    return %arg0, %c0_i32 : i32, i32
  }
}

module attributes {stable_mosaic.version = 11 : i64} {
  func.func @_radix_hist_kernel(%arg0: i32, %arg1: i32, %arg2: memref<1xi32, #tpu.memory_space<smem>>, %arg3: memref<4x128xf32, #tpu.memory_space<vmem>>, %arg4: memref<16x128xf32, #tpu.memory_space<vmem>>) attributes {dimension_semantics = [#tpu.dimension_semantics<parallel>, #tpu.dimension_semantics<arbitrary>], iteration_bounds = array<i64: 2, 1>, scalar_prefetch = 0 : i64, scratch_operands = 0 : i64, tpu.core_type = #tpu.core_type<tc>, window_params = [{transform_indices = @transform_0, window_bounds = array<i64: 1>}, {transform_indices = @transform_1, window_bounds = array<i64: 4, 128>}, {transform_indices = @transform_2, window_bounds = array<i64: 16, 128>}]} {
    %c0_i32 = arith.constant 0 : i32
    %0 = arith.cmpi eq, %arg1, %c0_i32 : i32
    %1 = arith.extui %0 : i1 to i32
    %c0_i32_0 = arith.constant 0 : i32
    %2 = arith.cmpi ne, %1, %c0_i32_0 : i32
    scf.if %2 {
      %cst_74 = arith.constant 0.000000e+00 : f32
      %173 = vector.broadcast %cst_74 : f32 to vector<16x128xf32>
      %c0_75 = arith.constant 0 : index
      %c0_76 = arith.constant 0 : index
      %174 = vector.load %arg4[%c0_75, %c0_76] : memref<16x128xf32, #tpu.memory_space<vmem>>, vector<16x128xf32>
      tpu.vector_store %arg4[%c0_75, %c0_76], %173 {strides = array<i32>} : memref<16x128xf32, #tpu.memory_space<vmem>>, vector<16x128xf32>,
    } else {
    }
    %c0 = arith.constant 0 : index
    %c0_1 = arith.constant 0 : index
    %3 = vector.load %arg3[%c0, %c0_1] : memref<4x128xf32, #tpu.memory_space<vmem>>, vector<4x128xf32>
    %4 = tpu.bitcast %3 : vector<4x128xf32> -> vector<4x128xi32>
    %c1_i32 = arith.constant 1 : i32
    %5 = arith.muli %arg0, %c1_i32 : i32
    %6 = arith.addi %5, %arg1 : i32
    %c4_i32 = arith.constant 4 : i32
    %7 = arith.muli %6, %c4_i32 : i32
    %8 = tpu.iota {dimensions = array<i32: 0>} : vector<4x128xi32>
    %9 = vector.broadcast %7 : i32 to vector<4x128xi32>
    %10 = arith.addi %9, %8 : vector<4x128xi32>
    %c4_i32_2 = arith.constant 4 : i32
    %11 = vector.broadcast %c4_i32_2 : i32 to vector<4x128xi32>
    %12 = arith.cmpi slt, %10, %11 : vector<4x128xi32>
    %c0_i32_3 = arith.constant 0 : i32
    %13 = vector.broadcast %c0_i32_3 : i32 to vector<4x128xi32>
    %14 = arith.cmpi sge, %4, %13 : vector<4x128xi32>
    %15 = arith.andi %12, %14 : vector<4x128xi1>
    %c0_4 = arith.constant 0 : index
    %16 = memref.load %arg2[%c0_4] : memref<1xi32, #tpu.memory_space<smem>>
    %c24_i32 = arith.constant 24 : i32
    %17 = arith.shrsi %16, %c24_i32 : i32
    %c24_i32_5 = arith.constant 24 : i32
    %18 = vector.broadcast %c24_i32_5 : i32 to vector<4x128xi32>
    %19 = arith.shrsi %4, %18 : vector<4x128xi32>
    %20 = vector.broadcast %17 : i32 to vector<4x128xi32>
    %21 = arith.cmpi eq, %19, %20 : vector<4x128xi32>
    %22 = arith.andi %15, %21 : vector<4x128xi1>
    %c20_i32 = arith.constant 20 : i32
    %23 = vector.broadcast %c20_i32 : i32 to vector<4x128xi32>
    %24 = arith.shrsi %4, %23 : vector<4x128xi32>
    %c15_i32 = arith.constant 15 : i32
    %25 = vector.broadcast %c15_i32 : i32 to vector<4x128xi32>
    %26 = arith.andi %24, %25 : vector<4x128xi32>
    %c-1_i32 = arith.constant -1 : i32
    %27 = vector.broadcast %c-1_i32 : i32 to vector<4x128xi32>
    %28 = arith.select %22, %26, %27 : vector<4x128xi1>, vector<4x128xi32>
    %c0_6 = arith.constant 0 : index
    %c0_7 = arith.constant 0 : index
    %29 = vector.load %arg4[%c0_6, %c0_7] : memref<16x128xf32, #tpu.memory_space<vmem>>, vector<1x128xf32>
    %c0_i32_8 = arith.constant 0 : i32
    %30 = vector.broadcast %c0_i32_8 : i32 to vector<4x128xi32>
    %31 = arith.cmpi eq, %28, %30 : vector<4x128xi32>
    %32 = arith.extui %31 : vector<4x128xi1> to vector<4x128xi32>
    %33 = arith.sitofp %32 : vector<4x128xi32> to vector<4x128xf32>
    %cst = arith.constant dense<0.000000e+00> : vector<128xf32>
    %34 = vector.multi_reduction <add>, %33, %cst [0] : vector<4x128xf32> to vector<128xf32>
    %35 = vector.shape_cast %34 : vector<128xf32> to vector<1x128xf32>
    %36 = arith.addf %29, %35 : vector<1x128xf32>
    %c0_9 = arith.constant 0 : index
    %c0_10 = arith.constant 0 : index
    %37 = vector.load %arg4[%c0_9, %c0_10] : memref<16x128xf32, #tpu.memory_space<vmem>>, vector<1x128xf32>
    tpu.vector_store %arg4[%c0_9, %c0_10], %36 {strides = array<i32>} : memref<16x128xf32, #tpu.memory_space<vmem>>, vector<1x128xf32>,
    %c1 = arith.constant 1 : index
    %c0_11 = arith.constant 0 : index
    %38 = vector.load %arg4[%c1, %c0_11] : memref<16x128xf32, #tpu.memory_space<vmem>>, vector<1x128xf32>
    %c1_i32_12 = arith.constant 1 : i32
    %39 = vector.broadcast %c1_i32_12 : i32 to vector<4x128xi32>
    %40 = arith.cmpi eq, %28, %39 : vector<4x128xi32>
    %41 = arith.extui %40 : vector<4x128xi1> to vector<4x128xi32>
    %42 = arith.sitofp %41 : vector<4x128xi32> to vector<4x128xf32>
    %cst_13 = arith.constant dense<0.000000e+00> : vector<128xf32>
    %43 = vector.multi_reduction <add>, %42, %cst_13 [0] : vector<4x128xf32> to vector<128xf32>
    %44 = vector.shape_cast %43 : vector<128xf32> to vector<1x128xf32>
    %45 = arith.addf %38, %44 : vector<1x128xf32>
    %c1_14 = arith.constant 1 : index
    %c0_15 = arith.constant 0 : index
    %46 = vector.load %arg4[%c1_14, %c0_15] : memref<16x128xf32, #tpu.memory_space<vmem>>, vector<1x128xf32>
    tpu.vector_store %arg4[%c1_14, %c0_15], %45 {strides = array<i32>} : memref<16x128xf32, #tpu.memory_space<vmem>>, vector<1x128xf32>,
    %c2 = arith.constant 2 : index
    %c0_16 = arith.constant 0 : index
    %47 = vector.load %arg4[%c2, %c0_16] : memref<16x128xf32, #tpu.memory_space<vmem>>, vector<1x128xf32>
    %c2_i32 = arith.constant 2 : i32
    %48 = vector.broadcast %c2_i32 : i32 to vector<4x128xi32>
    %49 = arith.cmpi eq, %28, %48 : vector<4x128xi32>
    %50 = arith.extui %49 : vector<4x128xi1> to vector<4x128xi32>
    %51 = arith.sitofp %50 : vector<4x128xi32> to vector<4x128xf32>
    %cst_17 = arith.constant dense<0.000000e+00> : vector<128xf32>
    %52 = vector.multi_reduction <add>, %51, %cst_17 [0] : vector<4x128xf32> to vector<128xf32>
    %53 = vector.shape_cast %52 : vector<128xf32> to vector<1x128xf32>
    %54 = arith.addf %47, %53 : vector<1x128xf32>
    %c2_18 = arith.constant 2 : index
    %c0_19 = arith.constant 0 : index
    %55 = vector.load %arg4[%c2_18, %c0_19] : memref<16x128xf32, #tpu.memory_space<vmem>>, vector<1x128xf32>
    tpu.vector_store %arg4[%c2_18, %c0_19], %54 {strides = array<i32>} : memref<16x128xf32, #tpu.memory_space<vmem>>, vector<1x128xf32>,
    %c3 = arith.constant 3 : index
    %c0_20 = arith.constant 0 : index
    %56 = vector.load %arg4[%c3, %c0_20] : memref<16x128xf32, #tpu.memory_space<vmem>>, vector<1x128xf32>
    %c3_i32 = arith.constant 3 : i32
    %57 = vector.broadcast %c3_i32 : i32 to vector<4x128xi32>
    %58 = arith.cmpi eq, %28, %57 : vector<4x128xi32>
    %59 = arith.extui %58 : vector<4x128xi1> to vector<4x128xi32>
    %60 = arith.sitofp %59 : vector<4x128xi32> to vector<4x128xf32>
    %cst_21 = arith.constant dense<0.000000e+00> : vector<128xf32>
    %61 = vector.multi_reduction <add>, %60, %cst_21 [0] : vector<4x128xf32> to vector<128xf32>
    %62 = vector.shape_cast %61 : vector<128xf32> to vector<1x128xf32>
    %63 = arith.addf %56, %62 : vector<1x128xf32>
    %c3_22 = arith.constant 3 : index
    %c0_23 = arith.constant 0 : index
    %64 = vector.load %arg4[%c3_22, %c0_23] : memref<16x128xf32, #tpu.memory_space<vmem>>, vector<1x128xf32>
    tpu.vector_store %arg4[%c3_22, %c0_23], %63 {strides = array<i32>} : memref<16x128xf32, #tpu.memory_space<vmem>>, vector<1x128xf32>,
    %c4 = arith.constant 4 : index
    %c0_24 = arith.constant 0 : index
    %65 = vector.load %arg4[%c4, %c0_24] : memref<16x128xf32, #tpu.memory_space<vmem>>, vector<1x128xf32>
    %c4_i32_25 = arith.constant 4 : i32
    %66 = vector.broadcast %c4_i32_25 : i32 to vector<4x128xi32>
    %67 = arith.cmpi eq, %28, %66 : vector<4x128xi32>
    %68 = arith.extui %67 : vector<4x128xi1> to vector<4x128xi32>
    %69 = arith.sitofp %68 : vector<4x128xi32> to vector<4x128xf32>
    %cst_26 = arith.constant dense<0.000000e+00> : vector<128xf32>
    %70 = vector.multi_reduction <add>, %69, %cst_26 [0] : vector<4x128xf32> to vector<128xf32>
    %71 = vector.shape_cast %70 : vector<128xf32> to vector<1x128xf32>
    %72 = arith.addf %65, %71 : vector<1x128xf32>
    %c4_27 = arith.constant 4 : index
    %c0_28 = arith.constant 0 : index
    %73 = vector.load %arg4[%c4_27, %c0_28] : memref<16x128xf32, #tpu.memory_space<vmem>>, vector<1x128xf32>
    tpu.vector_store %arg4[%c4_27, %c0_28], %72 {strides = array<i32>} : memref<16x128xf32, #tpu.memory_space<vmem>>, vector<1x128xf32>,
    %c5 = arith.constant 5 : index
    %c0_29 = arith.constant 0 : index
    %74 = vector.load %arg4[%c5, %c0_29] : memref<16x128xf32, #tpu.memory_space<vmem>>, vector<1x128xf32>
    %c5_i32 = arith.constant 5 : i32
    %75 = vector.broadcast %c5_i32 : i32 to vector<4x128xi32>
    %76 = arith.cmpi eq, %28, %75 : vector<4x128xi32>
    %77 = arith.extui %76 : vector<4x128xi1> to vector<4x128xi32>
    %78 = arith.sitofp %77 : vector<4x128xi32> to vector<4x128xf32>
    %cst_30 = arith.constant dense<0.000000e+00> : vector<128xf32>
    %79 = vector.multi_reduction <add>, %78, %cst_30 [0] : vector<4x128xf32> to vector<128xf32>
    %80 = vector.shape_cast %79 : vector<128xf32> to vector<1x128xf32>
    %81 = arith.addf %74, %80 : vector<1x128xf32>
    %c5_31 = arith.constant 5 : index
    %c0_32 = arith.constant 0 : index
    %82 = vector.load %arg4[%c5_31, %c0_32] : memref<16x128xf32, #tpu.memory_space<vmem>>, vector<1x128xf32>
    tpu.vector_store %arg4[%c5_31, %c0_32], %81 {strides = array<i32>} : memref<16x128xf32, #tpu.memory_space<vmem>>, vector<1x128xf32>,
    %c6 = arith.constant 6 : index
    %c0_33 = arith.constant 0 : index
    %83 = vector.load %arg4[%c6, %c0_33] : memref<16x128xf32, #tpu.memory_space<vmem>>, vector<1x128xf32>
    %c6_i32 = arith.constant 6 : i32
    %84 = vector.broadcast %c6_i32 : i32 to vector<4x128xi32>
    %85 = arith.cmpi eq, %28, %84 : vector<4x128xi32>
    %86 = arith.extui %85 : vector<4x128xi1> to vector<4x128xi32>
    %87 = arith.sitofp %86 : vector<4x128xi32> to vector<4x128xf32>
    %cst_34 = arith.constant dense<0.000000e+00> : vector<128xf32>
    %88 = vector.multi_reduction <add>, %87, %cst_34 [0] : vector<4x128xf32> to vector<128xf32>
    %89 = vector.shape_cast %88 : vector<128xf32> to vector<1x128xf32>
    %90 = arith.addf %83, %89 : vector<1x128xf32>
    %c6_35 = arith.constant 6 : index
    %c0_36 = arith.constant 0 : index
    %91 = vector.load %arg4[%c6_35, %c0_36] : memref<16x128xf32, #tpu.memory_space<vmem>>, vector<1x128xf32>
    tpu.vector_store %arg4[%c6_35, %c0_36], %90 {strides = array<i32>} : memref<16x128xf32, #tpu.memory_space<vmem>>, vector<1x128xf32>,
    %c7 = arith.constant 7 : index
    %c0_37 = arith.constant 0 : index
    %92 = vector.load %arg4[%c7, %c0_37] : memref<16x128xf32, #tpu.memory_space<vmem>>, vector<1x128xf32>
    %c7_i32 = arith.constant 7 : i32
    %93 = vector.broadcast %c7_i32 : i32 to vector<4x128xi32>
    %94 = arith.cmpi eq, %28, %93 : vector<4x128xi32>
    %95 = arith.extui %94 : vector<4x128xi1> to vector<4x128xi32>
    %96 = arith.sitofp %95 : vector<4x128xi32> to vector<4x128xf32>
    %cst_38 = arith.constant dense<0.000000e+00> : vector<128xf32>
    %97 = vector.multi_reduction <add>, %96, %cst_38 [0] : vector<4x128xf32> to vector<128xf32>
    %98 = vector.shape_cast %97 : vector<128xf32> to vector<1x128xf32>
    %99 = arith.addf %92, %98 : vector<1x128xf32>
    %c7_39 = arith.constant 7 : index
    %c0_40 = arith.constant 0 : index
    %100 = vector.load %arg4[%c7_39, %c0_40] : memref<16x128xf32, #tpu.memory_space<vmem>>, vector<1x128xf32>
    tpu.vector_store %arg4[%c7_39, %c0_40], %99 {strides = array<i32>} : memref<16x128xf32, #tpu.memory_space<vmem>>, vector<1x128xf32>,
    %c8 = arith.constant 8 : index
    %c0_41 = arith.constant 0 : index
    %101 = vector.load %arg4[%c8, %c0_41] : memref<16x128xf32, #tpu.memory_space<vmem>>, vector<1x128xf32>
    %c8_i32 = arith.constant 8 : i32
    %102 = vector.broadcast %c8_i32 : i32 to vector<4x128xi32>
    %103 = arith.cmpi eq, %28, %102 : vector<4x128xi32>
    %104 = arith.extui %103 : vector<4x128xi1> to vector<4x128xi32>
    %105 = arith.sitofp %104 : vector<4x128xi32> to vector<4x128xf32>
    %cst_42 = arith.constant dense<0.000000e+00> : vector<128xf32>
    %106 = vector.multi_reduction <add>, %105, %cst_42 [0] : vector<4x128xf32> to vector<128xf32>
    %107 = vector.shape_cast %106 : vector<128xf32> to vector<1x128xf32>
    %108 = arith.addf %101, %107 : vector<1x128xf32>
    %c8_43 = arith.constant 8 : index
    %c0_44 = arith.constant 0 : index
    %109 = vector.load %arg4[%c8_43, %c0_44] : memref<16x128xf32, #tpu.memory_space<vmem>>, vector<1x128xf32>
    tpu.vector_store %arg4[%c8_43, %c0_44], %108 {strides = array<i32>} : memref<16x128xf32, #tpu.memory_space<vmem>>, vector<1x128xf32>,
    %c9 = arith.constant 9 : index
    %c0_45 = arith.constant 0 : index
    %110 = vector.load %arg4[%c9, %c0_45] : memref<16x128xf32, #tpu.memory_space<vmem>>, vector<1x128xf32>
    %c9_i32 = arith.constant 9 : i32
    %111 = vector.broadcast %c9_i32 : i32 to vector<4x128xi32>
    %112 = arith.cmpi eq, %28, %111 : vector<4x128xi32>
    %113 = arith.extui %112 : vector<4x128xi1> to vector<4x128xi32>
    %114 = arith.sitofp %113 : vector<4x128xi32> to vector<4x128xf32>
    %cst_46 = arith.constant dense<0.000000e+00> : vector<128xf32>
    %115 = vector.multi_reduction <add>, %114, %cst_46 [0] : vector<4x128xf32> to vector<128xf32>
    %116 = vector.shape_cast %115 : vector<128xf32> to vector<1x128xf32>
    %117 = arith.addf %110, %116 : vector<1x128xf32>
    %c9_47 = arith.constant 9 : index
    %c0_48 = arith.constant 0 : index
    %118 = vector.load %arg4[%c9_47, %c0_48] : memref<16x128xf32, #tpu.memory_space<vmem>>, vector<1x128xf32>
    tpu.vector_store %arg4[%c9_47, %c0_48], %117 {strides = array<i32>} : memref<16x128xf32, #tpu.memory_space<vmem>>, vector<1x128xf32>,
    %c10 = arith.constant 10 : index
    %c0_49 = arith.constant 0 : index
    %119 = vector.load %arg4[%c10, %c0_49] : memref<16x128xf32, #tpu.memory_space<vmem>>, vector<1x128xf32>
    %c10_i32 = arith.constant 10 : i32
    %120 = vector.broadcast %c10_i32 : i32 to vector<4x128xi32>
    %121 = arith.cmpi eq, %28, %120 : vector<4x128xi32>
    %122 = arith.extui %121 : vector<4x128xi1> to vector<4x128xi32>
    %123 = arith.sitofp %122 : vector<4x128xi32> to vector<4x128xf32>
    %cst_50 = arith.constant dense<0.000000e+00> : vector<128xf32>
    %124 = vector.multi_reduction <add>, %123, %cst_50 [0] : vector<4x128xf32> to vector<128xf32>
    %125 = vector.shape_cast %124 : vector<128xf32> to vector<1x128xf32>
    %126 = arith.addf %119, %125 : vector<1x128xf32>
    %c10_51 = arith.constant 10 : index
    %c0_52 = arith.constant 0 : index
    %127 = vector.load %arg4[%c10_51, %c0_52] : memref<16x128xf32, #tpu.memory_space<vmem>>, vector<1x128xf32>
    tpu.vector_store %arg4[%c10_51, %c0_52], %126 {strides = array<i32>} : memref<16x128xf32, #tpu.memory_space<vmem>>, vector<1x128xf32>,
    %c11 = arith.constant 11 : index
    %c0_53 = arith.constant 0 : index
    %128 = vector.load %arg4[%c11, %c0_53] : memref<16x128xf32, #tpu.memory_space<vmem>>, vector<1x128xf32>
    %c11_i32 = arith.constant 11 : i32
    %129 = vector.broadcast %c11_i32 : i32 to vector<4x128xi32>
    %130 = arith.cmpi eq, %28, %129 : vector<4x128xi32>
    %131 = arith.extui %130 : vector<4x128xi1> to vector<4x128xi32>
    %132 = arith.sitofp %131 : vector<4x128xi32> to vector<4x128xf32>
    %cst_54 = arith.constant dense<0.000000e+00> : vector<128xf32>
    %133 = vector.multi_reduction <add>, %132, %cst_54 [0] : vector<4x128xf32> to vector<128xf32>
    %134 = vector.shape_cast %133 : vector<128xf32> to vector<1x128xf32>
    %135 = arith.addf %128, %134 : vector<1x128xf32>
    %c11_55 = arith.constant 11 : index
    %c0_56 = arith.constant 0 : index
    %136 = vector.load %arg4[%c11_55, %c0_56] : memref<16x128xf32, #tpu.memory_space<vmem>>, vector<1x128xf32>
    tpu.vector_store %arg4[%c11_55, %c0_56], %135 {strides = array<i32>} : memref<16x128xf32, #tpu.memory_space<vmem>>, vector<1x128xf32>,
    %c12 = arith.constant 12 : index
    %c0_57 = arith.constant 0 : index
    %137 = vector.load %arg4[%c12, %c0_57] : memref<16x128xf32, #tpu.memory_space<vmem>>, vector<1x128xf32>
    %c12_i32 = arith.constant 12 : i32
    %138 = vector.broadcast %c12_i32 : i32 to vector<4x128xi32>
    %139 = arith.cmpi eq, %28, %138 : vector<4x128xi32>
    %140 = arith.extui %139 : vector<4x128xi1> to vector<4x128xi32>
    %141 = arith.sitofp %140 : vector<4x128xi32> to vector<4x128xf32>
    %cst_58 = arith.constant dense<0.000000e+00> : vector<128xf32>
    %142 = vector.multi_reduction <add>, %141, %cst_58 [0] : vector<4x128xf32> to vector<128xf32>
    %143 = vector.shape_cast %142 : vector<128xf32> to vector<1x128xf32>
    %144 = arith.addf %137, %143 : vector<1x128xf32>
    %c12_59 = arith.constant 12 : index
    %c0_60 = arith.constant 0 : index
    %145 = vector.load %arg4[%c12_59, %c0_60] : memref<16x128xf32, #tpu.memory_space<vmem>>, vector<1x128xf32>
    tpu.vector_store %arg4[%c12_59, %c0_60], %144 {strides = array<i32>} : memref<16x128xf32, #tpu.memory_space<vmem>>, vector<1x128xf32>,
    %c13 = arith.constant 13 : index
    %c0_61 = arith.constant 0 : index
    %146 = vector.load %arg4[%c13, %c0_61] : memref<16x128xf32, #tpu.memory_space<vmem>>, vector<1x128xf32>
    %c13_i32 = arith.constant 13 : i32
    %147 = vector.broadcast %c13_i32 : i32 to vector<4x128xi32>
    %148 = arith.cmpi eq, %28, %147 : vector<4x128xi32>
    %149 = arith.extui %148 : vector<4x128xi1> to vector<4x128xi32>
    %150 = arith.sitofp %149 : vector<4x128xi32> to vector<4x128xf32>
    %cst_62 = arith.constant dense<0.000000e+00> : vector<128xf32>
    %151 = vector.multi_reduction <add>, %150, %cst_62 [0] : vector<4x128xf32> to vector<128xf32>
    %152 = vector.shape_cast %151 : vector<128xf32> to vector<1x128xf32>
    %153 = arith.addf %146, %152 : vector<1x128xf32>
    %c13_63 = arith.constant 13 : index
    %c0_64 = arith.constant 0 : index
    %154 = vector.load %arg4[%c13_63, %c0_64] : memref<16x128xf32, #tpu.memory_space<vmem>>, vector<1x128xf32>
    tpu.vector_store %arg4[%c13_63, %c0_64], %153 {strides = array<i32>} : memref<16x128xf32, #tpu.memory_space<vmem>>, vector<1x128xf32>,
    %c14 = arith.constant 14 : index
    %c0_65 = arith.constant 0 : index
    %155 = vector.load %arg4[%c14, %c0_65] : memref<16x128xf32, #tpu.memory_space<vmem>>, vector<1x128xf32>
    %c14_i32 = arith.constant 14 : i32
    %156 = vector.broadcast %c14_i32 : i32 to vector<4x128xi32>
    %157 = arith.cmpi eq, %28, %156 : vector<4x128xi32>
    %158 = arith.extui %157 : vector<4x128xi1> to vector<4x128xi32>
    %159 = arith.sitofp %158 : vector<4x128xi32> to vector<4x128xf32>
    %cst_66 = arith.constant dense<0.000000e+00> : vector<128xf32>
    %160 = vector.multi_reduction <add>, %159, %cst_66 [0] : vector<4x128xf32> to vector<128xf32>
    %161 = vector.shape_cast %160 : vector<128xf32> to vector<1x128xf32>
    %162 = arith.addf %155, %161 : vector<1x128xf32>
    %c14_67 = arith.constant 14 : index
    %c0_68 = arith.constant 0 : index
    %163 = vector.load %arg4[%c14_67, %c0_68] : memref<16x128xf32, #tpu.memory_space<vmem>>, vector<1x128xf32>
    tpu.vector_store %arg4[%c14_67, %c0_68], %162 {strides = array<i32>} : memref<16x128xf32, #tpu.memory_space<vmem>>, vector<1x128xf32>,
    %c15 = arith.constant 15 : index
    %c0_69 = arith.constant 0 : index
    %164 = vector.load %arg4[%c15, %c0_69] : memref<16x128xf32, #tpu.memory_space<vmem>>, vector<1x128xf32>
    %c15_i32_70 = arith.constant 15 : i32
    %165 = vector.broadcast %c15_i32_70 : i32 to vector<4x128xi32>
    %166 = arith.cmpi eq, %28, %165 : vector<4x128xi32>
    %167 = arith.extui %166 : vector<4x128xi1> to vector<4x128xi32>
    %168 = arith.sitofp %167 : vector<4x128xi32> to vector<4x128xf32>
    %cst_71 = arith.constant dense<0.000000e+00> : vector<128xf32>
    %169 = vector.multi_reduction <add>, %168, %cst_71 [0] : vector<4x128xf32> to vector<128xf32>
    %170 = vector.shape_cast %169 : vector<128xf32> to vector<1x128xf32>
    %171 = arith.addf %164, %170 : vector<1x128xf32>
    %c15_72 = arith.constant 15 : index
    %c0_73 = arith.constant 0 : index
    %172 = vector.load %arg4[%c15_72, %c0_73] : memref<16x128xf32, #tpu.memory_space<vmem>>, vector<1x128xf32>
    tpu.vector_store %arg4[%c15_72, %c0_73], %171 {strides = array<i32>} : memref<16x128xf32, #tpu.memory_space<vmem>>, vector<1x128xf32>,
    return
  }
  func.func @transform_0(%arg0: i32, %arg1: i32) -> i32 {
    %c0_i32 = arith.constant 0 : i32
    %c0_i32_0 = arith.constant 0 : i32
    return %c0_i32 : i32
  }
  func.func @transform_1(%arg0: i32, %arg1: i32) -> (i32, i32) {
    %c1_i32 = arith.constant 1 : i32
    %0 = arith.muli %arg0, %c1_i32 : i32
    %1 = arith.addi %0, %arg1 : i32
    %c0_i32 = arith.constant 0 : i32
    %2 = arith.minsi %1, %c0_i32 : i32
    %c0_i32_0 = arith.constant 0 : i32
    %c0_i32_1 = arith.constant 0 : i32
    return %2, %c0_i32_0 : i32, i32
  }
  func.func @transform_2(%arg0: i32, %arg1: i32) -> (i32, i32) {
    %c0_i32 = arith.constant 0 : i32
    %c0_i32_0 = arith.constant 0 : i32
    return %arg0, %c0_i32 : i32, i32
  }
}

module attributes {stable_mosaic.version = 11 : i64} {
  func.func @_radix_hist_kernel(%arg0: i32, %arg1: i32, %arg2: memref<1xi32, #tpu.memory_space<smem>>, %arg3: memref<4x128xf32, #tpu.memory_space<vmem>>, %arg4: memref<16x128xf32, #tpu.memory_space<vmem>>) attributes {dimension_semantics = [#tpu.dimension_semantics<parallel>, #tpu.dimension_semantics<arbitrary>], iteration_bounds = array<i64: 2, 1>, scalar_prefetch = 0 : i64, scratch_operands = 0 : i64, tpu.core_type = #tpu.core_type<tc>, window_params = [{transform_indices = @transform_0, window_bounds = array<i64: 1>}, {transform_indices = @transform_1, window_bounds = array<i64: 4, 128>}, {transform_indices = @transform_2, window_bounds = array<i64: 16, 128>}]} {
    %c0_i32 = arith.constant 0 : i32
    %0 = arith.cmpi eq, %arg1, %c0_i32 : i32
    %1 = arith.extui %0 : i1 to i32
    %c0_i32_0 = arith.constant 0 : i32
    %2 = arith.cmpi ne, %1, %c0_i32_0 : i32
    scf.if %2 {
      %cst_74 = arith.constant 0.000000e+00 : f32
      %173 = vector.broadcast %cst_74 : f32 to vector<16x128xf32>
      %c0_75 = arith.constant 0 : index
      %c0_76 = arith.constant 0 : index
      %174 = vector.load %arg4[%c0_75, %c0_76] : memref<16x128xf32, #tpu.memory_space<vmem>>, vector<16x128xf32>
      tpu.vector_store %arg4[%c0_75, %c0_76], %173 {strides = array<i32>} : memref<16x128xf32, #tpu.memory_space<vmem>>, vector<16x128xf32>,
    } else {
    }
    %c0 = arith.constant 0 : index
    %c0_1 = arith.constant 0 : index
    %3 = vector.load %arg3[%c0, %c0_1] : memref<4x128xf32, #tpu.memory_space<vmem>>, vector<4x128xf32>
    %4 = tpu.bitcast %3 : vector<4x128xf32> -> vector<4x128xi32>
    %c1_i32 = arith.constant 1 : i32
    %5 = arith.muli %arg0, %c1_i32 : i32
    %6 = arith.addi %5, %arg1 : i32
    %c4_i32 = arith.constant 4 : i32
    %7 = arith.muli %6, %c4_i32 : i32
    %8 = tpu.iota {dimensions = array<i32: 0>} : vector<4x128xi32>
    %9 = vector.broadcast %7 : i32 to vector<4x128xi32>
    %10 = arith.addi %9, %8 : vector<4x128xi32>
    %c4_i32_2 = arith.constant 4 : i32
    %11 = vector.broadcast %c4_i32_2 : i32 to vector<4x128xi32>
    %12 = arith.cmpi slt, %10, %11 : vector<4x128xi32>
    %c0_i32_3 = arith.constant 0 : i32
    %13 = vector.broadcast %c0_i32_3 : i32 to vector<4x128xi32>
    %14 = arith.cmpi sge, %4, %13 : vector<4x128xi32>
    %15 = arith.andi %12, %14 : vector<4x128xi1>
    %c0_4 = arith.constant 0 : index
    %16 = memref.load %arg2[%c0_4] : memref<1xi32, #tpu.memory_space<smem>>
    %c20_i32 = arith.constant 20 : i32
    %17 = arith.shrsi %16, %c20_i32 : i32
    %c20_i32_5 = arith.constant 20 : i32
    %18 = vector.broadcast %c20_i32_5 : i32 to vector<4x128xi32>
    %19 = arith.shrsi %4, %18 : vector<4x128xi32>
    %20 = vector.broadcast %17 : i32 to vector<4x128xi32>
    %21 = arith.cmpi eq, %19, %20 : vector<4x128xi32>
    %22 = arith.andi %15, %21 : vector<4x128xi1>
    %c16_i32 = arith.constant 16 : i32
    %23 = vector.broadcast %c16_i32 : i32 to vector<4x128xi32>
    %24 = arith.shrsi %4, %23 : vector<4x128xi32>
    %c15_i32 = arith.constant 15 : i32
    %25 = vector.broadcast %c15_i32 : i32 to vector<4x128xi32>
    %26 = arith.andi %24, %25 : vector<4x128xi32>
    %c-1_i32 = arith.constant -1 : i32
    %27 = vector.broadcast %c-1_i32 : i32 to vector<4x128xi32>
    %28 = arith.select %22, %26, %27 : vector<4x128xi1>, vector<4x128xi32>
    %c0_6 = arith.constant 0 : index
    %c0_7 = arith.constant 0 : index
    %29 = vector.load %arg4[%c0_6, %c0_7] : memref<16x128xf32, #tpu.memory_space<vmem>>, vector<1x128xf32>
    %c0_i32_8 = arith.constant 0 : i32
    %30 = vector.broadcast %c0_i32_8 : i32 to vector<4x128xi32>
    %31 = arith.cmpi eq, %28, %30 : vector<4x128xi32>
    %32 = arith.extui %31 : vector<4x128xi1> to vector<4x128xi32>
    %33 = arith.sitofp %32 : vector<4x128xi32> to vector<4x128xf32>
    %cst = arith.constant dense<0.000000e+00> : vector<128xf32>
    %34 = vector.multi_reduction <add>, %33, %cst [0] : vector<4x128xf32> to vector<128xf32>
    %35 = vector.shape_cast %34 : vector<128xf32> to vector<1x128xf32>
    %36 = arith.addf %29, %35 : vector<1x128xf32>
    %c0_9 = arith.constant 0 : index
    %c0_10 = arith.constant 0 : index
    %37 = vector.load %arg4[%c0_9, %c0_10] : memref<16x128xf32, #tpu.memory_space<vmem>>, vector<1x128xf32>
    tpu.vector_store %arg4[%c0_9, %c0_10], %36 {strides = array<i32>} : memref<16x128xf32, #tpu.memory_space<vmem>>, vector<1x128xf32>,
    %c1 = arith.constant 1 : index
    %c0_11 = arith.constant 0 : index
    %38 = vector.load %arg4[%c1, %c0_11] : memref<16x128xf32, #tpu.memory_space<vmem>>, vector<1x128xf32>
    %c1_i32_12 = arith.constant 1 : i32
    %39 = vector.broadcast %c1_i32_12 : i32 to vector<4x128xi32>
    %40 = arith.cmpi eq, %28, %39 : vector<4x128xi32>
    %41 = arith.extui %40 : vector<4x128xi1> to vector<4x128xi32>
    %42 = arith.sitofp %41 : vector<4x128xi32> to vector<4x128xf32>
    %cst_13 = arith.constant dense<0.000000e+00> : vector<128xf32>
    %43 = vector.multi_reduction <add>, %42, %cst_13 [0] : vector<4x128xf32> to vector<128xf32>
    %44 = vector.shape_cast %43 : vector<128xf32> to vector<1x128xf32>
    %45 = arith.addf %38, %44 : vector<1x128xf32>
    %c1_14 = arith.constant 1 : index
    %c0_15 = arith.constant 0 : index
    %46 = vector.load %arg4[%c1_14, %c0_15] : memref<16x128xf32, #tpu.memory_space<vmem>>, vector<1x128xf32>
    tpu.vector_store %arg4[%c1_14, %c0_15], %45 {strides = array<i32>} : memref<16x128xf32, #tpu.memory_space<vmem>>, vector<1x128xf32>,
    %c2 = arith.constant 2 : index
    %c0_16 = arith.constant 0 : index
    %47 = vector.load %arg4[%c2, %c0_16] : memref<16x128xf32, #tpu.memory_space<vmem>>, vector<1x128xf32>
    %c2_i32 = arith.constant 2 : i32
    %48 = vector.broadcast %c2_i32 : i32 to vector<4x128xi32>
    %49 = arith.cmpi eq, %28, %48 : vector<4x128xi32>
    %50 = arith.extui %49 : vector<4x128xi1> to vector<4x128xi32>
    %51 = arith.sitofp %50 : vector<4x128xi32> to vector<4x128xf32>
    %cst_17 = arith.constant dense<0.000000e+00> : vector<128xf32>
    %52 = vector.multi_reduction <add>, %51, %cst_17 [0] : vector<4x128xf32> to vector<128xf32>
    %53 = vector.shape_cast %52 : vector<128xf32> to vector<1x128xf32>
    %54 = arith.addf %47, %53 : vector<1x128xf32>
    %c2_18 = arith.constant 2 : index
    %c0_19 = arith.constant 0 : index
    %55 = vector.load %arg4[%c2_18, %c0_19] : memref<16x128xf32, #tpu.memory_space<vmem>>, vector<1x128xf32>
    tpu.vector_store %arg4[%c2_18, %c0_19], %54 {strides = array<i32>} : memref<16x128xf32, #tpu.memory_space<vmem>>, vector<1x128xf32>,
    %c3 = arith.constant 3 : index
    %c0_20 = arith.constant 0 : index
    %56 = vector.load %arg4[%c3, %c0_20] : memref<16x128xf32, #tpu.memory_space<vmem>>, vector<1x128xf32>
    %c3_i32 = arith.constant 3 : i32
    %57 = vector.broadcast %c3_i32 : i32 to vector<4x128xi32>
    %58 = arith.cmpi eq, %28, %57 : vector<4x128xi32>
    %59 = arith.extui %58 : vector<4x128xi1> to vector<4x128xi32>
    %60 = arith.sitofp %59 : vector<4x128xi32> to vector<4x128xf32>
    %cst_21 = arith.constant dense<0.000000e+00> : vector<128xf32>
    %61 = vector.multi_reduction <add>, %60, %cst_21 [0] : vector<4x128xf32> to vector<128xf32>
    %62 = vector.shape_cast %61 : vector<128xf32> to vector<1x128xf32>
    %63 = arith.addf %56, %62 : vector<1x128xf32>
    %c3_22 = arith.constant 3 : index
    %c0_23 = arith.constant 0 : index
    %64 = vector.load %arg4[%c3_22, %c0_23] : memref<16x128xf32, #tpu.memory_space<vmem>>, vector<1x128xf32>
    tpu.vector_store %arg4[%c3_22, %c0_23], %63 {strides = array<i32>} : memref<16x128xf32, #tpu.memory_space<vmem>>, vector<1x128xf32>,
    %c4 = arith.constant 4 : index
    %c0_24 = arith.constant 0 : index
    %65 = vector.load %arg4[%c4, %c0_24] : memref<16x128xf32, #tpu.memory_space<vmem>>, vector<1x128xf32>
    %c4_i32_25 = arith.constant 4 : i32
    %66 = vector.broadcast %c4_i32_25 : i32 to vector<4x128xi32>
    %67 = arith.cmpi eq, %28, %66 : vector<4x128xi32>
    %68 = arith.extui %67 : vector<4x128xi1> to vector<4x128xi32>
    %69 = arith.sitofp %68 : vector<4x128xi32> to vector<4x128xf32>
    %cst_26 = arith.constant dense<0.000000e+00> : vector<128xf32>
    %70 = vector.multi_reduction <add>, %69, %cst_26 [0] : vector<4x128xf32> to vector<128xf32>
    %71 = vector.shape_cast %70 : vector<128xf32> to vector<1x128xf32>
    %72 = arith.addf %65, %71 : vector<1x128xf32>
    %c4_27 = arith.constant 4 : index
    %c0_28 = arith.constant 0 : index
    %73 = vector.load %arg4[%c4_27, %c0_28] : memref<16x128xf32, #tpu.memory_space<vmem>>, vector<1x128xf32>
    tpu.vector_store %arg4[%c4_27, %c0_28], %72 {strides = array<i32>} : memref<16x128xf32, #tpu.memory_space<vmem>>, vector<1x128xf32>,
    %c5 = arith.constant 5 : index
    %c0_29 = arith.constant 0 : index
    %74 = vector.load %arg4[%c5, %c0_29] : memref<16x128xf32, #tpu.memory_space<vmem>>, vector<1x128xf32>
    %c5_i32 = arith.constant 5 : i32
    %75 = vector.broadcast %c5_i32 : i32 to vector<4x128xi32>
    %76 = arith.cmpi eq, %28, %75 : vector<4x128xi32>
    %77 = arith.extui %76 : vector<4x128xi1> to vector<4x128xi32>
    %78 = arith.sitofp %77 : vector<4x128xi32> to vector<4x128xf32>
    %cst_30 = arith.constant dense<0.000000e+00> : vector<128xf32>
    %79 = vector.multi_reduction <add>, %78, %cst_30 [0] : vector<4x128xf32> to vector<128xf32>
    %80 = vector.shape_cast %79 : vector<128xf32> to vector<1x128xf32>
    %81 = arith.addf %74, %80 : vector<1x128xf32>
    %c5_31 = arith.constant 5 : index
    %c0_32 = arith.constant 0 : index
    %82 = vector.load %arg4[%c5_31, %c0_32] : memref<16x128xf32, #tpu.memory_space<vmem>>, vector<1x128xf32>
    tpu.vector_store %arg4[%c5_31, %c0_32], %81 {strides = array<i32>} : memref<16x128xf32, #tpu.memory_space<vmem>>, vector<1x128xf32>,
    %c6 = arith.constant 6 : index
    %c0_33 = arith.constant 0 : index
    %83 = vector.load %arg4[%c6, %c0_33] : memref<16x128xf32, #tpu.memory_space<vmem>>, vector<1x128xf32>
    %c6_i32 = arith.constant 6 : i32
    %84 = vector.broadcast %c6_i32 : i32 to vector<4x128xi32>
    %85 = arith.cmpi eq, %28, %84 : vector<4x128xi32>
    %86 = arith.extui %85 : vector<4x128xi1> to vector<4x128xi32>
    %87 = arith.sitofp %86 : vector<4x128xi32> to vector<4x128xf32>
    %cst_34 = arith.constant dense<0.000000e+00> : vector<128xf32>
    %88 = vector.multi_reduction <add>, %87, %cst_34 [0] : vector<4x128xf32> to vector<128xf32>
    %89 = vector.shape_cast %88 : vector<128xf32> to vector<1x128xf32>
    %90 = arith.addf %83, %89 : vector<1x128xf32>
    %c6_35 = arith.constant 6 : index
    %c0_36 = arith.constant 0 : index
    %91 = vector.load %arg4[%c6_35, %c0_36] : memref<16x128xf32, #tpu.memory_space<vmem>>, vector<1x128xf32>
    tpu.vector_store %arg4[%c6_35, %c0_36], %90 {strides = array<i32>} : memref<16x128xf32, #tpu.memory_space<vmem>>, vector<1x128xf32>,
    %c7 = arith.constant 7 : index
    %c0_37 = arith.constant 0 : index
    %92 = vector.load %arg4[%c7, %c0_37] : memref<16x128xf32, #tpu.memory_space<vmem>>, vector<1x128xf32>
    %c7_i32 = arith.constant 7 : i32
    %93 = vector.broadcast %c7_i32 : i32 to vector<4x128xi32>
    %94 = arith.cmpi eq, %28, %93 : vector<4x128xi32>
    %95 = arith.extui %94 : vector<4x128xi1> to vector<4x128xi32>
    %96 = arith.sitofp %95 : vector<4x128xi32> to vector<4x128xf32>
    %cst_38 = arith.constant dense<0.000000e+00> : vector<128xf32>
    %97 = vector.multi_reduction <add>, %96, %cst_38 [0] : vector<4x128xf32> to vector<128xf32>
    %98 = vector.shape_cast %97 : vector<128xf32> to vector<1x128xf32>
    %99 = arith.addf %92, %98 : vector<1x128xf32>
    %c7_39 = arith.constant 7 : index
    %c0_40 = arith.constant 0 : index
    %100 = vector.load %arg4[%c7_39, %c0_40] : memref<16x128xf32, #tpu.memory_space<vmem>>, vector<1x128xf32>
    tpu.vector_store %arg4[%c7_39, %c0_40], %99 {strides = array<i32>} : memref<16x128xf32, #tpu.memory_space<vmem>>, vector<1x128xf32>,
    %c8 = arith.constant 8 : index
    %c0_41 = arith.constant 0 : index
    %101 = vector.load %arg4[%c8, %c0_41] : memref<16x128xf32, #tpu.memory_space<vmem>>, vector<1x128xf32>
    %c8_i32 = arith.constant 8 : i32
    %102 = vector.broadcast %c8_i32 : i32 to vector<4x128xi32>
    %103 = arith.cmpi eq, %28, %102 : vector<4x128xi32>
    %104 = arith.extui %103 : vector<4x128xi1> to vector<4x128xi32>
    %105 = arith.sitofp %104 : vector<4x128xi32> to vector<4x128xf32>
    %cst_42 = arith.constant dense<0.000000e+00> : vector<128xf32>
    %106 = vector.multi_reduction <add>, %105, %cst_42 [0] : vector<4x128xf32> to vector<128xf32>
    %107 = vector.shape_cast %106 : vector<128xf32> to vector<1x128xf32>
    %108 = arith.addf %101, %107 : vector<1x128xf32>
    %c8_43 = arith.constant 8 : index
    %c0_44 = arith.constant 0 : index
    %109 = vector.load %arg4[%c8_43, %c0_44] : memref<16x128xf32, #tpu.memory_space<vmem>>, vector<1x128xf32>
    tpu.vector_store %arg4[%c8_43, %c0_44], %108 {strides = array<i32>} : memref<16x128xf32, #tpu.memory_space<vmem>>, vector<1x128xf32>,
    %c9 = arith.constant 9 : index
    %c0_45 = arith.constant 0 : index
    %110 = vector.load %arg4[%c9, %c0_45] : memref<16x128xf32, #tpu.memory_space<vmem>>, vector<1x128xf32>
    %c9_i32 = arith.constant 9 : i32
    %111 = vector.broadcast %c9_i32 : i32 to vector<4x128xi32>
    %112 = arith.cmpi eq, %28, %111 : vector<4x128xi32>
    %113 = arith.extui %112 : vector<4x128xi1> to vector<4x128xi32>
    %114 = arith.sitofp %113 : vector<4x128xi32> to vector<4x128xf32>
    %cst_46 = arith.constant dense<0.000000e+00> : vector<128xf32>
    %115 = vector.multi_reduction <add>, %114, %cst_46 [0] : vector<4x128xf32> to vector<128xf32>
    %116 = vector.shape_cast %115 : vector<128xf32> to vector<1x128xf32>
    %117 = arith.addf %110, %116 : vector<1x128xf32>
    %c9_47 = arith.constant 9 : index
    %c0_48 = arith.constant 0 : index
    %118 = vector.load %arg4[%c9_47, %c0_48] : memref<16x128xf32, #tpu.memory_space<vmem>>, vector<1x128xf32>
    tpu.vector_store %arg4[%c9_47, %c0_48], %117 {strides = array<i32>} : memref<16x128xf32, #tpu.memory_space<vmem>>, vector<1x128xf32>,
    %c10 = arith.constant 10 : index
    %c0_49 = arith.constant 0 : index
    %119 = vector.load %arg4[%c10, %c0_49] : memref<16x128xf32, #tpu.memory_space<vmem>>, vector<1x128xf32>
    %c10_i32 = arith.constant 10 : i32
    %120 = vector.broadcast %c10_i32 : i32 to vector<4x128xi32>
    %121 = arith.cmpi eq, %28, %120 : vector<4x128xi32>
    %122 = arith.extui %121 : vector<4x128xi1> to vector<4x128xi32>
    %123 = arith.sitofp %122 : vector<4x128xi32> to vector<4x128xf32>
    %cst_50 = arith.constant dense<0.000000e+00> : vector<128xf32>
    %124 = vector.multi_reduction <add>, %123, %cst_50 [0] : vector<4x128xf32> to vector<128xf32>
    %125 = vector.shape_cast %124 : vector<128xf32> to vector<1x128xf32>
    %126 = arith.addf %119, %125 : vector<1x128xf32>
    %c10_51 = arith.constant 10 : index
    %c0_52 = arith.constant 0 : index
    %127 = vector.load %arg4[%c10_51, %c0_52] : memref<16x128xf32, #tpu.memory_space<vmem>>, vector<1x128xf32>
    tpu.vector_store %arg4[%c10_51, %c0_52], %126 {strides = array<i32>} : memref<16x128xf32, #tpu.memory_space<vmem>>, vector<1x128xf32>,
    %c11 = arith.constant 11 : index
    %c0_53 = arith.constant 0 : index
    %128 = vector.load %arg4[%c11, %c0_53] : memref<16x128xf32, #tpu.memory_space<vmem>>, vector<1x128xf32>
    %c11_i32 = arith.constant 11 : i32
    %129 = vector.broadcast %c11_i32 : i32 to vector<4x128xi32>
    %130 = arith.cmpi eq, %28, %129 : vector<4x128xi32>
    %131 = arith.extui %130 : vector<4x128xi1> to vector<4x128xi32>
    %132 = arith.sitofp %131 : vector<4x128xi32> to vector<4x128xf32>
    %cst_54 = arith.constant dense<0.000000e+00> : vector<128xf32>
    %133 = vector.multi_reduction <add>, %132, %cst_54 [0] : vector<4x128xf32> to vector<128xf32>
    %134 = vector.shape_cast %133 : vector<128xf32> to vector<1x128xf32>
    %135 = arith.addf %128, %134 : vector<1x128xf32>
    %c11_55 = arith.constant 11 : index
    %c0_56 = arith.constant 0 : index
    %136 = vector.load %arg4[%c11_55, %c0_56] : memref<16x128xf32, #tpu.memory_space<vmem>>, vector<1x128xf32>
    tpu.vector_store %arg4[%c11_55, %c0_56], %135 {strides = array<i32>} : memref<16x128xf32, #tpu.memory_space<vmem>>, vector<1x128xf32>,
    %c12 = arith.constant 12 : index
    %c0_57 = arith.constant 0 : index
    %137 = vector.load %arg4[%c12, %c0_57] : memref<16x128xf32, #tpu.memory_space<vmem>>, vector<1x128xf32>
    %c12_i32 = arith.constant 12 : i32
    %138 = vector.broadcast %c12_i32 : i32 to vector<4x128xi32>
    %139 = arith.cmpi eq, %28, %138 : vector<4x128xi32>
    %140 = arith.extui %139 : vector<4x128xi1> to vector<4x128xi32>
    %141 = arith.sitofp %140 : vector<4x128xi32> to vector<4x128xf32>
    %cst_58 = arith.constant dense<0.000000e+00> : vector<128xf32>
    %142 = vector.multi_reduction <add>, %141, %cst_58 [0] : vector<4x128xf32> to vector<128xf32>
    %143 = vector.shape_cast %142 : vector<128xf32> to vector<1x128xf32>
    %144 = arith.addf %137, %143 : vector<1x128xf32>
    %c12_59 = arith.constant 12 : index
    %c0_60 = arith.constant 0 : index
    %145 = vector.load %arg4[%c12_59, %c0_60] : memref<16x128xf32, #tpu.memory_space<vmem>>, vector<1x128xf32>
    tpu.vector_store %arg4[%c12_59, %c0_60], %144 {strides = array<i32>} : memref<16x128xf32, #tpu.memory_space<vmem>>, vector<1x128xf32>,
    %c13 = arith.constant 13 : index
    %c0_61 = arith.constant 0 : index
    %146 = vector.load %arg4[%c13, %c0_61] : memref<16x128xf32, #tpu.memory_space<vmem>>, vector<1x128xf32>
    %c13_i32 = arith.constant 13 : i32
    %147 = vector.broadcast %c13_i32 : i32 to vector<4x128xi32>
    %148 = arith.cmpi eq, %28, %147 : vector<4x128xi32>
    %149 = arith.extui %148 : vector<4x128xi1> to vector<4x128xi32>
    %150 = arith.sitofp %149 : vector<4x128xi32> to vector<4x128xf32>
    %cst_62 = arith.constant dense<0.000000e+00> : vector<128xf32>
    %151 = vector.multi_reduction <add>, %150, %cst_62 [0] : vector<4x128xf32> to vector<128xf32>
    %152 = vector.shape_cast %151 : vector<128xf32> to vector<1x128xf32>
    %153 = arith.addf %146, %152 : vector<1x128xf32>
    %c13_63 = arith.constant 13 : index
    %c0_64 = arith.constant 0 : index
    %154 = vector.load %arg4[%c13_63, %c0_64] : memref<16x128xf32, #tpu.memory_space<vmem>>, vector<1x128xf32>
    tpu.vector_store %arg4[%c13_63, %c0_64], %153 {strides = array<i32>} : memref<16x128xf32, #tpu.memory_space<vmem>>, vector<1x128xf32>,
    %c14 = arith.constant 14 : index
    %c0_65 = arith.constant 0 : index
    %155 = vector.load %arg4[%c14, %c0_65] : memref<16x128xf32, #tpu.memory_space<vmem>>, vector<1x128xf32>
    %c14_i32 = arith.constant 14 : i32
    %156 = vector.broadcast %c14_i32 : i32 to vector<4x128xi32>
    %157 = arith.cmpi eq, %28, %156 : vector<4x128xi32>
    %158 = arith.extui %157 : vector<4x128xi1> to vector<4x128xi32>
    %159 = arith.sitofp %158 : vector<4x128xi32> to vector<4x128xf32>
    %cst_66 = arith.constant dense<0.000000e+00> : vector<128xf32>
    %160 = vector.multi_reduction <add>, %159, %cst_66 [0] : vector<4x128xf32> to vector<128xf32>
    %161 = vector.shape_cast %160 : vector<128xf32> to vector<1x128xf32>
    %162 = arith.addf %155, %161 : vector<1x128xf32>
    %c14_67 = arith.constant 14 : index
    %c0_68 = arith.constant 0 : index
    %163 = vector.load %arg4[%c14_67, %c0_68] : memref<16x128xf32, #tpu.memory_space<vmem>>, vector<1x128xf32>
    tpu.vector_store %arg4[%c14_67, %c0_68], %162 {strides = array<i32>} : memref<16x128xf32, #tpu.memory_space<vmem>>, vector<1x128xf32>,
    %c15 = arith.constant 15 : index
    %c0_69 = arith.constant 0 : index
    %164 = vector.load %arg4[%c15, %c0_69] : memref<16x128xf32, #tpu.memory_space<vmem>>, vector<1x128xf32>
    %c15_i32_70 = arith.constant 15 : i32
    %165 = vector.broadcast %c15_i32_70 : i32 to vector<4x128xi32>
    %166 = arith.cmpi eq, %28, %165 : vector<4x128xi32>
    %167 = arith.extui %166 : vector<4x128xi1> to vector<4x128xi32>
    %168 = arith.sitofp %167 : vector<4x128xi32> to vector<4x128xf32>
    %cst_71 = arith.constant dense<0.000000e+00> : vector<128xf32>
    %169 = vector.multi_reduction <add>, %168, %cst_71 [0] : vector<4x128xf32> to vector<128xf32>
    %170 = vector.shape_cast %169 : vector<128xf32> to vector<1x128xf32>
    %171 = arith.addf %164, %170 : vector<1x128xf32>
    %c15_72 = arith.constant 15 : index
    %c0_73 = arith.constant 0 : index
    %172 = vector.load %arg4[%c15_72, %c0_73] : memref<16x128xf32, #tpu.memory_space<vmem>>, vector<1x128xf32>
    tpu.vector_store %arg4[%c15_72, %c0_73], %171 {strides = array<i32>} : memref<16x128xf32, #tpu.memory_space<vmem>>, vector<1x128xf32>,
    return
  }
  func.func @transform_0(%arg0: i32, %arg1: i32) -> i32 {
    %c0_i32 = arith.constant 0 : i32
    %c0_i32_0 = arith.constant 0 : i32
    return %c0_i32 : i32
  }
  func.func @transform_1(%arg0: i32, %arg1: i32) -> (i32, i32) {
    %c1_i32 = arith.constant 1 : i32
    %0 = arith.muli %arg0, %c1_i32 : i32
    %1 = arith.addi %0, %arg1 : i32
    %c0_i32 = arith.constant 0 : i32
    %2 = arith.minsi %1, %c0_i32 : i32
    %c0_i32_0 = arith.constant 0 : i32
    %c0_i32_1 = arith.constant 0 : i32
    return %2, %c0_i32_0 : i32, i32
  }
  func.func @transform_2(%arg0: i32, %arg1: i32) -> (i32, i32) {
    %c0_i32 = arith.constant 0 : i32
    %c0_i32_0 = arith.constant 0 : i32
    return %arg0, %c0_i32 : i32, i32
  }
}

module attributes {stable_mosaic.version = 11 : i64} {
  func.func @_radix_hist_kernel(%arg0: i32, %arg1: i32, %arg2: memref<1xi32, #tpu.memory_space<smem>>, %arg3: memref<4x128xf32, #tpu.memory_space<vmem>>, %arg4: memref<16x128xf32, #tpu.memory_space<vmem>>) attributes {dimension_semantics = [#tpu.dimension_semantics<parallel>, #tpu.dimension_semantics<arbitrary>], iteration_bounds = array<i64: 2, 1>, scalar_prefetch = 0 : i64, scratch_operands = 0 : i64, tpu.core_type = #tpu.core_type<tc>, window_params = [{transform_indices = @transform_0, window_bounds = array<i64: 1>}, {transform_indices = @transform_1, window_bounds = array<i64: 4, 128>}, {transform_indices = @transform_2, window_bounds = array<i64: 16, 128>}]} {
    %c0_i32 = arith.constant 0 : i32
    %0 = arith.cmpi eq, %arg1, %c0_i32 : i32
    %1 = arith.extui %0 : i1 to i32
    %c0_i32_0 = arith.constant 0 : i32
    %2 = arith.cmpi ne, %1, %c0_i32_0 : i32
    scf.if %2 {
      %cst_75 = arith.constant 0.000000e+00 : f32
      %173 = vector.broadcast %cst_75 : f32 to vector<16x128xf32>
      %c0_76 = arith.constant 0 : index
      %c0_77 = arith.constant 0 : index
      %174 = vector.load %arg4[%c0_76, %c0_77] : memref<16x128xf32, #tpu.memory_space<vmem>>, vector<16x128xf32>
      tpu.vector_store %arg4[%c0_76, %c0_77], %173 {strides = array<i32>} : memref<16x128xf32, #tpu.memory_space<vmem>>, vector<16x128xf32>,
    } else {
    }
    %c0 = arith.constant 0 : index
    %c0_1 = arith.constant 0 : index
    %3 = vector.load %arg3[%c0, %c0_1] : memref<4x128xf32, #tpu.memory_space<vmem>>, vector<4x128xf32>
    %4 = tpu.bitcast %3 : vector<4x128xf32> -> vector<4x128xi32>
    %c1_i32 = arith.constant 1 : i32
    %5 = arith.muli %arg0, %c1_i32 : i32
    %6 = arith.addi %5, %arg1 : i32
    %c4_i32 = arith.constant 4 : i32
    %7 = arith.muli %6, %c4_i32 : i32
    %8 = tpu.iota {dimensions = array<i32: 0>} : vector<4x128xi32>
    %9 = vector.broadcast %7 : i32 to vector<4x128xi32>
    %10 = arith.addi %9, %8 : vector<4x128xi32>
    %c4_i32_2 = arith.constant 4 : i32
    %11 = vector.broadcast %c4_i32_2 : i32 to vector<4x128xi32>
    %12 = arith.cmpi slt, %10, %11 : vector<4x128xi32>
    %c0_i32_3 = arith.constant 0 : i32
    %13 = vector.broadcast %c0_i32_3 : i32 to vector<4x128xi32>
    %14 = arith.cmpi sge, %4, %13 : vector<4x128xi32>
    %15 = arith.andi %12, %14 : vector<4x128xi1>
    %c0_4 = arith.constant 0 : index
    %16 = memref.load %arg2[%c0_4] : memref<1xi32, #tpu.memory_space<smem>>
    %c16_i32 = arith.constant 16 : i32
    %17 = arith.shrsi %16, %c16_i32 : i32
    %c16_i32_5 = arith.constant 16 : i32
    %18 = vector.broadcast %c16_i32_5 : i32 to vector<4x128xi32>
    %19 = arith.shrsi %4, %18 : vector<4x128xi32>
    %20 = vector.broadcast %17 : i32 to vector<4x128xi32>
    %21 = arith.cmpi eq, %19, %20 : vector<4x128xi32>
    %22 = arith.andi %15, %21 : vector<4x128xi1>
    %c12_i32 = arith.constant 12 : i32
    %23 = vector.broadcast %c12_i32 : i32 to vector<4x128xi32>
    %24 = arith.shrsi %4, %23 : vector<4x128xi32>
    %c15_i32 = arith.constant 15 : i32
    %25 = vector.broadcast %c15_i32 : i32 to vector<4x128xi32>
    %26 = arith.andi %24, %25 : vector<4x128xi32>
    %c-1_i32 = arith.constant -1 : i32
    %27 = vector.broadcast %c-1_i32 : i32 to vector<4x128xi32>
    %28 = arith.select %22, %26, %27 : vector<4x128xi1>, vector<4x128xi32>
    %c0_6 = arith.constant 0 : index
    %c0_7 = arith.constant 0 : index
    %29 = vector.load %arg4[%c0_6, %c0_7] : memref<16x128xf32, #tpu.memory_space<vmem>>, vector<1x128xf32>
    %c0_i32_8 = arith.constant 0 : i32
    %30 = vector.broadcast %c0_i32_8 : i32 to vector<4x128xi32>
    %31 = arith.cmpi eq, %28, %30 : vector<4x128xi32>
    %32 = arith.extui %31 : vector<4x128xi1> to vector<4x128xi32>
    %33 = arith.sitofp %32 : vector<4x128xi32> to vector<4x128xf32>
    %cst = arith.constant dense<0.000000e+00> : vector<128xf32>
    %34 = vector.multi_reduction <add>, %33, %cst [0] : vector<4x128xf32> to vector<128xf32>
    %35 = vector.shape_cast %34 : vector<128xf32> to vector<1x128xf32>
    %36 = arith.addf %29, %35 : vector<1x128xf32>
    %c0_9 = arith.constant 0 : index
    %c0_10 = arith.constant 0 : index
    %37 = vector.load %arg4[%c0_9, %c0_10] : memref<16x128xf32, #tpu.memory_space<vmem>>, vector<1x128xf32>
    tpu.vector_store %arg4[%c0_9, %c0_10], %36 {strides = array<i32>} : memref<16x128xf32, #tpu.memory_space<vmem>>, vector<1x128xf32>,
    %c1 = arith.constant 1 : index
    %c0_11 = arith.constant 0 : index
    %38 = vector.load %arg4[%c1, %c0_11] : memref<16x128xf32, #tpu.memory_space<vmem>>, vector<1x128xf32>
    %c1_i32_12 = arith.constant 1 : i32
    %39 = vector.broadcast %c1_i32_12 : i32 to vector<4x128xi32>
    %40 = arith.cmpi eq, %28, %39 : vector<4x128xi32>
    %41 = arith.extui %40 : vector<4x128xi1> to vector<4x128xi32>
    %42 = arith.sitofp %41 : vector<4x128xi32> to vector<4x128xf32>
    %cst_13 = arith.constant dense<0.000000e+00> : vector<128xf32>
    %43 = vector.multi_reduction <add>, %42, %cst_13 [0] : vector<4x128xf32> to vector<128xf32>
    %44 = vector.shape_cast %43 : vector<128xf32> to vector<1x128xf32>
    %45 = arith.addf %38, %44 : vector<1x128xf32>
    %c1_14 = arith.constant 1 : index
    %c0_15 = arith.constant 0 : index
    %46 = vector.load %arg4[%c1_14, %c0_15] : memref<16x128xf32, #tpu.memory_space<vmem>>, vector<1x128xf32>
    tpu.vector_store %arg4[%c1_14, %c0_15], %45 {strides = array<i32>} : memref<16x128xf32, #tpu.memory_space<vmem>>, vector<1x128xf32>,
    %c2 = arith.constant 2 : index
    %c0_16 = arith.constant 0 : index
    %47 = vector.load %arg4[%c2, %c0_16] : memref<16x128xf32, #tpu.memory_space<vmem>>, vector<1x128xf32>
    %c2_i32 = arith.constant 2 : i32
    %48 = vector.broadcast %c2_i32 : i32 to vector<4x128xi32>
    %49 = arith.cmpi eq, %28, %48 : vector<4x128xi32>
    %50 = arith.extui %49 : vector<4x128xi1> to vector<4x128xi32>
    %51 = arith.sitofp %50 : vector<4x128xi32> to vector<4x128xf32>
    %cst_17 = arith.constant dense<0.000000e+00> : vector<128xf32>
    %52 = vector.multi_reduction <add>, %51, %cst_17 [0] : vector<4x128xf32> to vector<128xf32>
    %53 = vector.shape_cast %52 : vector<128xf32> to vector<1x128xf32>
    %54 = arith.addf %47, %53 : vector<1x128xf32>
    %c2_18 = arith.constant 2 : index
    %c0_19 = arith.constant 0 : index
    %55 = vector.load %arg4[%c2_18, %c0_19] : memref<16x128xf32, #tpu.memory_space<vmem>>, vector<1x128xf32>
    tpu.vector_store %arg4[%c2_18, %c0_19], %54 {strides = array<i32>} : memref<16x128xf32, #tpu.memory_space<vmem>>, vector<1x128xf32>,
    %c3 = arith.constant 3 : index
    %c0_20 = arith.constant 0 : index
    %56 = vector.load %arg4[%c3, %c0_20] : memref<16x128xf32, #tpu.memory_space<vmem>>, vector<1x128xf32>
    %c3_i32 = arith.constant 3 : i32
    %57 = vector.broadcast %c3_i32 : i32 to vector<4x128xi32>
    %58 = arith.cmpi eq, %28, %57 : vector<4x128xi32>
    %59 = arith.extui %58 : vector<4x128xi1> to vector<4x128xi32>
    %60 = arith.sitofp %59 : vector<4x128xi32> to vector<4x128xf32>
    %cst_21 = arith.constant dense<0.000000e+00> : vector<128xf32>
    %61 = vector.multi_reduction <add>, %60, %cst_21 [0] : vector<4x128xf32> to vector<128xf32>
    %62 = vector.shape_cast %61 : vector<128xf32> to vector<1x128xf32>
    %63 = arith.addf %56, %62 : vector<1x128xf32>
    %c3_22 = arith.constant 3 : index
    %c0_23 = arith.constant 0 : index
    %64 = vector.load %arg4[%c3_22, %c0_23] : memref<16x128xf32, #tpu.memory_space<vmem>>, vector<1x128xf32>
    tpu.vector_store %arg4[%c3_22, %c0_23], %63 {strides = array<i32>} : memref<16x128xf32, #tpu.memory_space<vmem>>, vector<1x128xf32>,
    %c4 = arith.constant 4 : index
    %c0_24 = arith.constant 0 : index
    %65 = vector.load %arg4[%c4, %c0_24] : memref<16x128xf32, #tpu.memory_space<vmem>>, vector<1x128xf32>
    %c4_i32_25 = arith.constant 4 : i32
    %66 = vector.broadcast %c4_i32_25 : i32 to vector<4x128xi32>
    %67 = arith.cmpi eq, %28, %66 : vector<4x128xi32>
    %68 = arith.extui %67 : vector<4x128xi1> to vector<4x128xi32>
    %69 = arith.sitofp %68 : vector<4x128xi32> to vector<4x128xf32>
    %cst_26 = arith.constant dense<0.000000e+00> : vector<128xf32>
    %70 = vector.multi_reduction <add>, %69, %cst_26 [0] : vector<4x128xf32> to vector<128xf32>
    %71 = vector.shape_cast %70 : vector<128xf32> to vector<1x128xf32>
    %72 = arith.addf %65, %71 : vector<1x128xf32>
    %c4_27 = arith.constant 4 : index
    %c0_28 = arith.constant 0 : index
    %73 = vector.load %arg4[%c4_27, %c0_28] : memref<16x128xf32, #tpu.memory_space<vmem>>, vector<1x128xf32>
    tpu.vector_store %arg4[%c4_27, %c0_28], %72 {strides = array<i32>} : memref<16x128xf32, #tpu.memory_space<vmem>>, vector<1x128xf32>,
    %c5 = arith.constant 5 : index
    %c0_29 = arith.constant 0 : index
    %74 = vector.load %arg4[%c5, %c0_29] : memref<16x128xf32, #tpu.memory_space<vmem>>, vector<1x128xf32>
    %c5_i32 = arith.constant 5 : i32
    %75 = vector.broadcast %c5_i32 : i32 to vector<4x128xi32>
    %76 = arith.cmpi eq, %28, %75 : vector<4x128xi32>
    %77 = arith.extui %76 : vector<4x128xi1> to vector<4x128xi32>
    %78 = arith.sitofp %77 : vector<4x128xi32> to vector<4x128xf32>
    %cst_30 = arith.constant dense<0.000000e+00> : vector<128xf32>
    %79 = vector.multi_reduction <add>, %78, %cst_30 [0] : vector<4x128xf32> to vector<128xf32>
    %80 = vector.shape_cast %79 : vector<128xf32> to vector<1x128xf32>
    %81 = arith.addf %74, %80 : vector<1x128xf32>
    %c5_31 = arith.constant 5 : index
    %c0_32 = arith.constant 0 : index
    %82 = vector.load %arg4[%c5_31, %c0_32] : memref<16x128xf32, #tpu.memory_space<vmem>>, vector<1x128xf32>
    tpu.vector_store %arg4[%c5_31, %c0_32], %81 {strides = array<i32>} : memref<16x128xf32, #tpu.memory_space<vmem>>, vector<1x128xf32>,
    %c6 = arith.constant 6 : index
    %c0_33 = arith.constant 0 : index
    %83 = vector.load %arg4[%c6, %c0_33] : memref<16x128xf32, #tpu.memory_space<vmem>>, vector<1x128xf32>
    %c6_i32 = arith.constant 6 : i32
    %84 = vector.broadcast %c6_i32 : i32 to vector<4x128xi32>
    %85 = arith.cmpi eq, %28, %84 : vector<4x128xi32>
    %86 = arith.extui %85 : vector<4x128xi1> to vector<4x128xi32>
    %87 = arith.sitofp %86 : vector<4x128xi32> to vector<4x128xf32>
    %cst_34 = arith.constant dense<0.000000e+00> : vector<128xf32>
    %88 = vector.multi_reduction <add>, %87, %cst_34 [0] : vector<4x128xf32> to vector<128xf32>
    %89 = vector.shape_cast %88 : vector<128xf32> to vector<1x128xf32>
    %90 = arith.addf %83, %89 : vector<1x128xf32>
    %c6_35 = arith.constant 6 : index
    %c0_36 = arith.constant 0 : index
    %91 = vector.load %arg4[%c6_35, %c0_36] : memref<16x128xf32, #tpu.memory_space<vmem>>, vector<1x128xf32>
    tpu.vector_store %arg4[%c6_35, %c0_36], %90 {strides = array<i32>} : memref<16x128xf32, #tpu.memory_space<vmem>>, vector<1x128xf32>,
    %c7 = arith.constant 7 : index
    %c0_37 = arith.constant 0 : index
    %92 = vector.load %arg4[%c7, %c0_37] : memref<16x128xf32, #tpu.memory_space<vmem>>, vector<1x128xf32>
    %c7_i32 = arith.constant 7 : i32
    %93 = vector.broadcast %c7_i32 : i32 to vector<4x128xi32>
    %94 = arith.cmpi eq, %28, %93 : vector<4x128xi32>
    %95 = arith.extui %94 : vector<4x128xi1> to vector<4x128xi32>
    %96 = arith.sitofp %95 : vector<4x128xi32> to vector<4x128xf32>
    %cst_38 = arith.constant dense<0.000000e+00> : vector<128xf32>
    %97 = vector.multi_reduction <add>, %96, %cst_38 [0] : vector<4x128xf32> to vector<128xf32>
    %98 = vector.shape_cast %97 : vector<128xf32> to vector<1x128xf32>
    %99 = arith.addf %92, %98 : vector<1x128xf32>
    %c7_39 = arith.constant 7 : index
    %c0_40 = arith.constant 0 : index
    %100 = vector.load %arg4[%c7_39, %c0_40] : memref<16x128xf32, #tpu.memory_space<vmem>>, vector<1x128xf32>
    tpu.vector_store %arg4[%c7_39, %c0_40], %99 {strides = array<i32>} : memref<16x128xf32, #tpu.memory_space<vmem>>, vector<1x128xf32>,
    %c8 = arith.constant 8 : index
    %c0_41 = arith.constant 0 : index
    %101 = vector.load %arg4[%c8, %c0_41] : memref<16x128xf32, #tpu.memory_space<vmem>>, vector<1x128xf32>
    %c8_i32 = arith.constant 8 : i32
    %102 = vector.broadcast %c8_i32 : i32 to vector<4x128xi32>
    %103 = arith.cmpi eq, %28, %102 : vector<4x128xi32>
    %104 = arith.extui %103 : vector<4x128xi1> to vector<4x128xi32>
    %105 = arith.sitofp %104 : vector<4x128xi32> to vector<4x128xf32>
    %cst_42 = arith.constant dense<0.000000e+00> : vector<128xf32>
    %106 = vector.multi_reduction <add>, %105, %cst_42 [0] : vector<4x128xf32> to vector<128xf32>
    %107 = vector.shape_cast %106 : vector<128xf32> to vector<1x128xf32>
    %108 = arith.addf %101, %107 : vector<1x128xf32>
    %c8_43 = arith.constant 8 : index
    %c0_44 = arith.constant 0 : index
    %109 = vector.load %arg4[%c8_43, %c0_44] : memref<16x128xf32, #tpu.memory_space<vmem>>, vector<1x128xf32>
    tpu.vector_store %arg4[%c8_43, %c0_44], %108 {strides = array<i32>} : memref<16x128xf32, #tpu.memory_space<vmem>>, vector<1x128xf32>,
    %c9 = arith.constant 9 : index
    %c0_45 = arith.constant 0 : index
    %110 = vector.load %arg4[%c9, %c0_45] : memref<16x128xf32, #tpu.memory_space<vmem>>, vector<1x128xf32>
    %c9_i32 = arith.constant 9 : i32
    %111 = vector.broadcast %c9_i32 : i32 to vector<4x128xi32>
    %112 = arith.cmpi eq, %28, %111 : vector<4x128xi32>
    %113 = arith.extui %112 : vector<4x128xi1> to vector<4x128xi32>
    %114 = arith.sitofp %113 : vector<4x128xi32> to vector<4x128xf32>
    %cst_46 = arith.constant dense<0.000000e+00> : vector<128xf32>
    %115 = vector.multi_reduction <add>, %114, %cst_46 [0] : vector<4x128xf32> to vector<128xf32>
    %116 = vector.shape_cast %115 : vector<128xf32> to vector<1x128xf32>
    %117 = arith.addf %110, %116 : vector<1x128xf32>
    %c9_47 = arith.constant 9 : index
    %c0_48 = arith.constant 0 : index
    %118 = vector.load %arg4[%c9_47, %c0_48] : memref<16x128xf32, #tpu.memory_space<vmem>>, vector<1x128xf32>
    tpu.vector_store %arg4[%c9_47, %c0_48], %117 {strides = array<i32>} : memref<16x128xf32, #tpu.memory_space<vmem>>, vector<1x128xf32>,
    %c10 = arith.constant 10 : index
    %c0_49 = arith.constant 0 : index
    %119 = vector.load %arg4[%c10, %c0_49] : memref<16x128xf32, #tpu.memory_space<vmem>>, vector<1x128xf32>
    %c10_i32 = arith.constant 10 : i32
    %120 = vector.broadcast %c10_i32 : i32 to vector<4x128xi32>
    %121 = arith.cmpi eq, %28, %120 : vector<4x128xi32>
    %122 = arith.extui %121 : vector<4x128xi1> to vector<4x128xi32>
    %123 = arith.sitofp %122 : vector<4x128xi32> to vector<4x128xf32>
    %cst_50 = arith.constant dense<0.000000e+00> : vector<128xf32>
    %124 = vector.multi_reduction <add>, %123, %cst_50 [0] : vector<4x128xf32> to vector<128xf32>
    %125 = vector.shape_cast %124 : vector<128xf32> to vector<1x128xf32>
    %126 = arith.addf %119, %125 : vector<1x128xf32>
    %c10_51 = arith.constant 10 : index
    %c0_52 = arith.constant 0 : index
    %127 = vector.load %arg4[%c10_51, %c0_52] : memref<16x128xf32, #tpu.memory_space<vmem>>, vector<1x128xf32>
    tpu.vector_store %arg4[%c10_51, %c0_52], %126 {strides = array<i32>} : memref<16x128xf32, #tpu.memory_space<vmem>>, vector<1x128xf32>,
    %c11 = arith.constant 11 : index
    %c0_53 = arith.constant 0 : index
    %128 = vector.load %arg4[%c11, %c0_53] : memref<16x128xf32, #tpu.memory_space<vmem>>, vector<1x128xf32>
    %c11_i32 = arith.constant 11 : i32
    %129 = vector.broadcast %c11_i32 : i32 to vector<4x128xi32>
    %130 = arith.cmpi eq, %28, %129 : vector<4x128xi32>
    %131 = arith.extui %130 : vector<4x128xi1> to vector<4x128xi32>
    %132 = arith.sitofp %131 : vector<4x128xi32> to vector<4x128xf32>
    %cst_54 = arith.constant dense<0.000000e+00> : vector<128xf32>
    %133 = vector.multi_reduction <add>, %132, %cst_54 [0] : vector<4x128xf32> to vector<128xf32>
    %134 = vector.shape_cast %133 : vector<128xf32> to vector<1x128xf32>
    %135 = arith.addf %128, %134 : vector<1x128xf32>
    %c11_55 = arith.constant 11 : index
    %c0_56 = arith.constant 0 : index
    %136 = vector.load %arg4[%c11_55, %c0_56] : memref<16x128xf32, #tpu.memory_space<vmem>>, vector<1x128xf32>
    tpu.vector_store %arg4[%c11_55, %c0_56], %135 {strides = array<i32>} : memref<16x128xf32, #tpu.memory_space<vmem>>, vector<1x128xf32>,
    %c12 = arith.constant 12 : index
    %c0_57 = arith.constant 0 : index
    %137 = vector.load %arg4[%c12, %c0_57] : memref<16x128xf32, #tpu.memory_space<vmem>>, vector<1x128xf32>
    %c12_i32_58 = arith.constant 12 : i32
    %138 = vector.broadcast %c12_i32_58 : i32 to vector<4x128xi32>
    %139 = arith.cmpi eq, %28, %138 : vector<4x128xi32>
    %140 = arith.extui %139 : vector<4x128xi1> to vector<4x128xi32>
    %141 = arith.sitofp %140 : vector<4x128xi32> to vector<4x128xf32>
    %cst_59 = arith.constant dense<0.000000e+00> : vector<128xf32>
    %142 = vector.multi_reduction <add>, %141, %cst_59 [0] : vector<4x128xf32> to vector<128xf32>
    %143 = vector.shape_cast %142 : vector<128xf32> to vector<1x128xf32>
    %144 = arith.addf %137, %143 : vector<1x128xf32>
    %c12_60 = arith.constant 12 : index
    %c0_61 = arith.constant 0 : index
    %145 = vector.load %arg4[%c12_60, %c0_61] : memref<16x128xf32, #tpu.memory_space<vmem>>, vector<1x128xf32>
    tpu.vector_store %arg4[%c12_60, %c0_61], %144 {strides = array<i32>} : memref<16x128xf32, #tpu.memory_space<vmem>>, vector<1x128xf32>,
    %c13 = arith.constant 13 : index
    %c0_62 = arith.constant 0 : index
    %146 = vector.load %arg4[%c13, %c0_62] : memref<16x128xf32, #tpu.memory_space<vmem>>, vector<1x128xf32>
    %c13_i32 = arith.constant 13 : i32
    %147 = vector.broadcast %c13_i32 : i32 to vector<4x128xi32>
    %148 = arith.cmpi eq, %28, %147 : vector<4x128xi32>
    %149 = arith.extui %148 : vector<4x128xi1> to vector<4x128xi32>
    %150 = arith.sitofp %149 : vector<4x128xi32> to vector<4x128xf32>
    %cst_63 = arith.constant dense<0.000000e+00> : vector<128xf32>
    %151 = vector.multi_reduction <add>, %150, %cst_63 [0] : vector<4x128xf32> to vector<128xf32>
    %152 = vector.shape_cast %151 : vector<128xf32> to vector<1x128xf32>
    %153 = arith.addf %146, %152 : vector<1x128xf32>
    %c13_64 = arith.constant 13 : index
    %c0_65 = arith.constant 0 : index
    %154 = vector.load %arg4[%c13_64, %c0_65] : memref<16x128xf32, #tpu.memory_space<vmem>>, vector<1x128xf32>
    tpu.vector_store %arg4[%c13_64, %c0_65], %153 {strides = array<i32>} : memref<16x128xf32, #tpu.memory_space<vmem>>, vector<1x128xf32>,
    %c14 = arith.constant 14 : index
    %c0_66 = arith.constant 0 : index
    %155 = vector.load %arg4[%c14, %c0_66] : memref<16x128xf32, #tpu.memory_space<vmem>>, vector<1x128xf32>
    %c14_i32 = arith.constant 14 : i32
    %156 = vector.broadcast %c14_i32 : i32 to vector<4x128xi32>
    %157 = arith.cmpi eq, %28, %156 : vector<4x128xi32>
    %158 = arith.extui %157 : vector<4x128xi1> to vector<4x128xi32>
    %159 = arith.sitofp %158 : vector<4x128xi32> to vector<4x128xf32>
    %cst_67 = arith.constant dense<0.000000e+00> : vector<128xf32>
    %160 = vector.multi_reduction <add>, %159, %cst_67 [0] : vector<4x128xf32> to vector<128xf32>
    %161 = vector.shape_cast %160 : vector<128xf32> to vector<1x128xf32>
    %162 = arith.addf %155, %161 : vector<1x128xf32>
    %c14_68 = arith.constant 14 : index
    %c0_69 = arith.constant 0 : index
    %163 = vector.load %arg4[%c14_68, %c0_69] : memref<16x128xf32, #tpu.memory_space<vmem>>, vector<1x128xf32>
    tpu.vector_store %arg4[%c14_68, %c0_69], %162 {strides = array<i32>} : memref<16x128xf32, #tpu.memory_space<vmem>>, vector<1x128xf32>,
    %c15 = arith.constant 15 : index
    %c0_70 = arith.constant 0 : index
    %164 = vector.load %arg4[%c15, %c0_70] : memref<16x128xf32, #tpu.memory_space<vmem>>, vector<1x128xf32>
    %c15_i32_71 = arith.constant 15 : i32
    %165 = vector.broadcast %c15_i32_71 : i32 to vector<4x128xi32>
    %166 = arith.cmpi eq, %28, %165 : vector<4x128xi32>
    %167 = arith.extui %166 : vector<4x128xi1> to vector<4x128xi32>
    %168 = arith.sitofp %167 : vector<4x128xi32> to vector<4x128xf32>
    %cst_72 = arith.constant dense<0.000000e+00> : vector<128xf32>
    %169 = vector.multi_reduction <add>, %168, %cst_72 [0] : vector<4x128xf32> to vector<128xf32>
    %170 = vector.shape_cast %169 : vector<128xf32> to vector<1x128xf32>
    %171 = arith.addf %164, %170 : vector<1x128xf32>
    %c15_73 = arith.constant 15 : index
    %c0_74 = arith.constant 0 : index
    %172 = vector.load %arg4[%c15_73, %c0_74] : memref<16x128xf32, #tpu.memory_space<vmem>>, vector<1x128xf32>
    tpu.vector_store %arg4[%c15_73, %c0_74], %171 {strides = array<i32>} : memref<16x128xf32, #tpu.memory_space<vmem>>, vector<1x128xf32>,
    return
  }
  func.func @transform_0(%arg0: i32, %arg1: i32) -> i32 {
    %c0_i32 = arith.constant 0 : i32
    %c0_i32_0 = arith.constant 0 : i32
    return %c0_i32 : i32
  }
  func.func @transform_1(%arg0: i32, %arg1: i32) -> (i32, i32) {
    %c1_i32 = arith.constant 1 : i32
    %0 = arith.muli %arg0, %c1_i32 : i32
    %1 = arith.addi %0, %arg1 : i32
    %c0_i32 = arith.constant 0 : i32
    %2 = arith.minsi %1, %c0_i32 : i32
    %c0_i32_0 = arith.constant 0 : i32
    %c0_i32_1 = arith.constant 0 : i32
    return %2, %c0_i32_0 : i32, i32
  }
  func.func @transform_2(%arg0: i32, %arg1: i32) -> (i32, i32) {
    %c0_i32 = arith.constant 0 : i32
    %c0_i32_0 = arith.constant 0 : i32
    return %arg0, %c0_i32 : i32, i32
  }
}

module attributes {stable_mosaic.version = 11 : i64} {
  func.func @_radix_hist_kernel(%arg0: i32, %arg1: i32, %arg2: memref<1xi32, #tpu.memory_space<smem>>, %arg3: memref<4x128xf32, #tpu.memory_space<vmem>>, %arg4: memref<16x128xf32, #tpu.memory_space<vmem>>) attributes {dimension_semantics = [#tpu.dimension_semantics<parallel>, #tpu.dimension_semantics<arbitrary>], iteration_bounds = array<i64: 2, 1>, scalar_prefetch = 0 : i64, scratch_operands = 0 : i64, tpu.core_type = #tpu.core_type<tc>, window_params = [{transform_indices = @transform_0, window_bounds = array<i64: 1>}, {transform_indices = @transform_1, window_bounds = array<i64: 4, 128>}, {transform_indices = @transform_2, window_bounds = array<i64: 16, 128>}]} {
    %c0_i32 = arith.constant 0 : i32
    %0 = arith.cmpi eq, %arg1, %c0_i32 : i32
    %1 = arith.extui %0 : i1 to i32
    %c0_i32_0 = arith.constant 0 : i32
    %2 = arith.cmpi ne, %1, %c0_i32_0 : i32
    scf.if %2 {
      %cst_76 = arith.constant 0.000000e+00 : f32
      %173 = vector.broadcast %cst_76 : f32 to vector<16x128xf32>
      %c0_77 = arith.constant 0 : index
      %c0_78 = arith.constant 0 : index
      %174 = vector.load %arg4[%c0_77, %c0_78] : memref<16x128xf32, #tpu.memory_space<vmem>>, vector<16x128xf32>
      tpu.vector_store %arg4[%c0_77, %c0_78], %173 {strides = array<i32>} : memref<16x128xf32, #tpu.memory_space<vmem>>, vector<16x128xf32>,
    } else {
    }
    %c0 = arith.constant 0 : index
    %c0_1 = arith.constant 0 : index
    %3 = vector.load %arg3[%c0, %c0_1] : memref<4x128xf32, #tpu.memory_space<vmem>>, vector<4x128xf32>
    %4 = tpu.bitcast %3 : vector<4x128xf32> -> vector<4x128xi32>
    %c1_i32 = arith.constant 1 : i32
    %5 = arith.muli %arg0, %c1_i32 : i32
    %6 = arith.addi %5, %arg1 : i32
    %c4_i32 = arith.constant 4 : i32
    %7 = arith.muli %6, %c4_i32 : i32
    %8 = tpu.iota {dimensions = array<i32: 0>} : vector<4x128xi32>
    %9 = vector.broadcast %7 : i32 to vector<4x128xi32>
    %10 = arith.addi %9, %8 : vector<4x128xi32>
    %c4_i32_2 = arith.constant 4 : i32
    %11 = vector.broadcast %c4_i32_2 : i32 to vector<4x128xi32>
    %12 = arith.cmpi slt, %10, %11 : vector<4x128xi32>
    %c0_i32_3 = arith.constant 0 : i32
    %13 = vector.broadcast %c0_i32_3 : i32 to vector<4x128xi32>
    %14 = arith.cmpi sge, %4, %13 : vector<4x128xi32>
    %15 = arith.andi %12, %14 : vector<4x128xi1>
    %c0_4 = arith.constant 0 : index
    %16 = memref.load %arg2[%c0_4] : memref<1xi32, #tpu.memory_space<smem>>
    %c12_i32 = arith.constant 12 : i32
    %17 = arith.shrsi %16, %c12_i32 : i32
    %c12_i32_5 = arith.constant 12 : i32
    %18 = vector.broadcast %c12_i32_5 : i32 to vector<4x128xi32>
    %19 = arith.shrsi %4, %18 : vector<4x128xi32>
    %20 = vector.broadcast %17 : i32 to vector<4x128xi32>
    %21 = arith.cmpi eq, %19, %20 : vector<4x128xi32>
    %22 = arith.andi %15, %21 : vector<4x128xi1>
    %c8_i32 = arith.constant 8 : i32
    %23 = vector.broadcast %c8_i32 : i32 to vector<4x128xi32>
    %24 = arith.shrsi %4, %23 : vector<4x128xi32>
    %c15_i32 = arith.constant 15 : i32
    %25 = vector.broadcast %c15_i32 : i32 to vector<4x128xi32>
    %26 = arith.andi %24, %25 : vector<4x128xi32>
    %c-1_i32 = arith.constant -1 : i32
    %27 = vector.broadcast %c-1_i32 : i32 to vector<4x128xi32>
    %28 = arith.select %22, %26, %27 : vector<4x128xi1>, vector<4x128xi32>
    %c0_6 = arith.constant 0 : index
    %c0_7 = arith.constant 0 : index
    %29 = vector.load %arg4[%c0_6, %c0_7] : memref<16x128xf32, #tpu.memory_space<vmem>>, vector<1x128xf32>
    %c0_i32_8 = arith.constant 0 : i32
    %30 = vector.broadcast %c0_i32_8 : i32 to vector<4x128xi32>
    %31 = arith.cmpi eq, %28, %30 : vector<4x128xi32>
    %32 = arith.extui %31 : vector<4x128xi1> to vector<4x128xi32>
    %33 = arith.sitofp %32 : vector<4x128xi32> to vector<4x128xf32>
    %cst = arith.constant dense<0.000000e+00> : vector<128xf32>
    %34 = vector.multi_reduction <add>, %33, %cst [0] : vector<4x128xf32> to vector<128xf32>
    %35 = vector.shape_cast %34 : vector<128xf32> to vector<1x128xf32>
    %36 = arith.addf %29, %35 : vector<1x128xf32>
    %c0_9 = arith.constant 0 : index
    %c0_10 = arith.constant 0 : index
    %37 = vector.load %arg4[%c0_9, %c0_10] : memref<16x128xf32, #tpu.memory_space<vmem>>, vector<1x128xf32>
    tpu.vector_store %arg4[%c0_9, %c0_10], %36 {strides = array<i32>} : memref<16x128xf32, #tpu.memory_space<vmem>>, vector<1x128xf32>,
    %c1 = arith.constant 1 : index
    %c0_11 = arith.constant 0 : index
    %38 = vector.load %arg4[%c1, %c0_11] : memref<16x128xf32, #tpu.memory_space<vmem>>, vector<1x128xf32>
    %c1_i32_12 = arith.constant 1 : i32
    %39 = vector.broadcast %c1_i32_12 : i32 to vector<4x128xi32>
    %40 = arith.cmpi eq, %28, %39 : vector<4x128xi32>
    %41 = arith.extui %40 : vector<4x128xi1> to vector<4x128xi32>
    %42 = arith.sitofp %41 : vector<4x128xi32> to vector<4x128xf32>
    %cst_13 = arith.constant dense<0.000000e+00> : vector<128xf32>
    %43 = vector.multi_reduction <add>, %42, %cst_13 [0] : vector<4x128xf32> to vector<128xf32>
    %44 = vector.shape_cast %43 : vector<128xf32> to vector<1x128xf32>
    %45 = arith.addf %38, %44 : vector<1x128xf32>
    %c1_14 = arith.constant 1 : index
    %c0_15 = arith.constant 0 : index
    %46 = vector.load %arg4[%c1_14, %c0_15] : memref<16x128xf32, #tpu.memory_space<vmem>>, vector<1x128xf32>
    tpu.vector_store %arg4[%c1_14, %c0_15], %45 {strides = array<i32>} : memref<16x128xf32, #tpu.memory_space<vmem>>, vector<1x128xf32>,
    %c2 = arith.constant 2 : index
    %c0_16 = arith.constant 0 : index
    %47 = vector.load %arg4[%c2, %c0_16] : memref<16x128xf32, #tpu.memory_space<vmem>>, vector<1x128xf32>
    %c2_i32 = arith.constant 2 : i32
    %48 = vector.broadcast %c2_i32 : i32 to vector<4x128xi32>
    %49 = arith.cmpi eq, %28, %48 : vector<4x128xi32>
    %50 = arith.extui %49 : vector<4x128xi1> to vector<4x128xi32>
    %51 = arith.sitofp %50 : vector<4x128xi32> to vector<4x128xf32>
    %cst_17 = arith.constant dense<0.000000e+00> : vector<128xf32>
    %52 = vector.multi_reduction <add>, %51, %cst_17 [0] : vector<4x128xf32> to vector<128xf32>
    %53 = vector.shape_cast %52 : vector<128xf32> to vector<1x128xf32>
    %54 = arith.addf %47, %53 : vector<1x128xf32>
    %c2_18 = arith.constant 2 : index
    %c0_19 = arith.constant 0 : index
    %55 = vector.load %arg4[%c2_18, %c0_19] : memref<16x128xf32, #tpu.memory_space<vmem>>, vector<1x128xf32>
    tpu.vector_store %arg4[%c2_18, %c0_19], %54 {strides = array<i32>} : memref<16x128xf32, #tpu.memory_space<vmem>>, vector<1x128xf32>,
    %c3 = arith.constant 3 : index
    %c0_20 = arith.constant 0 : index
    %56 = vector.load %arg4[%c3, %c0_20] : memref<16x128xf32, #tpu.memory_space<vmem>>, vector<1x128xf32>
    %c3_i32 = arith.constant 3 : i32
    %57 = vector.broadcast %c3_i32 : i32 to vector<4x128xi32>
    %58 = arith.cmpi eq, %28, %57 : vector<4x128xi32>
    %59 = arith.extui %58 : vector<4x128xi1> to vector<4x128xi32>
    %60 = arith.sitofp %59 : vector<4x128xi32> to vector<4x128xf32>
    %cst_21 = arith.constant dense<0.000000e+00> : vector<128xf32>
    %61 = vector.multi_reduction <add>, %60, %cst_21 [0] : vector<4x128xf32> to vector<128xf32>
    %62 = vector.shape_cast %61 : vector<128xf32> to vector<1x128xf32>
    %63 = arith.addf %56, %62 : vector<1x128xf32>
    %c3_22 = arith.constant 3 : index
    %c0_23 = arith.constant 0 : index
    %64 = vector.load %arg4[%c3_22, %c0_23] : memref<16x128xf32, #tpu.memory_space<vmem>>, vector<1x128xf32>
    tpu.vector_store %arg4[%c3_22, %c0_23], %63 {strides = array<i32>} : memref<16x128xf32, #tpu.memory_space<vmem>>, vector<1x128xf32>,
    %c4 = arith.constant 4 : index
    %c0_24 = arith.constant 0 : index
    %65 = vector.load %arg4[%c4, %c0_24] : memref<16x128xf32, #tpu.memory_space<vmem>>, vector<1x128xf32>
    %c4_i32_25 = arith.constant 4 : i32
    %66 = vector.broadcast %c4_i32_25 : i32 to vector<4x128xi32>
    %67 = arith.cmpi eq, %28, %66 : vector<4x128xi32>
    %68 = arith.extui %67 : vector<4x128xi1> to vector<4x128xi32>
    %69 = arith.sitofp %68 : vector<4x128xi32> to vector<4x128xf32>
    %cst_26 = arith.constant dense<0.000000e+00> : vector<128xf32>
    %70 = vector.multi_reduction <add>, %69, %cst_26 [0] : vector<4x128xf32> to vector<128xf32>
    %71 = vector.shape_cast %70 : vector<128xf32> to vector<1x128xf32>
    %72 = arith.addf %65, %71 : vector<1x128xf32>
    %c4_27 = arith.constant 4 : index
    %c0_28 = arith.constant 0 : index
    %73 = vector.load %arg4[%c4_27, %c0_28] : memref<16x128xf32, #tpu.memory_space<vmem>>, vector<1x128xf32>
    tpu.vector_store %arg4[%c4_27, %c0_28], %72 {strides = array<i32>} : memref<16x128xf32, #tpu.memory_space<vmem>>, vector<1x128xf32>,
    %c5 = arith.constant 5 : index
    %c0_29 = arith.constant 0 : index
    %74 = vector.load %arg4[%c5, %c0_29] : memref<16x128xf32, #tpu.memory_space<vmem>>, vector<1x128xf32>
    %c5_i32 = arith.constant 5 : i32
    %75 = vector.broadcast %c5_i32 : i32 to vector<4x128xi32>
    %76 = arith.cmpi eq, %28, %75 : vector<4x128xi32>
    %77 = arith.extui %76 : vector<4x128xi1> to vector<4x128xi32>
    %78 = arith.sitofp %77 : vector<4x128xi32> to vector<4x128xf32>
    %cst_30 = arith.constant dense<0.000000e+00> : vector<128xf32>
    %79 = vector.multi_reduction <add>, %78, %cst_30 [0] : vector<4x128xf32> to vector<128xf32>
    %80 = vector.shape_cast %79 : vector<128xf32> to vector<1x128xf32>
    %81 = arith.addf %74, %80 : vector<1x128xf32>
    %c5_31 = arith.constant 5 : index
    %c0_32 = arith.constant 0 : index
    %82 = vector.load %arg4[%c5_31, %c0_32] : memref<16x128xf32, #tpu.memory_space<vmem>>, vector<1x128xf32>
    tpu.vector_store %arg4[%c5_31, %c0_32], %81 {strides = array<i32>} : memref<16x128xf32, #tpu.memory_space<vmem>>, vector<1x128xf32>,
    %c6 = arith.constant 6 : index
    %c0_33 = arith.constant 0 : index
    %83 = vector.load %arg4[%c6, %c0_33] : memref<16x128xf32, #tpu.memory_space<vmem>>, vector<1x128xf32>
    %c6_i32 = arith.constant 6 : i32
    %84 = vector.broadcast %c6_i32 : i32 to vector<4x128xi32>
    %85 = arith.cmpi eq, %28, %84 : vector<4x128xi32>
    %86 = arith.extui %85 : vector<4x128xi1> to vector<4x128xi32>
    %87 = arith.sitofp %86 : vector<4x128xi32> to vector<4x128xf32>
    %cst_34 = arith.constant dense<0.000000e+00> : vector<128xf32>
    %88 = vector.multi_reduction <add>, %87, %cst_34 [0] : vector<4x128xf32> to vector<128xf32>
    %89 = vector.shape_cast %88 : vector<128xf32> to vector<1x128xf32>
    %90 = arith.addf %83, %89 : vector<1x128xf32>
    %c6_35 = arith.constant 6 : index
    %c0_36 = arith.constant 0 : index
    %91 = vector.load %arg4[%c6_35, %c0_36] : memref<16x128xf32, #tpu.memory_space<vmem>>, vector<1x128xf32>
    tpu.vector_store %arg4[%c6_35, %c0_36], %90 {strides = array<i32>} : memref<16x128xf32, #tpu.memory_space<vmem>>, vector<1x128xf32>,
    %c7 = arith.constant 7 : index
    %c0_37 = arith.constant 0 : index
    %92 = vector.load %arg4[%c7, %c0_37] : memref<16x128xf32, #tpu.memory_space<vmem>>, vector<1x128xf32>
    %c7_i32 = arith.constant 7 : i32
    %93 = vector.broadcast %c7_i32 : i32 to vector<4x128xi32>
    %94 = arith.cmpi eq, %28, %93 : vector<4x128xi32>
    %95 = arith.extui %94 : vector<4x128xi1> to vector<4x128xi32>
    %96 = arith.sitofp %95 : vector<4x128xi32> to vector<4x128xf32>
    %cst_38 = arith.constant dense<0.000000e+00> : vector<128xf32>
    %97 = vector.multi_reduction <add>, %96, %cst_38 [0] : vector<4x128xf32> to vector<128xf32>
    %98 = vector.shape_cast %97 : vector<128xf32> to vector<1x128xf32>
    %99 = arith.addf %92, %98 : vector<1x128xf32>
    %c7_39 = arith.constant 7 : index
    %c0_40 = arith.constant 0 : index
    %100 = vector.load %arg4[%c7_39, %c0_40] : memref<16x128xf32, #tpu.memory_space<vmem>>, vector<1x128xf32>
    tpu.vector_store %arg4[%c7_39, %c0_40], %99 {strides = array<i32>} : memref<16x128xf32, #tpu.memory_space<vmem>>, vector<1x128xf32>,
    %c8 = arith.constant 8 : index
    %c0_41 = arith.constant 0 : index
    %101 = vector.load %arg4[%c8, %c0_41] : memref<16x128xf32, #tpu.memory_space<vmem>>, vector<1x128xf32>
    %c8_i32_42 = arith.constant 8 : i32
    %102 = vector.broadcast %c8_i32_42 : i32 to vector<4x128xi32>
    %103 = arith.cmpi eq, %28, %102 : vector<4x128xi32>
    %104 = arith.extui %103 : vector<4x128xi1> to vector<4x128xi32>
    %105 = arith.sitofp %104 : vector<4x128xi32> to vector<4x128xf32>
    %cst_43 = arith.constant dense<0.000000e+00> : vector<128xf32>
    %106 = vector.multi_reduction <add>, %105, %cst_43 [0] : vector<4x128xf32> to vector<128xf32>
    %107 = vector.shape_cast %106 : vector<128xf32> to vector<1x128xf32>
    %108 = arith.addf %101, %107 : vector<1x128xf32>
    %c8_44 = arith.constant 8 : index
    %c0_45 = arith.constant 0 : index
    %109 = vector.load %arg4[%c8_44, %c0_45] : memref<16x128xf32, #tpu.memory_space<vmem>>, vector<1x128xf32>
    tpu.vector_store %arg4[%c8_44, %c0_45], %108 {strides = array<i32>} : memref<16x128xf32, #tpu.memory_space<vmem>>, vector<1x128xf32>,
    %c9 = arith.constant 9 : index
    %c0_46 = arith.constant 0 : index
    %110 = vector.load %arg4[%c9, %c0_46] : memref<16x128xf32, #tpu.memory_space<vmem>>, vector<1x128xf32>
    %c9_i32 = arith.constant 9 : i32
    %111 = vector.broadcast %c9_i32 : i32 to vector<4x128xi32>
    %112 = arith.cmpi eq, %28, %111 : vector<4x128xi32>
    %113 = arith.extui %112 : vector<4x128xi1> to vector<4x128xi32>
    %114 = arith.sitofp %113 : vector<4x128xi32> to vector<4x128xf32>
    %cst_47 = arith.constant dense<0.000000e+00> : vector<128xf32>
    %115 = vector.multi_reduction <add>, %114, %cst_47 [0] : vector<4x128xf32> to vector<128xf32>
    %116 = vector.shape_cast %115 : vector<128xf32> to vector<1x128xf32>
    %117 = arith.addf %110, %116 : vector<1x128xf32>
    %c9_48 = arith.constant 9 : index
    %c0_49 = arith.constant 0 : index
    %118 = vector.load %arg4[%c9_48, %c0_49] : memref<16x128xf32, #tpu.memory_space<vmem>>, vector<1x128xf32>
    tpu.vector_store %arg4[%c9_48, %c0_49], %117 {strides = array<i32>} : memref<16x128xf32, #tpu.memory_space<vmem>>, vector<1x128xf32>,
    %c10 = arith.constant 10 : index
    %c0_50 = arith.constant 0 : index
    %119 = vector.load %arg4[%c10, %c0_50] : memref<16x128xf32, #tpu.memory_space<vmem>>, vector<1x128xf32>
    %c10_i32 = arith.constant 10 : i32
    %120 = vector.broadcast %c10_i32 : i32 to vector<4x128xi32>
    %121 = arith.cmpi eq, %28, %120 : vector<4x128xi32>
    %122 = arith.extui %121 : vector<4x128xi1> to vector<4x128xi32>
    %123 = arith.sitofp %122 : vector<4x128xi32> to vector<4x128xf32>
    %cst_51 = arith.constant dense<0.000000e+00> : vector<128xf32>
    %124 = vector.multi_reduction <add>, %123, %cst_51 [0] : vector<4x128xf32> to vector<128xf32>
    %125 = vector.shape_cast %124 : vector<128xf32> to vector<1x128xf32>
    %126 = arith.addf %119, %125 : vector<1x128xf32>
    %c10_52 = arith.constant 10 : index
    %c0_53 = arith.constant 0 : index
    %127 = vector.load %arg4[%c10_52, %c0_53] : memref<16x128xf32, #tpu.memory_space<vmem>>, vector<1x128xf32>
    tpu.vector_store %arg4[%c10_52, %c0_53], %126 {strides = array<i32>} : memref<16x128xf32, #tpu.memory_space<vmem>>, vector<1x128xf32>,
    %c11 = arith.constant 11 : index
    %c0_54 = arith.constant 0 : index
    %128 = vector.load %arg4[%c11, %c0_54] : memref<16x128xf32, #tpu.memory_space<vmem>>, vector<1x128xf32>
    %c11_i32 = arith.constant 11 : i32
    %129 = vector.broadcast %c11_i32 : i32 to vector<4x128xi32>
    %130 = arith.cmpi eq, %28, %129 : vector<4x128xi32>
    %131 = arith.extui %130 : vector<4x128xi1> to vector<4x128xi32>
    %132 = arith.sitofp %131 : vector<4x128xi32> to vector<4x128xf32>
    %cst_55 = arith.constant dense<0.000000e+00> : vector<128xf32>
    %133 = vector.multi_reduction <add>, %132, %cst_55 [0] : vector<4x128xf32> to vector<128xf32>
    %134 = vector.shape_cast %133 : vector<128xf32> to vector<1x128xf32>
    %135 = arith.addf %128, %134 : vector<1x128xf32>
    %c11_56 = arith.constant 11 : index
    %c0_57 = arith.constant 0 : index
    %136 = vector.load %arg4[%c11_56, %c0_57] : memref<16x128xf32, #tpu.memory_space<vmem>>, vector<1x128xf32>
    tpu.vector_store %arg4[%c11_56, %c0_57], %135 {strides = array<i32>} : memref<16x128xf32, #tpu.memory_space<vmem>>, vector<1x128xf32>,
    %c12 = arith.constant 12 : index
    %c0_58 = arith.constant 0 : index
    %137 = vector.load %arg4[%c12, %c0_58] : memref<16x128xf32, #tpu.memory_space<vmem>>, vector<1x128xf32>
    %c12_i32_59 = arith.constant 12 : i32
    %138 = vector.broadcast %c12_i32_59 : i32 to vector<4x128xi32>
    %139 = arith.cmpi eq, %28, %138 : vector<4x128xi32>
    %140 = arith.extui %139 : vector<4x128xi1> to vector<4x128xi32>
    %141 = arith.sitofp %140 : vector<4x128xi32> to vector<4x128xf32>
    %cst_60 = arith.constant dense<0.000000e+00> : vector<128xf32>
    %142 = vector.multi_reduction <add>, %141, %cst_60 [0] : vector<4x128xf32> to vector<128xf32>
    %143 = vector.shape_cast %142 : vector<128xf32> to vector<1x128xf32>
    %144 = arith.addf %137, %143 : vector<1x128xf32>
    %c12_61 = arith.constant 12 : index
    %c0_62 = arith.constant 0 : index
    %145 = vector.load %arg4[%c12_61, %c0_62] : memref<16x128xf32, #tpu.memory_space<vmem>>, vector<1x128xf32>
    tpu.vector_store %arg4[%c12_61, %c0_62], %144 {strides = array<i32>} : memref<16x128xf32, #tpu.memory_space<vmem>>, vector<1x128xf32>,
    %c13 = arith.constant 13 : index
    %c0_63 = arith.constant 0 : index
    %146 = vector.load %arg4[%c13, %c0_63] : memref<16x128xf32, #tpu.memory_space<vmem>>, vector<1x128xf32>
    %c13_i32 = arith.constant 13 : i32
    %147 = vector.broadcast %c13_i32 : i32 to vector<4x128xi32>
    %148 = arith.cmpi eq, %28, %147 : vector<4x128xi32>
    %149 = arith.extui %148 : vector<4x128xi1> to vector<4x128xi32>
    %150 = arith.sitofp %149 : vector<4x128xi32> to vector<4x128xf32>
    %cst_64 = arith.constant dense<0.000000e+00> : vector<128xf32>
    %151 = vector.multi_reduction <add>, %150, %cst_64 [0] : vector<4x128xf32> to vector<128xf32>
    %152 = vector.shape_cast %151 : vector<128xf32> to vector<1x128xf32>
    %153 = arith.addf %146, %152 : vector<1x128xf32>
    %c13_65 = arith.constant 13 : index
    %c0_66 = arith.constant 0 : index
    %154 = vector.load %arg4[%c13_65, %c0_66] : memref<16x128xf32, #tpu.memory_space<vmem>>, vector<1x128xf32>
    tpu.vector_store %arg4[%c13_65, %c0_66], %153 {strides = array<i32>} : memref<16x128xf32, #tpu.memory_space<vmem>>, vector<1x128xf32>,
    %c14 = arith.constant 14 : index
    %c0_67 = arith.constant 0 : index
    %155 = vector.load %arg4[%c14, %c0_67] : memref<16x128xf32, #tpu.memory_space<vmem>>, vector<1x128xf32>
    %c14_i32 = arith.constant 14 : i32
    %156 = vector.broadcast %c14_i32 : i32 to vector<4x128xi32>
    %157 = arith.cmpi eq, %28, %156 : vector<4x128xi32>
    %158 = arith.extui %157 : vector<4x128xi1> to vector<4x128xi32>
    %159 = arith.sitofp %158 : vector<4x128xi32> to vector<4x128xf32>
    %cst_68 = arith.constant dense<0.000000e+00> : vector<128xf32>
    %160 = vector.multi_reduction <add>, %159, %cst_68 [0] : vector<4x128xf32> to vector<128xf32>
    %161 = vector.shape_cast %160 : vector<128xf32> to vector<1x128xf32>
    %162 = arith.addf %155, %161 : vector<1x128xf32>
    %c14_69 = arith.constant 14 : index
    %c0_70 = arith.constant 0 : index
    %163 = vector.load %arg4[%c14_69, %c0_70] : memref<16x128xf32, #tpu.memory_space<vmem>>, vector<1x128xf32>
    tpu.vector_store %arg4[%c14_69, %c0_70], %162 {strides = array<i32>} : memref<16x128xf32, #tpu.memory_space<vmem>>, vector<1x128xf32>,
    %c15 = arith.constant 15 : index
    %c0_71 = arith.constant 0 : index
    %164 = vector.load %arg4[%c15, %c0_71] : memref<16x128xf32, #tpu.memory_space<vmem>>, vector<1x128xf32>
    %c15_i32_72 = arith.constant 15 : i32
    %165 = vector.broadcast %c15_i32_72 : i32 to vector<4x128xi32>
    %166 = arith.cmpi eq, %28, %165 : vector<4x128xi32>
    %167 = arith.extui %166 : vector<4x128xi1> to vector<4x128xi32>
    %168 = arith.sitofp %167 : vector<4x128xi32> to vector<4x128xf32>
    %cst_73 = arith.constant dense<0.000000e+00> : vector<128xf32>
    %169 = vector.multi_reduction <add>, %168, %cst_73 [0] : vector<4x128xf32> to vector<128xf32>
    %170 = vector.shape_cast %169 : vector<128xf32> to vector<1x128xf32>
    %171 = arith.addf %164, %170 : vector<1x128xf32>
    %c15_74 = arith.constant 15 : index
    %c0_75 = arith.constant 0 : index
    %172 = vector.load %arg4[%c15_74, %c0_75] : memref<16x128xf32, #tpu.memory_space<vmem>>, vector<1x128xf32>
    tpu.vector_store %arg4[%c15_74, %c0_75], %171 {strides = array<i32>} : memref<16x128xf32, #tpu.memory_space<vmem>>, vector<1x128xf32>,
    return
  }
  func.func @transform_0(%arg0: i32, %arg1: i32) -> i32 {
    %c0_i32 = arith.constant 0 : i32
    %c0_i32_0 = arith.constant 0 : i32
    return %c0_i32 : i32
  }
  func.func @transform_1(%arg0: i32, %arg1: i32) -> (i32, i32) {
    %c1_i32 = arith.constant 1 : i32
    %0 = arith.muli %arg0, %c1_i32 : i32
    %1 = arith.addi %0, %arg1 : i32
    %c0_i32 = arith.constant 0 : i32
    %2 = arith.minsi %1, %c0_i32 : i32
    %c0_i32_0 = arith.constant 0 : i32
    %c0_i32_1 = arith.constant 0 : i32
    return %2, %c0_i32_0 : i32, i32
  }
  func.func @transform_2(%arg0: i32, %arg1: i32) -> (i32, i32) {
    %c0_i32 = arith.constant 0 : i32
    %c0_i32_0 = arith.constant 0 : i32
    return %arg0, %c0_i32 : i32, i32
  }
}

module attributes {stable_mosaic.version = 11 : i64} {
  func.func @_radix_hist_kernel(%arg0: i32, %arg1: i32, %arg2: memref<1xi32, #tpu.memory_space<smem>>, %arg3: memref<4x128xf32, #tpu.memory_space<vmem>>, %arg4: memref<16x128xf32, #tpu.memory_space<vmem>>) attributes {dimension_semantics = [#tpu.dimension_semantics<parallel>, #tpu.dimension_semantics<arbitrary>], iteration_bounds = array<i64: 2, 1>, scalar_prefetch = 0 : i64, scratch_operands = 0 : i64, tpu.core_type = #tpu.core_type<tc>, window_params = [{transform_indices = @transform_0, window_bounds = array<i64: 1>}, {transform_indices = @transform_1, window_bounds = array<i64: 4, 128>}, {transform_indices = @transform_2, window_bounds = array<i64: 16, 128>}]} {
    %c0_i32 = arith.constant 0 : i32
    %0 = arith.cmpi eq, %arg1, %c0_i32 : i32
    %1 = arith.extui %0 : i1 to i32
    %c0_i32_0 = arith.constant 0 : i32
    %2 = arith.cmpi ne, %1, %c0_i32_0 : i32
    scf.if %2 {
      %cst_76 = arith.constant 0.000000e+00 : f32
      %173 = vector.broadcast %cst_76 : f32 to vector<16x128xf32>
      %c0_77 = arith.constant 0 : index
      %c0_78 = arith.constant 0 : index
      %174 = vector.load %arg4[%c0_77, %c0_78] : memref<16x128xf32, #tpu.memory_space<vmem>>, vector<16x128xf32>
      tpu.vector_store %arg4[%c0_77, %c0_78], %173 {strides = array<i32>} : memref<16x128xf32, #tpu.memory_space<vmem>>, vector<16x128xf32>,
    } else {
    }
    %c0 = arith.constant 0 : index
    %c0_1 = arith.constant 0 : index
    %3 = vector.load %arg3[%c0, %c0_1] : memref<4x128xf32, #tpu.memory_space<vmem>>, vector<4x128xf32>
    %4 = tpu.bitcast %3 : vector<4x128xf32> -> vector<4x128xi32>
    %c1_i32 = arith.constant 1 : i32
    %5 = arith.muli %arg0, %c1_i32 : i32
    %6 = arith.addi %5, %arg1 : i32
    %c4_i32 = arith.constant 4 : i32
    %7 = arith.muli %6, %c4_i32 : i32
    %8 = tpu.iota {dimensions = array<i32: 0>} : vector<4x128xi32>
    %9 = vector.broadcast %7 : i32 to vector<4x128xi32>
    %10 = arith.addi %9, %8 : vector<4x128xi32>
    %c4_i32_2 = arith.constant 4 : i32
    %11 = vector.broadcast %c4_i32_2 : i32 to vector<4x128xi32>
    %12 = arith.cmpi slt, %10, %11 : vector<4x128xi32>
    %c0_i32_3 = arith.constant 0 : i32
    %13 = vector.broadcast %c0_i32_3 : i32 to vector<4x128xi32>
    %14 = arith.cmpi sge, %4, %13 : vector<4x128xi32>
    %15 = arith.andi %12, %14 : vector<4x128xi1>
    %c0_4 = arith.constant 0 : index
    %16 = memref.load %arg2[%c0_4] : memref<1xi32, #tpu.memory_space<smem>>
    %c8_i32 = arith.constant 8 : i32
    %17 = arith.shrsi %16, %c8_i32 : i32
    %c8_i32_5 = arith.constant 8 : i32
    %18 = vector.broadcast %c8_i32_5 : i32 to vector<4x128xi32>
    %19 = arith.shrsi %4, %18 : vector<4x128xi32>
    %20 = vector.broadcast %17 : i32 to vector<4x128xi32>
    %21 = arith.cmpi eq, %19, %20 : vector<4x128xi32>
    %22 = arith.andi %15, %21 : vector<4x128xi1>
    %c4_i32_6 = arith.constant 4 : i32
    %23 = vector.broadcast %c4_i32_6 : i32 to vector<4x128xi32>
    %24 = arith.shrsi %4, %23 : vector<4x128xi32>
    %c15_i32 = arith.constant 15 : i32
    %25 = vector.broadcast %c15_i32 : i32 to vector<4x128xi32>
    %26 = arith.andi %24, %25 : vector<4x128xi32>
    %c-1_i32 = arith.constant -1 : i32
    %27 = vector.broadcast %c-1_i32 : i32 to vector<4x128xi32>
    %28 = arith.select %22, %26, %27 : vector<4x128xi1>, vector<4x128xi32>
    %c0_7 = arith.constant 0 : index
    %c0_8 = arith.constant 0 : index
    %29 = vector.load %arg4[%c0_7, %c0_8] : memref<16x128xf32, #tpu.memory_space<vmem>>, vector<1x128xf32>
    %c0_i32_9 = arith.constant 0 : i32
    %30 = vector.broadcast %c0_i32_9 : i32 to vector<4x128xi32>
    %31 = arith.cmpi eq, %28, %30 : vector<4x128xi32>
    %32 = arith.extui %31 : vector<4x128xi1> to vector<4x128xi32>
    %33 = arith.sitofp %32 : vector<4x128xi32> to vector<4x128xf32>
    %cst = arith.constant dense<0.000000e+00> : vector<128xf32>
    %34 = vector.multi_reduction <add>, %33, %cst [0] : vector<4x128xf32> to vector<128xf32>
    %35 = vector.shape_cast %34 : vector<128xf32> to vector<1x128xf32>
    %36 = arith.addf %29, %35 : vector<1x128xf32>
    %c0_10 = arith.constant 0 : index
    %c0_11 = arith.constant 0 : index
    %37 = vector.load %arg4[%c0_10, %c0_11] : memref<16x128xf32, #tpu.memory_space<vmem>>, vector<1x128xf32>
    tpu.vector_store %arg4[%c0_10, %c0_11], %36 {strides = array<i32>} : memref<16x128xf32, #tpu.memory_space<vmem>>, vector<1x128xf32>,
    %c1 = arith.constant 1 : index
    %c0_12 = arith.constant 0 : index
    %38 = vector.load %arg4[%c1, %c0_12] : memref<16x128xf32, #tpu.memory_space<vmem>>, vector<1x128xf32>
    %c1_i32_13 = arith.constant 1 : i32
    %39 = vector.broadcast %c1_i32_13 : i32 to vector<4x128xi32>
    %40 = arith.cmpi eq, %28, %39 : vector<4x128xi32>
    %41 = arith.extui %40 : vector<4x128xi1> to vector<4x128xi32>
    %42 = arith.sitofp %41 : vector<4x128xi32> to vector<4x128xf32>
    %cst_14 = arith.constant dense<0.000000e+00> : vector<128xf32>
    %43 = vector.multi_reduction <add>, %42, %cst_14 [0] : vector<4x128xf32> to vector<128xf32>
    %44 = vector.shape_cast %43 : vector<128xf32> to vector<1x128xf32>
    %45 = arith.addf %38, %44 : vector<1x128xf32>
    %c1_15 = arith.constant 1 : index
    %c0_16 = arith.constant 0 : index
    %46 = vector.load %arg4[%c1_15, %c0_16] : memref<16x128xf32, #tpu.memory_space<vmem>>, vector<1x128xf32>
    tpu.vector_store %arg4[%c1_15, %c0_16], %45 {strides = array<i32>} : memref<16x128xf32, #tpu.memory_space<vmem>>, vector<1x128xf32>,
    %c2 = arith.constant 2 : index
    %c0_17 = arith.constant 0 : index
    %47 = vector.load %arg4[%c2, %c0_17] : memref<16x128xf32, #tpu.memory_space<vmem>>, vector<1x128xf32>
    %c2_i32 = arith.constant 2 : i32
    %48 = vector.broadcast %c2_i32 : i32 to vector<4x128xi32>
    %49 = arith.cmpi eq, %28, %48 : vector<4x128xi32>
    %50 = arith.extui %49 : vector<4x128xi1> to vector<4x128xi32>
    %51 = arith.sitofp %50 : vector<4x128xi32> to vector<4x128xf32>
    %cst_18 = arith.constant dense<0.000000e+00> : vector<128xf32>
    %52 = vector.multi_reduction <add>, %51, %cst_18 [0] : vector<4x128xf32> to vector<128xf32>
    %53 = vector.shape_cast %52 : vector<128xf32> to vector<1x128xf32>
    %54 = arith.addf %47, %53 : vector<1x128xf32>
    %c2_19 = arith.constant 2 : index
    %c0_20 = arith.constant 0 : index
    %55 = vector.load %arg4[%c2_19, %c0_20] : memref<16x128xf32, #tpu.memory_space<vmem>>, vector<1x128xf32>
    tpu.vector_store %arg4[%c2_19, %c0_20], %54 {strides = array<i32>} : memref<16x128xf32, #tpu.memory_space<vmem>>, vector<1x128xf32>,
    %c3 = arith.constant 3 : index
    %c0_21 = arith.constant 0 : index
    %56 = vector.load %arg4[%c3, %c0_21] : memref<16x128xf32, #tpu.memory_space<vmem>>, vector<1x128xf32>
    %c3_i32 = arith.constant 3 : i32
    %57 = vector.broadcast %c3_i32 : i32 to vector<4x128xi32>
    %58 = arith.cmpi eq, %28, %57 : vector<4x128xi32>
    %59 = arith.extui %58 : vector<4x128xi1> to vector<4x128xi32>
    %60 = arith.sitofp %59 : vector<4x128xi32> to vector<4x128xf32>
    %cst_22 = arith.constant dense<0.000000e+00> : vector<128xf32>
    %61 = vector.multi_reduction <add>, %60, %cst_22 [0] : vector<4x128xf32> to vector<128xf32>
    %62 = vector.shape_cast %61 : vector<128xf32> to vector<1x128xf32>
    %63 = arith.addf %56, %62 : vector<1x128xf32>
    %c3_23 = arith.constant 3 : index
    %c0_24 = arith.constant 0 : index
    %64 = vector.load %arg4[%c3_23, %c0_24] : memref<16x128xf32, #tpu.memory_space<vmem>>, vector<1x128xf32>
    tpu.vector_store %arg4[%c3_23, %c0_24], %63 {strides = array<i32>} : memref<16x128xf32, #tpu.memory_space<vmem>>, vector<1x128xf32>,
    %c4 = arith.constant 4 : index
    %c0_25 = arith.constant 0 : index
    %65 = vector.load %arg4[%c4, %c0_25] : memref<16x128xf32, #tpu.memory_space<vmem>>, vector<1x128xf32>
    %c4_i32_26 = arith.constant 4 : i32
    %66 = vector.broadcast %c4_i32_26 : i32 to vector<4x128xi32>
    %67 = arith.cmpi eq, %28, %66 : vector<4x128xi32>
    %68 = arith.extui %67 : vector<4x128xi1> to vector<4x128xi32>
    %69 = arith.sitofp %68 : vector<4x128xi32> to vector<4x128xf32>
    %cst_27 = arith.constant dense<0.000000e+00> : vector<128xf32>
    %70 = vector.multi_reduction <add>, %69, %cst_27 [0] : vector<4x128xf32> to vector<128xf32>
    %71 = vector.shape_cast %70 : vector<128xf32> to vector<1x128xf32>
    %72 = arith.addf %65, %71 : vector<1x128xf32>
    %c4_28 = arith.constant 4 : index
    %c0_29 = arith.constant 0 : index
    %73 = vector.load %arg4[%c4_28, %c0_29] : memref<16x128xf32, #tpu.memory_space<vmem>>, vector<1x128xf32>
    tpu.vector_store %arg4[%c4_28, %c0_29], %72 {strides = array<i32>} : memref<16x128xf32, #tpu.memory_space<vmem>>, vector<1x128xf32>,
    %c5 = arith.constant 5 : index
    %c0_30 = arith.constant 0 : index
    %74 = vector.load %arg4[%c5, %c0_30] : memref<16x128xf32, #tpu.memory_space<vmem>>, vector<1x128xf32>
    %c5_i32 = arith.constant 5 : i32
    %75 = vector.broadcast %c5_i32 : i32 to vector<4x128xi32>
    %76 = arith.cmpi eq, %28, %75 : vector<4x128xi32>
    %77 = arith.extui %76 : vector<4x128xi1> to vector<4x128xi32>
    %78 = arith.sitofp %77 : vector<4x128xi32> to vector<4x128xf32>
    %cst_31 = arith.constant dense<0.000000e+00> : vector<128xf32>
    %79 = vector.multi_reduction <add>, %78, %cst_31 [0] : vector<4x128xf32> to vector<128xf32>
    %80 = vector.shape_cast %79 : vector<128xf32> to vector<1x128xf32>
    %81 = arith.addf %74, %80 : vector<1x128xf32>
    %c5_32 = arith.constant 5 : index
    %c0_33 = arith.constant 0 : index
    %82 = vector.load %arg4[%c5_32, %c0_33] : memref<16x128xf32, #tpu.memory_space<vmem>>, vector<1x128xf32>
    tpu.vector_store %arg4[%c5_32, %c0_33], %81 {strides = array<i32>} : memref<16x128xf32, #tpu.memory_space<vmem>>, vector<1x128xf32>,
    %c6 = arith.constant 6 : index
    %c0_34 = arith.constant 0 : index
    %83 = vector.load %arg4[%c6, %c0_34] : memref<16x128xf32, #tpu.memory_space<vmem>>, vector<1x128xf32>
    %c6_i32 = arith.constant 6 : i32
    %84 = vector.broadcast %c6_i32 : i32 to vector<4x128xi32>
    %85 = arith.cmpi eq, %28, %84 : vector<4x128xi32>
    %86 = arith.extui %85 : vector<4x128xi1> to vector<4x128xi32>
    %87 = arith.sitofp %86 : vector<4x128xi32> to vector<4x128xf32>
    %cst_35 = arith.constant dense<0.000000e+00> : vector<128xf32>
    %88 = vector.multi_reduction <add>, %87, %cst_35 [0] : vector<4x128xf32> to vector<128xf32>
    %89 = vector.shape_cast %88 : vector<128xf32> to vector<1x128xf32>
    %90 = arith.addf %83, %89 : vector<1x128xf32>
    %c6_36 = arith.constant 6 : index
    %c0_37 = arith.constant 0 : index
    %91 = vector.load %arg4[%c6_36, %c0_37] : memref<16x128xf32, #tpu.memory_space<vmem>>, vector<1x128xf32>
    tpu.vector_store %arg4[%c6_36, %c0_37], %90 {strides = array<i32>} : memref<16x128xf32, #tpu.memory_space<vmem>>, vector<1x128xf32>,
    %c7 = arith.constant 7 : index
    %c0_38 = arith.constant 0 : index
    %92 = vector.load %arg4[%c7, %c0_38] : memref<16x128xf32, #tpu.memory_space<vmem>>, vector<1x128xf32>
    %c7_i32 = arith.constant 7 : i32
    %93 = vector.broadcast %c7_i32 : i32 to vector<4x128xi32>
    %94 = arith.cmpi eq, %28, %93 : vector<4x128xi32>
    %95 = arith.extui %94 : vector<4x128xi1> to vector<4x128xi32>
    %96 = arith.sitofp %95 : vector<4x128xi32> to vector<4x128xf32>
    %cst_39 = arith.constant dense<0.000000e+00> : vector<128xf32>
    %97 = vector.multi_reduction <add>, %96, %cst_39 [0] : vector<4x128xf32> to vector<128xf32>
    %98 = vector.shape_cast %97 : vector<128xf32> to vector<1x128xf32>
    %99 = arith.addf %92, %98 : vector<1x128xf32>
    %c7_40 = arith.constant 7 : index
    %c0_41 = arith.constant 0 : index
    %100 = vector.load %arg4[%c7_40, %c0_41] : memref<16x128xf32, #tpu.memory_space<vmem>>, vector<1x128xf32>
    tpu.vector_store %arg4[%c7_40, %c0_41], %99 {strides = array<i32>} : memref<16x128xf32, #tpu.memory_space<vmem>>, vector<1x128xf32>,
    %c8 = arith.constant 8 : index
    %c0_42 = arith.constant 0 : index
    %101 = vector.load %arg4[%c8, %c0_42] : memref<16x128xf32, #tpu.memory_space<vmem>>, vector<1x128xf32>
    %c8_i32_43 = arith.constant 8 : i32
    %102 = vector.broadcast %c8_i32_43 : i32 to vector<4x128xi32>
    %103 = arith.cmpi eq, %28, %102 : vector<4x128xi32>
    %104 = arith.extui %103 : vector<4x128xi1> to vector<4x128xi32>
    %105 = arith.sitofp %104 : vector<4x128xi32> to vector<4x128xf32>
    %cst_44 = arith.constant dense<0.000000e+00> : vector<128xf32>
    %106 = vector.multi_reduction <add>, %105, %cst_44 [0] : vector<4x128xf32> to vector<128xf32>
    %107 = vector.shape_cast %106 : vector<128xf32> to vector<1x128xf32>
    %108 = arith.addf %101, %107 : vector<1x128xf32>
    %c8_45 = arith.constant 8 : index
    %c0_46 = arith.constant 0 : index
    %109 = vector.load %arg4[%c8_45, %c0_46] : memref<16x128xf32, #tpu.memory_space<vmem>>, vector<1x128xf32>
    tpu.vector_store %arg4[%c8_45, %c0_46], %108 {strides = array<i32>} : memref<16x128xf32, #tpu.memory_space<vmem>>, vector<1x128xf32>,
    %c9 = arith.constant 9 : index
    %c0_47 = arith.constant 0 : index
    %110 = vector.load %arg4[%c9, %c0_47] : memref<16x128xf32, #tpu.memory_space<vmem>>, vector<1x128xf32>
    %c9_i32 = arith.constant 9 : i32
    %111 = vector.broadcast %c9_i32 : i32 to vector<4x128xi32>
    %112 = arith.cmpi eq, %28, %111 : vector<4x128xi32>
    %113 = arith.extui %112 : vector<4x128xi1> to vector<4x128xi32>
    %114 = arith.sitofp %113 : vector<4x128xi32> to vector<4x128xf32>
    %cst_48 = arith.constant dense<0.000000e+00> : vector<128xf32>
    %115 = vector.multi_reduction <add>, %114, %cst_48 [0] : vector<4x128xf32> to vector<128xf32>
    %116 = vector.shape_cast %115 : vector<128xf32> to vector<1x128xf32>
    %117 = arith.addf %110, %116 : vector<1x128xf32>
    %c9_49 = arith.constant 9 : index
    %c0_50 = arith.constant 0 : index
    %118 = vector.load %arg4[%c9_49, %c0_50] : memref<16x128xf32, #tpu.memory_space<vmem>>, vector<1x128xf32>
    tpu.vector_store %arg4[%c9_49, %c0_50], %117 {strides = array<i32>} : memref<16x128xf32, #tpu.memory_space<vmem>>, vector<1x128xf32>,
    %c10 = arith.constant 10 : index
    %c0_51 = arith.constant 0 : index
    %119 = vector.load %arg4[%c10, %c0_51] : memref<16x128xf32, #tpu.memory_space<vmem>>, vector<1x128xf32>
    %c10_i32 = arith.constant 10 : i32
    %120 = vector.broadcast %c10_i32 : i32 to vector<4x128xi32>
    %121 = arith.cmpi eq, %28, %120 : vector<4x128xi32>
    %122 = arith.extui %121 : vector<4x128xi1> to vector<4x128xi32>
    %123 = arith.sitofp %122 : vector<4x128xi32> to vector<4x128xf32>
    %cst_52 = arith.constant dense<0.000000e+00> : vector<128xf32>
    %124 = vector.multi_reduction <add>, %123, %cst_52 [0] : vector<4x128xf32> to vector<128xf32>
    %125 = vector.shape_cast %124 : vector<128xf32> to vector<1x128xf32>
    %126 = arith.addf %119, %125 : vector<1x128xf32>
    %c10_53 = arith.constant 10 : index
    %c0_54 = arith.constant 0 : index
    %127 = vector.load %arg4[%c10_53, %c0_54] : memref<16x128xf32, #tpu.memory_space<vmem>>, vector<1x128xf32>
    tpu.vector_store %arg4[%c10_53, %c0_54], %126 {strides = array<i32>} : memref<16x128xf32, #tpu.memory_space<vmem>>, vector<1x128xf32>,
    %c11 = arith.constant 11 : index
    %c0_55 = arith.constant 0 : index
    %128 = vector.load %arg4[%c11, %c0_55] : memref<16x128xf32, #tpu.memory_space<vmem>>, vector<1x128xf32>
    %c11_i32 = arith.constant 11 : i32
    %129 = vector.broadcast %c11_i32 : i32 to vector<4x128xi32>
    %130 = arith.cmpi eq, %28, %129 : vector<4x128xi32>
    %131 = arith.extui %130 : vector<4x128xi1> to vector<4x128xi32>
    %132 = arith.sitofp %131 : vector<4x128xi32> to vector<4x128xf32>
    %cst_56 = arith.constant dense<0.000000e+00> : vector<128xf32>
    %133 = vector.multi_reduction <add>, %132, %cst_56 [0] : vector<4x128xf32> to vector<128xf32>
    %134 = vector.shape_cast %133 : vector<128xf32> to vector<1x128xf32>
    %135 = arith.addf %128, %134 : vector<1x128xf32>
    %c11_57 = arith.constant 11 : index
    %c0_58 = arith.constant 0 : index
    %136 = vector.load %arg4[%c11_57, %c0_58] : memref<16x128xf32, #tpu.memory_space<vmem>>, vector<1x128xf32>
    tpu.vector_store %arg4[%c11_57, %c0_58], %135 {strides = array<i32>} : memref<16x128xf32, #tpu.memory_space<vmem>>, vector<1x128xf32>,
    %c12 = arith.constant 12 : index
    %c0_59 = arith.constant 0 : index
    %137 = vector.load %arg4[%c12, %c0_59] : memref<16x128xf32, #tpu.memory_space<vmem>>, vector<1x128xf32>
    %c12_i32 = arith.constant 12 : i32
    %138 = vector.broadcast %c12_i32 : i32 to vector<4x128xi32>
    %139 = arith.cmpi eq, %28, %138 : vector<4x128xi32>
    %140 = arith.extui %139 : vector<4x128xi1> to vector<4x128xi32>
    %141 = arith.sitofp %140 : vector<4x128xi32> to vector<4x128xf32>
    %cst_60 = arith.constant dense<0.000000e+00> : vector<128xf32>
    %142 = vector.multi_reduction <add>, %141, %cst_60 [0] : vector<4x128xf32> to vector<128xf32>
    %143 = vector.shape_cast %142 : vector<128xf32> to vector<1x128xf32>
    %144 = arith.addf %137, %143 : vector<1x128xf32>
    %c12_61 = arith.constant 12 : index
    %c0_62 = arith.constant 0 : index
    %145 = vector.load %arg4[%c12_61, %c0_62] : memref<16x128xf32, #tpu.memory_space<vmem>>, vector<1x128xf32>
    tpu.vector_store %arg4[%c12_61, %c0_62], %144 {strides = array<i32>} : memref<16x128xf32, #tpu.memory_space<vmem>>, vector<1x128xf32>,
    %c13 = arith.constant 13 : index
    %c0_63 = arith.constant 0 : index
    %146 = vector.load %arg4[%c13, %c0_63] : memref<16x128xf32, #tpu.memory_space<vmem>>, vector<1x128xf32>
    %c13_i32 = arith.constant 13 : i32
    %147 = vector.broadcast %c13_i32 : i32 to vector<4x128xi32>
    %148 = arith.cmpi eq, %28, %147 : vector<4x128xi32>
    %149 = arith.extui %148 : vector<4x128xi1> to vector<4x128xi32>
    %150 = arith.sitofp %149 : vector<4x128xi32> to vector<4x128xf32>
    %cst_64 = arith.constant dense<0.000000e+00> : vector<128xf32>
    %151 = vector.multi_reduction <add>, %150, %cst_64 [0] : vector<4x128xf32> to vector<128xf32>
    %152 = vector.shape_cast %151 : vector<128xf32> to vector<1x128xf32>
    %153 = arith.addf %146, %152 : vector<1x128xf32>
    %c13_65 = arith.constant 13 : index
    %c0_66 = arith.constant 0 : index
    %154 = vector.load %arg4[%c13_65, %c0_66] : memref<16x128xf32, #tpu.memory_space<vmem>>, vector<1x128xf32>
    tpu.vector_store %arg4[%c13_65, %c0_66], %153 {strides = array<i32>} : memref<16x128xf32, #tpu.memory_space<vmem>>, vector<1x128xf32>,
    %c14 = arith.constant 14 : index
    %c0_67 = arith.constant 0 : index
    %155 = vector.load %arg4[%c14, %c0_67] : memref<16x128xf32, #tpu.memory_space<vmem>>, vector<1x128xf32>
    %c14_i32 = arith.constant 14 : i32
    %156 = vector.broadcast %c14_i32 : i32 to vector<4x128xi32>
    %157 = arith.cmpi eq, %28, %156 : vector<4x128xi32>
    %158 = arith.extui %157 : vector<4x128xi1> to vector<4x128xi32>
    %159 = arith.sitofp %158 : vector<4x128xi32> to vector<4x128xf32>
    %cst_68 = arith.constant dense<0.000000e+00> : vector<128xf32>
    %160 = vector.multi_reduction <add>, %159, %cst_68 [0] : vector<4x128xf32> to vector<128xf32>
    %161 = vector.shape_cast %160 : vector<128xf32> to vector<1x128xf32>
    %162 = arith.addf %155, %161 : vector<1x128xf32>
    %c14_69 = arith.constant 14 : index
    %c0_70 = arith.constant 0 : index
    %163 = vector.load %arg4[%c14_69, %c0_70] : memref<16x128xf32, #tpu.memory_space<vmem>>, vector<1x128xf32>
    tpu.vector_store %arg4[%c14_69, %c0_70], %162 {strides = array<i32>} : memref<16x128xf32, #tpu.memory_space<vmem>>, vector<1x128xf32>,
    %c15 = arith.constant 15 : index
    %c0_71 = arith.constant 0 : index
    %164 = vector.load %arg4[%c15, %c0_71] : memref<16x128xf32, #tpu.memory_space<vmem>>, vector<1x128xf32>
    %c15_i32_72 = arith.constant 15 : i32
    %165 = vector.broadcast %c15_i32_72 : i32 to vector<4x128xi32>
    %166 = arith.cmpi eq, %28, %165 : vector<4x128xi32>
    %167 = arith.extui %166 : vector<4x128xi1> to vector<4x128xi32>
    %168 = arith.sitofp %167 : vector<4x128xi32> to vector<4x128xf32>
    %cst_73 = arith.constant dense<0.000000e+00> : vector<128xf32>
    %169 = vector.multi_reduction <add>, %168, %cst_73 [0] : vector<4x128xf32> to vector<128xf32>
    %170 = vector.shape_cast %169 : vector<128xf32> to vector<1x128xf32>
    %171 = arith.addf %164, %170 : vector<1x128xf32>
    %c15_74 = arith.constant 15 : index
    %c0_75 = arith.constant 0 : index
    %172 = vector.load %arg4[%c15_74, %c0_75] : memref<16x128xf32, #tpu.memory_space<vmem>>, vector<1x128xf32>
    tpu.vector_store %arg4[%c15_74, %c0_75], %171 {strides = array<i32>} : memref<16x128xf32, #tpu.memory_space<vmem>>, vector<1x128xf32>,
    return
  }
  func.func @transform_0(%arg0: i32, %arg1: i32) -> i32 {
    %c0_i32 = arith.constant 0 : i32
    %c0_i32_0 = arith.constant 0 : i32
    return %c0_i32 : i32
  }
  func.func @transform_1(%arg0: i32, %arg1: i32) -> (i32, i32) {
    %c1_i32 = arith.constant 1 : i32
    %0 = arith.muli %arg0, %c1_i32 : i32
    %1 = arith.addi %0, %arg1 : i32
    %c0_i32 = arith.constant 0 : i32
    %2 = arith.minsi %1, %c0_i32 : i32
    %c0_i32_0 = arith.constant 0 : i32
    %c0_i32_1 = arith.constant 0 : i32
    return %2, %c0_i32_0 : i32, i32
  }
  func.func @transform_2(%arg0: i32, %arg1: i32) -> (i32, i32) {
    %c0_i32 = arith.constant 0 : i32
    %c0_i32_0 = arith.constant 0 : i32
    return %arg0, %c0_i32 : i32, i32
  }
}

module attributes {stable_mosaic.version = 11 : i64} {
  func.func @_radix_hist_kernel(%arg0: i32, %arg1: i32, %arg2: memref<1xi32, #tpu.memory_space<smem>>, %arg3: memref<4x128xf32, #tpu.memory_space<vmem>>, %arg4: memref<16x128xf32, #tpu.memory_space<vmem>>) attributes {dimension_semantics = [#tpu.dimension_semantics<parallel>, #tpu.dimension_semantics<arbitrary>], iteration_bounds = array<i64: 2, 1>, scalar_prefetch = 0 : i64, scratch_operands = 0 : i64, tpu.core_type = #tpu.core_type<tc>, window_params = [{transform_indices = @transform_0, window_bounds = array<i64: 1>}, {transform_indices = @transform_1, window_bounds = array<i64: 4, 128>}, {transform_indices = @transform_2, window_bounds = array<i64: 16, 128>}]} {
    %c0_i32 = arith.constant 0 : i32
    %0 = arith.cmpi eq, %arg1, %c0_i32 : i32
    %1 = arith.extui %0 : i1 to i32
    %c0_i32_0 = arith.constant 0 : i32
    %2 = arith.cmpi ne, %1, %c0_i32_0 : i32
    scf.if %2 {
      %cst_76 = arith.constant 0.000000e+00 : f32
      %173 = vector.broadcast %cst_76 : f32 to vector<16x128xf32>
      %c0_77 = arith.constant 0 : index
      %c0_78 = arith.constant 0 : index
      %174 = vector.load %arg4[%c0_77, %c0_78] : memref<16x128xf32, #tpu.memory_space<vmem>>, vector<16x128xf32>
      tpu.vector_store %arg4[%c0_77, %c0_78], %173 {strides = array<i32>} : memref<16x128xf32, #tpu.memory_space<vmem>>, vector<16x128xf32>,
    } else {
    }
    %c0 = arith.constant 0 : index
    %c0_1 = arith.constant 0 : index
    %3 = vector.load %arg3[%c0, %c0_1] : memref<4x128xf32, #tpu.memory_space<vmem>>, vector<4x128xf32>
    %4 = tpu.bitcast %3 : vector<4x128xf32> -> vector<4x128xi32>
    %c1_i32 = arith.constant 1 : i32
    %5 = arith.muli %arg0, %c1_i32 : i32
    %6 = arith.addi %5, %arg1 : i32
    %c4_i32 = arith.constant 4 : i32
    %7 = arith.muli %6, %c4_i32 : i32
    %8 = tpu.iota {dimensions = array<i32: 0>} : vector<4x128xi32>
    %9 = vector.broadcast %7 : i32 to vector<4x128xi32>
    %10 = arith.addi %9, %8 : vector<4x128xi32>
    %c4_i32_2 = arith.constant 4 : i32
    %11 = vector.broadcast %c4_i32_2 : i32 to vector<4x128xi32>
    %12 = arith.cmpi slt, %10, %11 : vector<4x128xi32>
    %c0_i32_3 = arith.constant 0 : i32
    %13 = vector.broadcast %c0_i32_3 : i32 to vector<4x128xi32>
    %14 = arith.cmpi sge, %4, %13 : vector<4x128xi32>
    %15 = arith.andi %12, %14 : vector<4x128xi1>
    %c0_4 = arith.constant 0 : index
    %16 = memref.load %arg2[%c0_4] : memref<1xi32, #tpu.memory_space<smem>>
    %c4_i32_5 = arith.constant 4 : i32
    %17 = arith.shrsi %16, %c4_i32_5 : i32
    %c4_i32_6 = arith.constant 4 : i32
    %18 = vector.broadcast %c4_i32_6 : i32 to vector<4x128xi32>
    %19 = arith.shrsi %4, %18 : vector<4x128xi32>
    %20 = vector.broadcast %17 : i32 to vector<4x128xi32>
    %21 = arith.cmpi eq, %19, %20 : vector<4x128xi32>
    %22 = arith.andi %15, %21 : vector<4x128xi1>
    %c0_i32_7 = arith.constant 0 : i32
    %23 = vector.broadcast %c0_i32_7 : i32 to vector<4x128xi32>
    %24 = arith.shrsi %4, %23 : vector<4x128xi32>
    %c15_i32 = arith.constant 15 : i32
    %25 = vector.broadcast %c15_i32 : i32 to vector<4x128xi32>
    %26 = arith.andi %24, %25 : vector<4x128xi32>
    %c-1_i32 = arith.constant -1 : i32
    %27 = vector.broadcast %c-1_i32 : i32 to vector<4x128xi32>
    %28 = arith.select %22, %26, %27 : vector<4x128xi1>, vector<4x128xi32>
    %c0_8 = arith.constant 0 : index
    %c0_9 = arith.constant 0 : index
    %29 = vector.load %arg4[%c0_8, %c0_9] : memref<16x128xf32, #tpu.memory_space<vmem>>, vector<1x128xf32>
    %c0_i32_10 = arith.constant 0 : i32
    %30 = vector.broadcast %c0_i32_10 : i32 to vector<4x128xi32>
    %31 = arith.cmpi eq, %28, %30 : vector<4x128xi32>
    %32 = arith.extui %31 : vector<4x128xi1> to vector<4x128xi32>
    %33 = arith.sitofp %32 : vector<4x128xi32> to vector<4x128xf32>
    %cst = arith.constant dense<0.000000e+00> : vector<128xf32>
    %34 = vector.multi_reduction <add>, %33, %cst [0] : vector<4x128xf32> to vector<128xf32>
    %35 = vector.shape_cast %34 : vector<128xf32> to vector<1x128xf32>
    %36 = arith.addf %29, %35 : vector<1x128xf32>
    %c0_11 = arith.constant 0 : index
    %c0_12 = arith.constant 0 : index
    %37 = vector.load %arg4[%c0_11, %c0_12] : memref<16x128xf32, #tpu.memory_space<vmem>>, vector<1x128xf32>
    tpu.vector_store %arg4[%c0_11, %c0_12], %36 {strides = array<i32>} : memref<16x128xf32, #tpu.memory_space<vmem>>, vector<1x128xf32>,
    %c1 = arith.constant 1 : index
    %c0_13 = arith.constant 0 : index
    %38 = vector.load %arg4[%c1, %c0_13] : memref<16x128xf32, #tpu.memory_space<vmem>>, vector<1x128xf32>
    %c1_i32_14 = arith.constant 1 : i32
    %39 = vector.broadcast %c1_i32_14 : i32 to vector<4x128xi32>
    %40 = arith.cmpi eq, %28, %39 : vector<4x128xi32>
    %41 = arith.extui %40 : vector<4x128xi1> to vector<4x128xi32>
    %42 = arith.sitofp %41 : vector<4x128xi32> to vector<4x128xf32>
    %cst_15 = arith.constant dense<0.000000e+00> : vector<128xf32>
    %43 = vector.multi_reduction <add>, %42, %cst_15 [0] : vector<4x128xf32> to vector<128xf32>
    %44 = vector.shape_cast %43 : vector<128xf32> to vector<1x128xf32>
    %45 = arith.addf %38, %44 : vector<1x128xf32>
    %c1_16 = arith.constant 1 : index
    %c0_17 = arith.constant 0 : index
    %46 = vector.load %arg4[%c1_16, %c0_17] : memref<16x128xf32, #tpu.memory_space<vmem>>, vector<1x128xf32>
    tpu.vector_store %arg4[%c1_16, %c0_17], %45 {strides = array<i32>} : memref<16x128xf32, #tpu.memory_space<vmem>>, vector<1x128xf32>,
    %c2 = arith.constant 2 : index
    %c0_18 = arith.constant 0 : index
    %47 = vector.load %arg4[%c2, %c0_18] : memref<16x128xf32, #tpu.memory_space<vmem>>, vector<1x128xf32>
    %c2_i32 = arith.constant 2 : i32
    %48 = vector.broadcast %c2_i32 : i32 to vector<4x128xi32>
    %49 = arith.cmpi eq, %28, %48 : vector<4x128xi32>
    %50 = arith.extui %49 : vector<4x128xi1> to vector<4x128xi32>
    %51 = arith.sitofp %50 : vector<4x128xi32> to vector<4x128xf32>
    %cst_19 = arith.constant dense<0.000000e+00> : vector<128xf32>
    %52 = vector.multi_reduction <add>, %51, %cst_19 [0] : vector<4x128xf32> to vector<128xf32>
    %53 = vector.shape_cast %52 : vector<128xf32> to vector<1x128xf32>
    %54 = arith.addf %47, %53 : vector<1x128xf32>
    %c2_20 = arith.constant 2 : index
    %c0_21 = arith.constant 0 : index
    %55 = vector.load %arg4[%c2_20, %c0_21] : memref<16x128xf32, #tpu.memory_space<vmem>>, vector<1x128xf32>
    tpu.vector_store %arg4[%c2_20, %c0_21], %54 {strides = array<i32>} : memref<16x128xf32, #tpu.memory_space<vmem>>, vector<1x128xf32>,
    %c3 = arith.constant 3 : index
    %c0_22 = arith.constant 0 : index
    %56 = vector.load %arg4[%c3, %c0_22] : memref<16x128xf32, #tpu.memory_space<vmem>>, vector<1x128xf32>
    %c3_i32 = arith.constant 3 : i32
    %57 = vector.broadcast %c3_i32 : i32 to vector<4x128xi32>
    %58 = arith.cmpi eq, %28, %57 : vector<4x128xi32>
    %59 = arith.extui %58 : vector<4x128xi1> to vector<4x128xi32>
    %60 = arith.sitofp %59 : vector<4x128xi32> to vector<4x128xf32>
    %cst_23 = arith.constant dense<0.000000e+00> : vector<128xf32>
    %61 = vector.multi_reduction <add>, %60, %cst_23 [0] : vector<4x128xf32> to vector<128xf32>
    %62 = vector.shape_cast %61 : vector<128xf32> to vector<1x128xf32>
    %63 = arith.addf %56, %62 : vector<1x128xf32>
    %c3_24 = arith.constant 3 : index
    %c0_25 = arith.constant 0 : index
    %64 = vector.load %arg4[%c3_24, %c0_25] : memref<16x128xf32, #tpu.memory_space<vmem>>, vector<1x128xf32>
    tpu.vector_store %arg4[%c3_24, %c0_25], %63 {strides = array<i32>} : memref<16x128xf32, #tpu.memory_space<vmem>>, vector<1x128xf32>,
    %c4 = arith.constant 4 : index
    %c0_26 = arith.constant 0 : index
    %65 = vector.load %arg4[%c4, %c0_26] : memref<16x128xf32, #tpu.memory_space<vmem>>, vector<1x128xf32>
    %c4_i32_27 = arith.constant 4 : i32
    %66 = vector.broadcast %c4_i32_27 : i32 to vector<4x128xi32>
    %67 = arith.cmpi eq, %28, %66 : vector<4x128xi32>
    %68 = arith.extui %67 : vector<4x128xi1> to vector<4x128xi32>
    %69 = arith.sitofp %68 : vector<4x128xi32> to vector<4x128xf32>
    %cst_28 = arith.constant dense<0.000000e+00> : vector<128xf32>
    %70 = vector.multi_reduction <add>, %69, %cst_28 [0] : vector<4x128xf32> to vector<128xf32>
    %71 = vector.shape_cast %70 : vector<128xf32> to vector<1x128xf32>
    %72 = arith.addf %65, %71 : vector<1x128xf32>
    %c4_29 = arith.constant 4 : index
    %c0_30 = arith.constant 0 : index
    %73 = vector.load %arg4[%c4_29, %c0_30] : memref<16x128xf32, #tpu.memory_space<vmem>>, vector<1x128xf32>
    tpu.vector_store %arg4[%c4_29, %c0_30], %72 {strides = array<i32>} : memref<16x128xf32, #tpu.memory_space<vmem>>, vector<1x128xf32>,
    %c5 = arith.constant 5 : index
    %c0_31 = arith.constant 0 : index
    %74 = vector.load %arg4[%c5, %c0_31] : memref<16x128xf32, #tpu.memory_space<vmem>>, vector<1x128xf32>
    %c5_i32 = arith.constant 5 : i32
    %75 = vector.broadcast %c5_i32 : i32 to vector<4x128xi32>
    %76 = arith.cmpi eq, %28, %75 : vector<4x128xi32>
    %77 = arith.extui %76 : vector<4x128xi1> to vector<4x128xi32>
    %78 = arith.sitofp %77 : vector<4x128xi32> to vector<4x128xf32>
    %cst_32 = arith.constant dense<0.000000e+00> : vector<128xf32>
    %79 = vector.multi_reduction <add>, %78, %cst_32 [0] : vector<4x128xf32> to vector<128xf32>
    %80 = vector.shape_cast %79 : vector<128xf32> to vector<1x128xf32>
    %81 = arith.addf %74, %80 : vector<1x128xf32>
    %c5_33 = arith.constant 5 : index
    %c0_34 = arith.constant 0 : index
    %82 = vector.load %arg4[%c5_33, %c0_34] : memref<16x128xf32, #tpu.memory_space<vmem>>, vector<1x128xf32>
    tpu.vector_store %arg4[%c5_33, %c0_34], %81 {strides = array<i32>} : memref<16x128xf32, #tpu.memory_space<vmem>>, vector<1x128xf32>,
    %c6 = arith.constant 6 : index
    %c0_35 = arith.constant 0 : index
    %83 = vector.load %arg4[%c6, %c0_35] : memref<16x128xf32, #tpu.memory_space<vmem>>, vector<1x128xf32>
    %c6_i32 = arith.constant 6 : i32
    %84 = vector.broadcast %c6_i32 : i32 to vector<4x128xi32>
    %85 = arith.cmpi eq, %28, %84 : vector<4x128xi32>
    %86 = arith.extui %85 : vector<4x128xi1> to vector<4x128xi32>
    %87 = arith.sitofp %86 : vector<4x128xi32> to vector<4x128xf32>
    %cst_36 = arith.constant dense<0.000000e+00> : vector<128xf32>
    %88 = vector.multi_reduction <add>, %87, %cst_36 [0] : vector<4x128xf32> to vector<128xf32>
    %89 = vector.shape_cast %88 : vector<128xf32> to vector<1x128xf32>
    %90 = arith.addf %83, %89 : vector<1x128xf32>
    %c6_37 = arith.constant 6 : index
    %c0_38 = arith.constant 0 : index
    %91 = vector.load %arg4[%c6_37, %c0_38] : memref<16x128xf32, #tpu.memory_space<vmem>>, vector<1x128xf32>
    tpu.vector_store %arg4[%c6_37, %c0_38], %90 {strides = array<i32>} : memref<16x128xf32, #tpu.memory_space<vmem>>, vector<1x128xf32>,
    %c7 = arith.constant 7 : index
    %c0_39 = arith.constant 0 : index
    %92 = vector.load %arg4[%c7, %c0_39] : memref<16x128xf32, #tpu.memory_space<vmem>>, vector<1x128xf32>
    %c7_i32 = arith.constant 7 : i32
    %93 = vector.broadcast %c7_i32 : i32 to vector<4x128xi32>
    %94 = arith.cmpi eq, %28, %93 : vector<4x128xi32>
    %95 = arith.extui %94 : vector<4x128xi1> to vector<4x128xi32>
    %96 = arith.sitofp %95 : vector<4x128xi32> to vector<4x128xf32>
    %cst_40 = arith.constant dense<0.000000e+00> : vector<128xf32>
    %97 = vector.multi_reduction <add>, %96, %cst_40 [0] : vector<4x128xf32> to vector<128xf32>
    %98 = vector.shape_cast %97 : vector<128xf32> to vector<1x128xf32>
    %99 = arith.addf %92, %98 : vector<1x128xf32>
    %c7_41 = arith.constant 7 : index
    %c0_42 = arith.constant 0 : index
    %100 = vector.load %arg4[%c7_41, %c0_42] : memref<16x128xf32, #tpu.memory_space<vmem>>, vector<1x128xf32>
    tpu.vector_store %arg4[%c7_41, %c0_42], %99 {strides = array<i32>} : memref<16x128xf32, #tpu.memory_space<vmem>>, vector<1x128xf32>,
    %c8 = arith.constant 8 : index
    %c0_43 = arith.constant 0 : index
    %101 = vector.load %arg4[%c8, %c0_43] : memref<16x128xf32, #tpu.memory_space<vmem>>, vector<1x128xf32>
    %c8_i32 = arith.constant 8 : i32
    %102 = vector.broadcast %c8_i32 : i32 to vector<4x128xi32>
    %103 = arith.cmpi eq, %28, %102 : vector<4x128xi32>
    %104 = arith.extui %103 : vector<4x128xi1> to vector<4x128xi32>
    %105 = arith.sitofp %104 : vector<4x128xi32> to vector<4x128xf32>
    %cst_44 = arith.constant dense<0.000000e+00> : vector<128xf32>
    %106 = vector.multi_reduction <add>, %105, %cst_44 [0] : vector<4x128xf32> to vector<128xf32>
    %107 = vector.shape_cast %106 : vector<128xf32> to vector<1x128xf32>
    %108 = arith.addf %101, %107 : vector<1x128xf32>
    %c8_45 = arith.constant 8 : index
    %c0_46 = arith.constant 0 : index
    %109 = vector.load %arg4[%c8_45, %c0_46] : memref<16x128xf32, #tpu.memory_space<vmem>>, vector<1x128xf32>
    tpu.vector_store %arg4[%c8_45, %c0_46], %108 {strides = array<i32>} : memref<16x128xf32, #tpu.memory_space<vmem>>, vector<1x128xf32>,
    %c9 = arith.constant 9 : index
    %c0_47 = arith.constant 0 : index
    %110 = vector.load %arg4[%c9, %c0_47] : memref<16x128xf32, #tpu.memory_space<vmem>>, vector<1x128xf32>
    %c9_i32 = arith.constant 9 : i32
    %111 = vector.broadcast %c9_i32 : i32 to vector<4x128xi32>
    %112 = arith.cmpi eq, %28, %111 : vector<4x128xi32>
    %113 = arith.extui %112 : vector<4x128xi1> to vector<4x128xi32>
    %114 = arith.sitofp %113 : vector<4x128xi32> to vector<4x128xf32>
    %cst_48 = arith.constant dense<0.000000e+00> : vector<128xf32>
    %115 = vector.multi_reduction <add>, %114, %cst_48 [0] : vector<4x128xf32> to vector<128xf32>
    %116 = vector.shape_cast %115 : vector<128xf32> to vector<1x128xf32>
    %117 = arith.addf %110, %116 : vector<1x128xf32>
    %c9_49 = arith.constant 9 : index
    %c0_50 = arith.constant 0 : index
    %118 = vector.load %arg4[%c9_49, %c0_50] : memref<16x128xf32, #tpu.memory_space<vmem>>, vector<1x128xf32>
    tpu.vector_store %arg4[%c9_49, %c0_50], %117 {strides = array<i32>} : memref<16x128xf32, #tpu.memory_space<vmem>>, vector<1x128xf32>,
    %c10 = arith.constant 10 : index
    %c0_51 = arith.constant 0 : index
    %119 = vector.load %arg4[%c10, %c0_51] : memref<16x128xf32, #tpu.memory_space<vmem>>, vector<1x128xf32>
    %c10_i32 = arith.constant 10 : i32
    %120 = vector.broadcast %c10_i32 : i32 to vector<4x128xi32>
    %121 = arith.cmpi eq, %28, %120 : vector<4x128xi32>
    %122 = arith.extui %121 : vector<4x128xi1> to vector<4x128xi32>
    %123 = arith.sitofp %122 : vector<4x128xi32> to vector<4x128xf32>
    %cst_52 = arith.constant dense<0.000000e+00> : vector<128xf32>
    %124 = vector.multi_reduction <add>, %123, %cst_52 [0] : vector<4x128xf32> to vector<128xf32>
    %125 = vector.shape_cast %124 : vector<128xf32> to vector<1x128xf32>
    %126 = arith.addf %119, %125 : vector<1x128xf32>
    %c10_53 = arith.constant 10 : index
    %c0_54 = arith.constant 0 : index
    %127 = vector.load %arg4[%c10_53, %c0_54] : memref<16x128xf32, #tpu.memory_space<vmem>>, vector<1x128xf32>
    tpu.vector_store %arg4[%c10_53, %c0_54], %126 {strides = array<i32>} : memref<16x128xf32, #tpu.memory_space<vmem>>, vector<1x128xf32>,
    %c11 = arith.constant 11 : index
    %c0_55 = arith.constant 0 : index
    %128 = vector.load %arg4[%c11, %c0_55] : memref<16x128xf32, #tpu.memory_space<vmem>>, vector<1x128xf32>
    %c11_i32 = arith.constant 11 : i32
    %129 = vector.broadcast %c11_i32 : i32 to vector<4x128xi32>
    %130 = arith.cmpi eq, %28, %129 : vector<4x128xi32>
    %131 = arith.extui %130 : vector<4x128xi1> to vector<4x128xi32>
    %132 = arith.sitofp %131 : vector<4x128xi32> to vector<4x128xf32>
    %cst_56 = arith.constant dense<0.000000e+00> : vector<128xf32>
    %133 = vector.multi_reduction <add>, %132, %cst_56 [0] : vector<4x128xf32> to vector<128xf32>
    %134 = vector.shape_cast %133 : vector<128xf32> to vector<1x128xf32>
    %135 = arith.addf %128, %134 : vector<1x128xf32>
    %c11_57 = arith.constant 11 : index
    %c0_58 = arith.constant 0 : index
    %136 = vector.load %arg4[%c11_57, %c0_58] : memref<16x128xf32, #tpu.memory_space<vmem>>, vector<1x128xf32>
    tpu.vector_store %arg4[%c11_57, %c0_58], %135 {strides = array<i32>} : memref<16x128xf32, #tpu.memory_space<vmem>>, vector<1x128xf32>,
    %c12 = arith.constant 12 : index
    %c0_59 = arith.constant 0 : index
    %137 = vector.load %arg4[%c12, %c0_59] : memref<16x128xf32, #tpu.memory_space<vmem>>, vector<1x128xf32>
    %c12_i32 = arith.constant 12 : i32
    %138 = vector.broadcast %c12_i32 : i32 to vector<4x128xi32>
    %139 = arith.cmpi eq, %28, %138 : vector<4x128xi32>
    %140 = arith.extui %139 : vector<4x128xi1> to vector<4x128xi32>
    %141 = arith.sitofp %140 : vector<4x128xi32> to vector<4x128xf32>
    %cst_60 = arith.constant dense<0.000000e+00> : vector<128xf32>
    %142 = vector.multi_reduction <add>, %141, %cst_60 [0] : vector<4x128xf32> to vector<128xf32>
    %143 = vector.shape_cast %142 : vector<128xf32> to vector<1x128xf32>
    %144 = arith.addf %137, %143 : vector<1x128xf32>
    %c12_61 = arith.constant 12 : index
    %c0_62 = arith.constant 0 : index
    %145 = vector.load %arg4[%c12_61, %c0_62] : memref<16x128xf32, #tpu.memory_space<vmem>>, vector<1x128xf32>
    tpu.vector_store %arg4[%c12_61, %c0_62], %144 {strides = array<i32>} : memref<16x128xf32, #tpu.memory_space<vmem>>, vector<1x128xf32>,
    %c13 = arith.constant 13 : index
    %c0_63 = arith.constant 0 : index
    %146 = vector.load %arg4[%c13, %c0_63] : memref<16x128xf32, #tpu.memory_space<vmem>>, vector<1x128xf32>
    %c13_i32 = arith.constant 13 : i32
    %147 = vector.broadcast %c13_i32 : i32 to vector<4x128xi32>
    %148 = arith.cmpi eq, %28, %147 : vector<4x128xi32>
    %149 = arith.extui %148 : vector<4x128xi1> to vector<4x128xi32>
    %150 = arith.sitofp %149 : vector<4x128xi32> to vector<4x128xf32>
    %cst_64 = arith.constant dense<0.000000e+00> : vector<128xf32>
    %151 = vector.multi_reduction <add>, %150, %cst_64 [0] : vector<4x128xf32> to vector<128xf32>
    %152 = vector.shape_cast %151 : vector<128xf32> to vector<1x128xf32>
    %153 = arith.addf %146, %152 : vector<1x128xf32>
    %c13_65 = arith.constant 13 : index
    %c0_66 = arith.constant 0 : index
    %154 = vector.load %arg4[%c13_65, %c0_66] : memref<16x128xf32, #tpu.memory_space<vmem>>, vector<1x128xf32>
    tpu.vector_store %arg4[%c13_65, %c0_66], %153 {strides = array<i32>} : memref<16x128xf32, #tpu.memory_space<vmem>>, vector<1x128xf32>,
    %c14 = arith.constant 14 : index
    %c0_67 = arith.constant 0 : index
    %155 = vector.load %arg4[%c14, %c0_67] : memref<16x128xf32, #tpu.memory_space<vmem>>, vector<1x128xf32>
    %c14_i32 = arith.constant 14 : i32
    %156 = vector.broadcast %c14_i32 : i32 to vector<4x128xi32>
    %157 = arith.cmpi eq, %28, %156 : vector<4x128xi32>
    %158 = arith.extui %157 : vector<4x128xi1> to vector<4x128xi32>
    %159 = arith.sitofp %158 : vector<4x128xi32> to vector<4x128xf32>
    %cst_68 = arith.constant dense<0.000000e+00> : vector<128xf32>
    %160 = vector.multi_reduction <add>, %159, %cst_68 [0] : vector<4x128xf32> to vector<128xf32>
    %161 = vector.shape_cast %160 : vector<128xf32> to vector<1x128xf32>
    %162 = arith.addf %155, %161 : vector<1x128xf32>
    %c14_69 = arith.constant 14 : index
    %c0_70 = arith.constant 0 : index
    %163 = vector.load %arg4[%c14_69, %c0_70] : memref<16x128xf32, #tpu.memory_space<vmem>>, vector<1x128xf32>
    tpu.vector_store %arg4[%c14_69, %c0_70], %162 {strides = array<i32>} : memref<16x128xf32, #tpu.memory_space<vmem>>, vector<1x128xf32>,
    %c15 = arith.constant 15 : index
    %c0_71 = arith.constant 0 : index
    %164 = vector.load %arg4[%c15, %c0_71] : memref<16x128xf32, #tpu.memory_space<vmem>>, vector<1x128xf32>
    %c15_i32_72 = arith.constant 15 : i32
    %165 = vector.broadcast %c15_i32_72 : i32 to vector<4x128xi32>
    %166 = arith.cmpi eq, %28, %165 : vector<4x128xi32>
    %167 = arith.extui %166 : vector<4x128xi1> to vector<4x128xi32>
    %168 = arith.sitofp %167 : vector<4x128xi32> to vector<4x128xf32>
    %cst_73 = arith.constant dense<0.000000e+00> : vector<128xf32>
    %169 = vector.multi_reduction <add>, %168, %cst_73 [0] : vector<4x128xf32> to vector<128xf32>
    %170 = vector.shape_cast %169 : vector<128xf32> to vector<1x128xf32>
    %171 = arith.addf %164, %170 : vector<1x128xf32>
    %c15_74 = arith.constant 15 : index
    %c0_75 = arith.constant 0 : index
    %172 = vector.load %arg4[%c15_74, %c0_75] : memref<16x128xf32, #tpu.memory_space<vmem>>, vector<1x128xf32>
    tpu.vector_store %arg4[%c15_74, %c0_75], %171 {strides = array<i32>} : memref<16x128xf32, #tpu.memory_space<vmem>>, vector<1x128xf32>,
    return
  }
  func.func @transform_0(%arg0: i32, %arg1: i32) -> i32 {
    %c0_i32 = arith.constant 0 : i32
    %c0_i32_0 = arith.constant 0 : i32
    return %c0_i32 : i32
  }
  func.func @transform_1(%arg0: i32, %arg1: i32) -> (i32, i32) {
    %c1_i32 = arith.constant 1 : i32
    %0 = arith.muli %arg0, %c1_i32 : i32
    %1 = arith.addi %0, %arg1 : i32
    %c0_i32 = arith.constant 0 : i32
    %2 = arith.minsi %1, %c0_i32 : i32
    %c0_i32_0 = arith.constant 0 : i32
    %c0_i32_1 = arith.constant 0 : i32
    return %2, %c0_i32_0 : i32, i32
  }
  func.func @transform_2(%arg0: i32, %arg1: i32) -> (i32, i32) {
    %c0_i32 = arith.constant 0 : i32
    %c0_i32_0 = arith.constant 0 : i32
    return %arg0, %c0_i32 : i32, i32
  }
}

module attributes {stable_mosaic.version = 11 : i64} {
  func.func @_masked_mean_kernel(%arg0: i32, %arg1: i32, %arg2: memref<1xf32, #tpu.memory_space<smem>>, %arg3: memref<4x128xf32, #tpu.memory_space<vmem>>, %arg4: memref<8x128xf32, #tpu.memory_space<vmem>>, %arg5: memref<8x128xf32, #tpu.memory_space<vmem>>) attributes {dimension_semantics = [#tpu.dimension_semantics<parallel>, #tpu.dimension_semantics<arbitrary>], iteration_bounds = array<i64: 2, 1>, scalar_prefetch = 0 : i64, scratch_operands = 0 : i64, tpu.core_type = #tpu.core_type<tc>, window_params = [{transform_indices = @transform_0, window_bounds = array<i64: 1>}, {transform_indices = @transform_1, window_bounds = array<i64: 4, 128>}, {transform_indices = @transform_2, window_bounds = array<i64: 8, 128>}, {transform_indices = @transform_3, window_bounds = array<i64: 8, 128>}]} {
    %c0_i32 = arith.constant 0 : i32
    %0 = arith.cmpi eq, %arg1, %c0_i32 : i32
    %1 = arith.extui %0 : i1 to i32
    %c0_i32_0 = arith.constant 0 : i32
    %2 = arith.cmpi ne, %1, %c0_i32_0 : i32
    scf.if %2 {
      %cst_16 = arith.constant 0.000000e+00 : f32
      %31 = vector.broadcast %cst_16 : f32 to vector<8x128xf32>
      %c0_17 = arith.constant 0 : index
      %c0_18 = arith.constant 0 : index
      %32 = vector.load %arg4[%c0_17, %c0_18] : memref<8x128xf32, #tpu.memory_space<vmem>>, vector<8x128xf32>
      tpu.vector_store %arg4[%c0_17, %c0_18], %31 {strides = array<i32>} : memref<8x128xf32, #tpu.memory_space<vmem>>, vector<8x128xf32>,
      %cst_19 = arith.constant 0.000000e+00 : f32
      %33 = vector.broadcast %cst_19 : f32 to vector<8x128xf32>
      %c0_20 = arith.constant 0 : index
      %c0_21 = arith.constant 0 : index
      %34 = vector.load %arg5[%c0_20, %c0_21] : memref<8x128xf32, #tpu.memory_space<vmem>>, vector<8x128xf32>
      tpu.vector_store %arg5[%c0_20, %c0_21], %33 {strides = array<i32>} : memref<8x128xf32, #tpu.memory_space<vmem>>, vector<8x128xf32>,
    } else {
    }
    %c0 = arith.constant 0 : index
    %3 = memref.load %arg2[%c0] : memref<1xf32, #tpu.memory_space<smem>>
    %c0_1 = arith.constant 0 : index
    %c0_2 = arith.constant 0 : index
    %4 = vector.load %arg3[%c0_1, %c0_2] : memref<4x128xf32, #tpu.memory_space<vmem>>, vector<4x128xf32>
    %c1_i32 = arith.constant 1 : i32
    %5 = arith.muli %arg0, %c1_i32 : i32
    %6 = arith.addi %5, %arg1 : i32
    %c4_i32 = arith.constant 4 : i32
    %7 = arith.muli %6, %c4_i32 : i32
    %8 = tpu.iota {dimensions = array<i32: 0>} : vector<4x128xi32>
    %9 = vector.broadcast %7 : i32 to vector<4x128xi32>
    %10 = arith.addi %9, %8 : vector<4x128xi32>
    %c4_i32_3 = arith.constant 4 : i32
    %11 = vector.broadcast %c4_i32_3 : i32 to vector<4x128xi32>
    %12 = arith.cmpi slt, %10, %11 : vector<4x128xi32>
    %13 = vector.broadcast %3 : f32 to vector<4x128xf32>
    %14 = arith.cmpf oge, %4, %13 : vector<4x128xf32>
    %15 = arith.andi %12, %14 : vector<4x128xi1>
    %c0_4 = arith.constant 0 : index
    %c0_5 = arith.constant 0 : index
    %16 = vector.load %arg4[%c0_4, %c0_5] : memref<8x128xf32, #tpu.memory_space<vmem>>, vector<1x128xf32>
    %cst = arith.constant 0.000000e+00 : f32
    %17 = vector.broadcast %cst : f32 to vector<4x128xf32>
    %18 = arith.select %15, %4, %17 : vector<4x128xi1>, vector<4x128xf32>
    %cst_6 = arith.constant dense<0.000000e+00> : vector<128xf32>
    %19 = vector.multi_reduction <add>, %18, %cst_6 [0] : vector<4x128xf32> to vector<128xf32>
    %20 = vector.shape_cast %19 : vector<128xf32> to vector<1x128xf32>
    %21 = arith.addf %16, %20 : vector<1x128xf32>
    %c0_7 = arith.constant 0 : index
    %c0_8 = arith.constant 0 : index
    %22 = vector.load %arg4[%c0_7, %c0_8] : memref<8x128xf32, #tpu.memory_space<vmem>>, vector<1x128xf32>
    tpu.vector_store %arg4[%c0_7, %c0_8], %21 {strides = array<i32>} : memref<8x128xf32, #tpu.memory_space<vmem>>, vector<1x128xf32>,
    %c0_9 = arith.constant 0 : index
    %c0_10 = arith.constant 0 : index
    %23 = vector.load %arg5[%c0_9, %c0_10] : memref<8x128xf32, #tpu.memory_space<vmem>>, vector<1x128xf32>
    %cst_11 = arith.constant 1.000000e+00 : f32
    %cst_12 = arith.constant 0.000000e+00 : f32
    %24 = vector.broadcast %cst_11 : f32 to vector<4x128xf32>
    %25 = vector.broadcast %cst_12 : f32 to vector<4x128xf32>
    %26 = arith.select %15, %24, %25 : vector<4x128xi1>, vector<4x128xf32>
    %cst_13 = arith.constant dense<0.000000e+00> : vector<128xf32>
    %27 = vector.multi_reduction <add>, %26, %cst_13 [0] : vector<4x128xf32> to vector<128xf32>
    %28 = vector.shape_cast %27 : vector<128xf32> to vector<1x128xf32>
    %29 = arith.addf %23, %28 : vector<1x128xf32>
    %c0_14 = arith.constant 0 : index
    %c0_15 = arith.constant 0 : index
    %30 = vector.load %arg5[%c0_14, %c0_15] : memref<8x128xf32, #tpu.memory_space<vmem>>, vector<1x128xf32>
    tpu.vector_store %arg5[%c0_14, %c0_15], %29 {strides = array<i32>} : memref<8x128xf32, #tpu.memory_space<vmem>>, vector<1x128xf32>,
    return
  }
  func.func @transform_0(%arg0: i32, %arg1: i32) -> i32 {
    %c0_i32 = arith.constant 0 : i32
    %c0_i32_0 = arith.constant 0 : i32
    return %c0_i32 : i32
  }
  func.func @transform_1(%arg0: i32, %arg1: i32) -> (i32, i32) {
    %c1_i32 = arith.constant 1 : i32
    %0 = arith.muli %arg0, %c1_i32 : i32
    %1 = arith.addi %0, %arg1 : i32
    %c0_i32 = arith.constant 0 : i32
    %2 = arith.minsi %1, %c0_i32 : i32
    %c0_i32_0 = arith.constant 0 : i32
    %c0_i32_1 = arith.constant 0 : i32
    return %2, %c0_i32_0 : i32, i32
  }
  func.func @transform_2(%arg0: i32, %arg1: i32) -> (i32, i32) {
    %c0_i32 = arith.constant 0 : i32
    %c0_i32_0 = arith.constant 0 : i32
    return %arg0, %c0_i32 : i32, i32
  }
  func.func @transform_3(%arg0: i32, %arg1: i32) -> (i32, i32) {
    %c0_i32 = arith.constant 0 : i32
    %c0_i32_0 = arith.constant 0 : i32
    return %arg0, %c0_i32 : i32, i32
  }
}

</mosaic_0001>

<bundles_post_ra>
// kernel: _lambda_.11
= control target key start
LH: loop header
LB: loop body
LE: loop exit
PB: predicated region body
PF: predicated region fallthrough
CT: control target
= control target key end

     0   :  { %s566_s9 = smov 0   ;;  %s568_s10 = smov 0   ;;  %s687_s0 = inlined_call_operand.<no memory space> [shape: s32[1], index: 0, kind: input, shape index: {}]   ;;  %s688_s1 = inlined_call_operand.vmem [shape: f32[4,128], index: 1, kind: input, shape index: {}]   ;;  %s689_s2 = inlined_call_operand.vmem [shape: f32[32,128], index: 2, kind: output, shape index: {}]  }
   0x1   :  { %s570_s11 = smov 0  }
   0x2 LB: > { %s25_s0 = sadd.s32 1, %s544_s10  ;;  %p474_p0 = scmp.ge.s32.totalorder %s548_s11, 1  ;;  %s548_s11 = sphi %s570_s11, %s13_s11   ;;  %s544_s10 = sphi %s568_s10, %s691_s10   ;;  %s540_s9 = sphi %s566_s9, %s690_s9  }
   0x3   : > { %p27_p1 = scmp.ge.s32.totalorder %s25_s0, 2  ;;  %p136_p2 = scmp.lt.s32.totalorder %s548_s11, 3 }
   0x5   : > { %s693_s0 = smov (%p27_p1, %s25_s0), 0  ;;  %p137_p3 = pnand %p474_p0, %p136_p2 }
   0x6   : > { %s479_s12 = sshll.u32 (!%p137_p3), %s540_s9, 1  ;;  %p161_p4 = scmp.lt.s32.totalorder (!%p137_p3), %s540_s9, 0  ;;  %v186_v0 = vlaneseq (!%p137_p3)  ;;  %v550_v4 = vmov (!%p137_p3), 0.0   ;;  %vm200_vm3 = vcmask (!%p137_p3), 1043456  }
   0x7   : > { %140 = sbr.rel (%p137_p3) target bundleno = 72 (0x48), region = 28  ;;  %p171_p5 = scmp.lt.s32.totalorder (!%p137_p3), %s479_s12, 3 }
   0x8   : > { %s481_s13 = sshll.u32 (!%p137_p3), %s540_s9, 2  ;;  %v187_v1 = vshrl.u32 (!%p137_p3), %v186_v0, 7 }
   0x9   : > { %v188_v2 = vstv (!%p137_p3), %s481_s13 }
   0xa   : > { %v189_v3 = vadd.s32 (!%p137_p3), %v188_v2, %v187_v1 }
   0xc   : > { %vm190_vm0 = vcmp.lt.s32.totalorder (!%p137_p3), %v189_v3, 4 }
   0xe   : > { %s695_s9 = smov (!%p161_p4, %s540_s9), 0  ;;  %s697_s12 = smov (!%p171_p5, %s479_s12), 3 }
   0xf   : > { %s699_s9 = smov (!%p161_p4, %s695_s9), 0  ;;  %s480_s14 = sshll.u32 %s697_s12, 3 }
  0x10   : > { %s587_s17 = scalar_lea.vmem %s689_s2, %s480_s14  ;;  %s478_s18 = sshll.u32 %s699_s9, 2 }
  0x11   : > { %180 = vst [vmem:[%s587_s17] sm:$0xff] %v550_v4  ;;  %s166_s21 = scalar_lea.vmem %s688_s1, %s478_s18  ;;  %181 = vst [vmem:[%s587_s17 + $0x8] sm:$0xff] %v550_v4 }
  0x12   : > { %v182_v5 = vld [vmem:[%s166_s21] sm:$0xf] }
  0x13   : > { %vm191_vm1 = vcmp.ge.s32.totalorder %v182_v5, 0  ;;  %v482_v6 = vshrl.u32 %v182_v5, 28 }
  0x14   : > { %vm192_vm2 = vmand %vm190_vm0, %vm191_vm1 }
  0x15   : > { %v596_v7 = vsel %vm192_vm2, %v482_v6, 4294967295 }
  0x16   : > { %vm197_vm4 = vcmp.eq.s32.totalorder %v596_v7, 0  ;;  %vm211_vm5 = vcmp.eq.s32.totalorder %v596_v7, 1  ;;  %vm224_vm6 = vcmp.eq.s32.totalorder %v596_v7, 2  ;;  %vm237_vm7 = vcmp.eq.s32.totalorder %v596_v7, 3 }
  0x17   : > { %v483_v8 = vsel %vm197_vm4, 1.0, %v550_v4  ;;  %v484_v9 = vsel %vm211_vm5, 1.0, %v550_v4  ;;  %v485_v10 = vsel %vm224_vm6, 1.0, %v550_v4  ;;  %v486_v11 = vsel %vm237_vm7, 1.0, %v550_v4 }
  0x18   : > { %v201_v12 = vsel %vm200_vm3, %v483_v8, 0.0  ;;  %v214_v13 = vsel %vm200_vm3, %v484_v9, 0.0  ;;  %v227_v14 = vsel %vm200_vm3, %v485_v10, 0.0  ;;  %v240_v15 = vsel %vm200_vm3, %v486_v11, 0.0  ;;  %v196_v40 = vld [vmem:[%s587_s17] sm:$0x1] }
  0x19   : > { %v202_v16 = vrot.slane %v201_v12, 4  ;;  %v215_v17 = vrot.slane %v214_v13, 4  ;;  %v228_v18 = vrot.slane %v227_v14, 4  ;;  %v241_v19 = vrot.slane %v240_v15, 4  ;;  %v210_v45 = vld [vmem:[%s587_s17 + $0x1] sm:$0x1] }
  0x1a   : > { %vm250_vm8 = vcmp.eq.s32.totalorder %v596_v7, 4  ;;  %vm263_vm9 = vcmp.eq.s32.totalorder %v596_v7, 5  ;;  %vm276_vm10 = vcmp.eq.s32.totalorder %v596_v7, 6  ;;  %vm289_vm11 = vcmp.eq.s32.totalorder %v596_v7, 7  ;;  %v223_v52 = vld [vmem:[%s587_s17 + $0x2] sm:$0x1] }
  0x1b   : > { %v203_v20 = vadd.f32 %v202_v16, %v201_v12  ;;  %v216_v21 = vadd.f32 %v215_v17, %v214_v13  ;;  %v229_v22 = vadd.f32 %v228_v18, %v227_v14  ;;  %v242_v23 = vadd.f32 %v241_v19, %v240_v15  ;;  %v236_v53 = vld [vmem:[%s587_s17 + $0x3] sm:$0x1]  ;;  %v249_v5 = vld [vmem:[%s587_s17 + $0x4] sm:$0x1]  ;;  %v262_v6 = vld [vmem:[%s587_s17 + $0x5] sm:$0x1] }
  0x1c   : > { %v487_v24 = vsel %vm250_vm8, 1.0, %v550_v4  ;;  %v488_v25 = vsel %vm263_vm9, 1.0, %v550_v4  ;;  %v489_v43 = vsel %vm276_vm10, 1.0, %v550_v4  ;;  %v490_v44 = vsel %vm289_vm11, 1.0, %v550_v4 }
  0x1d   : > { %v204_v26 = vrot.slane %v203_v20, 2  ;;  %v217_v27 = vrot.slane %v216_v21, 2  ;;  %v253_v28 = vsel %vm200_vm3, %v487_v24, 0.0  ;;  %v266_v29 = vsel %vm200_vm3, %v488_v25, 0.0 }
  0x1e   : > { %v230_v30 = vrot.slane %v229_v22, 2  ;;  %v243_v31 = vrot.slane %v242_v23, 2  ;;  %v254_v32 = vrot.slane %v253_v28, 4  ;;  %v267_v33 = vrot.slane %v266_v29, 4 }
  0x1f   : > { %v205_v34 = vadd.f32 %v204_v26, %v203_v20  ;;  %v218_v35 = vadd.f32 %v217_v27, %v216_v21  ;;  %v279_v54 = vsel %vm200_vm3, %v489_v43, 0.0  ;;  %v292_v55 = vsel %vm200_vm3, %v490_v44, 0.0 }
  0x20   : > { %v231_v36 = vadd.f32 %v230_v30, %v229_v22  ;;  %v244_v37 = vadd.f32 %v243_v31, %v242_v23  ;;  %v255_v38 = vadd.f32 %v254_v32, %v253_v28  ;;  %v268_v39 = vadd.f32 %v267_v33, %v266_v29  ;;  %v275_v32 = vld [vmem:[%s587_s17 + $0x6] sm:$0x1]  ;;  %v288_v33 = vld [vmem:[%s587_s17 + $0x7] sm:$0x1] }
  0x21   : > { %v206_v41 = vrot.slane %v205_v34, 1  ;;  %v219_v42 = vrot.slane %v218_v35, 1  ;;  %v280_v62 = vrot.slane %v279_v54, 4  ;;  %v293_v63 = vrot.slane %v292_v55, 4 }
  0x22   : > { %v232_v46 = vrot.slane %v231_v36, 1  ;;  %v245_v47 = vrot.slane %v244_v37, 1  ;;  %v256_v48 = vrot.slane %v255_v38, 2  ;;  %v269_v49 = vrot.slane %v268_v39, 2 }
  0x23   : > { %v207_v50 = vadd.f32 %v206_v41, %v205_v34  ;;  %v220_v51 = vadd.f32 %v219_v42, %v218_v35  ;;  %v281_v8 = vadd.f32 %v280_v62, %v279_v54  ;;  %v294_v9 = vadd.f32 %v293_v63, %v292_v55 }
  0x24   : > { %v233_v56 = vadd.f32 %v232_v46, %v231_v36  ;;  %v246_v57 = vadd.f32 %v245_v47, %v244_v37  ;;  %v257_v58 = vadd.f32 %v256_v48, %v255_v38  ;;  %v270_v59 = vadd.f32 %v269_v49, %v268_v39  ;;  %v301_v46 = vld [vmem:[%s587_s17 + $0x8] sm:$0x1] }
  0x25   : > { %v208_v60 = vadd.f32 %v207_v50, %v196_v40  ;;  %v221_v61 = vadd.f32 %v220_v51, %v210_v45  ;;  %vm302_vm12 = vcmp.eq.s32.totalorder %v596_v7, 8  ;;  %vm315_vm13 = vcmp.eq.s32.totalorder %v596_v7, 9  ;;  %v314_v51 = vld [vmem:[%s587_s17 + $0x9] sm:$0x1] }
  0x26   : > { %v234_v0 = vadd.f32 %v233_v56, %v223_v52  ;;  %v247_v1 = vadd.f32 %v246_v57, %v236_v53  ;;  %v258_v2 = vrot.slane %v257_v58, 1  ;;  %v271_v3 = vrot.slane %v270_v59, 1 }
  0x27   : > { %209 = vst [vmem:[%s587_s17] sm:$0x1] %v208_v60  ;;  %222 = vst [vmem:[%s587_s17 + $0x1] sm:$0x1] %v221_v61  ;;  %v491_v12 = vsel %vm302_vm12, 1.0, %v550_v4  ;;  %v492_v13 = vsel %vm315_vm13, 1.0, %v550_v4  ;;  %v282_v14 = vrot.slane %v281_v8, 2 }
  0x28   : > { %235 = vst [vmem:[%s587_s17 + $0x2] sm:$0x1] %v234_v0  ;;  %248 = vst [vmem:[%s587_s17 + $0x3] sm:$0x1] %v247_v1  ;;  %v259_v10 = vadd.f32 %v258_v2, %v257_v58  ;;  %v272_v11 = vadd.f32 %v271_v3, %v270_v59  ;;  %v295_v15 = vrot.slane %v294_v9, 2  ;;  %v305_v16 = vsel %vm200_vm3, %v491_v12, 0.0 }
  0x29   : > { %v318_v17 = vsel %vm200_vm3, %v492_v13, 0.0  ;;  %v306_v20 = vrot.slane %v305_v16, 4  ;;  %v283_v22 = vadd.f32 %v282_v14, %v281_v8  ;;  %vm328_vm14 = vcmp.eq.s32.totalorder %v596_v7, 10  ;;  %v327_v2 = vld [vmem:[%s587_s17 + $0xa] sm:$0x1] }
  0x2a   : > { %v260_v18 = vadd.f32 %v259_v10, %v249_v5  ;;  %v273_v19 = vadd.f32 %v272_v11, %v262_v6  ;;  %v319_v21 = vrot.slane %v318_v17, 4  ;;  %v296_v23 = vadd.f32 %v295_v15, %v294_v9  ;;  %v340_v9 = vld [vmem:[%s587_s17 + $0xb] sm:$0x1] }
  0x2b   : > { %vm341_vm15 = vcmp.eq.s32.totalorder %v596_v7, 11  ;;  %v307_v24 = vadd.f32 %v306_v20, %v305_v16  ;;  %v493_v26 = vsel %vm328_vm14, 1.0, %v550_v4  ;;  %v284_v28 = vrot.slane %v283_v22, 1 }
  0x2c   : > { %261 = vst [vmem:[%s587_s17 + $0x4] sm:$0x1] %v260_v18  ;;  %274 = vst [vmem:[%s587_s17 + $0x5] sm:$0x1] %v273_v19  ;;  %v320_v25 = vadd.f32 %v319_v21, %v318_v17  ;;  %v494_v27 = vsel %vm341_vm15, 1.0, %v550_v4  ;;  %v297_v29 = vrot.slane %v296_v23, 1 }
  0x2d   : > { %v331_v30 = vsel %vm200_vm3, %v493_v26, 0.0  ;;  %v344_v31 = vsel %vm200_vm3, %v494_v27, 0.0  ;;  %v308_v34 = vrot.slane %v307_v24, 2  ;;  %v285_v36 = vadd.f32 %v284_v28, %v283_v22 }
  0x2e   : > { %v321_v35 = vrot.slane %v320_v25, 2  ;;  %v298_v37 = vadd.f32 %v297_v29, %v296_v23  ;;  %v332_v38 = vrot.slane %v331_v30, 4  ;;  %v345_v39 = vrot.slane %v344_v31, 4 }
  0x2f   : > { %v309_v40 = vadd.f32 %v308_v34, %v307_v24  ;;  %vm354_vm0 = vcmp.eq.s32.totalorder %v596_v7, 12  ;;  %vm367_vm1 = vcmp.eq.s32.totalorder %v596_v7, 13  ;;  %v286_v42 = vadd.f32 %v285_v36, %v275_v32  ;;  %v353_v24 = vld [vmem:[%s587_s17 + $0xc] sm:$0x1]  ;;  %v379_v36 = vld [vmem:[%s587_s17 + $0xe] sm:$0x1] }
  0x30   : > { %v322_v41 = vadd.f32 %v321_v35, %v320_v25  ;;  %v299_v43 = vadd.f32 %v298_v37, %v288_v33  ;;  %v333_v44 = vadd.f32 %v332_v38, %v331_v30  ;;  %v346_v45 = vadd.f32 %v345_v39, %v344_v31  ;;  %v366_v25 = vld [vmem:[%s587_s17 + $0xd] sm:$0x1]  ;;  %v392_v37 = vld [vmem:[%s587_s17 + $0xf] sm:$0x1] }
  0x31   : > { %v310_v47 = vrot.slane %v309_v40, 1  ;;  %v495_v49 = vsel %vm354_vm0, 1.0, %v550_v4  ;;  %v496_v50 = vsel %vm367_vm1, 1.0, %v550_v4  ;;  %287 = vst [vmem:[%s587_s17 + $0x6] sm:$0x1] %v286_v42  ;;  %vm380_vm2 = vcmp.eq.s32.totalorder %v596_v7, 14 }
  0x32   : > { %v323_v48 = vrot.slane %v322_v41, 1  ;;  %300 = vst [vmem:[%s587_s17 + $0x7] sm:$0x1] %v299_v43  ;;  %v334_v52 = vrot.slane %v333_v44, 2  ;;  %v347_v53 = vrot.slane %v346_v45, 2  ;;  %v357_v54 = vsel %vm200_vm3, %v495_v49, 0.0 }
  0x33   : > { %v370_v55 = vsel %vm200_vm3, %v496_v50, 0.0  ;;  %v311_v56 = vadd.f32 %v310_v47, %v309_v40  ;;  %v358_v58 = vrot.slane %v357_v54, 4  ;;  %vm393_vm4 = vcmp.eq.s32.totalorder %v596_v7, 15 }
  0x34   : > { %v324_v57 = vadd.f32 %v323_v48, %v322_v41  ;;  %v371_v59 = vrot.slane %v370_v55, 4  ;;  %v335_v60 = vadd.f32 %v334_v52, %v333_v44  ;;  %v348_v61 = vadd.f32 %v347_v53, %v346_v45 }
  0x35   : > { %v312_v62 = vadd.f32 %v311_v56, %v301_v46  ;;  %v359_v0 = vadd.f32 %v358_v58, %v357_v54  ;;  %v497_v6 = vsel %vm380_vm2, 1.0, %v550_v4  ;;  %v498_v8 = vsel %vm393_vm4, 1.0, %v550_v4 }
  0x36   : > { %v325_v63 = vadd.f32 %v324_v57, %v314_v51  ;;  %v372_v1 = vadd.f32 %v371_v59, %v370_v55  ;;  %v336_v3 = vrot.slane %v335_v60, 1  ;;  %v349_v5 = vrot.slane %v348_v61, 1 }
  0x37   : > { %313 = vst [vmem:[%s587_s17 + $0x8] sm:$0x1] %v312_v62  ;;  %v360_v10 = vrot.slane %v359_v0, 2  ;;  %v383_v7 = vsel %vm200_vm3, %v497_v6, 0.0  ;;  %v396_v12 = vsel %vm200_vm3, %v498_v8, 0.0 }
  0x38   : > { %326 = vst [vmem:[%s587_s17 + $0x9] sm:$0x1] %v325_v63  ;;  %v373_v11 = vrot.slane %v372_v1, 2  ;;  %v337_v13 = vadd.f32 %v336_v3, %v335_v60  ;;  %v350_v14 = vadd.f32 %v349_v5, %v348_v61  ;;  %v384_v15 = vrot.slane %v383_v7, 4 }
  0x39   : > { %v397_v16 = vrot.slane %v396_v12, 4  ;;  %v361_v17 = vadd.f32 %v360_v10, %v359_v0 }
  0x3a   : > { %v374_v18 = vadd.f32 %v373_v11, %v372_v1  ;;  %v338_v4 = vadd.f32 %v337_v13, %v327_v2  ;;  %v351_v19 = vadd.f32 %v350_v14, %v340_v9  ;;  %v385_v20 = vadd.f32 %v384_v15, %v383_v7 }
  0x3b   : > { %v398_v21 = vadd.f32 %v397_v16, %v396_v12  ;;  %v362_v22 = vrot.slane %v361_v17, 1 }
  0x3c   : > { %v375_v23 = vrot.slane %v374_v18, 1  ;;  %339 = vst [vmem:[%s587_s17 + $0xa] sm:$0x1] %v338_v4  ;;  %352 = vst [vmem:[%s587_s17 + $0xb] sm:$0x1] %v351_v19  ;;  %v386_v26 = vrot.slane %v385_v20, 2 }
  0x3d   : > { %v399_v27 = vrot.slane %v398_v21, 2  ;;  %v363_v28 = vadd.f32 %v362_v22, %v361_v17 }
  0x3e   : > { %v376_v29 = vadd.f32 %v375_v23, %v374_v18  ;;  %v387_v30 = vadd.f32 %v386_v26, %v385_v20 }
  0x3f   : > { %v400_v31 = vadd.f32 %v399_v27, %v398_v21  ;;  %v364_v32 = vadd.f32 %v363_v28, %v353_v24 }
  0x40   : > { %v377_v33 = vadd.f32 %v376_v29, %v366_v25  ;;  %v388_v34 = vrot.slane %v387_v30, 1 }
  0x41   : > { %v401_v35 = vrot.slane %v400_v31, 1  ;;  %365 = vst [vmem:[%s587_s17 + $0xc] sm:$0x1] %v364_v32 }
  0x42   : > { %378 = vst [vmem:[%s587_s17 + $0xd] sm:$0x1] %v377_v33  ;;  %v389_v38 = vadd.f32 %v388_v34, %v387_v30 }
  0x43   : > { %v402_v39 = vadd.f32 %v401_v35, %v400_v31 }
  0x44   : > { %v390_v40 = vadd.f32 %v389_v38, %v379_v36 }
  0x45   : > { %v403_v41 = vadd.f32 %v402_v39, %v392_v37 }
  0x46   : > { %391 = vst [vmem:[%s587_s17 + $0xe] sm:$0x1] %v390_v40 }
  0x47   : > { %404 = vst [vmem:[%s587_s17 + $0xf] sm:$0x1] %v403_v41 }
  0x48 PF: > { %s13_s11 = sadd.s32 1, %s548_s11   ;;  %s690_s9 = smov %s544_s10 }
  0x49   : > { %p10_p6 = scmp.ge.s32.totalorder %s13_s11, 4   ;;  %s691_s10 = smov %s693_s0 }
  0x4b   :  { %12 = sbr.rel (!%p10_p6) target bundleno = 2 (0x2), region = 62 }

// kernel: _lambda_.10
= control target key start
LH: loop header
LB: loop body
LE: loop exit
PB: predicated region body
PF: predicated region fallthrough
CT: control target
= control target key end

     0   :  { %s497_s9 = smov 0   ;;  %s499_s10 = smov 0   ;;  %s549_s0 = inlined_call_operand.vmem [shape: f32[2,4,256], index: 0, kind: input, shape index: {}]   ;;  %s550_s1 = inlined_call_operand.vmem [shape: s32[2,1,256], index: 1, kind: input, shape index: {}]   ;;  %s551_s2 = inlined_call_operand.vmem [shape: f32[2,1,256], index: 2, kind: output, shape index: {}]  }
   0x1   :  { %s501_s11 = smov 0  }
   0x2 LB: > { %s24_s12 = sadd.s32 1, %s475_s10  ;;  %p417_p0 = scmp.ge.s32.totalorder %s479_s11, 1  ;;  %s479_s11 = sphi %s501_s11, %s12_s11   ;;  %s475_s10 = sphi %s499_s10, %s553_s10   ;;  %s471_s9 = sphi %s497_s9, %s552_s9  }
   0x3   : > { %p26_p1 = scmp.ge.s32.totalorder %s24_s12, 2  ;;  %p149_p2 = scmp.lt.s32.totalorder %s479_s11, 3 }
   0x5   : > { %s555_s12 = smov (%p26_p1, %s24_s12), 0  ;;  %p150_p3 = pnand %p417_p0, %p149_p2 }
   0x6   : > { %p187_p4 = scmp.lt.s32.totalorder (!%p150_p3), %s471_s9, 1  ;;  %vm219_vm0 = vcmask (!%p150_p3), 1043456   ;;  %v264_v15 = vlaneseq (!%p150_p3)  ;;  %v481_v56 = vmov (!%p150_p3), 1966171168  }
   0x7   : > { %153 = sbr.rel (%p150_p3) target bundleno = 89 (0x59), region = 28  ;;  %v298_v57 = vunpack.c.l.s4 (!%p150_p3), %v481_v56 }
   0x8   : > { %v265_v18 = vshrl.u32 (!%p150_p3), %v264_v15, 7  ;;  %vm314_vm3 = vcmp.lt.s32.totalorder (!%p150_p3), %v264_v15, 256 }
   0xa   : > { %v268_v21 = vsub.s32 (!%p150_p3), 0, %v265_v18  ;;  %v272_v23 = vsub.s32 (!%p150_p3), 1, %v265_v18 }
   0xe   : > { %s557_s9 = smov (!%p187_p4, %s471_s9), 1 }
   0xf   : > { %s424_s13 = sshll.u32 %s557_s9, 3  ;;  %s420_s17 = sshll.u32 %s557_s9, 1 }
  0x10   : > { %s194_s16 = scalar_lea.vmem %s549_s0, %s424_s13  ;;  %s203_s20 = scalar_lea.vmem %s550_s1, %s420_s17 }
  0x11   : > { %v214_v0 = vld [vmem:[%s194_s16] sm:$0xff]  ;;  %s212_s23 = scalar_lea.vmem %s551_s2, %s420_s17 }
  0x12   : > { %v217_v1 = vcombine.high %v214_v0, %v214_v0  ;;  %v220_v2 = vsel %vm219_vm0, %v214_v0, -inf  ;;  %v215_v22 = vld [vmem:[%s203_s20] sm:$0x3] }
  0x13   : > { %v221_v3 = vrot.slane %v220_v2, 4  ;;  %v269_v24 = vrot.slane %v215_v22, %v268_v21  ;;  %v273_v25 = vrot.slane %v215_v22, %v272_v23 }
  0x14   : > { %v227_v4 = vsel %vm219_vm0, %v217_v1, -inf }
  0x15   : > { %v222_v5 = vmax.f32 %v220_v2, %v221_v3  ;;  %v228_v6 = vrot.slane %v227_v4, 4  ;;  %vm274_vm1 = vcmp.eq.s32.totalorder %v265_v18, %v269_v24  ;;  %vm275_vm2 = vcmp.eq.s32.totalorder %v265_v18, %v273_v25 }
  0x16   : > { %v276_v26 = vsel %vm274_vm1, %v214_v0, 0.0  ;;  %v277_v30 = vsel %vm275_vm2, %v217_v1, 0.0  ;;  %v299_v1 = vunpack.c.0.s8 %v298_v57 }
  0x17   : > { %v223_v7 = vrot.slane %v222_v5, 2  ;;  %v229_v8 = vmax.f32 %v227_v4, %v228_v6  ;;  %v278_v32 = vsel %vm219_vm0, %v276_v26, 0.0  ;;  %v285_v36 = vsel %vm219_vm0, %v277_v30, 0.0 }
  0x18   : > { %v279_v37 = vrot.slane %v278_v32, 4  ;;  %v286_v40 = vrot.slane %v285_v36, 4 }
  0x19   : > { %v224_v9 = vmax.f32 %v222_v5, %v223_v7  ;;  %v230_v10 = vrot.slane %v229_v8, 2  ;;  %v302_v5 = vsub.s32 %v299_v1, %v265_v18 }
  0x1a   : > { %v280_v43 = vadd.f32 %v279_v37, %v278_v32  ;;  %v287_v46 = vadd.f32 %v286_v40, %v285_v36 }
  0x1b   : > { %v225_v11 = vrot.slane %v224_v9, 1  ;;  %v231_v12 = vmax.f32 %v229_v8, %v230_v10 }
  0x1c   : > { %v281_v49 = vrot.slane %v280_v43, 2  ;;  %v288_v51 = vrot.slane %v287_v46, 2 }
  0x1d   : > { %v226_v13 = vmax.f32 %v224_v9, %v225_v11  ;;  %v232_v14 = vrot.slane %v231_v12, 1 }
  0x1e   : > { %v282_v52 = vadd.f32 %v281_v49, %v280_v43  ;;  %v289_v53 = vadd.f32 %v288_v51, %v287_v46 }
  0x1f   : > { %v233_v16 = vmax.f32 %v231_v12, %v232_v14 }
  0x20   : > { %v283_v54 = vrot.slane %v282_v52, 1  ;;  %v290_v55 = vrot.slane %v289_v53, 1 }
  0x21   : > { %v236_v17 = vcombine.low %v226_v13, %v233_v16 }
  0x22   : > { %v284_v60 = vadd.f32 %v283_v54, %v282_v52 }
  0x23   : > { %v238_v19 = vsub.f32 %v214_v0, %v236_v17  ;;  %v291_v0 = vadd.f32 %v290_v55, %v289_v53 }
  0x25   : > { %v239_v20 = vmul.f32 1.442695, %v238_v19 }
  0x27   : > { %451 = vpow2.f32 %v239_v20 }
  0x31   : > { %v452_v27 = vpop.eup %451 }
  0x32   : > { %v242_v28 = vcombine.high %v452_v27, %v452_v27  ;;  %v244_v29 = vsel %vm219_vm0, %v452_v27, 0.0 }
  0x33   : > { %v245_v31 = vrot.slane %v244_v29, 4 }
  0x34   : > { %v251_v33 = vsel %vm219_vm0, %v242_v28, 0.0 }
  0x35   : > { %v246_v34 = vadd.f32 %v245_v31, %v244_v29  ;;  %v252_v35 = vrot.slane %v251_v33, 4 }
  0x37   : > { %v247_v38 = vrot.slane %v246_v34, 2  ;;  %v253_v39 = vadd.f32 %v252_v35, %v251_v33 }
  0x39   : > { %v248_v41 = vadd.f32 %v247_v38, %v246_v34  ;;  %v254_v42 = vrot.slane %v253_v39, 2 }
  0x3b   : > { %v249_v44 = vrot.slane %v248_v41, 1  ;;  %v255_v45 = vadd.f32 %v254_v42, %v253_v39 }
  0x3d   : > { %v250_v47 = vadd.f32 %v249_v44, %v248_v41  ;;  %v256_v48 = vrot.slane %v255_v45, 1 }
  0x3f   : > { %v257_v50 = vadd.f32 %v256_v48, %v255_v45  ;;  %453 = vlog2.f32 %v250_v47 }
  0x41   : > { %455 = vlog2.f32 %v257_v50 }
  0x49   : > { %v454_v58 = vpop.eup %453 }
  0x4a   : > { %v259_v59 = vmul.f32 0.6931472, %v454_v58 }
  0x4b   : > { %v456_v61 = vpop.eup %455 }
  0x4c   : > { %v261_v62 = vmul.f32 0.6931472, %v456_v61  ;;  %v262_v63 = vadd.f32 %v259_v59, %v226_v13 }
  0x4e   : > { %v263_v2 = vadd.f32 %v261_v62, %v233_v16  ;;  %v292_v3 = vsub.f32 %v262_v63, %v284_v60 }
  0x50   : > { %v293_v4 = vsub.f32 %v263_v2, %v291_v0 }
  0x52   : > { %v296_v6 = vcombine.low %v292_v3, %v293_v4 }
  0x54   : > { %v303_v7 = vrot.slane %v296_v6, %v302_v5 }
  0x56   : > { %v310_v8 = vrot.slane %v303_v7, %v302_v5 }
  0x58   : > { %316 = vst.msk [vmem:[%s212_s23] sm:$0x3] %vm314_vm3, %v310_v8 }
  0x59 PF: > { %s12_s11 = sadd.s32 1, %s479_s11   ;;  %s552_s9 = smov %s475_s10 }
  0x5a   : > { %p9_p5 = scmp.ge.s32.totalorder %s12_s11, 4   ;;  %s553_s10 = smov %s555_s12 }
  0x5c   :  { %11 = sbr.rel (!%p9_p5) target bundleno = 2 (0x2), region = 61 }

// kernel: _lambda_.12
= control target key start
LH: loop header
LB: loop body
LE: loop exit
PB: predicated region body
PF: predicated region fallthrough
CT: control target
= control target key end

     0   :  { %s574_s11 = smov 0   ;;  %s576_s12 = smov 0   ;;  %s695_s0 = inlined_call_operand.<no memory space> [shape: s32[1], index: 0, kind: input, shape index: {}]   ;;  %s696_s1 = inlined_call_operand.vmem [shape: f32[4,128], index: 1, kind: input, shape index: {}]   ;;  %s697_s2 = inlined_call_operand.vmem [shape: f32[32,128], index: 2, kind: output, shape index: {}]  }
   0x1   :  { %7 = sst [smem:[#allocation2]] %s695_s0  ;;  %s578_s13 = smov 0  }
   0x2 LB: > { %s25_s0 = sadd.s32 1, %s549_s12  ;;  %p480_p0 = scmp.ge.s32.totalorder %s553_s13, 1  ;;  %s553_s13 = sphi %s578_s13, %s13_s13   ;;  %s549_s12 = sphi %s576_s12, %s699_s12   ;;  %s545_s11 = sphi %s574_s11, %s698_s11  }
   0x3   : > { %p27_p1 = scmp.ge.s32.totalorder %s25_s0, 2  ;;  %p136_p2 = scmp.lt.s32.totalorder %s553_s13, 3 }
   0x5   : > { %s701_s0 = smov (%p27_p1, %s25_s0), 0  ;;  %p137_p3 = pnand %p480_p0, %p136_p2 }
   0x6   : > { %s485_s14 = sshll.u32 (!%p137_p3), %s545_s11, 1  ;;  %p161_p4 = scmp.lt.s32.totalorder (!%p137_p3), %s545_s11, 0  ;;  %v186_v0 = vlaneseq (!%p137_p3)  ;;  %v555_v4 = vmov (!%p137_p3), 0.0   ;;  %vm206_vm5 = vcmask (!%p137_p3), 1043456  }
   0x7   : > { %140 = sbr.rel (%p137_p3) target bundleno = 71 (0x47), region = 28  ;;  %p171_p5 = scmp.lt.s32.totalorder (!%p137_p3), %s485_s14, 3 }
   0x8   : > { %s487_s15 = sshll.u32 (!%p137_p3), %s545_s11, 2  ;;  %v187_v1 = vshrl.u32 (!%p137_p3), %v186_v0, 7  ;;  %s193_s17 = sld [smem:[#allocation2]] (!%p137_p3) }
   0x9   : > { %v188_v2 = vstv (!%p137_p3), %s487_s15 }
   0xa   : > { %v189_v3 = vadd.s32 (!%p137_p3), %v188_v2, %v187_v1 }
   0xc   : > { %vm190_vm0 = vcmp.lt.s32.totalorder (!%p137_p3), %v189_v3, 4 }
   0xe   : > { %s703_s11 = smov (!%p161_p4, %s545_s11), 0  ;;  %s705_s14 = smov (!%p171_p5, %s485_s14), 3 }
   0xf   : > { %s707_s11 = smov (!%p161_p4, %s703_s11), 0  ;;  %s486_s16 = sshll.u32 %s705_s14, 3 }
  0x10   : > { %s595_s20 = scalar_lea.vmem %s697_s2, %s486_s16  ;;  %s484_s21 = sshll.u32 %s707_s11, 2 }
  0x11   : > { %180 = vst [vmem:[%s595_s20] sm:$0xff] %v555_v4  ;;  %s166_s24 = scalar_lea.vmem %s696_s1, %s484_s21  ;;  %181 = vst [vmem:[%s595_s20 + $0x8] sm:$0xff] %v555_v4  ;;  %s194_s25 = sshra.s32 %s193_s17, 28 }
  0x12   : > { %v182_v5 = vld [vmem:[%s166_s24] sm:$0xf]  ;;  %v196_v9 = vstv %s194_s25 }
  0x13   : > { %vm191_vm1 = vcmp.ge.s32.totalorder %v182_v5, 0  ;;  %v195_v6 = vshra.s32 %v182_v5, 28  ;;  %v199_v7 = vshra.s32 %v182_v5, 24 }
  0x14   : > { %vm192_vm2 = vmand %vm190_vm0, %vm191_vm1 }
  0x15   : > { %v200_v8 = vand.u32 15, %v199_v7  ;;  %vm197_vm3 = vcmp.eq.s32.totalorder %v195_v6, %v196_v9 }
  0x16   : > { %vm198_vm4 = vmand %vm192_vm2, %vm197_vm3 }
  0x17   : > { %v604_v10 = vsel %vm198_vm4, %v200_v8, 4294967295 }
  0x18   : > { %vm203_vm6 = vcmp.eq.s32.totalorder %v604_v10, 0  ;;  %vm217_vm7 = vcmp.eq.s32.totalorder %v604_v10, 1  ;;  %vm230_vm8 = vcmp.eq.s32.totalorder %v604_v10, 2  ;;  %vm243_vm9 = vcmp.eq.s32.totalorder %v604_v10, 3  ;;  %v202_v47 = vld [vmem:[%s595_s20] sm:$0x1] }
  0x19   : > { %v488_v11 = vsel %vm203_vm6, 1.0, %v555_v4  ;;  %v489_v12 = vsel %vm217_vm7, 1.0, %v555_v4  ;;  %v490_v13 = vsel %vm230_vm8, 1.0, %v555_v4  ;;  %v491_v14 = vsel %vm243_vm9, 1.0, %v555_v4  ;;  %v216_v52 = vld [vmem:[%s595_s20 + $0x1] sm:$0x1] }
  0x1a   : > { %v207_v15 = vsel %vm206_vm5, %v488_v11, 0.0  ;;  %v220_v16 = vsel %vm206_vm5, %v489_v12, 0.0  ;;  %v233_v17 = vsel %vm206_vm5, %v490_v13, 0.0  ;;  %v246_v18 = vsel %vm206_vm5, %v491_v14, 0.0  ;;  %v229_v53 = vld [vmem:[%s595_s20 + $0x2] sm:$0x1] }
  0x1b   : > { %v208_v19 = vrot.slane %v207_v15, 4  ;;  %v221_v20 = vrot.slane %v220_v16, 4  ;;  %v234_v21 = vrot.slane %v233_v17, 4  ;;  %v247_v22 = vrot.slane %v246_v18, 4  ;;  %v242_v54 = vld [vmem:[%s595_s20 + $0x3] sm:$0x1] }
  0x1c   : > { %vm256_vm10 = vcmp.eq.s32.totalorder %v604_v10, 4  ;;  %vm269_vm11 = vcmp.eq.s32.totalorder %v604_v10, 5  ;;  %vm282_vm12 = vcmp.eq.s32.totalorder %v604_v10, 6  ;;  %vm295_vm13 = vcmp.eq.s32.totalorder %v604_v10, 7  ;;  %v255_v13 = vld [vmem:[%s595_s20 + $0x4] sm:$0x1] }
  0x1d   : > { %v209_v23 = vadd.f32 %v208_v19, %v207_v15  ;;  %v222_v24 = vadd.f32 %v221_v20, %v220_v16  ;;  %v235_v25 = vadd.f32 %v234_v21, %v233_v17  ;;  %v248_v26 = vadd.f32 %v247_v22, %v246_v18  ;;  %v268_v14 = vld [vmem:[%s595_s20 + $0x5] sm:$0x1]  ;;  %v281_v17 = vld [vmem:[%s595_s20 + $0x6] sm:$0x1]  ;;  %v294_v20 = vld [vmem:[%s595_s20 + $0x7] sm:$0x1] }
  0x1e   : > { %v492_v27 = vsel %vm256_vm10, 1.0, %v555_v4  ;;  %v493_v28 = vsel %vm269_vm11, 1.0, %v555_v4  ;;  %v494_v29 = vsel %vm282_vm12, 1.0, %v555_v4  ;;  %v495_v30 = vsel %vm295_vm13, 1.0, %v555_v4 }
  0x1f   : > { %v210_v31 = vrot.slane %v209_v23, 2  ;;  %v223_v32 = vrot.slane %v222_v24, 2  ;;  %v236_v33 = vrot.slane %v235_v25, 2  ;;  %v249_v34 = vrot.slane %v248_v26, 2 }
  0x20   : > { %v259_v35 = vsel %vm206_vm5, %v492_v27, 0.0  ;;  %v272_v36 = vsel %vm206_vm5, %v493_v28, 0.0  ;;  %v285_v37 = vsel %vm206_vm5, %v494_v29, 0.0  ;;  %v298_v38 = vsel %vm206_vm5, %v495_v30, 0.0 }
  0x21   : > { %v211_v39 = vadd.f32 %v210_v31, %v209_v23  ;;  %v224_v40 = vadd.f32 %v223_v32, %v222_v24  ;;  %v237_v41 = vadd.f32 %v236_v33, %v235_v25  ;;  %v250_v42 = vadd.f32 %v249_v34, %v248_v26 }
  0x22   : > { %v260_v43 = vrot.slane %v259_v35, 4  ;;  %v273_v44 = vrot.slane %v272_v36, 4  ;;  %v286_v45 = vrot.slane %v285_v37, 4  ;;  %v299_v46 = vrot.slane %v298_v38, 4 }
  0x23   : > { %v212_v48 = vrot.slane %v211_v39, 1  ;;  %v225_v49 = vrot.slane %v224_v40, 1  ;;  %v238_v50 = vrot.slane %v237_v41, 1  ;;  %v251_v51 = vrot.slane %v250_v42, 1 }
  0x24   : > { %v261_v55 = vadd.f32 %v260_v43, %v259_v35  ;;  %v274_v56 = vadd.f32 %v273_v44, %v272_v36  ;;  %v287_v57 = vadd.f32 %v286_v45, %v285_v37  ;;  %v300_v58 = vadd.f32 %v299_v46, %v298_v38 }
  0x25   : > { %v213_v59 = vadd.f32 %v212_v48, %v211_v39  ;;  %v226_v60 = vadd.f32 %v225_v49, %v224_v40  ;;  %v239_v61 = vadd.f32 %v238_v50, %v237_v41  ;;  %v252_v62 = vadd.f32 %v251_v51, %v250_v42 }
  0x26   : > { %v262_v63 = vrot.slane %v261_v55, 2  ;;  %v275_v0 = vrot.slane %v274_v56, 2  ;;  %v288_v1 = vrot.slane %v287_v57, 2  ;;  %v301_v2 = vrot.slane %v300_v58, 2 }
  0x27   : > { %v214_v3 = vadd.f32 %v213_v59, %v202_v47  ;;  %v227_v5 = vadd.f32 %v226_v60, %v216_v52  ;;  %v240_v6 = vadd.f32 %v239_v61, %v229_v53  ;;  %v253_v7 = vadd.f32 %v252_v62, %v242_v54  ;;  %v320_v62 = vld [vmem:[%s595_s20 + $0x9] sm:$0x1] }
  0x28   : > { %v263_v8 = vadd.f32 %v262_v63, %v261_v55  ;;  %v276_v9 = vadd.f32 %v275_v0, %v274_v56  ;;  %v289_v11 = vadd.f32 %v288_v1, %v287_v57  ;;  %v302_v12 = vadd.f32 %v301_v2, %v300_v58  ;;  %v346_v2 = vld [vmem:[%s595_s20 + $0xb] sm:$0x1] }
  0x29   : > { %215 = vst [vmem:[%s595_s20] sm:$0x1] %v214_v3  ;;  %228 = vst [vmem:[%s595_s20 + $0x1] sm:$0x1] %v227_v5  ;;  %vm308_vm14 = vcmp.eq.s32.totalorder %v604_v10, 8  ;;  %vm321_vm15 = vcmp.eq.s32.totalorder %v604_v10, 9  ;;  %vm334_vm0 = vcmp.eq.s32.totalorder %v604_v10, 10 }
  0x2a   : > { %241 = vst [vmem:[%s595_s20 + $0x2] sm:$0x1] %v240_v6  ;;  %254 = vst [vmem:[%s595_s20 + $0x3] sm:$0x1] %v253_v7  ;;  %vm347_vm1 = vcmp.eq.s32.totalorder %v604_v10, 11  ;;  %v264_v15 = vrot.slane %v263_v8, 1 }
  0x2b   : > { %v277_v16 = vrot.slane %v276_v9, 1  ;;  %v290_v18 = vrot.slane %v289_v11, 1  ;;  %v303_v19 = vrot.slane %v302_v12, 1  ;;  %v496_v21 = vsel %vm308_vm14, 1.0, %v555_v4 }
  0x2c   : > { %v497_v22 = vsel %vm321_vm15, 1.0, %v555_v4  ;;  %v498_v23 = vsel %vm334_vm0, 1.0, %v555_v4  ;;  %v499_v24 = vsel %vm347_vm1, 1.0, %v555_v4  ;;  %v265_v25 = vadd.f32 %v264_v15, %v263_v8 }
  0x2d   : > { %v278_v26 = vadd.f32 %v277_v16, %v276_v9  ;;  %v291_v27 = vadd.f32 %v290_v18, %v289_v11  ;;  %v304_v28 = vadd.f32 %v303_v19, %v302_v12  ;;  %v311_v29 = vsel %vm206_vm5, %v496_v21, 0.0 }
  0x2e   : > { %v324_v30 = vsel %vm206_vm5, %v497_v22, 0.0  ;;  %v337_v31 = vsel %vm206_vm5, %v498_v23, 0.0  ;;  %v350_v32 = vsel %vm206_vm5, %v499_v24, 0.0  ;;  %v266_v33 = vadd.f32 %v265_v25, %v255_v13 }
  0x2f   : > { %v279_v34 = vadd.f32 %v278_v26, %v268_v14  ;;  %v292_v35 = vadd.f32 %v291_v27, %v281_v17  ;;  %v305_v36 = vadd.f32 %v304_v28, %v294_v20  ;;  %v312_v37 = vrot.slane %v311_v29, 4 }
  0x30   : > { %v325_v38 = vrot.slane %v324_v30, 4  ;;  %v338_v39 = vrot.slane %v337_v31, 4  ;;  %v351_v40 = vrot.slane %v350_v32, 4  ;;  %267 = vst [vmem:[%s595_s20 + $0x4] sm:$0x1] %v266_v33  ;;  %vm360_vm2 = vcmp.eq.s32.totalorder %v604_v10, 12 }
  0x31   : > { %280 = vst [vmem:[%s595_s20 + $0x5] sm:$0x1] %v279_v34  ;;  %293 = vst [vmem:[%s595_s20 + $0x6] sm:$0x1] %v292_v35  ;;  %v313_v41 = vadd.f32 %v312_v37, %v311_v29  ;;  %vm373_vm3 = vcmp.eq.s32.totalorder %v604_v10, 13  ;;  %vm386_vm4 = vcmp.eq.s32.totalorder %v604_v10, 14 }
  0x32   : > { %306 = vst [vmem:[%s595_s20 + $0x7] sm:$0x1] %v305_v36  ;;  %v326_v42 = vadd.f32 %v325_v38, %v324_v30  ;;  %v339_v43 = vadd.f32 %v338_v39, %v337_v31  ;;  %v352_v44 = vadd.f32 %v351_v40, %v350_v32  ;;  %vm399_vm6 = vcmp.eq.s32.totalorder %v604_v10, 15  ;;  %v307_v10 = vld [vmem:[%s595_s20 + $0x8] sm:$0x1] }
  0x33   : > { %v314_v45 = vrot.slane %v313_v41, 2  ;;  %v500_v49 = vsel %vm360_vm2, 1.0, %v555_v4  ;;  %v501_v50 = vsel %vm373_vm3, 1.0, %v555_v4  ;;  %v502_v51 = vsel %vm386_vm4, 1.0, %v555_v4  ;;  %v359_v31 = vld [vmem:[%s595_s20 + $0xc] sm:$0x1] }
  0x34   : > { %v327_v46 = vrot.slane %v326_v42, 2  ;;  %v340_v47 = vrot.slane %v339_v43, 2  ;;  %v353_v48 = vrot.slane %v352_v44, 2  ;;  %v503_v52 = vsel %vm399_vm6, 1.0, %v555_v4  ;;  %v333_v4 = vld [vmem:[%s595_s20 + $0xa] sm:$0x1] }
  0x35   : > { %v315_v53 = vadd.f32 %v314_v45, %v313_v41  ;;  %v363_v57 = vsel %vm206_vm5, %v500_v49, 0.0  ;;  %v376_v58 = vsel %vm206_vm5, %v501_v50, 0.0  ;;  %v389_v59 = vsel %vm206_vm5, %v502_v51, 0.0  ;;  %v372_v32 = vld [vmem:[%s595_s20 + $0xd] sm:$0x1] }
  0x36   : > { %v328_v54 = vadd.f32 %v327_v46, %v326_v42  ;;  %v341_v55 = vadd.f32 %v340_v47, %v339_v43  ;;  %v354_v56 = vadd.f32 %v353_v48, %v352_v44  ;;  %v402_v60 = vsel %vm206_vm5, %v503_v52, 0.0  ;;  %v385_v37 = vld [vmem:[%s595_s20 + $0xe] sm:$0x1]  ;;  %v398_v38 = vld [vmem:[%s595_s20 + $0xf] sm:$0x1] }
  0x37   : > { %v316_v61 = vrot.slane %v315_v53, 1  ;;  %v364_v3 = vrot.slane %v363_v57, 4  ;;  %v377_v5 = vrot.slane %v376_v58, 4  ;;  %v390_v13 = vrot.slane %v389_v59, 4 }
  0x38   : > { %v329_v63 = vrot.slane %v328_v54, 1  ;;  %v342_v0 = vrot.slane %v341_v55, 1  ;;  %v355_v1 = vrot.slane %v354_v56, 1  ;;  %v403_v14 = vrot.slane %v402_v60, 4 }
  0x39   : > { %v317_v6 = vadd.f32 %v316_v61, %v315_v53  ;;  %v365_v11 = vadd.f32 %v364_v3, %v363_v57  ;;  %v378_v12 = vadd.f32 %v377_v5, %v376_v58  ;;  %v391_v21 = vadd.f32 %v390_v13, %v389_v59 }
  0x3a   : > { %v330_v7 = vadd.f32 %v329_v63, %v328_v54  ;;  %v343_v8 = vadd.f32 %v342_v0, %v341_v55  ;;  %v356_v9 = vadd.f32 %v355_v1, %v354_v56  ;;  %v404_v22 = vadd.f32 %v403_v14, %v402_v60 }
  0x3b   : > { %v318_v15 = vadd.f32 %v317_v6, %v307_v10  ;;  %v366_v19 = vrot.slane %v365_v11, 2  ;;  %v379_v20 = vrot.slane %v378_v12, 2  ;;  %v392_v25 = vrot.slane %v391_v21, 2 }
  0x3c   : > { %v331_v16 = vadd.f32 %v330_v7, %v320_v62  ;;  %v344_v17 = vadd.f32 %v343_v8, %v333_v4  ;;  %v357_v18 = vadd.f32 %v356_v9, %v346_v2  ;;  %v405_v26 = vrot.slane %v404_v22, 2 }
  0x3d   : > { %319 = vst [vmem:[%s595_s20 + $0x8] sm:$0x1] %v318_v15  ;;  %v367_v23 = vadd.f32 %v366_v19, %v365_v11  ;;  %v380_v24 = vadd.f32 %v379_v20, %v378_v12  ;;  %v393_v29 = vadd.f32 %v392_v25, %v391_v21 }
  0x3e   : > { %332 = vst [vmem:[%s595_s20 + $0x9] sm:$0x1] %v331_v16  ;;  %345 = vst [vmem:[%s595_s20 + $0xa] sm:$0x1] %v344_v17  ;;  %v406_v30 = vadd.f32 %v405_v26, %v404_v22 }
  0x3f   : > { %358 = vst [vmem:[%s595_s20 + $0xb] sm:$0x1] %v357_v18  ;;  %v368_v27 = vrot.slane %v367_v23, 1  ;;  %v381_v28 = vrot.slane %v380_v24, 1  ;;  %v394_v35 = vrot.slane %v393_v29, 1 }
  0x40   : > { %v407_v36 = vrot.slane %v406_v30, 1 }
  0x41   : > { %v369_v33 = vadd.f32 %v368_v27, %v367_v23  ;;  %v382_v34 = vadd.f32 %v381_v28, %v380_v24  ;;  %v395_v41 = vadd.f32 %v394_v35, %v393_v29 }
  0x42   : > { %v408_v42 = vadd.f32 %v407_v36, %v406_v30 }
  0x43   : > { %v370_v39 = vadd.f32 %v369_v33, %v359_v31  ;;  %v383_v40 = vadd.f32 %v382_v34, %v372_v32  ;;  %v396_v43 = vadd.f32 %v395_v41, %v385_v37 }
  0x44   : > { %v409_v44 = vadd.f32 %v408_v42, %v398_v38 }
  0x45   : > { %371 = vst [vmem:[%s595_s20 + $0xc] sm:$0x1] %v370_v39  ;;  %384 = vst [vmem:[%s595_s20 + $0xd] sm:$0x1] %v383_v40 }
  0x46   : > { %397 = vst [vmem:[%s595_s20 + $0xe] sm:$0x1] %v396_v43  ;;  %410 = vst [vmem:[%s595_s20 + $0xf] sm:$0x1] %v409_v44 }
  0x47 PF: > { %s13_s13 = sadd.s32 1, %s553_s13   ;;  %s698_s11 = smov %s549_s12 }
  0x48   : > { %p10_p6 = scmp.ge.s32.totalorder %s13_s13, 4   ;;  %s699_s12 = smov %s701_s0 }
  0x4a   :  { %12 = sbr.rel (!%p10_p6) target bundleno = 2 (0x2), region = 62 }

// kernel: _lambda_.13
= control target key start
LH: loop header
LB: loop body
LE: loop exit
PB: predicated region body
PF: predicated region fallthrough
CT: control target
= control target key end

     0   :  { %s574_s11 = smov 0   ;;  %s576_s12 = smov 0   ;;  %s695_s0 = inlined_call_operand.<no memory space> [shape: s32[1], index: 0, kind: input, shape index: {}]   ;;  %s696_s1 = inlined_call_operand.vmem [shape: f32[4,128], index: 1, kind: input, shape index: {}]   ;;  %s697_s2 = inlined_call_operand.vmem [shape: f32[32,128], index: 2, kind: output, shape index: {}]  }
   0x1   :  { %7 = sst [smem:[#allocation2]] %s695_s0  ;;  %s578_s13 = smov 0  }
   0x2 LB: > { %s25_s0 = sadd.s32 1, %s549_s12  ;;  %p480_p0 = scmp.ge.s32.totalorder %s553_s13, 1  ;;  %s553_s13 = sphi %s578_s13, %s13_s13   ;;  %s549_s12 = sphi %s576_s12, %s699_s12   ;;  %s545_s11 = sphi %s574_s11, %s698_s11  }
   0x3   : > { %p27_p1 = scmp.ge.s32.totalorder %s25_s0, 2  ;;  %p136_p2 = scmp.lt.s32.totalorder %s553_s13, 3 }
   0x5   : > { %s701_s0 = smov (%p27_p1, %s25_s0), 0  ;;  %p137_p3 = pnand %p480_p0, %p136_p2 }
   0x6   : > { %s485_s14 = sshll.u32 (!%p137_p3), %s545_s11, 1  ;;  %p161_p4 = scmp.lt.s32.totalorder (!%p137_p3), %s545_s11, 0  ;;  %v186_v0 = vlaneseq (!%p137_p3)  ;;  %v555_v4 = vmov (!%p137_p3), 0.0   ;;  %vm206_vm5 = vcmask (!%p137_p3), 1043456  }
   0x7   : > { %140 = sbr.rel (%p137_p3) target bundleno = 71 (0x47), region = 28  ;;  %p171_p5 = scmp.lt.s32.totalorder (!%p137_p3), %s485_s14, 3 }
   0x8   : > { %s487_s15 = sshll.u32 (!%p137_p3), %s545_s11, 2  ;;  %v187_v1 = vshrl.u32 (!%p137_p3), %v186_v0, 7  ;;  %s193_s17 = sld [smem:[#allocation2]] (!%p137_p3) }
   0x9   : > { %v188_v2 = vstv (!%p137_p3), %s487_s15 }
   0xa   : > { %v189_v3 = vadd.s32 (!%p137_p3), %v188_v2, %v187_v1 }
   0xc   : > { %vm190_vm0 = vcmp.lt.s32.totalorder (!%p137_p3), %v189_v3, 4 }
   0xe   : > { %s703_s11 = smov (!%p161_p4, %s545_s11), 0  ;;  %s705_s14 = smov (!%p171_p5, %s485_s14), 3 }
   0xf   : > { %s707_s11 = smov (!%p161_p4, %s703_s11), 0  ;;  %s486_s16 = sshll.u32 %s705_s14, 3 }
  0x10   : > { %s595_s20 = scalar_lea.vmem %s697_s2, %s486_s16  ;;  %s484_s21 = sshll.u32 %s707_s11, 2 }
  0x11   : > { %180 = vst [vmem:[%s595_s20] sm:$0xff] %v555_v4  ;;  %s166_s24 = scalar_lea.vmem %s696_s1, %s484_s21  ;;  %181 = vst [vmem:[%s595_s20 + $0x8] sm:$0xff] %v555_v4  ;;  %s194_s25 = sshra.s32 %s193_s17, 24 }
  0x12   : > { %v182_v5 = vld [vmem:[%s166_s24] sm:$0xf]  ;;  %v196_v9 = vstv %s194_s25 }
  0x13   : > { %vm191_vm1 = vcmp.ge.s32.totalorder %v182_v5, 0  ;;  %v195_v6 = vshra.s32 %v182_v5, 24  ;;  %v199_v7 = vshra.s32 %v182_v5, 20 }
  0x14   : > { %vm192_vm2 = vmand %vm190_vm0, %vm191_vm1 }
  0x15   : > { %v200_v8 = vand.u32 15, %v199_v7  ;;  %vm197_vm3 = vcmp.eq.s32.totalorder %v195_v6, %v196_v9 }
  0x16   : > { %vm198_vm4 = vmand %vm192_vm2, %vm197_vm3 }
  0x17   : > { %v604_v10 = vsel %vm198_vm4, %v200_v8, 4294967295 }
  0x18   : > { %vm203_vm6 = vcmp.eq.s32.totalorder %v604_v10, 0  ;;  %vm217_vm7 = vcmp.eq.s32.totalorder %v604_v10, 1  ;;  %vm230_vm8 = vcmp.eq.s32.totalorder %v604_v10, 2  ;;  %vm243_vm9 = vcmp.eq.s32.totalorder %v604_v10, 3  ;;  %v202_v47 = vld [vmem:[%s595_s20] sm:$0x1] }
  0x19   : > { %v488_v11 = vsel %vm203_vm6, 1.0, %v555_v4  ;;  %v489_v12 = vsel %vm217_vm7, 1.0, %v555_v4  ;;  %v490_v13 = vsel %vm230_vm8, 1.0, %v555_v4  ;;  %v491_v14 = vsel %vm243_vm9, 1.0, %v555_v4  ;;  %v216_v52 = vld [vmem:[%s595_s20 + $0x1] sm:$0x1] }
  0x1a   : > { %v207_v15 = vsel %vm206_vm5, %v488_v11, 0.0  ;;  %v220_v16 = vsel %vm206_vm5, %v489_v12, 0.0  ;;  %v233_v17 = vsel %vm206_vm5, %v490_v13, 0.0  ;;  %v246_v18 = vsel %vm206_vm5, %v491_v14, 0.0  ;;  %v229_v53 = vld [vmem:[%s595_s20 + $0x2] sm:$0x1] }
  0x1b   : > { %v208_v19 = vrot.slane %v207_v15, 4  ;;  %v221_v20 = vrot.slane %v220_v16, 4  ;;  %v234_v21 = vrot.slane %v233_v17, 4  ;;  %v247_v22 = vrot.slane %v246_v18, 4  ;;  %v242_v54 = vld [vmem:[%s595_s20 + $0x3] sm:$0x1] }
  0x1c   : > { %vm256_vm10 = vcmp.eq.s32.totalorder %v604_v10, 4  ;;  %vm269_vm11 = vcmp.eq.s32.totalorder %v604_v10, 5  ;;  %vm282_vm12 = vcmp.eq.s32.totalorder %v604_v10, 6  ;;  %vm295_vm13 = vcmp.eq.s32.totalorder %v604_v10, 7  ;;  %v255_v13 = vld [vmem:[%s595_s20 + $0x4] sm:$0x1] }
  0x1d   : > { %v209_v23 = vadd.f32 %v208_v19, %v207_v15  ;;  %v222_v24 = vadd.f32 %v221_v20, %v220_v16  ;;  %v235_v25 = vadd.f32 %v234_v21, %v233_v17  ;;  %v248_v26 = vadd.f32 %v247_v22, %v246_v18  ;;  %v268_v14 = vld [vmem:[%s595_s20 + $0x5] sm:$0x1]  ;;  %v281_v17 = vld [vmem:[%s595_s20 + $0x6] sm:$0x1]  ;;  %v294_v20 = vld [vmem:[%s595_s20 + $0x7] sm:$0x1] }
  0x1e   : > { %v492_v27 = vsel %vm256_vm10, 1.0, %v555_v4  ;;  %v493_v28 = vsel %vm269_vm11, 1.0, %v555_v4  ;;  %v494_v29 = vsel %vm282_vm12, 1.0, %v555_v4  ;;  %v495_v30 = vsel %vm295_vm13, 1.0, %v555_v4 }
  0x1f   : > { %v210_v31 = vrot.slane %v209_v23, 2  ;;  %v223_v32 = vrot.slane %v222_v24, 2  ;;  %v236_v33 = vrot.slane %v235_v25, 2  ;;  %v249_v34 = vrot.slane %v248_v26, 2 }
  0x20   : > { %v259_v35 = vsel %vm206_vm5, %v492_v27, 0.0  ;;  %v272_v36 = vsel %vm206_vm5, %v493_v28, 0.0  ;;  %v285_v37 = vsel %vm206_vm5, %v494_v29, 0.0  ;;  %v298_v38 = vsel %vm206_vm5, %v495_v30, 0.0 }
  0x21   : > { %v211_v39 = vadd.f32 %v210_v31, %v209_v23  ;;  %v224_v40 = vadd.f32 %v223_v32, %v222_v24  ;;  %v237_v41 = vadd.f32 %v236_v33, %v235_v25  ;;  %v250_v42 = vadd.f32 %v249_v34, %v248_v26 }
  0x22   : > { %v260_v43 = vrot.slane %v259_v35, 4  ;;  %v273_v44 = vrot.slane %v272_v36, 4  ;;  %v286_v45 = vrot.slane %v285_v37, 4  ;;  %v299_v46 = vrot.slane %v298_v38, 4 }
  0x23   : > { %v212_v48 = vrot.slane %v211_v39, 1  ;;  %v225_v49 = vrot.slane %v224_v40, 1  ;;  %v238_v50 = vrot.slane %v237_v41, 1  ;;  %v251_v51 = vrot.slane %v250_v42, 1 }
  0x24   : > { %v261_v55 = vadd.f32 %v260_v43, %v259_v35  ;;  %v274_v56 = vadd.f32 %v273_v44, %v272_v36  ;;  %v287_v57 = vadd.f32 %v286_v45, %v285_v37  ;;  %v300_v58 = vadd.f32 %v299_v46, %v298_v38 }
  0x25   : > { %v213_v59 = vadd.f32 %v212_v48, %v211_v39  ;;  %v226_v60 = vadd.f32 %v225_v49, %v224_v40  ;;  %v239_v61 = vadd.f32 %v238_v50, %v237_v41  ;;  %v252_v62 = vadd.f32 %v251_v51, %v250_v42 }
  0x26   : > { %v262_v63 = vrot.slane %v261_v55, 2  ;;  %v275_v0 = vrot.slane %v274_v56, 2  ;;  %v288_v1 = vrot.slane %v287_v57, 2  ;;  %v301_v2 = vrot.slane %v300_v58, 2 }
  0x27   : > { %v214_v3 = vadd.f32 %v213_v59, %v202_v47  ;;  %v227_v5 = vadd.f32 %v226_v60, %v216_v52  ;;  %v240_v6 = vadd.f32 %v239_v61, %v229_v53  ;;  %v253_v7 = vadd.f32 %v252_v62, %v242_v54  ;;  %v320_v62 = vld [vmem:[%s595_s20 + $0x9] sm:$0x1] }
  0x28   : > { %v263_v8 = vadd.f32 %v262_v63, %v261_v55  ;;  %v276_v9 = vadd.f32 %v275_v0, %v274_v56  ;;  %v289_v11 = vadd.f32 %v288_v1, %v287_v57  ;;  %v302_v12 = vadd.f32 %v301_v2, %v300_v58  ;;  %v346_v2 = vld [vmem:[%s595_s20 + $0xb] sm:$0x1] }
  0x29   : > { %215 = vst [vmem:[%s595_s20] sm:$0x1] %v214_v3  ;;  %228 = vst [vmem:[%s595_s20 + $0x1] sm:$0x1] %v227_v5  ;;  %vm308_vm14 = vcmp.eq.s32.totalorder %v604_v10, 8  ;;  %vm321_vm15 = vcmp.eq.s32.totalorder %v604_v10, 9  ;;  %vm334_vm0 = vcmp.eq.s32.totalorder %v604_v10, 10 }
  0x2a   : > { %241 = vst [vmem:[%s595_s20 + $0x2] sm:$0x1] %v240_v6  ;;  %254 = vst [vmem:[%s595_s20 + $0x3] sm:$0x1] %v253_v7  ;;  %vm347_vm1 = vcmp.eq.s32.totalorder %v604_v10, 11  ;;  %v264_v15 = vrot.slane %v263_v8, 1 }
  0x2b   : > { %v277_v16 = vrot.slane %v276_v9, 1  ;;  %v290_v18 = vrot.slane %v289_v11, 1  ;;  %v303_v19 = vrot.slane %v302_v12, 1  ;;  %v496_v21 = vsel %vm308_vm14, 1.0, %v555_v4 }
  0x2c   : > { %v497_v22 = vsel %vm321_vm15, 1.0, %v555_v4  ;;  %v498_v23 = vsel %vm334_vm0, 1.0, %v555_v4  ;;  %v499_v24 = vsel %vm347_vm1, 1.0, %v555_v4  ;;  %v265_v25 = vadd.f32 %v264_v15, %v263_v8 }
  0x2d   : > { %v278_v26 = vadd.f32 %v277_v16, %v276_v9  ;;  %v291_v27 = vadd.f32 %v290_v18, %v289_v11  ;;  %v304_v28 = vadd.f32 %v303_v19, %v302_v12  ;;  %v311_v29 = vsel %vm206_vm5, %v496_v21, 0.0 }
  0x2e   : > { %v324_v30 = vsel %vm206_vm5, %v497_v22, 0.0  ;;  %v337_v31 = vsel %vm206_vm5, %v498_v23, 0.0  ;;  %v350_v32 = vsel %vm206_vm5, %v499_v24, 0.0  ;;  %v266_v33 = vadd.f32 %v265_v25, %v255_v13 }
  0x2f   : > { %v279_v34 = vadd.f32 %v278_v26, %v268_v14  ;;  %v292_v35 = vadd.f32 %v291_v27, %v281_v17  ;;  %v305_v36 = vadd.f32 %v304_v28, %v294_v20  ;;  %v312_v37 = vrot.slane %v311_v29, 4 }
  0x30   : > { %v325_v38 = vrot.slane %v324_v30, 4  ;;  %v338_v39 = vrot.slane %v337_v31, 4  ;;  %v351_v40 = vrot.slane %v350_v32, 4  ;;  %267 = vst [vmem:[%s595_s20 + $0x4] sm:$0x1] %v266_v33  ;;  %vm360_vm2 = vcmp.eq.s32.totalorder %v604_v10, 12 }
  0x31   : > { %280 = vst [vmem:[%s595_s20 + $0x5] sm:$0x1] %v279_v34  ;;  %293 = vst [vmem:[%s595_s20 + $0x6] sm:$0x1] %v292_v35  ;;  %v313_v41 = vadd.f32 %v312_v37, %v311_v29  ;;  %vm373_vm3 = vcmp.eq.s32.totalorder %v604_v10, 13  ;;  %vm386_vm4 = vcmp.eq.s32.totalorder %v604_v10, 14 }
  0x32   : > { %306 = vst [vmem:[%s595_s20 + $0x7] sm:$0x1] %v305_v36  ;;  %v326_v42 = vadd.f32 %v325_v38, %v324_v30  ;;  %v339_v43 = vadd.f32 %v338_v39, %v337_v31  ;;  %v352_v44 = vadd.f32 %v351_v40, %v350_v32  ;;  %vm399_vm6 = vcmp.eq.s32.totalorder %v604_v10, 15  ;;  %v307_v10 = vld [vmem:[%s595_s20 + $0x8] sm:$0x1] }
  0x33   : > { %v314_v45 = vrot.slane %v313_v41, 2  ;;  %v500_v49 = vsel %vm360_vm2, 1.0, %v555_v4  ;;  %v501_v50 = vsel %vm373_vm3, 1.0, %v555_v4  ;;  %v502_v51 = vsel %vm386_vm4, 1.0, %v555_v4  ;;  %v359_v31 = vld [vmem:[%s595_s20 + $0xc] sm:$0x1] }
  0x34   : > { %v327_v46 = vrot.slane %v326_v42, 2  ;;  %v340_v47 = vrot.slane %v339_v43, 2  ;;  %v353_v48 = vrot.slane %v352_v44, 2  ;;  %v503_v52 = vsel %vm399_vm6, 1.0, %v555_v4  ;;  %v333_v4 = vld [vmem:[%s595_s20 + $0xa] sm:$0x1] }
  0x35   : > { %v315_v53 = vadd.f32 %v314_v45, %v313_v41  ;;  %v363_v57 = vsel %vm206_vm5, %v500_v49, 0.0  ;;  %v376_v58 = vsel %vm206_vm5, %v501_v50, 0.0  ;;  %v389_v59 = vsel %vm206_vm5, %v502_v51, 0.0  ;;  %v372_v32 = vld [vmem:[%s595_s20 + $0xd] sm:$0x1] }
  0x36   : > { %v328_v54 = vadd.f32 %v327_v46, %v326_v42  ;;  %v341_v55 = vadd.f32 %v340_v47, %v339_v43  ;;  %v354_v56 = vadd.f32 %v353_v48, %v352_v44  ;;  %v402_v60 = vsel %vm206_vm5, %v503_v52, 0.0  ;;  %v385_v37 = vld [vmem:[%s595_s20 + $0xe] sm:$0x1]  ;;  %v398_v38 = vld [vmem:[%s595_s20 + $0xf] sm:$0x1] }
  0x37   : > { %v316_v61 = vrot.slane %v315_v53, 1  ;;  %v364_v3 = vrot.slane %v363_v57, 4  ;;  %v377_v5 = vrot.slane %v376_v58, 4  ;;  %v390_v13 = vrot.slane %v389_v59, 4 }
  0x38   : > { %v329_v63 = vrot.slane %v328_v54, 1  ;;  %v342_v0 = vrot.slane %v341_v55, 1  ;;  %v355_v1 = vrot.slane %v354_v56, 1  ;;  %v403_v14 = vrot.slane %v402_v60, 4 }
  0x39   : > { %v317_v6 = vadd.f32 %v316_v61, %v315_v53  ;;  %v365_v11 = vadd.f32 %v364_v3, %v363_v57  ;;  %v378_v12 = vadd.f32 %v377_v5, %v376_v58  ;;  %v391_v21 = vadd.f32 %v390_v13, %v389_v59 }
  0x3a   : > { %v330_v7 = vadd.f32 %v329_v63, %v328_v54  ;;  %v343_v8 = vadd.f32 %v342_v0, %v341_v55  ;;  %v356_v9 = vadd.f32 %v355_v1, %v354_v56  ;;  %v404_v22 = vadd.f32 %v403_v14, %v402_v60 }
  0x3b   : > { %v318_v15 = vadd.f32 %v317_v6, %v307_v10  ;;  %v366_v19 = vrot.slane %v365_v11, 2  ;;  %v379_v20 = vrot.slane %v378_v12, 2  ;;  %v392_v25 = vrot.slane %v391_v21, 2 }
  0x3c   : > { %v331_v16 = vadd.f32 %v330_v7, %v320_v62  ;;  %v344_v17 = vadd.f32 %v343_v8, %v333_v4  ;;  %v357_v18 = vadd.f32 %v356_v9, %v346_v2  ;;  %v405_v26 = vrot.slane %v404_v22, 2 }
  0x3d   : > { %319 = vst [vmem:[%s595_s20 + $0x8] sm:$0x1] %v318_v15  ;;  %v367_v23 = vadd.f32 %v366_v19, %v365_v11  ;;  %v380_v24 = vadd.f32 %v379_v20, %v378_v12  ;;  %v393_v29 = vadd.f32 %v392_v25, %v391_v21 }
  0x3e   : > { %332 = vst [vmem:[%s595_s20 + $0x9] sm:$0x1] %v331_v16  ;;  %345 = vst [vmem:[%s595_s20 + $0xa] sm:$0x1] %v344_v17  ;;  %v406_v30 = vadd.f32 %v405_v26, %v404_v22 }
  0x3f   : > { %358 = vst [vmem:[%s595_s20 + $0xb] sm:$0x1] %v357_v18  ;;  %v368_v27 = vrot.slane %v367_v23, 1  ;;  %v381_v28 = vrot.slane %v380_v24, 1  ;;  %v394_v35 = vrot.slane %v393_v29, 1 }
  0x40   : > { %v407_v36 = vrot.slane %v406_v30, 1 }
  0x41   : > { %v369_v33 = vadd.f32 %v368_v27, %v367_v23  ;;  %v382_v34 = vadd.f32 %v381_v28, %v380_v24  ;;  %v395_v41 = vadd.f32 %v394_v35, %v393_v29 }
  0x42   : > { %v408_v42 = vadd.f32 %v407_v36, %v406_v30 }
  0x43   : > { %v370_v39 = vadd.f32 %v369_v33, %v359_v31  ;;  %v383_v40 = vadd.f32 %v382_v34, %v372_v32  ;;  %v396_v43 = vadd.f32 %v395_v41, %v385_v37 }
  0x44   : > { %v409_v44 = vadd.f32 %v408_v42, %v398_v38 }
  0x45   : > { %371 = vst [vmem:[%s595_s20 + $0xc] sm:$0x1] %v370_v39  ;;  %384 = vst [vmem:[%s595_s20 + $0xd] sm:$0x1] %v383_v40 }
  0x46   : > { %397 = vst [vmem:[%s595_s20 + $0xe] sm:$0x1] %v396_v43  ;;  %410 = vst [vmem:[%s595_s20 + $0xf] sm:$0x1] %v409_v44 }
  0x47 PF: > { %s13_s13 = sadd.s32 1, %s553_s13   ;;  %s698_s11 = smov %s549_s12 }
  0x48   : > { %p10_p6 = scmp.ge.s32.totalorder %s13_s13, 4   ;;  %s699_s12 = smov %s701_s0 }
  0x4a   :  { %12 = sbr.rel (!%p10_p6) target bundleno = 2 (0x2), region = 62 }

// kernel: _lambda_.14
= control target key start
LH: loop header
LB: loop body
LE: loop exit
PB: predicated region body
PF: predicated region fallthrough
CT: control target
= control target key end

     0   :  { %s574_s11 = smov 0   ;;  %s576_s12 = smov 0   ;;  %s695_s0 = inlined_call_operand.<no memory space> [shape: s32[1], index: 0, kind: input, shape index: {}]   ;;  %s696_s1 = inlined_call_operand.vmem [shape: f32[4,128], index: 1, kind: input, shape index: {}]   ;;  %s697_s2 = inlined_call_operand.vmem [shape: f32[32,128], index: 2, kind: output, shape index: {}]  }
   0x1   :  { %7 = sst [smem:[#allocation2]] %s695_s0  ;;  %s578_s13 = smov 0  }
   0x2 LB: > { %s25_s0 = sadd.s32 1, %s549_s12  ;;  %p480_p0 = scmp.ge.s32.totalorder %s553_s13, 1  ;;  %s553_s13 = sphi %s578_s13, %s13_s13   ;;  %s549_s12 = sphi %s576_s12, %s699_s12   ;;  %s545_s11 = sphi %s574_s11, %s698_s11  }
   0x3   : > { %p27_p1 = scmp.ge.s32.totalorder %s25_s0, 2  ;;  %p136_p2 = scmp.lt.s32.totalorder %s553_s13, 3 }
   0x5   : > { %s701_s0 = smov (%p27_p1, %s25_s0), 0  ;;  %p137_p3 = pnand %p480_p0, %p136_p2 }
   0x6   : > { %s485_s14 = sshll.u32 (!%p137_p3), %s545_s11, 1  ;;  %p161_p4 = scmp.lt.s32.totalorder (!%p137_p3), %s545_s11, 0  ;;  %v186_v0 = vlaneseq (!%p137_p3)  ;;  %v555_v4 = vmov (!%p137_p3), 0.0   ;;  %vm206_vm5 = vcmask (!%p137_p3), 1043456  }
   0x7   : > { %140 = sbr.rel (%p137_p3) target bundleno = 71 (0x47), region = 28  ;;  %p171_p5 = scmp.lt.s32.totalorder (!%p137_p3), %s485_s14, 3 }
   0x8   : > { %s487_s15 = sshll.u32 (!%p137_p3), %s545_s11, 2  ;;  %v187_v1 = vshrl.u32 (!%p137_p3), %v186_v0, 7  ;;  %s193_s17 = sld [smem:[#allocation2]] (!%p137_p3) }
   0x9   : > { %v188_v2 = vstv (!%p137_p3), %s487_s15 }
   0xa   : > { %v189_v3 = vadd.s32 (!%p137_p3), %v188_v2, %v187_v1 }
   0xc   : > { %vm190_vm0 = vcmp.lt.s32.totalorder (!%p137_p3), %v189_v3, 4 }
   0xe   : > { %s703_s11 = smov (!%p161_p4, %s545_s11), 0  ;;  %s705_s14 = smov (!%p171_p5, %s485_s14), 3 }
   0xf   : > { %s707_s11 = smov (!%p161_p4, %s703_s11), 0  ;;  %s486_s16 = sshll.u32 %s705_s14, 3 }
  0x10   : > { %s595_s20 = scalar_lea.vmem %s697_s2, %s486_s16  ;;  %s484_s21 = sshll.u32 %s707_s11, 2 }
  0x11   : > { %180 = vst [vmem:[%s595_s20] sm:$0xff] %v555_v4  ;;  %s166_s24 = scalar_lea.vmem %s696_s1, %s484_s21  ;;  %181 = vst [vmem:[%s595_s20 + $0x8] sm:$0xff] %v555_v4  ;;  %s194_s25 = sshra.s32 %s193_s17, 20 }
  0x12   : > { %v182_v5 = vld [vmem:[%s166_s24] sm:$0xf]  ;;  %v196_v9 = vstv %s194_s25 }
  0x13   : > { %vm191_vm1 = vcmp.ge.s32.totalorder %v182_v5, 0  ;;  %v195_v6 = vshra.s32 %v182_v5, 20  ;;  %v199_v7 = vshra.s32 %v182_v5, 16 }
  0x14   : > { %vm192_vm2 = vmand %vm190_vm0, %vm191_vm1 }
  0x15   : > { %v200_v8 = vand.u32 15, %v199_v7  ;;  %vm197_vm3 = vcmp.eq.s32.totalorder %v195_v6, %v196_v9 }
  0x16   : > { %vm198_vm4 = vmand %vm192_vm2, %vm197_vm3 }
  0x17   : > { %v604_v10 = vsel %vm198_vm4, %v200_v8, 4294967295 }
  0x18   : > { %vm203_vm6 = vcmp.eq.s32.totalorder %v604_v10, 0  ;;  %vm217_vm7 = vcmp.eq.s32.totalorder %v604_v10, 1  ;;  %vm230_vm8 = vcmp.eq.s32.totalorder %v604_v10, 2  ;;  %vm243_vm9 = vcmp.eq.s32.totalorder %v604_v10, 3  ;;  %v202_v47 = vld [vmem:[%s595_s20] sm:$0x1] }
  0x19   : > { %v488_v11 = vsel %vm203_vm6, 1.0, %v555_v4  ;;  %v489_v12 = vsel %vm217_vm7, 1.0, %v555_v4  ;;  %v490_v13 = vsel %vm230_vm8, 1.0, %v555_v4  ;;  %v491_v14 = vsel %vm243_vm9, 1.0, %v555_v4  ;;  %v216_v52 = vld [vmem:[%s595_s20 + $0x1] sm:$0x1] }
  0x1a   : > { %v207_v15 = vsel %vm206_vm5, %v488_v11, 0.0  ;;  %v220_v16 = vsel %vm206_vm5, %v489_v12, 0.0  ;;  %v233_v17 = vsel %vm206_vm5, %v490_v13, 0.0  ;;  %v246_v18 = vsel %vm206_vm5, %v491_v14, 0.0  ;;  %v229_v53 = vld [vmem:[%s595_s20 + $0x2] sm:$0x1] }
  0x1b   : > { %v208_v19 = vrot.slane %v207_v15, 4  ;;  %v221_v20 = vrot.slane %v220_v16, 4  ;;  %v234_v21 = vrot.slane %v233_v17, 4  ;;  %v247_v22 = vrot.slane %v246_v18, 4  ;;  %v242_v54 = vld [vmem:[%s595_s20 + $0x3] sm:$0x1] }
  0x1c   : > { %vm256_vm10 = vcmp.eq.s32.totalorder %v604_v10, 4  ;;  %vm269_vm11 = vcmp.eq.s32.totalorder %v604_v10, 5  ;;  %vm282_vm12 = vcmp.eq.s32.totalorder %v604_v10, 6  ;;  %vm295_vm13 = vcmp.eq.s32.totalorder %v604_v10, 7  ;;  %v255_v13 = vld [vmem:[%s595_s20 + $0x4] sm:$0x1] }
  0x1d   : > { %v209_v23 = vadd.f32 %v208_v19, %v207_v15  ;;  %v222_v24 = vadd.f32 %v221_v20, %v220_v16  ;;  %v235_v25 = vadd.f32 %v234_v21, %v233_v17  ;;  %v248_v26 = vadd.f32 %v247_v22, %v246_v18  ;;  %v268_v14 = vld [vmem:[%s595_s20 + $0x5] sm:$0x1]  ;;  %v281_v17 = vld [vmem:[%s595_s20 + $0x6] sm:$0x1]  ;;  %v294_v20 = vld [vmem:[%s595_s20 + $0x7] sm:$0x1] }
  0x1e   : > { %v492_v27 = vsel %vm256_vm10, 1.0, %v555_v4  ;;  %v493_v28 = vsel %vm269_vm11, 1.0, %v555_v4  ;;  %v494_v29 = vsel %vm282_vm12, 1.0, %v555_v4  ;;  %v495_v30 = vsel %vm295_vm13, 1.0, %v555_v4 }
  0x1f   : > { %v210_v31 = vrot.slane %v209_v23, 2  ;;  %v223_v32 = vrot.slane %v222_v24, 2  ;;  %v236_v33 = vrot.slane %v235_v25, 2  ;;  %v249_v34 = vrot.slane %v248_v26, 2 }
  0x20   : > { %v259_v35 = vsel %vm206_vm5, %v492_v27, 0.0  ;;  %v272_v36 = vsel %vm206_vm5, %v493_v28, 0.0  ;;  %v285_v37 = vsel %vm206_vm5, %v494_v29, 0.0  ;;  %v298_v38 = vsel %vm206_vm5, %v495_v30, 0.0 }
  0x21   : > { %v211_v39 = vadd.f32 %v210_v31, %v209_v23  ;;  %v224_v40 = vadd.f32 %v223_v32, %v222_v24  ;;  %v237_v41 = vadd.f32 %v236_v33, %v235_v25  ;;  %v250_v42 = vadd.f32 %v249_v34, %v248_v26 }
  0x22   : > { %v260_v43 = vrot.slane %v259_v35, 4  ;;  %v273_v44 = vrot.slane %v272_v36, 4  ;;  %v286_v45 = vrot.slane %v285_v37, 4  ;;  %v299_v46 = vrot.slane %v298_v38, 4 }
  0x23   : > { %v212_v48 = vrot.slane %v211_v39, 1  ;;  %v225_v49 = vrot.slane %v224_v40, 1  ;;  %v238_v50 = vrot.slane %v237_v41, 1  ;;  %v251_v51 = vrot.slane %v250_v42, 1 }
  0x24   : > { %v261_v55 = vadd.f32 %v260_v43, %v259_v35  ;;  %v274_v56 = vadd.f32 %v273_v44, %v272_v36  ;;  %v287_v57 = vadd.f32 %v286_v45, %v285_v37  ;;  %v300_v58 = vadd.f32 %v299_v46, %v298_v38 }
  0x25   : > { %v213_v59 = vadd.f32 %v212_v48, %v211_v39  ;;  %v226_v60 = vadd.f32 %v225_v49, %v224_v40  ;;  %v239_v61 = vadd.f32 %v238_v50, %v237_v41  ;;  %v252_v62 = vadd.f32 %v251_v51, %v250_v42 }
  0x26   : > { %v262_v63 = vrot.slane %v261_v55, 2  ;;  %v275_v0 = vrot.slane %v274_v56, 2  ;;  %v288_v1 = vrot.slane %v287_v57, 2  ;;  %v301_v2 = vrot.slane %v300_v58, 2 }
  0x27   : > { %v214_v3 = vadd.f32 %v213_v59, %v202_v47  ;;  %v227_v5 = vadd.f32 %v226_v60, %v216_v52  ;;  %v240_v6 = vadd.f32 %v239_v61, %v229_v53  ;;  %v253_v7 = vadd.f32 %v252_v62, %v242_v54  ;;  %v320_v62 = vld [vmem:[%s595_s20 + $0x9] sm:$0x1] }
  0x28   : > { %v263_v8 = vadd.f32 %v262_v63, %v261_v55  ;;  %v276_v9 = vadd.f32 %v275_v0, %v274_v56  ;;  %v289_v11 = vadd.f32 %v288_v1, %v287_v57  ;;  %v302_v12 = vadd.f32 %v301_v2, %v300_v58  ;;  %v346_v2 = vld [vmem:[%s595_s20 + $0xb] sm:$0x1] }
  0x29   : > { %215 = vst [vmem:[%s595_s20] sm:$0x1] %v214_v3  ;;  %228 = vst [vmem:[%s595_s20 + $0x1] sm:$0x1] %v227_v5  ;;  %vm308_vm14 = vcmp.eq.s32.totalorder %v604_v10, 8  ;;  %vm321_vm15 = vcmp.eq.s32.totalorder %v604_v10, 9  ;;  %vm334_vm0 = vcmp.eq.s32.totalorder %v604_v10, 10 }
  0x2a   : > { %241 = vst [vmem:[%s595_s20 + $0x2] sm:$0x1] %v240_v6  ;;  %254 = vst [vmem:[%s595_s20 + $0x3] sm:$0x1] %v253_v7  ;;  %vm347_vm1 = vcmp.eq.s32.totalorder %v604_v10, 11  ;;  %v264_v15 = vrot.slane %v263_v8, 1 }
  0x2b   : > { %v277_v16 = vrot.slane %v276_v9, 1  ;;  %v290_v18 = vrot.slane %v289_v11, 1  ;;  %v303_v19 = vrot.slane %v302_v12, 1  ;;  %v496_v21 = vsel %vm308_vm14, 1.0, %v555_v4 }
  0x2c   : > { %v497_v22 = vsel %vm321_vm15, 1.0, %v555_v4  ;;  %v498_v23 = vsel %vm334_vm0, 1.0, %v555_v4  ;;  %v499_v24 = vsel %vm347_vm1, 1.0, %v555_v4  ;;  %v265_v25 = vadd.f32 %v264_v15, %v263_v8 }
  0x2d   : > { %v278_v26 = vadd.f32 %v277_v16, %v276_v9  ;;  %v291_v27 = vadd.f32 %v290_v18, %v289_v11  ;;  %v304_v28 = vadd.f32 %v303_v19, %v302_v12  ;;  %v311_v29 = vsel %vm206_vm5, %v496_v21, 0.0 }
  0x2e   : > { %v324_v30 = vsel %vm206_vm5, %v497_v22, 0.0  ;;  %v337_v31 = vsel %vm206_vm5, %v498_v23, 0.0  ;;  %v350_v32 = vsel %vm206_vm5, %v499_v24, 0.0  ;;  %v266_v33 = vadd.f32 %v265_v25, %v255_v13 }
  0x2f   : > { %v279_v34 = vadd.f32 %v278_v26, %v268_v14  ;;  %v292_v35 = vadd.f32 %v291_v27, %v281_v17  ;;  %v305_v36 = vadd.f32 %v304_v28, %v294_v20  ;;  %v312_v37 = vrot.slane %v311_v29, 4 }
  0x30   : > { %v325_v38 = vrot.slane %v324_v30, 4  ;;  %v338_v39 = vrot.slane %v337_v31, 4  ;;  %v351_v40 = vrot.slane %v350_v32, 4  ;;  %267 = vst [vmem:[%s595_s20 + $0x4] sm:$0x1] %v266_v33  ;;  %vm360_vm2 = vcmp.eq.s32.totalorder %v604_v10, 12 }
  0x31   : > { %280 = vst [vmem:[%s595_s20 + $0x5] sm:$0x1] %v279_v34  ;;  %293 = vst [vmem:[%s595_s20 + $0x6] sm:$0x1] %v292_v35  ;;  %v313_v41 = vadd.f32 %v312_v37, %v311_v29  ;;  %vm373_vm3 = vcmp.eq.s32.totalorder %v604_v10, 13  ;;  %vm386_vm4 = vcmp.eq.s32.totalorder %v604_v10, 14 }
  0x32   : > { %306 = vst [vmem:[%s595_s20 + $0x7] sm:$0x1] %v305_v36  ;;  %v326_v42 = vadd.f32 %v325_v38, %v324_v30  ;;  %v339_v43 = vadd.f32 %v338_v39, %v337_v31  ;;  %v352_v44 = vadd.f32 %v351_v40, %v350_v32  ;;  %vm399_vm6 = vcmp.eq.s32.totalorder %v604_v10, 15  ;;  %v307_v10 = vld [vmem:[%s595_s20 + $0x8] sm:$0x1] }
  0x33   : > { %v314_v45 = vrot.slane %v313_v41, 2  ;;  %v500_v49 = vsel %vm360_vm2, 1.0, %v555_v4  ;;  %v501_v50 = vsel %vm373_vm3, 1.0, %v555_v4  ;;  %v502_v51 = vsel %vm386_vm4, 1.0, %v555_v4  ;;  %v359_v31 = vld [vmem:[%s595_s20 + $0xc] sm:$0x1] }
  0x34   : > { %v327_v46 = vrot.slane %v326_v42, 2  ;;  %v340_v47 = vrot.slane %v339_v43, 2  ;;  %v353_v48 = vrot.slane %v352_v44, 2  ;;  %v503_v52 = vsel %vm399_vm6, 1.0, %v555_v4  ;;  %v333_v4 = vld [vmem:[%s595_s20 + $0xa] sm:$0x1] }
  0x35   : > { %v315_v53 = vadd.f32 %v314_v45, %v313_v41  ;;  %v363_v57 = vsel %vm206_vm5, %v500_v49, 0.0  ;;  %v376_v58 = vsel %vm206_vm5, %v501_v50, 0.0  ;;  %v389_v59 = vsel %vm206_vm5, %v502_v51, 0.0  ;;  %v372_v32 = vld [vmem:[%s595_s20 + $0xd] sm:$0x1] }
  0x36   : > { %v328_v54 = vadd.f32 %v327_v46, %v326_v42  ;;  %v341_v55 = vadd.f32 %v340_v47, %v339_v43  ;;  %v354_v56 = vadd.f32 %v353_v48, %v352_v44  ;;  %v402_v60 = vsel %vm206_vm5, %v503_v52, 0.0  ;;  %v385_v37 = vld [vmem:[%s595_s20 + $0xe] sm:$0x1]  ;;  %v398_v38 = vld [vmem:[%s595_s20 + $0xf] sm:$0x1] }
  0x37   : > { %v316_v61 = vrot.slane %v315_v53, 1  ;;  %v364_v3 = vrot.slane %v363_v57, 4  ;;  %v377_v5 = vrot.slane %v376_v58, 4  ;;  %v390_v13 = vrot.slane %v389_v59, 4 }
  0x38   : > { %v329_v63 = vrot.slane %v328_v54, 1  ;;  %v342_v0 = vrot.slane %v341_v55, 1  ;;  %v355_v1 = vrot.slane %v354_v56, 1  ;;  %v403_v14 = vrot.slane %v402_v60, 4 }
  0x39   : > { %v317_v6 = vadd.f32 %v316_v61, %v315_v53  ;;  %v365_v11 = vadd.f32 %v364_v3, %v363_v57  ;;  %v378_v12 = vadd.f32 %v377_v5, %v376_v58  ;;  %v391_v21 = vadd.f32 %v390_v13, %v389_v59 }
  0x3a   : > { %v330_v7 = vadd.f32 %v329_v63, %v328_v54  ;;  %v343_v8 = vadd.f32 %v342_v0, %v341_v55  ;;  %v356_v9 = vadd.f32 %v355_v1, %v354_v56  ;;  %v404_v22 = vadd.f32 %v403_v14, %v402_v60 }
  0x3b   : > { %v318_v15 = vadd.f32 %v317_v6, %v307_v10  ;;  %v366_v19 = vrot.slane %v365_v11, 2  ;;  %v379_v20 = vrot.slane %v378_v12, 2  ;;  %v392_v25 = vrot.slane %v391_v21, 2 }
  0x3c   : > { %v331_v16 = vadd.f32 %v330_v7, %v320_v62  ;;  %v344_v17 = vadd.f32 %v343_v8, %v333_v4  ;;  %v357_v18 = vadd.f32 %v356_v9, %v346_v2  ;;  %v405_v26 = vrot.slane %v404_v22, 2 }
  0x3d   : > { %319 = vst [vmem:[%s595_s20 + $0x8] sm:$0x1] %v318_v15  ;;  %v367_v23 = vadd.f32 %v366_v19, %v365_v11  ;;  %v380_v24 = vadd.f32 %v379_v20, %v378_v12  ;;  %v393_v29 = vadd.f32 %v392_v25, %v391_v21 }
  0x3e   : > { %332 = vst [vmem:[%s595_s20 + $0x9] sm:$0x1] %v331_v16  ;;  %345 = vst [vmem:[%s595_s20 + $0xa] sm:$0x1] %v344_v17  ;;  %v406_v30 = vadd.f32 %v405_v26, %v404_v22 }
  0x3f   : > { %358 = vst [vmem:[%s595_s20 + $0xb] sm:$0x1] %v357_v18  ;;  %v368_v27 = vrot.slane %v367_v23, 1  ;;  %v381_v28 = vrot.slane %v380_v24, 1  ;;  %v394_v35 = vrot.slane %v393_v29, 1 }
  0x40   : > { %v407_v36 = vrot.slane %v406_v30, 1 }
  0x41   : > { %v369_v33 = vadd.f32 %v368_v27, %v367_v23  ;;  %v382_v34 = vadd.f32 %v381_v28, %v380_v24  ;;  %v395_v41 = vadd.f32 %v394_v35, %v393_v29 }
  0x42   : > { %v408_v42 = vadd.f32 %v407_v36, %v406_v30 }
  0x43   : > { %v370_v39 = vadd.f32 %v369_v33, %v359_v31  ;;  %v383_v40 = vadd.f32 %v382_v34, %v372_v32  ;;  %v396_v43 = vadd.f32 %v395_v41, %v385_v37 }
  0x44   : > { %v409_v44 = vadd.f32 %v408_v42, %v398_v38 }
  0x45   : > { %371 = vst [vmem:[%s595_s20 + $0xc] sm:$0x1] %v370_v39  ;;  %384 = vst [vmem:[%s595_s20 + $0xd] sm:$0x1] %v383_v40 }
  0x46   : > { %397 = vst [vmem:[%s595_s20 + $0xe] sm:$0x1] %v396_v43  ;;  %410 = vst [vmem:[%s595_s20 + $0xf] sm:$0x1] %v409_v44 }
  0x47 PF: > { %s13_s13 = sadd.s32 1, %s553_s13   ;;  %s698_s11 = smov %s549_s12 }
  0x48   : > { %p10_p6 = scmp.ge.s32.totalorder %s13_s13, 4   ;;  %s699_s12 = smov %s701_s0 }
  0x4a   :  { %12 = sbr.rel (!%p10_p6) target bundleno = 2 (0x2), region = 62 }

// kernel: _lambda_.15
= control target key start
LH: loop header
LB: loop body
LE: loop exit
PB: predicated region body
PF: predicated region fallthrough
CT: control target
= control target key end

     0   :  { %s574_s11 = smov 0   ;;  %s576_s12 = smov 0   ;;  %s695_s0 = inlined_call_operand.<no memory space> [shape: s32[1], index: 0, kind: input, shape index: {}]   ;;  %s696_s1 = inlined_call_operand.vmem [shape: f32[4,128], index: 1, kind: input, shape index: {}]   ;;  %s697_s2 = inlined_call_operand.vmem [shape: f32[32,128], index: 2, kind: output, shape index: {}]  }
   0x1   :  { %7 = sst [smem:[#allocation2]] %s695_s0  ;;  %s578_s13 = smov 0  }
   0x2 LB: > { %s25_s0 = sadd.s32 1, %s549_s12  ;;  %p480_p0 = scmp.ge.s32.totalorder %s553_s13, 1  ;;  %s553_s13 = sphi %s578_s13, %s13_s13   ;;  %s549_s12 = sphi %s576_s12, %s699_s12   ;;  %s545_s11 = sphi %s574_s11, %s698_s11  }
   0x3   : > { %p27_p1 = scmp.ge.s32.totalorder %s25_s0, 2  ;;  %p136_p2 = scmp.lt.s32.totalorder %s553_s13, 3 }
   0x5   : > { %s701_s0 = smov (%p27_p1, %s25_s0), 0  ;;  %p137_p3 = pnand %p480_p0, %p136_p2 }
   0x6   : > { %s485_s14 = sshll.u32 (!%p137_p3), %s545_s11, 1  ;;  %p161_p4 = scmp.lt.s32.totalorder (!%p137_p3), %s545_s11, 0  ;;  %v186_v0 = vlaneseq (!%p137_p3)  ;;  %v555_v4 = vmov (!%p137_p3), 0.0   ;;  %vm206_vm5 = vcmask (!%p137_p3), 1043456  }
   0x7   : > { %140 = sbr.rel (%p137_p3) target bundleno = 71 (0x47), region = 28  ;;  %p171_p5 = scmp.lt.s32.totalorder (!%p137_p3), %s485_s14, 3 }
   0x8   : > { %s487_s15 = sshll.u32 (!%p137_p3), %s545_s11, 2  ;;  %v187_v1 = vshrl.u32 (!%p137_p3), %v186_v0, 7  ;;  %s193_s17 = sld [smem:[#allocation2]] (!%p137_p3) }
   0x9   : > { %v188_v2 = vstv (!%p137_p3), %s487_s15 }
   0xa   : > { %v189_v3 = vadd.s32 (!%p137_p3), %v188_v2, %v187_v1 }
   0xc   : > { %vm190_vm0 = vcmp.lt.s32.totalorder (!%p137_p3), %v189_v3, 4 }
   0xe   : > { %s703_s11 = smov (!%p161_p4, %s545_s11), 0  ;;  %s705_s14 = smov (!%p171_p5, %s485_s14), 3 }
   0xf   : > { %s707_s11 = smov (!%p161_p4, %s703_s11), 0  ;;  %s486_s16 = sshll.u32 %s705_s14, 3 }
  0x10   : > { %s595_s20 = scalar_lea.vmem %s697_s2, %s486_s16  ;;  %s484_s21 = sshll.u32 %s707_s11, 2 }
  0x11   : > { %180 = vst [vmem:[%s595_s20] sm:$0xff] %v555_v4  ;;  %s166_s24 = scalar_lea.vmem %s696_s1, %s484_s21  ;;  %181 = vst [vmem:[%s595_s20 + $0x8] sm:$0xff] %v555_v4  ;;  %s194_s25 = sshra.s32 %s193_s17, 16 }
  0x12   : > { %v182_v5 = vld [vmem:[%s166_s24] sm:$0xf]  ;;  %v196_v9 = vstv %s194_s25 }
  0x13   : > { %vm191_vm1 = vcmp.ge.s32.totalorder %v182_v5, 0  ;;  %v195_v6 = vshra.s32 %v182_v5, 16  ;;  %v199_v7 = vshra.s32 %v182_v5, 12 }
  0x14   : > { %vm192_vm2 = vmand %vm190_vm0, %vm191_vm1 }
  0x15   : > { %v200_v8 = vand.u32 15, %v199_v7  ;;  %vm197_vm3 = vcmp.eq.s32.totalorder %v195_v6, %v196_v9 }
  0x16   : > { %vm198_vm4 = vmand %vm192_vm2, %vm197_vm3 }
  0x17   : > { %v604_v10 = vsel %vm198_vm4, %v200_v8, 4294967295 }
  0x18   : > { %vm203_vm6 = vcmp.eq.s32.totalorder %v604_v10, 0  ;;  %vm217_vm7 = vcmp.eq.s32.totalorder %v604_v10, 1  ;;  %vm230_vm8 = vcmp.eq.s32.totalorder %v604_v10, 2  ;;  %vm243_vm9 = vcmp.eq.s32.totalorder %v604_v10, 3  ;;  %v202_v47 = vld [vmem:[%s595_s20] sm:$0x1] }
  0x19   : > { %v488_v11 = vsel %vm203_vm6, 1.0, %v555_v4  ;;  %v489_v12 = vsel %vm217_vm7, 1.0, %v555_v4  ;;  %v490_v13 = vsel %vm230_vm8, 1.0, %v555_v4  ;;  %v491_v14 = vsel %vm243_vm9, 1.0, %v555_v4  ;;  %v216_v52 = vld [vmem:[%s595_s20 + $0x1] sm:$0x1] }
  0x1a   : > { %v207_v15 = vsel %vm206_vm5, %v488_v11, 0.0  ;;  %v220_v16 = vsel %vm206_vm5, %v489_v12, 0.0  ;;  %v233_v17 = vsel %vm206_vm5, %v490_v13, 0.0  ;;  %v246_v18 = vsel %vm206_vm5, %v491_v14, 0.0  ;;  %v229_v53 = vld [vmem:[%s595_s20 + $0x2] sm:$0x1] }
  0x1b   : > { %v208_v19 = vrot.slane %v207_v15, 4  ;;  %v221_v20 = vrot.slane %v220_v16, 4  ;;  %v234_v21 = vrot.slane %v233_v17, 4  ;;  %v247_v22 = vrot.slane %v246_v18, 4  ;;  %v242_v54 = vld [vmem:[%s595_s20 + $0x3] sm:$0x1] }
  0x1c   : > { %vm256_vm10 = vcmp.eq.s32.totalorder %v604_v10, 4  ;;  %vm269_vm11 = vcmp.eq.s32.totalorder %v604_v10, 5  ;;  %vm282_vm12 = vcmp.eq.s32.totalorder %v604_v10, 6  ;;  %vm295_vm13 = vcmp.eq.s32.totalorder %v604_v10, 7  ;;  %v255_v13 = vld [vmem:[%s595_s20 + $0x4] sm:$0x1] }
  0x1d   : > { %v209_v23 = vadd.f32 %v208_v19, %v207_v15  ;;  %v222_v24 = vadd.f32 %v221_v20, %v220_v16  ;;  %v235_v25 = vadd.f32 %v234_v21, %v233_v17  ;;  %v248_v26 = vadd.f32 %v247_v22, %v246_v18  ;;  %v268_v14 = vld [vmem:[%s595_s20 + $0x5] sm:$0x1]  ;;  %v281_v17 = vld [vmem:[%s595_s20 + $0x6] sm:$0x1]  ;;  %v294_v20 = vld [vmem:[%s595_s20 + $0x7] sm:$0x1] }
  0x1e   : > { %v492_v27 = vsel %vm256_vm10, 1.0, %v555_v4  ;;  %v493_v28 = vsel %vm269_vm11, 1.0, %v555_v4  ;;  %v494_v29 = vsel %vm282_vm12, 1.0, %v555_v4  ;;  %v495_v30 = vsel %vm295_vm13, 1.0, %v555_v4 }
  0x1f   : > { %v210_v31 = vrot.slane %v209_v23, 2  ;;  %v223_v32 = vrot.slane %v222_v24, 2  ;;  %v236_v33 = vrot.slane %v235_v25, 2  ;;  %v249_v34 = vrot.slane %v248_v26, 2 }
  0x20   : > { %v259_v35 = vsel %vm206_vm5, %v492_v27, 0.0  ;;  %v272_v36 = vsel %vm206_vm5, %v493_v28, 0.0  ;;  %v285_v37 = vsel %vm206_vm5, %v494_v29, 0.0  ;;  %v298_v38 = vsel %vm206_vm5, %v495_v30, 0.0 }
  0x21   : > { %v211_v39 = vadd.f32 %v210_v31, %v209_v23  ;;  %v224_v40 = vadd.f32 %v223_v32, %v222_v24  ;;  %v237_v41 = vadd.f32 %v236_v33, %v235_v25  ;;  %v250_v42 = vadd.f32 %v249_v34, %v248_v26 }
  0x22   : > { %v260_v43 = vrot.slane %v259_v35, 4  ;;  %v273_v44 = vrot.slane %v272_v36, 4  ;;  %v286_v45 = vrot.slane %v285_v37, 4  ;;  %v299_v46 = vrot.slane %v298_v38, 4 }
  0x23   : > { %v212_v48 = vrot.slane %v211_v39, 1  ;;  %v225_v49 = vrot.slane %v224_v40, 1  ;;  %v238_v50 = vrot.slane %v237_v41, 1  ;;  %v251_v51 = vrot.slane %v250_v42, 1 }
  0x24   : > { %v261_v55 = vadd.f32 %v260_v43, %v259_v35  ;;  %v274_v56 = vadd.f32 %v273_v44, %v272_v36  ;;  %v287_v57 = vadd.f32 %v286_v45, %v285_v37  ;;  %v300_v58 = vadd.f32 %v299_v46, %v298_v38 }
  0x25   : > { %v213_v59 = vadd.f32 %v212_v48, %v211_v39  ;;  %v226_v60 = vadd.f32 %v225_v49, %v224_v40  ;;  %v239_v61 = vadd.f32 %v238_v50, %v237_v41  ;;  %v252_v62 = vadd.f32 %v251_v51, %v250_v42 }
  0x26   : > { %v262_v63 = vrot.slane %v261_v55, 2  ;;  %v275_v0 = vrot.slane %v274_v56, 2  ;;  %v288_v1 = vrot.slane %v287_v57, 2  ;;  %v301_v2 = vrot.slane %v300_v58, 2 }
  0x27   : > { %v214_v3 = vadd.f32 %v213_v59, %v202_v47  ;;  %v227_v5 = vadd.f32 %v226_v60, %v216_v52  ;;  %v240_v6 = vadd.f32 %v239_v61, %v229_v53  ;;  %v253_v7 = vadd.f32 %v252_v62, %v242_v54  ;;  %v320_v62 = vld [vmem:[%s595_s20 + $0x9] sm:$0x1] }
  0x28   : > { %v263_v8 = vadd.f32 %v262_v63, %v261_v55  ;;  %v276_v9 = vadd.f32 %v275_v0, %v274_v56  ;;  %v289_v11 = vadd.f32 %v288_v1, %v287_v57  ;;  %v302_v12 = vadd.f32 %v301_v2, %v300_v58  ;;  %v346_v2 = vld [vmem:[%s595_s20 + $0xb] sm:$0x1] }
  0x29   : > { %215 = vst [vmem:[%s595_s20] sm:$0x1] %v214_v3  ;;  %228 = vst [vmem:[%s595_s20 + $0x1] sm:$0x1] %v227_v5  ;;  %vm308_vm14 = vcmp.eq.s32.totalorder %v604_v10, 8  ;;  %vm321_vm15 = vcmp.eq.s32.totalorder %v604_v10, 9  ;;  %vm334_vm0 = vcmp.eq.s32.totalorder %v604_v10, 10 }
  0x2a   : > { %241 = vst [vmem:[%s595_s20 + $0x2] sm:$0x1] %v240_v6  ;;  %254 = vst [vmem:[%s595_s20 + $0x3] sm:$0x1] %v253_v7  ;;  %vm347_vm1 = vcmp.eq.s32.totalorder %v604_v10, 11  ;;  %v264_v15 = vrot.slane %v263_v8, 1 }
  0x2b   : > { %v277_v16 = vrot.slane %v276_v9, 1  ;;  %v290_v18 = vrot.slane %v289_v11, 1  ;;  %v303_v19 = vrot.slane %v302_v12, 1  ;;  %v496_v21 = vsel %vm308_vm14, 1.0, %v555_v4 }
  0x2c   : > { %v497_v22 = vsel %vm321_vm15, 1.0, %v555_v4  ;;  %v498_v23 = vsel %vm334_vm0, 1.0, %v555_v4  ;;  %v499_v24 = vsel %vm347_vm1, 1.0, %v555_v4  ;;  %v265_v25 = vadd.f32 %v264_v15, %v263_v8 }
  0x2d   : > { %v278_v26 = vadd.f32 %v277_v16, %v276_v9  ;;  %v291_v27 = vadd.f32 %v290_v18, %v289_v11  ;;  %v304_v28 = vadd.f32 %v303_v19, %v302_v12  ;;  %v311_v29 = vsel %vm206_vm5, %v496_v21, 0.0 }
  0x2e   : > { %v324_v30 = vsel %vm206_vm5, %v497_v22, 0.0  ;;  %v337_v31 = vsel %vm206_vm5, %v498_v23, 0.0  ;;  %v350_v32 = vsel %vm206_vm5, %v499_v24, 0.0  ;;  %v266_v33 = vadd.f32 %v265_v25, %v255_v13 }
  0x2f   : > { %v279_v34 = vadd.f32 %v278_v26, %v268_v14  ;;  %v292_v35 = vadd.f32 %v291_v27, %v281_v17  ;;  %v305_v36 = vadd.f32 %v304_v28, %v294_v20  ;;  %v312_v37 = vrot.slane %v311_v29, 4 }
  0x30   : > { %v325_v38 = vrot.slane %v324_v30, 4  ;;  %v338_v39 = vrot.slane %v337_v31, 4  ;;  %v351_v40 = vrot.slane %v350_v32, 4  ;;  %267 = vst [vmem:[%s595_s20 + $0x4] sm:$0x1] %v266_v33  ;;  %vm360_vm2 = vcmp.eq.s32.totalorder %v604_v10, 12 }
  0x31   : > { %280 = vst [vmem:[%s595_s20 + $0x5] sm:$0x1] %v279_v34  ;;  %293 = vst [vmem:[%s595_s20 + $0x6] sm:$0x1] %v292_v35  ;;  %v313_v41 = vadd.f32 %v312_v37, %v311_v29  ;;  %vm373_vm3 = vcmp.eq.s32.totalorder %v604_v10, 13  ;;  %vm386_vm4 = vcmp.eq.s32.totalorder %v604_v10, 14 }
  0x32   : > { %306 = vst [vmem:[%s595_s20 + $0x7] sm:$0x1] %v305_v36  ;;  %v326_v42 = vadd.f32 %v325_v38, %v324_v30  ;;  %v339_v43 = vadd.f32 %v338_v39, %v337_v31  ;;  %v352_v44 = vadd.f32 %v351_v40, %v350_v32  ;;  %vm399_vm6 = vcmp.eq.s32.totalorder %v604_v10, 15  ;;  %v307_v10 = vld [vmem:[%s595_s20 + $0x8] sm:$0x1] }
  0x33   : > { %v314_v45 = vrot.slane %v313_v41, 2  ;;  %v500_v49 = vsel %vm360_vm2, 1.0, %v555_v4  ;;  %v501_v50 = vsel %vm373_vm3, 1.0, %v555_v4  ;;  %v502_v51 = vsel %vm386_vm4, 1.0, %v555_v4  ;;  %v359_v31 = vld [vmem:[%s595_s20 + $0xc] sm:$0x1] }
  0x34   : > { %v327_v46 = vrot.slane %v326_v42, 2  ;;  %v340_v47 = vrot.slane %v339_v43, 2  ;;  %v353_v48 = vrot.slane %v352_v44, 2  ;;  %v503_v52 = vsel %vm399_vm6, 1.0, %v555_v4  ;;  %v333_v4 = vld [vmem:[%s595_s20 + $0xa] sm:$0x1] }
  0x35   : > { %v315_v53 = vadd.f32 %v314_v45, %v313_v41  ;;  %v363_v57 = vsel %vm206_vm5, %v500_v49, 0.0  ;;  %v376_v58 = vsel %vm206_vm5, %v501_v50, 0.0  ;;  %v389_v59 = vsel %vm206_vm5, %v502_v51, 0.0  ;;  %v372_v32 = vld [vmem:[%s595_s20 + $0xd] sm:$0x1] }
  0x36   : > { %v328_v54 = vadd.f32 %v327_v46, %v326_v42  ;;  %v341_v55 = vadd.f32 %v340_v47, %v339_v43  ;;  %v354_v56 = vadd.f32 %v353_v48, %v352_v44  ;;  %v402_v60 = vsel %vm206_vm5, %v503_v52, 0.0  ;;  %v385_v37 = vld [vmem:[%s595_s20 + $0xe] sm:$0x1]  ;;  %v398_v38 = vld [vmem:[%s595_s20 + $0xf] sm:$0x1] }
  0x37   : > { %v316_v61 = vrot.slane %v315_v53, 1  ;;  %v364_v3 = vrot.slane %v363_v57, 4  ;;  %v377_v5 = vrot.slane %v376_v58, 4  ;;  %v390_v13 = vrot.slane %v389_v59, 4 }
  0x38   : > { %v329_v63 = vrot.slane %v328_v54, 1  ;;  %v342_v0 = vrot.slane %v341_v55, 1  ;;  %v355_v1 = vrot.slane %v354_v56, 1  ;;  %v403_v14 = vrot.slane %v402_v60, 4 }
  0x39   : > { %v317_v6 = vadd.f32 %v316_v61, %v315_v53  ;;  %v365_v11 = vadd.f32 %v364_v3, %v363_v57  ;;  %v378_v12 = vadd.f32 %v377_v5, %v376_v58  ;;  %v391_v21 = vadd.f32 %v390_v13, %v389_v59 }
  0x3a   : > { %v330_v7 = vadd.f32 %v329_v63, %v328_v54  ;;  %v343_v8 = vadd.f32 %v342_v0, %v341_v55  ;;  %v356_v9 = vadd.f32 %v355_v1, %v354_v56  ;;  %v404_v22 = vadd.f32 %v403_v14, %v402_v60 }
  0x3b   : > { %v318_v15 = vadd.f32 %v317_v6, %v307_v10  ;;  %v366_v19 = vrot.slane %v365_v11, 2  ;;  %v379_v20 = vrot.slane %v378_v12, 2  ;;  %v392_v25 = vrot.slane %v391_v21, 2 }
  0x3c   : > { %v331_v16 = vadd.f32 %v330_v7, %v320_v62  ;;  %v344_v17 = vadd.f32 %v343_v8, %v333_v4  ;;  %v357_v18 = vadd.f32 %v356_v9, %v346_v2  ;;  %v405_v26 = vrot.slane %v404_v22, 2 }
  0x3d   : > { %319 = vst [vmem:[%s595_s20 + $0x8] sm:$0x1] %v318_v15  ;;  %v367_v23 = vadd.f32 %v366_v19, %v365_v11  ;;  %v380_v24 = vadd.f32 %v379_v20, %v378_v12  ;;  %v393_v29 = vadd.f32 %v392_v25, %v391_v21 }
  0x3e   : > { %332 = vst [vmem:[%s595_s20 + $0x9] sm:$0x1] %v331_v16  ;;  %345 = vst [vmem:[%s595_s20 + $0xa] sm:$0x1] %v344_v17  ;;  %v406_v30 = vadd.f32 %v405_v26, %v404_v22 }
  0x3f   : > { %358 = vst [vmem:[%s595_s20 + $0xb] sm:$0x1] %v357_v18  ;;  %v368_v27 = vrot.slane %v367_v23, 1  ;;  %v381_v28 = vrot.slane %v380_v24, 1  ;;  %v394_v35 = vrot.slane %v393_v29, 1 }
  0x40   : > { %v407_v36 = vrot.slane %v406_v30, 1 }
  0x41   : > { %v369_v33 = vadd.f32 %v368_v27, %v367_v23  ;;  %v382_v34 = vadd.f32 %v381_v28, %v380_v24  ;;  %v395_v41 = vadd.f32 %v394_v35, %v393_v29 }
  0x42   : > { %v408_v42 = vadd.f32 %v407_v36, %v406_v30 }
  0x43   : > { %v370_v39 = vadd.f32 %v369_v33, %v359_v31  ;;  %v383_v40 = vadd.f32 %v382_v34, %v372_v32  ;;  %v396_v43 = vadd.f32 %v395_v41, %v385_v37 }
  0x44   : > { %v409_v44 = vadd.f32 %v408_v42, %v398_v38 }
  0x45   : > { %371 = vst [vmem:[%s595_s20 + $0xc] sm:$0x1] %v370_v39  ;;  %384 = vst [vmem:[%s595_s20 + $0xd] sm:$0x1] %v383_v40 }
  0x46   : > { %397 = vst [vmem:[%s595_s20 + $0xe] sm:$0x1] %v396_v43  ;;  %410 = vst [vmem:[%s595_s20 + $0xf] sm:$0x1] %v409_v44 }
  0x47 PF: > { %s13_s13 = sadd.s32 1, %s553_s13   ;;  %s698_s11 = smov %s549_s12 }
  0x48   : > { %p10_p6 = scmp.ge.s32.totalorder %s13_s13, 4   ;;  %s699_s12 = smov %s701_s0 }
  0x4a   :  { %12 = sbr.rel (!%p10_p6) target bundleno = 2 (0x2), region = 62 }

// kernel: _lambda_.17
= control target key start
LH: loop header
LB: loop body
LE: loop exit
PB: predicated region body
PF: predicated region fallthrough
CT: control target
= control target key end

     0   :  { %s574_s11 = smov 0   ;;  %s576_s12 = smov 0   ;;  %s695_s0 = inlined_call_operand.<no memory space> [shape: s32[1], index: 0, kind: input, shape index: {}]   ;;  %s696_s1 = inlined_call_operand.vmem [shape: f32[4,128], index: 1, kind: input, shape index: {}]   ;;  %s697_s2 = inlined_call_operand.vmem [shape: f32[32,128], index: 2, kind: output, shape index: {}]  }
   0x1   :  { %7 = sst [smem:[#allocation2]] %s695_s0  ;;  %s578_s13 = smov 0  }
   0x2 LB: > { %s25_s0 = sadd.s32 1, %s549_s12  ;;  %p480_p0 = scmp.ge.s32.totalorder %s553_s13, 1  ;;  %s553_s13 = sphi %s578_s13, %s13_s13   ;;  %s549_s12 = sphi %s576_s12, %s699_s12   ;;  %s545_s11 = sphi %s574_s11, %s698_s11  }
   0x3   : > { %p27_p1 = scmp.ge.s32.totalorder %s25_s0, 2  ;;  %p136_p2 = scmp.lt.s32.totalorder %s553_s13, 3 }
   0x5   : > { %s701_s0 = smov (%p27_p1, %s25_s0), 0  ;;  %p137_p3 = pnand %p480_p0, %p136_p2 }
   0x6   : > { %s485_s14 = sshll.u32 (!%p137_p3), %s545_s11, 1  ;;  %p161_p4 = scmp.lt.s32.totalorder (!%p137_p3), %s545_s11, 0  ;;  %v186_v0 = vlaneseq (!%p137_p3)  ;;  %v555_v4 = vmov (!%p137_p3), 0.0   ;;  %vm206_vm5 = vcmask (!%p137_p3), 1043456  }
   0x7   : > { %140 = sbr.rel (%p137_p3) target bundleno = 71 (0x47), region = 28  ;;  %p171_p5 = scmp.lt.s32.totalorder (!%p137_p3), %s485_s14, 3 }
   0x8   : > { %s487_s15 = sshll.u32 (!%p137_p3), %s545_s11, 2  ;;  %v187_v1 = vshrl.u32 (!%p137_p3), %v186_v0, 7  ;;  %s193_s17 = sld [smem:[#allocation2]] (!%p137_p3) }
   0x9   : > { %v188_v2 = vstv (!%p137_p3), %s487_s15 }
   0xa   : > { %v189_v3 = vadd.s32 (!%p137_p3), %v188_v2, %v187_v1 }
   0xc   : > { %vm190_vm0 = vcmp.lt.s32.totalorder (!%p137_p3), %v189_v3, 4 }
   0xe   : > { %s703_s11 = smov (!%p161_p4, %s545_s11), 0  ;;  %s705_s14 = smov (!%p171_p5, %s485_s14), 3 }
   0xf   : > { %s707_s11 = smov (!%p161_p4, %s703_s11), 0  ;;  %s486_s16 = sshll.u32 %s705_s14, 3 }
  0x10   : > { %s595_s20 = scalar_lea.vmem %s697_s2, %s486_s16  ;;  %s484_s21 = sshll.u32 %s707_s11, 2 }
  0x11   : > { %180 = vst [vmem:[%s595_s20] sm:$0xff] %v555_v4  ;;  %s166_s24 = scalar_lea.vmem %s696_s1, %s484_s21  ;;  %181 = vst [vmem:[%s595_s20 + $0x8] sm:$0xff] %v555_v4  ;;  %s194_s25 = sshra.s32 %s193_s17, 8 }
  0x12   : > { %v182_v5 = vld [vmem:[%s166_s24] sm:$0xf]  ;;  %v196_v9 = vstv %s194_s25 }
  0x13   : > { %vm191_vm1 = vcmp.ge.s32.totalorder %v182_v5, 0  ;;  %v195_v6 = vshra.s32 %v182_v5, 8  ;;  %v199_v7 = vshra.s32 %v182_v5, 4 }
  0x14   : > { %vm192_vm2 = vmand %vm190_vm0, %vm191_vm1 }
  0x15   : > { %v200_v8 = vand.u32 15, %v199_v7  ;;  %vm197_vm3 = vcmp.eq.s32.totalorder %v195_v6, %v196_v9 }
  0x16   : > { %vm198_vm4 = vmand %vm192_vm2, %vm197_vm3 }
  0x17   : > { %v604_v10 = vsel %vm198_vm4, %v200_v8, 4294967295 }
  0x18   : > { %vm203_vm6 = vcmp.eq.s32.totalorder %v604_v10, 0  ;;  %vm217_vm7 = vcmp.eq.s32.totalorder %v604_v10, 1  ;;  %vm230_vm8 = vcmp.eq.s32.totalorder %v604_v10, 2  ;;  %vm243_vm9 = vcmp.eq.s32.totalorder %v604_v10, 3  ;;  %v202_v47 = vld [vmem:[%s595_s20] sm:$0x1] }
  0x19   : > { %v488_v11 = vsel %vm203_vm6, 1.0, %v555_v4  ;;  %v489_v12 = vsel %vm217_vm7, 1.0, %v555_v4  ;;  %v490_v13 = vsel %vm230_vm8, 1.0, %v555_v4  ;;  %v491_v14 = vsel %vm243_vm9, 1.0, %v555_v4  ;;  %v216_v52 = vld [vmem:[%s595_s20 + $0x1] sm:$0x1] }
  0x1a   : > { %v207_v15 = vsel %vm206_vm5, %v488_v11, 0.0  ;;  %v220_v16 = vsel %vm206_vm5, %v489_v12, 0.0  ;;  %v233_v17 = vsel %vm206_vm5, %v490_v13, 0.0  ;;  %v246_v18 = vsel %vm206_vm5, %v491_v14, 0.0  ;;  %v229_v53 = vld [vmem:[%s595_s20 + $0x2] sm:$0x1] }
  0x1b   : > { %v208_v19 = vrot.slane %v207_v15, 4  ;;  %v221_v20 = vrot.slane %v220_v16, 4  ;;  %v234_v21 = vrot.slane %v233_v17, 4  ;;  %v247_v22 = vrot.slane %v246_v18, 4  ;;  %v242_v54 = vld [vmem:[%s595_s20 + $0x3] sm:$0x1] }
  0x1c   : > { %vm256_vm10 = vcmp.eq.s32.totalorder %v604_v10, 4  ;;  %vm269_vm11 = vcmp.eq.s32.totalorder %v604_v10, 5  ;;  %vm282_vm12 = vcmp.eq.s32.totalorder %v604_v10, 6  ;;  %vm295_vm13 = vcmp.eq.s32.totalorder %v604_v10, 7  ;;  %v255_v13 = vld [vmem:[%s595_s20 + $0x4] sm:$0x1] }
  0x1d   : > { %v209_v23 = vadd.f32 %v208_v19, %v207_v15  ;;  %v222_v24 = vadd.f32 %v221_v20, %v220_v16  ;;  %v235_v25 = vadd.f32 %v234_v21, %v233_v17  ;;  %v248_v26 = vadd.f32 %v247_v22, %v246_v18  ;;  %v268_v14 = vld [vmem:[%s595_s20 + $0x5] sm:$0x1]  ;;  %v281_v17 = vld [vmem:[%s595_s20 + $0x6] sm:$0x1]  ;;  %v294_v20 = vld [vmem:[%s595_s20 + $0x7] sm:$0x1] }
  0x1e   : > { %v492_v27 = vsel %vm256_vm10, 1.0, %v555_v4  ;;  %v493_v28 = vsel %vm269_vm11, 1.0, %v555_v4  ;;  %v494_v29 = vsel %vm282_vm12, 1.0, %v555_v4  ;;  %v495_v30 = vsel %vm295_vm13, 1.0, %v555_v4 }
  0x1f   : > { %v210_v31 = vrot.slane %v209_v23, 2  ;;  %v223_v32 = vrot.slane %v222_v24, 2  ;;  %v236_v33 = vrot.slane %v235_v25, 2  ;;  %v249_v34 = vrot.slane %v248_v26, 2 }
  0x20   : > { %v259_v35 = vsel %vm206_vm5, %v492_v27, 0.0  ;;  %v272_v36 = vsel %vm206_vm5, %v493_v28, 0.0  ;;  %v285_v37 = vsel %vm206_vm5, %v494_v29, 0.0  ;;  %v298_v38 = vsel %vm206_vm5, %v495_v30, 0.0 }
  0x21   : > { %v211_v39 = vadd.f32 %v210_v31, %v209_v23  ;;  %v224_v40 = vadd.f32 %v223_v32, %v222_v24  ;;  %v237_v41 = vadd.f32 %v236_v33, %v235_v25  ;;  %v250_v42 = vadd.f32 %v249_v34, %v248_v26 }
  0x22   : > { %v260_v43 = vrot.slane %v259_v35, 4  ;;  %v273_v44 = vrot.slane %v272_v36, 4  ;;  %v286_v45 = vrot.slane %v285_v37, 4  ;;  %v299_v46 = vrot.slane %v298_v38, 4 }
  0x23   : > { %v212_v48 = vrot.slane %v211_v39, 1  ;;  %v225_v49 = vrot.slane %v224_v40, 1  ;;  %v238_v50 = vrot.slane %v237_v41, 1  ;;  %v251_v51 = vrot.slane %v250_v42, 1 }
  0x24   : > { %v261_v55 = vadd.f32 %v260_v43, %v259_v35  ;;  %v274_v56 = vadd.f32 %v273_v44, %v272_v36  ;;  %v287_v57 = vadd.f32 %v286_v45, %v285_v37  ;;  %v300_v58 = vadd.f32 %v299_v46, %v298_v38 }
  0x25   : > { %v213_v59 = vadd.f32 %v212_v48, %v211_v39  ;;  %v226_v60 = vadd.f32 %v225_v49, %v224_v40  ;;  %v239_v61 = vadd.f32 %v238_v50, %v237_v41  ;;  %v252_v62 = vadd.f32 %v251_v51, %v250_v42 }
  0x26   : > { %v262_v63 = vrot.slane %v261_v55, 2  ;;  %v275_v0 = vrot.slane %v274_v56, 2  ;;  %v288_v1 = vrot.slane %v287_v57, 2  ;;  %v301_v2 = vrot.slane %v300_v58, 2 }
  0x27   : > { %v214_v3 = vadd.f32 %v213_v59, %v202_v47  ;;  %v227_v5 = vadd.f32 %v226_v60, %v216_v52  ;;  %v240_v6 = vadd.f32 %v239_v61, %v229_v53  ;;  %v253_v7 = vadd.f32 %v252_v62, %v242_v54  ;;  %v320_v62 = vld [vmem:[%s595_s20 + $0x9] sm:$0x1] }
  0x28   : > { %v263_v8 = vadd.f32 %v262_v63, %v261_v55  ;;  %v276_v9 = vadd.f32 %v275_v0, %v274_v56  ;;  %v289_v11 = vadd.f32 %v288_v1, %v287_v57  ;;  %v302_v12 = vadd.f32 %v301_v2, %v300_v58  ;;  %v346_v2 = vld [vmem:[%s595_s20 + $0xb] sm:$0x1] }
  0x29   : > { %215 = vst [vmem:[%s595_s20] sm:$0x1] %v214_v3  ;;  %228 = vst [vmem:[%s595_s20 + $0x1] sm:$0x1] %v227_v5  ;;  %vm308_vm14 = vcmp.eq.s32.totalorder %v604_v10, 8  ;;  %vm321_vm15 = vcmp.eq.s32.totalorder %v604_v10, 9  ;;  %vm334_vm0 = vcmp.eq.s32.totalorder %v604_v10, 10 }
  0x2a   : > { %241 = vst [vmem:[%s595_s20 + $0x2] sm:$0x1] %v240_v6  ;;  %254 = vst [vmem:[%s595_s20 + $0x3] sm:$0x1] %v253_v7  ;;  %vm347_vm1 = vcmp.eq.s32.totalorder %v604_v10, 11  ;;  %v264_v15 = vrot.slane %v263_v8, 1 }
  0x2b   : > { %v277_v16 = vrot.slane %v276_v9, 1  ;;  %v290_v18 = vrot.slane %v289_v11, 1  ;;  %v303_v19 = vrot.slane %v302_v12, 1  ;;  %v496_v21 = vsel %vm308_vm14, 1.0, %v555_v4 }
  0x2c   : > { %v497_v22 = vsel %vm321_vm15, 1.0, %v555_v4  ;;  %v498_v23 = vsel %vm334_vm0, 1.0, %v555_v4  ;;  %v499_v24 = vsel %vm347_vm1, 1.0, %v555_v4  ;;  %v265_v25 = vadd.f32 %v264_v15, %v263_v8 }
  0x2d   : > { %v278_v26 = vadd.f32 %v277_v16, %v276_v9  ;;  %v291_v27 = vadd.f32 %v290_v18, %v289_v11  ;;  %v304_v28 = vadd.f32 %v303_v19, %v302_v12  ;;  %v311_v29 = vsel %vm206_vm5, %v496_v21, 0.0 }
  0x2e   : > { %v324_v30 = vsel %vm206_vm5, %v497_v22, 0.0  ;;  %v337_v31 = vsel %vm206_vm5, %v498_v23, 0.0  ;;  %v350_v32 = vsel %vm206_vm5, %v499_v24, 0.0  ;;  %v266_v33 = vadd.f32 %v265_v25, %v255_v13 }
  0x2f   : > { %v279_v34 = vadd.f32 %v278_v26, %v268_v14  ;;  %v292_v35 = vadd.f32 %v291_v27, %v281_v17  ;;  %v305_v36 = vadd.f32 %v304_v28, %v294_v20  ;;  %v312_v37 = vrot.slane %v311_v29, 4 }
  0x30   : > { %v325_v38 = vrot.slane %v324_v30, 4  ;;  %v338_v39 = vrot.slane %v337_v31, 4  ;;  %v351_v40 = vrot.slane %v350_v32, 4  ;;  %267 = vst [vmem:[%s595_s20 + $0x4] sm:$0x1] %v266_v33  ;;  %vm360_vm2 = vcmp.eq.s32.totalorder %v604_v10, 12 }
  0x31   : > { %280 = vst [vmem:[%s595_s20 + $0x5] sm:$0x1] %v279_v34  ;;  %293 = vst [vmem:[%s595_s20 + $0x6] sm:$0x1] %v292_v35  ;;  %v313_v41 = vadd.f32 %v312_v37, %v311_v29  ;;  %vm373_vm3 = vcmp.eq.s32.totalorder %v604_v10, 13  ;;  %vm386_vm4 = vcmp.eq.s32.totalorder %v604_v10, 14 }
  0x32   : > { %306 = vst [vmem:[%s595_s20 + $0x7] sm:$0x1] %v305_v36  ;;  %v326_v42 = vadd.f32 %v325_v38, %v324_v30  ;;  %v339_v43 = vadd.f32 %v338_v39, %v337_v31  ;;  %v352_v44 = vadd.f32 %v351_v40, %v350_v32  ;;  %vm399_vm6 = vcmp.eq.s32.totalorder %v604_v10, 15  ;;  %v307_v10 = vld [vmem:[%s595_s20 + $0x8] sm:$0x1] }
  0x33   : > { %v314_v45 = vrot.slane %v313_v41, 2  ;;  %v500_v49 = vsel %vm360_vm2, 1.0, %v555_v4  ;;  %v501_v50 = vsel %vm373_vm3, 1.0, %v555_v4  ;;  %v502_v51 = vsel %vm386_vm4, 1.0, %v555_v4  ;;  %v359_v31 = vld [vmem:[%s595_s20 + $0xc] sm:$0x1] }
  0x34   : > { %v327_v46 = vrot.slane %v326_v42, 2  ;;  %v340_v47 = vrot.slane %v339_v43, 2  ;;  %v353_v48 = vrot.slane %v352_v44, 2  ;;  %v503_v52 = vsel %vm399_vm6, 1.0, %v555_v4  ;;  %v333_v4 = vld [vmem:[%s595_s20 + $0xa] sm:$0x1] }
  0x35   : > { %v315_v53 = vadd.f32 %v314_v45, %v313_v41  ;;  %v363_v57 = vsel %vm206_vm5, %v500_v49, 0.0  ;;  %v376_v58 = vsel %vm206_vm5, %v501_v50, 0.0  ;;  %v389_v59 = vsel %vm206_vm5, %v502_v51, 0.0  ;;  %v372_v32 = vld [vmem:[%s595_s20 + $0xd] sm:$0x1] }
  0x36   : > { %v328_v54 = vadd.f32 %v327_v46, %v326_v42  ;;  %v341_v55 = vadd.f32 %v340_v47, %v339_v43  ;;  %v354_v56 = vadd.f32 %v353_v48, %v352_v44  ;;  %v402_v60 = vsel %vm206_vm5, %v503_v52, 0.0  ;;  %v385_v37 = vld [vmem:[%s595_s20 + $0xe] sm:$0x1]  ;;  %v398_v38 = vld [vmem:[%s595_s20 + $0xf] sm:$0x1] }
  0x37   : > { %v316_v61 = vrot.slane %v315_v53, 1  ;;  %v364_v3 = vrot.slane %v363_v57, 4  ;;  %v377_v5 = vrot.slane %v376_v58, 4  ;;  %v390_v13 = vrot.slane %v389_v59, 4 }
  0x38   : > { %v329_v63 = vrot.slane %v328_v54, 1  ;;  %v342_v0 = vrot.slane %v341_v55, 1  ;;  %v355_v1 = vrot.slane %v354_v56, 1  ;;  %v403_v14 = vrot.slane %v402_v60, 4 }
  0x39   : > { %v317_v6 = vadd.f32 %v316_v61, %v315_v53  ;;  %v365_v11 = vadd.f32 %v364_v3, %v363_v57  ;;  %v378_v12 = vadd.f32 %v377_v5, %v376_v58  ;;  %v391_v21 = vadd.f32 %v390_v13, %v389_v59 }
  0x3a   : > { %v330_v7 = vadd.f32 %v329_v63, %v328_v54  ;;  %v343_v8 = vadd.f32 %v342_v0, %v341_v55  ;;  %v356_v9 = vadd.f32 %v355_v1, %v354_v56  ;;  %v404_v22 = vadd.f32 %v403_v14, %v402_v60 }
  0x3b   : > { %v318_v15 = vadd.f32 %v317_v6, %v307_v10  ;;  %v366_v19 = vrot.slane %v365_v11, 2  ;;  %v379_v20 = vrot.slane %v378_v12, 2  ;;  %v392_v25 = vrot.slane %v391_v21, 2 }
  0x3c   : > { %v331_v16 = vadd.f32 %v330_v7, %v320_v62  ;;  %v344_v17 = vadd.f32 %v343_v8, %v333_v4  ;;  %v357_v18 = vadd.f32 %v356_v9, %v346_v2  ;;  %v405_v26 = vrot.slane %v404_v22, 2 }
  0x3d   : > { %319 = vst [vmem:[%s595_s20 + $0x8] sm:$0x1] %v318_v15  ;;  %v367_v23 = vadd.f32 %v366_v19, %v365_v11  ;;  %v380_v24 = vadd.f32 %v379_v20, %v378_v12  ;;  %v393_v29 = vadd.f32 %v392_v25, %v391_v21 }
  0x3e   : > { %332 = vst [vmem:[%s595_s20 + $0x9] sm:$0x1] %v331_v16  ;;  %345 = vst [vmem:[%s595_s20 + $0xa] sm:$0x1] %v344_v17  ;;  %v406_v30 = vadd.f32 %v405_v26, %v404_v22 }
  0x3f   : > { %358 = vst [vmem:[%s595_s20 + $0xb] sm:$0x1] %v357_v18  ;;  %v368_v27 = vrot.slane %v367_v23, 1  ;;  %v381_v28 = vrot.slane %v380_v24, 1  ;;  %v394_v35 = vrot.slane %v393_v29, 1 }
  0x40   : > { %v407_v36 = vrot.slane %v406_v30, 1 }
  0x41   : > { %v369_v33 = vadd.f32 %v368_v27, %v367_v23  ;;  %v382_v34 = vadd.f32 %v381_v28, %v380_v24  ;;  %v395_v41 = vadd.f32 %v394_v35, %v393_v29 }
  0x42   : > { %v408_v42 = vadd.f32 %v407_v36, %v406_v30 }
  0x43   : > { %v370_v39 = vadd.f32 %v369_v33, %v359_v31  ;;  %v383_v40 = vadd.f32 %v382_v34, %v372_v32  ;;  %v396_v43 = vadd.f32 %v395_v41, %v385_v37 }
  0x44   : > { %v409_v44 = vadd.f32 %v408_v42, %v398_v38 }
  0x45   : > { %371 = vst [vmem:[%s595_s20 + $0xc] sm:$0x1] %v370_v39  ;;  %384 = vst [vmem:[%s595_s20 + $0xd] sm:$0x1] %v383_v40 }
  0x46   : > { %397 = vst [vmem:[%s595_s20 + $0xe] sm:$0x1] %v396_v43  ;;  %410 = vst [vmem:[%s595_s20 + $0xf] sm:$0x1] %v409_v44 }
  0x47 PF: > { %s13_s13 = sadd.s32 1, %s553_s13   ;;  %s698_s11 = smov %s549_s12 }
  0x48   : > { %p10_p6 = scmp.ge.s32.totalorder %s13_s13, 4   ;;  %s699_s12 = smov %s701_s0 }
  0x4a   :  { %12 = sbr.rel (!%p10_p6) target bundleno = 2 (0x2), region = 62 }

// kernel: _lambda_.16
= control target key start
LH: loop header
LB: loop body
LE: loop exit
PB: predicated region body
PF: predicated region fallthrough
CT: control target
= control target key end

     0   :  { %s574_s11 = smov 0   ;;  %s576_s12 = smov 0   ;;  %s695_s0 = inlined_call_operand.<no memory space> [shape: s32[1], index: 0, kind: input, shape index: {}]   ;;  %s696_s1 = inlined_call_operand.vmem [shape: f32[4,128], index: 1, kind: input, shape index: {}]   ;;  %s697_s2 = inlined_call_operand.vmem [shape: f32[32,128], index: 2, kind: output, shape index: {}]  }
   0x1   :  { %7 = sst [smem:[#allocation2]] %s695_s0  ;;  %s578_s13 = smov 0  }
   0x2 LB: > { %s25_s0 = sadd.s32 1, %s549_s12  ;;  %p480_p0 = scmp.ge.s32.totalorder %s553_s13, 1  ;;  %s553_s13 = sphi %s578_s13, %s13_s13   ;;  %s549_s12 = sphi %s576_s12, %s699_s12   ;;  %s545_s11 = sphi %s574_s11, %s698_s11  }
   0x3   : > { %p27_p1 = scmp.ge.s32.totalorder %s25_s0, 2  ;;  %p136_p2 = scmp.lt.s32.totalorder %s553_s13, 3 }
   0x5   : > { %s701_s0 = smov (%p27_p1, %s25_s0), 0  ;;  %p137_p3 = pnand %p480_p0, %p136_p2 }
   0x6   : > { %s485_s14 = sshll.u32 (!%p137_p3), %s545_s11, 1  ;;  %p161_p4 = scmp.lt.s32.totalorder (!%p137_p3), %s545_s11, 0  ;;  %v186_v0 = vlaneseq (!%p137_p3)  ;;  %v555_v4 = vmov (!%p137_p3), 0.0   ;;  %vm206_vm5 = vcmask (!%p137_p3), 1043456  }
   0x7   : > { %140 = sbr.rel (%p137_p3) target bundleno = 71 (0x47), region = 28  ;;  %p171_p5 = scmp.lt.s32.totalorder (!%p137_p3), %s485_s14, 3 }
   0x8   : > { %s487_s15 = sshll.u32 (!%p137_p3), %s545_s11, 2  ;;  %v187_v1 = vshrl.u32 (!%p137_p3), %v186_v0, 7  ;;  %s193_s17 = sld [smem:[#allocation2]] (!%p137_p3) }
   0x9   : > { %v188_v2 = vstv (!%p137_p3), %s487_s15 }
   0xa   : > { %v189_v3 = vadd.s32 (!%p137_p3), %v188_v2, %v187_v1 }
   0xc   : > { %vm190_vm0 = vcmp.lt.s32.totalorder (!%p137_p3), %v189_v3, 4 }
   0xe   : > { %s703_s11 = smov (!%p161_p4, %s545_s11), 0  ;;  %s705_s14 = smov (!%p171_p5, %s485_s14), 3 }
   0xf   : > { %s707_s11 = smov (!%p161_p4, %s703_s11), 0  ;;  %s486_s16 = sshll.u32 %s705_s14, 3 }
  0x10   : > { %s595_s20 = scalar_lea.vmem %s697_s2, %s486_s16  ;;  %s484_s21 = sshll.u32 %s707_s11, 2 }
  0x11   : > { %180 = vst [vmem:[%s595_s20] sm:$0xff] %v555_v4  ;;  %s166_s24 = scalar_lea.vmem %s696_s1, %s484_s21  ;;  %181 = vst [vmem:[%s595_s20 + $0x8] sm:$0xff] %v555_v4  ;;  %s194_s25 = sshra.s32 %s193_s17, 12 }
  0x12   : > { %v182_v5 = vld [vmem:[%s166_s24] sm:$0xf]  ;;  %v196_v9 = vstv %s194_s25 }
  0x13   : > { %vm191_vm1 = vcmp.ge.s32.totalorder %v182_v5, 0  ;;  %v195_v6 = vshra.s32 %v182_v5, 12  ;;  %v199_v7 = vshra.s32 %v182_v5, 8 }
  0x14   : > { %vm192_vm2 = vmand %vm190_vm0, %vm191_vm1 }
  0x15   : > { %v200_v8 = vand.u32 15, %v199_v7  ;;  %vm197_vm3 = vcmp.eq.s32.totalorder %v195_v6, %v196_v9 }
  0x16   : > { %vm198_vm4 = vmand %vm192_vm2, %vm197_vm3 }
  0x17   : > { %v604_v10 = vsel %vm198_vm4, %v200_v8, 4294967295 }
  0x18   : > { %vm203_vm6 = vcmp.eq.s32.totalorder %v604_v10, 0  ;;  %vm217_vm7 = vcmp.eq.s32.totalorder %v604_v10, 1  ;;  %vm230_vm8 = vcmp.eq.s32.totalorder %v604_v10, 2  ;;  %vm243_vm9 = vcmp.eq.s32.totalorder %v604_v10, 3  ;;  %v202_v47 = vld [vmem:[%s595_s20] sm:$0x1] }
  0x19   : > { %v488_v11 = vsel %vm203_vm6, 1.0, %v555_v4  ;;  %v489_v12 = vsel %vm217_vm7, 1.0, %v555_v4  ;;  %v490_v13 = vsel %vm230_vm8, 1.0, %v555_v4  ;;  %v491_v14 = vsel %vm243_vm9, 1.0, %v555_v4  ;;  %v216_v52 = vld [vmem:[%s595_s20 + $0x1] sm:$0x1] }
  0x1a   : > { %v207_v15 = vsel %vm206_vm5, %v488_v11, 0.0  ;;  %v220_v16 = vsel %vm206_vm5, %v489_v12, 0.0  ;;  %v233_v17 = vsel %vm206_vm5, %v490_v13, 0.0  ;;  %v246_v18 = vsel %vm206_vm5, %v491_v14, 0.0  ;;  %v229_v53 = vld [vmem:[%s595_s20 + $0x2] sm:$0x1] }
  0x1b   : > { %v208_v19 = vrot.slane %v207_v15, 4  ;;  %v221_v20 = vrot.slane %v220_v16, 4  ;;  %v234_v21 = vrot.slane %v233_v17, 4  ;;  %v247_v22 = vrot.slane %v246_v18, 4  ;;  %v242_v54 = vld [vmem:[%s595_s20 + $0x3] sm:$0x1] }
  0x1c   : > { %vm256_vm10 = vcmp.eq.s32.totalorder %v604_v10, 4  ;;  %vm269_vm11 = vcmp.eq.s32.totalorder %v604_v10, 5  ;;  %vm282_vm12 = vcmp.eq.s32.totalorder %v604_v10, 6  ;;  %vm295_vm13 = vcmp.eq.s32.totalorder %v604_v10, 7  ;;  %v255_v13 = vld [vmem:[%s595_s20 + $0x4] sm:$0x1] }
  0x1d   : > { %v209_v23 = vadd.f32 %v208_v19, %v207_v15  ;;  %v222_v24 = vadd.f32 %v221_v20, %v220_v16  ;;  %v235_v25 = vadd.f32 %v234_v21, %v233_v17  ;;  %v248_v26 = vadd.f32 %v247_v22, %v246_v18  ;;  %v268_v14 = vld [vmem:[%s595_s20 + $0x5] sm:$0x1]  ;;  %v281_v17 = vld [vmem:[%s595_s20 + $0x6] sm:$0x1]  ;;  %v294_v20 = vld [vmem:[%s595_s20 + $0x7] sm:$0x1] }
  0x1e   : > { %v492_v27 = vsel %vm256_vm10, 1.0, %v555_v4  ;;  %v493_v28 = vsel %vm269_vm11, 1.0, %v555_v4  ;;  %v494_v29 = vsel %vm282_vm12, 1.0, %v555_v4  ;;  %v495_v30 = vsel %vm295_vm13, 1.0, %v555_v4 }
  0x1f   : > { %v210_v31 = vrot.slane %v209_v23, 2  ;;  %v223_v32 = vrot.slane %v222_v24, 2  ;;  %v236_v33 = vrot.slane %v235_v25, 2  ;;  %v249_v34 = vrot.slane %v248_v26, 2 }
  0x20   : > { %v259_v35 = vsel %vm206_vm5, %v492_v27, 0.0  ;;  %v272_v36 = vsel %vm206_vm5, %v493_v28, 0.0  ;;  %v285_v37 = vsel %vm206_vm5, %v494_v29, 0.0  ;;  %v298_v38 = vsel %vm206_vm5, %v495_v30, 0.0 }
  0x21   : > { %v211_v39 = vadd.f32 %v210_v31, %v209_v23  ;;  %v224_v40 = vadd.f32 %v223_v32, %v222_v24  ;;  %v237_v41 = vadd.f32 %v236_v33, %v235_v25  ;;  %v250_v42 = vadd.f32 %v249_v34, %v248_v26 }
  0x22   : > { %v260_v43 = vrot.slane %v259_v35, 4  ;;  %v273_v44 = vrot.slane %v272_v36, 4  ;;  %v286_v45 = vrot.slane %v285_v37, 4  ;;  %v299_v46 = vrot.slane %v298_v38, 4 }
  0x23   : > { %v212_v48 = vrot.slane %v211_v39, 1  ;;  %v225_v49 = vrot.slane %v224_v40, 1  ;;  %v238_v50 = vrot.slane %v237_v41, 1  ;;  %v251_v51 = vrot.slane %v250_v42, 1 }
  0x24   : > { %v261_v55 = vadd.f32 %v260_v43, %v259_v35  ;;  %v274_v56 = vadd.f32 %v273_v44, %v272_v36  ;;  %v287_v57 = vadd.f32 %v286_v45, %v285_v37  ;;  %v300_v58 = vadd.f32 %v299_v46, %v298_v38 }
  0x25   : > { %v213_v59 = vadd.f32 %v212_v48, %v211_v39  ;;  %v226_v60 = vadd.f32 %v225_v49, %v224_v40  ;;  %v239_v61 = vadd.f32 %v238_v50, %v237_v41  ;;  %v252_v62 = vadd.f32 %v251_v51, %v250_v42 }
  0x26   : > { %v262_v63 = vrot.slane %v261_v55, 2  ;;  %v275_v0 = vrot.slane %v274_v56, 2  ;;  %v288_v1 = vrot.slane %v287_v57, 2  ;;  %v301_v2 = vrot.slane %v300_v58, 2 }
  0x27   : > { %v214_v3 = vadd.f32 %v213_v59, %v202_v47  ;;  %v227_v5 = vadd.f32 %v226_v60, %v216_v52  ;;  %v240_v6 = vadd.f32 %v239_v61, %v229_v53  ;;  %v253_v7 = vadd.f32 %v252_v62, %v242_v54  ;;  %v320_v62 = vld [vmem:[%s595_s20 + $0x9] sm:$0x1] }
  0x28   : > { %v263_v8 = vadd.f32 %v262_v63, %v261_v55  ;;  %v276_v9 = vadd.f32 %v275_v0, %v274_v56  ;;  %v289_v11 = vadd.f32 %v288_v1, %v287_v57  ;;  %v302_v12 = vadd.f32 %v301_v2, %v300_v58  ;;  %v346_v2 = vld [vmem:[%s595_s20 + $0xb] sm:$0x1] }
  0x29   : > { %215 = vst [vmem:[%s595_s20] sm:$0x1] %v214_v3  ;;  %228 = vst [vmem:[%s595_s20 + $0x1] sm:$0x1] %v227_v5  ;;  %vm308_vm14 = vcmp.eq.s32.totalorder %v604_v10, 8  ;;  %vm321_vm15 = vcmp.eq.s32.totalorder %v604_v10, 9  ;;  %vm334_vm0 = vcmp.eq.s32.totalorder %v604_v10, 10 }
  0x2a   : > { %241 = vst [vmem:[%s595_s20 + $0x2] sm:$0x1] %v240_v6  ;;  %254 = vst [vmem:[%s595_s20 + $0x3] sm:$0x1] %v253_v7  ;;  %vm347_vm1 = vcmp.eq.s32.totalorder %v604_v10, 11  ;;  %v264_v15 = vrot.slane %v263_v8, 1 }
  0x2b   : > { %v277_v16 = vrot.slane %v276_v9, 1  ;;  %v290_v18 = vrot.slane %v289_v11, 1  ;;  %v303_v19 = vrot.slane %v302_v12, 1  ;;  %v496_v21 = vsel %vm308_vm14, 1.0, %v555_v4 }
  0x2c   : > { %v497_v22 = vsel %vm321_vm15, 1.0, %v555_v4  ;;  %v498_v23 = vsel %vm334_vm0, 1.0, %v555_v4  ;;  %v499_v24 = vsel %vm347_vm1, 1.0, %v555_v4  ;;  %v265_v25 = vadd.f32 %v264_v15, %v263_v8 }
  0x2d   : > { %v278_v26 = vadd.f32 %v277_v16, %v276_v9  ;;  %v291_v27 = vadd.f32 %v290_v18, %v289_v11  ;;  %v304_v28 = vadd.f32 %v303_v19, %v302_v12  ;;  %v311_v29 = vsel %vm206_vm5, %v496_v21, 0.0 }
  0x2e   : > { %v324_v30 = vsel %vm206_vm5, %v497_v22, 0.0  ;;  %v337_v31 = vsel %vm206_vm5, %v498_v23, 0.0  ;;  %v350_v32 = vsel %vm206_vm5, %v499_v24, 0.0  ;;  %v266_v33 = vadd.f32 %v265_v25, %v255_v13 }
  0x2f   : > { %v279_v34 = vadd.f32 %v278_v26, %v268_v14  ;;  %v292_v35 = vadd.f32 %v291_v27, %v281_v17  ;;  %v305_v36 = vadd.f32 %v304_v28, %v294_v20  ;;  %v312_v37 = vrot.slane %v311_v29, 4 }
  0x30   : > { %v325_v38 = vrot.slane %v324_v30, 4  ;;  %v338_v39 = vrot.slane %v337_v31, 4  ;;  %v351_v40 = vrot.slane %v350_v32, 4  ;;  %267 = vst [vmem:[%s595_s20 + $0x4] sm:$0x1] %v266_v33  ;;  %vm360_vm2 = vcmp.eq.s32.totalorder %v604_v10, 12 }
  0x31   : > { %280 = vst [vmem:[%s595_s20 + $0x5] sm:$0x1] %v279_v34  ;;  %293 = vst [vmem:[%s595_s20 + $0x6] sm:$0x1] %v292_v35  ;;  %v313_v41 = vadd.f32 %v312_v37, %v311_v29  ;;  %vm373_vm3 = vcmp.eq.s32.totalorder %v604_v10, 13  ;;  %vm386_vm4 = vcmp.eq.s32.totalorder %v604_v10, 14 }
  0x32   : > { %306 = vst [vmem:[%s595_s20 + $0x7] sm:$0x1] %v305_v36  ;;  %v326_v42 = vadd.f32 %v325_v38, %v324_v30  ;;  %v339_v43 = vadd.f32 %v338_v39, %v337_v31  ;;  %v352_v44 = vadd.f32 %v351_v40, %v350_v32  ;;  %vm399_vm6 = vcmp.eq.s32.totalorder %v604_v10, 15  ;;  %v307_v10 = vld [vmem:[%s595_s20 + $0x8] sm:$0x1] }
  0x33   : > { %v314_v45 = vrot.slane %v313_v41, 2  ;;  %v500_v49 = vsel %vm360_vm2, 1.0, %v555_v4  ;;  %v501_v50 = vsel %vm373_vm3, 1.0, %v555_v4  ;;  %v502_v51 = vsel %vm386_vm4, 1.0, %v555_v4  ;;  %v359_v31 = vld [vmem:[%s595_s20 + $0xc] sm:$0x1] }
  0x34   : > { %v327_v46 = vrot.slane %v326_v42, 2  ;;  %v340_v47 = vrot.slane %v339_v43, 2  ;;  %v353_v48 = vrot.slane %v352_v44, 2  ;;  %v503_v52 = vsel %vm399_vm6, 1.0, %v555_v4  ;;  %v333_v4 = vld [vmem:[%s595_s20 + $0xa] sm:$0x1] }
  0x35   : > { %v315_v53 = vadd.f32 %v314_v45, %v313_v41  ;;  %v363_v57 = vsel %vm206_vm5, %v500_v49, 0.0  ;;  %v376_v58 = vsel %vm206_vm5, %v501_v50, 0.0  ;;  %v389_v59 = vsel %vm206_vm5, %v502_v51, 0.0  ;;  %v372_v32 = vld [vmem:[%s595_s20 + $0xd] sm:$0x1] }
  0x36   : > { %v328_v54 = vadd.f32 %v327_v46, %v326_v42  ;;  %v341_v55 = vadd.f32 %v340_v47, %v339_v43  ;;  %v354_v56 = vadd.f32 %v353_v48, %v352_v44  ;;  %v402_v60 = vsel %vm206_vm5, %v503_v52, 0.0  ;;  %v385_v37 = vld [vmem:[%s595_s20 + $0xe] sm:$0x1]  ;;  %v398_v38 = vld [vmem:[%s595_s20 + $0xf] sm:$0x1] }
  0x37   : > { %v316_v61 = vrot.slane %v315_v53, 1  ;;  %v364_v3 = vrot.slane %v363_v57, 4  ;;  %v377_v5 = vrot.slane %v376_v58, 4  ;;  %v390_v13 = vrot.slane %v389_v59, 4 }
  0x38   : > { %v329_v63 = vrot.slane %v328_v54, 1  ;;  %v342_v0 = vrot.slane %v341_v55, 1  ;;  %v355_v1 = vrot.slane %v354_v56, 1  ;;  %v403_v14 = vrot.slane %v402_v60, 4 }
  0x39   : > { %v317_v6 = vadd.f32 %v316_v61, %v315_v53  ;;  %v365_v11 = vadd.f32 %v364_v3, %v363_v57  ;;  %v378_v12 = vadd.f32 %v377_v5, %v376_v58  ;;  %v391_v21 = vadd.f32 %v390_v13, %v389_v59 }
  0x3a   : > { %v330_v7 = vadd.f32 %v329_v63, %v328_v54  ;;  %v343_v8 = vadd.f32 %v342_v0, %v341_v55  ;;  %v356_v9 = vadd.f32 %v355_v1, %v354_v56  ;;  %v404_v22 = vadd.f32 %v403_v14, %v402_v60 }
  0x3b   : > { %v318_v15 = vadd.f32 %v317_v6, %v307_v10  ;;  %v366_v19 = vrot.slane %v365_v11, 2  ;;  %v379_v20 = vrot.slane %v378_v12, 2  ;;  %v392_v25 = vrot.slane %v391_v21, 2 }
  0x3c   : > { %v331_v16 = vadd.f32 %v330_v7, %v320_v62  ;;  %v344_v17 = vadd.f32 %v343_v8, %v333_v4  ;;  %v357_v18 = vadd.f32 %v356_v9, %v346_v2  ;;  %v405_v26 = vrot.slane %v404_v22, 2 }
  0x3d   : > { %319 = vst [vmem:[%s595_s20 + $0x8] sm:$0x1] %v318_v15  ;;  %v367_v23 = vadd.f32 %v366_v19, %v365_v11  ;;  %v380_v24 = vadd.f32 %v379_v20, %v378_v12  ;;  %v393_v29 = vadd.f32 %v392_v25, %v391_v21 }
  0x3e   : > { %332 = vst [vmem:[%s595_s20 + $0x9] sm:$0x1] %v331_v16  ;;  %345 = vst [vmem:[%s595_s20 + $0xa] sm:$0x1] %v344_v17  ;;  %v406_v30 = vadd.f32 %v405_v26, %v404_v22 }
  0x3f   : > { %358 = vst [vmem:[%s595_s20 + $0xb] sm:$0x1] %v357_v18  ;;  %v368_v27 = vrot.slane %v367_v23, 1  ;;  %v381_v28 = vrot.slane %v380_v24, 1  ;;  %v394_v35 = vrot.slane %v393_v29, 1 }
  0x40   : > { %v407_v36 = vrot.slane %v406_v30, 1 }
  0x41   : > { %v369_v33 = vadd.f32 %v368_v27, %v367_v23  ;;  %v382_v34 = vadd.f32 %v381_v28, %v380_v24  ;;  %v395_v41 = vadd.f32 %v394_v35, %v393_v29 }
  0x42   : > { %v408_v42 = vadd.f32 %v407_v36, %v406_v30 }
  0x43   : > { %v370_v39 = vadd.f32 %v369_v33, %v359_v31  ;;  %v383_v40 = vadd.f32 %v382_v34, %v372_v32  ;;  %v396_v43 = vadd.f32 %v395_v41, %v385_v37 }
  0x44   : > { %v409_v44 = vadd.f32 %v408_v42, %v398_v38 }
  0x45   : > { %371 = vst [vmem:[%s595_s20 + $0xc] sm:$0x1] %v370_v39  ;;  %384 = vst [vmem:[%s595_s20 + $0xd] sm:$0x1] %v383_v40 }
  0x46   : > { %397 = vst [vmem:[%s595_s20 + $0xe] sm:$0x1] %v396_v43  ;;  %410 = vst [vmem:[%s595_s20 + $0xf] sm:$0x1] %v409_v44 }
  0x47 PF: > { %s13_s13 = sadd.s32 1, %s553_s13   ;;  %s698_s11 = smov %s549_s12 }
  0x48   : > { %p10_p6 = scmp.ge.s32.totalorder %s13_s13, 4   ;;  %s699_s12 = smov %s701_s0 }
  0x4a   :  { %12 = sbr.rel (!%p10_p6) target bundleno = 2 (0x2), region = 62 }

// kernel: _lambda_.18
= control target key start
LH: loop header
LB: loop body
LE: loop exit
PB: predicated region body
PF: predicated region fallthrough
CT: control target
= control target key end

     0   :  { %s573_s11 = smov 0   ;;  %s575_s12 = smov 0   ;;  %s694_s0 = inlined_call_operand.<no memory space> [shape: s32[1], index: 0, kind: input, shape index: {}]   ;;  %s695_s1 = inlined_call_operand.vmem [shape: f32[4,128], index: 1, kind: input, shape index: {}]   ;;  %s696_s2 = inlined_call_operand.vmem [shape: f32[32,128], index: 2, kind: output, shape index: {}]  }
   0x1   :  { %7 = sst [smem:[#allocation2]] %s694_s0  ;;  %s577_s13 = smov 0  }
   0x2 LB: > { %s25_s0 = sadd.s32 1, %s548_s12  ;;  %p479_p0 = scmp.ge.s32.totalorder %s552_s13, 1  ;;  %s552_s13 = sphi %s577_s13, %s13_s13   ;;  %s548_s12 = sphi %s575_s12, %s698_s12   ;;  %s544_s11 = sphi %s573_s11, %s697_s11  }
   0x3   : > { %p27_p1 = scmp.ge.s32.totalorder %s25_s0, 2  ;;  %p136_p2 = scmp.lt.s32.totalorder %s552_s13, 3 }
   0x5   : > { %s700_s0 = smov (%p27_p1, %s25_s0), 0  ;;  %p137_p3 = pnand %p479_p0, %p136_p2 }
   0x6   : > { %s484_s14 = sshll.u32 (!%p137_p3), %s544_s11, 1  ;;  %p161_p4 = scmp.lt.s32.totalorder (!%p137_p3), %s544_s11, 0  ;;  %v186_v0 = vlaneseq (!%p137_p3)  ;;  %v554_v4 = vmov (!%p137_p3), 0.0   ;;  %vm205_vm5 = vcmask (!%p137_p3), 1043456  }
   0x7   : > { %140 = sbr.rel (%p137_p3) target bundleno = 71 (0x47), region = 28  ;;  %p171_p5 = scmp.lt.s32.totalorder (!%p137_p3), %s484_s14, 3 }
   0x8   : > { %s486_s15 = sshll.u32 (!%p137_p3), %s544_s11, 2  ;;  %v187_v1 = vshrl.u32 (!%p137_p3), %v186_v0, 7  ;;  %s193_s17 = sld [smem:[#allocation2]] (!%p137_p3) }
   0x9   : > { %v188_v2 = vstv (!%p137_p3), %s486_s15 }
   0xa   : > { %v189_v3 = vadd.s32 (!%p137_p3), %v188_v2, %v187_v1 }
   0xc   : > { %vm190_vm0 = vcmp.lt.s32.totalorder (!%p137_p3), %v189_v3, 4 }
   0xe   : > { %s702_s11 = smov (!%p161_p4, %s544_s11), 0  ;;  %s704_s14 = smov (!%p171_p5, %s484_s14), 3 }
   0xf   : > { %s706_s11 = smov (!%p161_p4, %s702_s11), 0  ;;  %s485_s16 = sshll.u32 %s704_s14, 3 }
  0x10   : > { %s594_s20 = scalar_lea.vmem %s696_s2, %s485_s16  ;;  %s483_s21 = sshll.u32 %s706_s11, 2 }
  0x11   : > { %180 = vst [vmem:[%s594_s20] sm:$0xff] %v554_v4  ;;  %s166_s24 = scalar_lea.vmem %s695_s1, %s483_s21  ;;  %181 = vst [vmem:[%s594_s20 + $0x8] sm:$0xff] %v554_v4  ;;  %s194_s25 = sshra.s32 %s193_s17, 4 }
  0x12   : > { %v182_v5 = vld [vmem:[%s166_s24] sm:$0xf]  ;;  %v196_v8 = vstv %s194_s25 }
  0x13   : > { %vm191_vm1 = vcmp.ge.s32.totalorder %v182_v5, 0  ;;  %v195_v6 = vshra.s32 %v182_v5, 4  ;;  %v199_v7 = vand.u32 15, %v182_v5 }
  0x14   : > { %vm192_vm2 = vmand %vm190_vm0, %vm191_vm1 }
  0x15   : > { %vm197_vm3 = vcmp.eq.s32.totalorder %v195_v6, %v196_v8 }
  0x16   : > { %vm198_vm4 = vmand %vm192_vm2, %vm197_vm3 }
  0x17   : > { %v603_v9 = vsel %vm198_vm4, %v199_v7, 4294967295 }
  0x18   : > { %vm202_vm6 = vcmp.eq.s32.totalorder %v603_v9, 0  ;;  %vm216_vm7 = vcmp.eq.s32.totalorder %v603_v9, 1  ;;  %vm229_vm8 = vcmp.eq.s32.totalorder %v603_v9, 2  ;;  %vm242_vm9 = vcmp.eq.s32.totalorder %v603_v9, 3  ;;  %v201_v46 = vld [vmem:[%s594_s20] sm:$0x1] }
  0x19   : > { %v487_v10 = vsel %vm202_vm6, 1.0, %v554_v4  ;;  %v488_v11 = vsel %vm216_vm7, 1.0, %v554_v4  ;;  %v489_v12 = vsel %vm229_vm8, 1.0, %v554_v4  ;;  %v490_v13 = vsel %vm242_vm9, 1.0, %v554_v4  ;;  %v215_v51 = vld [vmem:[%s594_s20 + $0x1] sm:$0x1] }
  0x1a   : > { %v206_v14 = vsel %vm205_vm5, %v487_v10, 0.0  ;;  %v219_v15 = vsel %vm205_vm5, %v488_v11, 0.0  ;;  %v232_v16 = vsel %vm205_vm5, %v489_v12, 0.0  ;;  %v245_v17 = vsel %vm205_vm5, %v490_v13, 0.0  ;;  %v228_v52 = vld [vmem:[%s594_s20 + $0x2] sm:$0x1] }
  0x1b   : > { %v207_v18 = vrot.slane %v206_v14, 4  ;;  %v220_v19 = vrot.slane %v219_v15, 4  ;;  %v233_v20 = vrot.slane %v232_v16, 4  ;;  %v246_v21 = vrot.slane %v245_v17, 4  ;;  %v241_v53 = vld [vmem:[%s594_s20 + $0x3] sm:$0x1] }
  0x1c   : > { %vm255_vm10 = vcmp.eq.s32.totalorder %v603_v9, 4  ;;  %vm268_vm11 = vcmp.eq.s32.totalorder %v603_v9, 5  ;;  %vm281_vm12 = vcmp.eq.s32.totalorder %v603_v9, 6  ;;  %vm294_vm13 = vcmp.eq.s32.totalorder %v603_v9, 7  ;;  %v254_v12 = vld [vmem:[%s594_s20 + $0x4] sm:$0x1] }
  0x1d   : > { %v208_v22 = vadd.f32 %v207_v18, %v206_v14  ;;  %v221_v23 = vadd.f32 %v220_v19, %v219_v15  ;;  %v234_v24 = vadd.f32 %v233_v20, %v232_v16  ;;  %v247_v25 = vadd.f32 %v246_v21, %v245_v17  ;;  %v267_v13 = vld [vmem:[%s594_s20 + $0x5] sm:$0x1]  ;;  %v280_v16 = vld [vmem:[%s594_s20 + $0x6] sm:$0x1]  ;;  %v293_v19 = vld [vmem:[%s594_s20 + $0x7] sm:$0x1] }
  0x1e   : > { %v491_v26 = vsel %vm255_vm10, 1.0, %v554_v4  ;;  %v492_v27 = vsel %vm268_vm11, 1.0, %v554_v4  ;;  %v493_v28 = vsel %vm281_vm12, 1.0, %v554_v4  ;;  %v494_v29 = vsel %vm294_vm13, 1.0, %v554_v4 }
  0x1f   : > { %v209_v30 = vrot.slane %v208_v22, 2  ;;  %v222_v31 = vrot.slane %v221_v23, 2  ;;  %v235_v32 = vrot.slane %v234_v24, 2  ;;  %v248_v33 = vrot.slane %v247_v25, 2 }
  0x20   : > { %v258_v34 = vsel %vm205_vm5, %v491_v26, 0.0  ;;  %v271_v35 = vsel %vm205_vm5, %v492_v27, 0.0  ;;  %v284_v36 = vsel %vm205_vm5, %v493_v28, 0.0  ;;  %v297_v37 = vsel %vm205_vm5, %v494_v29, 0.0 }
  0x21   : > { %v210_v38 = vadd.f32 %v209_v30, %v208_v22  ;;  %v223_v39 = vadd.f32 %v222_v31, %v221_v23  ;;  %v236_v40 = vadd.f32 %v235_v32, %v234_v24  ;;  %v249_v41 = vadd.f32 %v248_v33, %v247_v25 }
  0x22   : > { %v259_v42 = vrot.slane %v258_v34, 4  ;;  %v272_v43 = vrot.slane %v271_v35, 4  ;;  %v285_v44 = vrot.slane %v284_v36, 4  ;;  %v298_v45 = vrot.slane %v297_v37, 4 }
  0x23   : > { %v211_v47 = vrot.slane %v210_v38, 1  ;;  %v224_v48 = vrot.slane %v223_v39, 1  ;;  %v237_v49 = vrot.slane %v236_v40, 1  ;;  %v250_v50 = vrot.slane %v249_v41, 1 }
  0x24   : > { %v260_v54 = vadd.f32 %v259_v42, %v258_v34  ;;  %v273_v55 = vadd.f32 %v272_v43, %v271_v35  ;;  %v286_v56 = vadd.f32 %v285_v44, %v284_v36  ;;  %v299_v57 = vadd.f32 %v298_v45, %v297_v37 }
  0x25   : > { %v212_v58 = vadd.f32 %v211_v47, %v210_v38  ;;  %v225_v59 = vadd.f32 %v224_v48, %v223_v39  ;;  %v238_v60 = vadd.f32 %v237_v49, %v236_v40  ;;  %v251_v61 = vadd.f32 %v250_v50, %v249_v41 }
  0x26   : > { %v261_v62 = vrot.slane %v260_v54, 2  ;;  %v274_v63 = vrot.slane %v273_v55, 2  ;;  %v287_v0 = vrot.slane %v286_v56, 2  ;;  %v300_v1 = vrot.slane %v299_v57, 2 }
  0x27   : > { %v213_v2 = vadd.f32 %v212_v58, %v201_v46  ;;  %v226_v3 = vadd.f32 %v225_v59, %v215_v51  ;;  %v239_v5 = vadd.f32 %v238_v60, %v228_v52  ;;  %v252_v6 = vadd.f32 %v251_v61, %v241_v53  ;;  %v319_v61 = vld [vmem:[%s594_s20 + $0x9] sm:$0x1] }
  0x28   : > { %v262_v7 = vadd.f32 %v261_v62, %v260_v54  ;;  %v275_v8 = vadd.f32 %v274_v63, %v273_v55  ;;  %v288_v10 = vadd.f32 %v287_v0, %v286_v56  ;;  %v301_v11 = vadd.f32 %v300_v1, %v299_v57  ;;  %v345_v1 = vld [vmem:[%s594_s20 + $0xb] sm:$0x1] }
  0x29   : > { %214 = vst [vmem:[%s594_s20] sm:$0x1] %v213_v2  ;;  %227 = vst [vmem:[%s594_s20 + $0x1] sm:$0x1] %v226_v3  ;;  %vm307_vm14 = vcmp.eq.s32.totalorder %v603_v9, 8  ;;  %vm320_vm15 = vcmp.eq.s32.totalorder %v603_v9, 9  ;;  %vm333_vm0 = vcmp.eq.s32.totalorder %v603_v9, 10 }
  0x2a   : > { %240 = vst [vmem:[%s594_s20 + $0x2] sm:$0x1] %v239_v5  ;;  %253 = vst [vmem:[%s594_s20 + $0x3] sm:$0x1] %v252_v6  ;;  %vm346_vm1 = vcmp.eq.s32.totalorder %v603_v9, 11  ;;  %v263_v14 = vrot.slane %v262_v7, 1 }
  0x2b   : > { %v276_v15 = vrot.slane %v275_v8, 1  ;;  %v289_v17 = vrot.slane %v288_v10, 1  ;;  %v302_v18 = vrot.slane %v301_v11, 1  ;;  %v495_v20 = vsel %vm307_vm14, 1.0, %v554_v4 }
  0x2c   : > { %v496_v21 = vsel %vm320_vm15, 1.0, %v554_v4  ;;  %v497_v22 = vsel %vm333_vm0, 1.0, %v554_v4  ;;  %v498_v23 = vsel %vm346_vm1, 1.0, %v554_v4  ;;  %v264_v24 = vadd.f32 %v263_v14, %v262_v7 }
  0x2d   : > { %v277_v25 = vadd.f32 %v276_v15, %v275_v8  ;;  %v290_v26 = vadd.f32 %v289_v17, %v288_v10  ;;  %v303_v27 = vadd.f32 %v302_v18, %v301_v11  ;;  %v310_v28 = vsel %vm205_vm5, %v495_v20, 0.0 }
  0x2e   : > { %v323_v29 = vsel %vm205_vm5, %v496_v21, 0.0  ;;  %v336_v30 = vsel %vm205_vm5, %v497_v22, 0.0  ;;  %v349_v31 = vsel %vm205_vm5, %v498_v23, 0.0  ;;  %v265_v32 = vadd.f32 %v264_v24, %v254_v12 }
  0x2f   : > { %v278_v33 = vadd.f32 %v277_v25, %v267_v13  ;;  %v291_v34 = vadd.f32 %v290_v26, %v280_v16  ;;  %v304_v35 = vadd.f32 %v303_v27, %v293_v19  ;;  %v311_v36 = vrot.slane %v310_v28, 4 }
  0x30   : > { %v324_v37 = vrot.slane %v323_v29, 4  ;;  %v337_v38 = vrot.slane %v336_v30, 4  ;;  %v350_v39 = vrot.slane %v349_v31, 4  ;;  %266 = vst [vmem:[%s594_s20 + $0x4] sm:$0x1] %v265_v32  ;;  %vm359_vm2 = vcmp.eq.s32.totalorder %v603_v9, 12 }
  0x31   : > { %279 = vst [vmem:[%s594_s20 + $0x5] sm:$0x1] %v278_v33  ;;  %292 = vst [vmem:[%s594_s20 + $0x6] sm:$0x1] %v291_v34  ;;  %v312_v40 = vadd.f32 %v311_v36, %v310_v28  ;;  %vm372_vm3 = vcmp.eq.s32.totalorder %v603_v9, 13  ;;  %vm385_vm4 = vcmp.eq.s32.totalorder %v603_v9, 14 }
  0x32   : > { %305 = vst [vmem:[%s594_s20 + $0x7] sm:$0x1] %v304_v35  ;;  %v325_v41 = vadd.f32 %v324_v37, %v323_v29  ;;  %v338_v42 = vadd.f32 %v337_v38, %v336_v30  ;;  %v351_v43 = vadd.f32 %v350_v39, %v349_v31  ;;  %vm398_vm6 = vcmp.eq.s32.totalorder %v603_v9, 15  ;;  %v306_v9 = vld [vmem:[%s594_s20 + $0x8] sm:$0x1] }
  0x33   : > { %v313_v44 = vrot.slane %v312_v40, 2  ;;  %v499_v48 = vsel %vm359_vm2, 1.0, %v554_v4  ;;  %v500_v49 = vsel %vm372_vm3, 1.0, %v554_v4  ;;  %v501_v50 = vsel %vm385_vm4, 1.0, %v554_v4  ;;  %v358_v30 = vld [vmem:[%s594_s20 + $0xc] sm:$0x1] }
  0x34   : > { %v326_v45 = vrot.slane %v325_v41, 2  ;;  %v339_v46 = vrot.slane %v338_v42, 2  ;;  %v352_v47 = vrot.slane %v351_v43, 2  ;;  %v502_v51 = vsel %vm398_vm6, 1.0, %v554_v4  ;;  %v332_v4 = vld [vmem:[%s594_s20 + $0xa] sm:$0x1] }
  0x35   : > { %v314_v52 = vadd.f32 %v313_v44, %v312_v40  ;;  %v362_v56 = vsel %vm205_vm5, %v499_v48, 0.0  ;;  %v375_v57 = vsel %vm205_vm5, %v500_v49, 0.0  ;;  %v388_v58 = vsel %vm205_vm5, %v501_v50, 0.0  ;;  %v371_v31 = vld [vmem:[%s594_s20 + $0xd] sm:$0x1] }
  0x36   : > { %v327_v53 = vadd.f32 %v326_v45, %v325_v41  ;;  %v340_v54 = vadd.f32 %v339_v46, %v338_v42  ;;  %v353_v55 = vadd.f32 %v352_v47, %v351_v43  ;;  %v401_v59 = vsel %vm205_vm5, %v502_v51, 0.0  ;;  %v384_v36 = vld [vmem:[%s594_s20 + $0xe] sm:$0x1]  ;;  %v397_v37 = vld [vmem:[%s594_s20 + $0xf] sm:$0x1] }
  0x37   : > { %v315_v60 = vrot.slane %v314_v52, 1  ;;  %v363_v2 = vrot.slane %v362_v56, 4  ;;  %v376_v3 = vrot.slane %v375_v57, 4  ;;  %v389_v12 = vrot.slane %v388_v58, 4 }
  0x38   : > { %v328_v62 = vrot.slane %v327_v53, 1  ;;  %v341_v63 = vrot.slane %v340_v54, 1  ;;  %v354_v0 = vrot.slane %v353_v55, 1  ;;  %v402_v13 = vrot.slane %v401_v59, 4 }
  0x39   : > { %v316_v5 = vadd.f32 %v315_v60, %v314_v52  ;;  %v364_v10 = vadd.f32 %v363_v2, %v362_v56  ;;  %v377_v11 = vadd.f32 %v376_v3, %v375_v57  ;;  %v390_v20 = vadd.f32 %v389_v12, %v388_v58 }
  0x3a   : > { %v329_v6 = vadd.f32 %v328_v62, %v327_v53  ;;  %v342_v7 = vadd.f32 %v341_v63, %v340_v54  ;;  %v355_v8 = vadd.f32 %v354_v0, %v353_v55  ;;  %v403_v21 = vadd.f32 %v402_v13, %v401_v59 }
  0x3b   : > { %v317_v14 = vadd.f32 %v316_v5, %v306_v9  ;;  %v365_v18 = vrot.slane %v364_v10, 2  ;;  %v378_v19 = vrot.slane %v377_v11, 2  ;;  %v391_v24 = vrot.slane %v390_v20, 2 }
  0x3c   : > { %v330_v15 = vadd.f32 %v329_v6, %v319_v61  ;;  %v343_v16 = vadd.f32 %v342_v7, %v332_v4  ;;  %v356_v17 = vadd.f32 %v355_v8, %v345_v1  ;;  %v404_v25 = vrot.slane %v403_v21, 2 }
  0x3d   : > { %318 = vst [vmem:[%s594_s20 + $0x8] sm:$0x1] %v317_v14  ;;  %v366_v22 = vadd.f32 %v365_v18, %v364_v10  ;;  %v379_v23 = vadd.f32 %v378_v19, %v377_v11  ;;  %v392_v28 = vadd.f32 %v391_v24, %v390_v20 }
  0x3e   : > { %331 = vst [vmem:[%s594_s20 + $0x9] sm:$0x1] %v330_v15  ;;  %344 = vst [vmem:[%s594_s20 + $0xa] sm:$0x1] %v343_v16  ;;  %v405_v29 = vadd.f32 %v404_v25, %v403_v21 }
  0x3f   : > { %357 = vst [vmem:[%s594_s20 + $0xb] sm:$0x1] %v356_v17  ;;  %v367_v26 = vrot.slane %v366_v22, 1  ;;  %v380_v27 = vrot.slane %v379_v23, 1  ;;  %v393_v34 = vrot.slane %v392_v28, 1 }
  0x40   : > { %v406_v35 = vrot.slane %v405_v29, 1 }
  0x41   : > { %v368_v32 = vadd.f32 %v367_v26, %v366_v22  ;;  %v381_v33 = vadd.f32 %v380_v27, %v379_v23  ;;  %v394_v40 = vadd.f32 %v393_v34, %v392_v28 }
  0x42   : > { %v407_v41 = vadd.f32 %v406_v35, %v405_v29 }
  0x43   : > { %v369_v38 = vadd.f32 %v368_v32, %v358_v30  ;;  %v382_v39 = vadd.f32 %v381_v33, %v371_v31  ;;  %v395_v42 = vadd.f32 %v394_v40, %v384_v36 }
  0x44   : > { %v408_v43 = vadd.f32 %v407_v41, %v397_v37 }
  0x45   : > { %370 = vst [vmem:[%s594_s20 + $0xc] sm:$0x1] %v369_v38  ;;  %383 = vst [vmem:[%s594_s20 + $0xd] sm:$0x1] %v382_v39 }
  0x46   : > { %396 = vst [vmem:[%s594_s20 + $0xe] sm:$0x1] %v395_v42  ;;  %409 = vst [vmem:[%s594_s20 + $0xf] sm:$0x1] %v408_v43 }
  0x47 PF: > { %s13_s13 = sadd.s32 1, %s552_s13   ;;  %s697_s11 = smov %s548_s12 }
  0x48   : > { %p10_p6 = scmp.ge.s32.totalorder %s13_s13, 4   ;;  %s698_s12 = smov %s700_s0 }
  0x4a   :  { %12 = sbr.rel (!%p10_p6) target bundleno = 2 (0x2), region = 62 }

// kernel: _lambda_.19
= control target key start
LH: loop header
LB: loop body
LE: loop exit
PB: predicated region body
PF: predicated region fallthrough
CT: control target
= control target key end

     0   :  { %s431_s14 = smov 0   ;;  %s433_s15 = smov 0   ;;  %s472_s0 = inlined_call_operand.<no memory space> [shape: f32[1], index: 0, kind: input, shape index: {}]   ;;  %s473_s1 = inlined_call_operand.vmem [shape: f32[4,128], index: 1, kind: input, shape index: {}]   ;;  %s474_s2 = inlined_call_operand.vmem [shape: f32[16,128], index: 2, kind: output, shape index: {0}]   ;;  %s475_s3 = inlined_call_operand.vmem [shape: f32[16,128], index: 3, kind: output, shape index: {1}]  }
   0x1   :  { %9 = sst [smem:[#allocation2]] %s472_s0  ;;  %s435_s16 = smov 0  }
   0x2 LB: > { %s27_s0 = sadd.s32 1, %s401_s15  ;;  %p348_p0 = scmp.ge.s32.totalorder %s405_s16, 1  ;;  %s405_s16 = sphi %s435_s16, %s15_s16   ;;  %s401_s15 = sphi %s433_s15, %s477_s15   ;;  %s397_s14 = sphi %s431_s14, %s476_s14  }
   0x3   : > { %p29_p1 = scmp.ge.s32.totalorder %s27_s0, 2  ;;  %p164_p2 = scmp.lt.s32.totalorder %s405_s16, 3 }
   0x5   : > { %s479_s0 = smov (%p29_p1, %s27_s0), 0  ;;  %p165_p3 = pnand %p348_p0, %p164_p2 }
   0x6   : > { %p194_p4 = scmp.lt.s32.totalorder (!%p165_p3), %s397_s14, 0  ;;  %p203_p5 = scmp.lt.s32.totalorder (!%p165_p3), %s397_s14, 1  ;;  %v221_v0 = vlaneseq (!%p165_p3)  ;;  %v407_v4 = vmov (!%p165_p3), 0.0   ;;  %vm231_vm2 = vcmask (!%p165_p3), 1043456  }
   0x7   : > { %168 = sbr.rel (%p165_p3) target bundleno = 39 (0x27), region = 28  ;;  %s217_s17 = sld [smem:[#allocation2]] (!%p165_p3) }
   0x8   : > { %s355_s18 = sshll.u32 (!%p165_p3), %s397_s14, 2  ;;  %v222_v1 = vshrl.u32 (!%p165_p3), %v221_v0, 7 }
   0x9   : > { %v223_v2 = vstv (!%p165_p3), %s355_s18 }
   0xa   : > { %v224_v3 = vadd.s32 (!%p165_p3), %v223_v2, %v222_v1 }
   0xc   : > { %vm225_vm0 = vcmp.lt.s32.totalorder (!%p165_p3), %v224_v3, 4 }
   0xd   : > { %v226_v5 = vstv (!%p165_p3), %s217_s17 }
   0xe   : > { %s195_s19 = scalar_select %p194_p4, %s397_s14, 0 }
   0xf   : > { %s481_s14 = smov (!%p203_p5, %s397_s14), 1 }
  0x10   : > { %s483_s19 = smov (!%p194_p4, %s195_s19), 0  ;;  %s353_s20 = sshll.u32 %s481_s14, 3 }
  0x11   : > { %s352_s21 = sshll.u32 %s483_s19, 2  ;;  %s452_s24 = scalar_lea.vmem %s474_s2, %s353_s20 }
  0x12   : > { %s199_s27 = scalar_lea.vmem %s473_s1, %s352_s21  ;;  %215 = vst [vmem:[%s452_s24] sm:$0xff] %v407_v4  ;;  %s210_s30 = scalar_lea.vmem %s475_s3, %s353_s20 }
  0x13   : > { %v218_v6 = vld [vmem:[%s199_s27] sm:$0xf]  ;;  %216 = vst [vmem:[%s210_s30] sm:$0xff] %v407_v4 }
  0x14   : > { %vm227_vm1 = vcmp.ge.f32.partialorder %v218_v6, %v226_v5 }
  0x15   : > { %vm228_vm3 = vmand %vm225_vm0, %vm227_vm1 }
  0x16   : > { %v230_v7 = vsel %vm228_vm3, %v218_v6, 0.0  ;;  %v242_v8 = vsel %vm228_vm3, 1.0, %v407_v4 }
  0x17   : > { %v232_v9 = vsel %vm231_vm2, %v230_v7, 0.0  ;;  %v243_v10 = vsel %vm231_vm2, %v242_v8, 0.0 }
  0x18   : > { %v233_v11 = vrot.slane %v232_v9, 4  ;;  %v244_v12 = vrot.slane %v243_v10, 4 }
  0x19   : > { %v229_v21 = vld [vmem:[%s452_s24] sm:$0x1] }
  0x1a   : > { %v234_v13 = vadd.f32 %v233_v11, %v232_v9  ;;  %v245_v14 = vadd.f32 %v244_v12, %v243_v10  ;;  %v241_v22 = vld [vmem:[%s210_s30] sm:$0x1] }
  0x1c   : > { %v235_v15 = vrot.slane %v234_v13, 2  ;;  %v246_v16 = vrot.slane %v245_v14, 2 }
  0x1e   : > { %v247_v17 = vadd.f32 %v246_v16, %v245_v14  ;;  %v236_v18 = vadd.f32 %v235_v15, %v234_v13 }
  0x20   : > { %v237_v19 = vrot.slane %v236_v18, 1  ;;  %v248_v20 = vrot.slane %v247_v17, 1 }
  0x22   : > { %v238_v23 = vadd.f32 %v237_v19, %v236_v18  ;;  %v249_v24 = vadd.f32 %v248_v20, %v247_v17 }
  0x24   : > { %v239_v25 = vadd.f32 %v238_v23, %v229_v21  ;;  %v250_v26 = vadd.f32 %v249_v24, %v241_v22 }
  0x26   : > { %240 = vst [vmem:[%s452_s24] sm:$0x1] %v239_v25  ;;  %251 = vst [vmem:[%s210_s30] sm:$0x1] %v250_v26 }
  0x27 PF: > { %s15_s16 = sadd.s32 1, %s405_s16   ;;  %s476_s14 = smov %s401_s15 }
  0x28   : > { %p12_p6 = scmp.ge.s32.totalorder %s15_s16, 4   ;;  %s477_s15 = smov %s479_s0 }
  0x2a   :  { %14 = sbr.rel (!%p12_p6) target bundleno = 2 (0x2), region = 74 }

</bundles_post_ra>
